<compile_context>
chip_gen: v7x
topology: tpu7x:2x2x1
jax: 0.10.0
libtpu: 0.0.40
codegen_flags: <defaults>
</compile_context>

<pallas_src>
import functools

import jax
import jax.numpy as jnp
from jax.experimental import pallas as pl
from jax.experimental.pallas import tpu as pltpu

_TN = 128  # output-channel tile (lane-dense, v5e-friendly, keeps j-extent >= 2)


def _round_up(x, m):
    return (x + m - 1) // m * m


def _pick_tk(K):
    """Pick a K-tile that minimizes padding of K (ties -> larger tile)."""
    cands = (512, 384, 256, 128)
    kps = [_round_up(K, c) for c in cands]
    kp_min = min(kps)
    return cands[kps.index(kp_min)], kp_min


# --------------------------------------------------------------------------
# Pallas kernels
# --------------------------------------------------------------------------
def _matmul_bias_act_kernel(a_ref, b_ref, bias_ref, o_ref, *, relu):
    """out = act(A @ B + bias).  A/B tiles are bf16; accumulation is f32
    directly in the resident output block (same (i, j) block for all k)."""
    k = pl.program_id(2)

    @pl.when(k == 0)
    def _():
        o_ref[...] = jnp.zeros_like(o_ref)

    o_ref[...] += jnp.dot(a_ref[...], b_ref[...],
                          preferred_element_type=jnp.float32)

    @pl.when(k == pl.num_programs(2) - 1)
    def _():
        out = o_ref[...] + bias_ref[...]
        if relu:
            out = jnp.maximum(out, 0.0)
        o_ref[...] = out


def matmul_bias_act(a, w_pad, bias_pad, *, n_true, relu):
    """act(a @ w + b).

    a:        (M, K) activations (any float dtype; cast to bf16 here)
    w_pad:    (Kp, Np) bf16 weight, pre-padded/cast once at init
    bias_pad: (1, Np) f32 bias, pre-padded once at init
    returns   (M, n_true) f32
    """
    M, K = a.shape
    Kp, Np = w_pad.shape
    tk, kp_check = _pick_tk(K)
    assert kp_check == Kp, (K, Kp, kp_check)
    tn = _TN
    tm = 256 if M >= 512 else 128          # bigger M-tile only for large GEMMs
    Mp = _round_up(M, tm)

    # Only the activation side is padded per call (weights are pre-padded).
    a_p = jnp.pad(a.astype(jnp.bfloat16), ((0, Mp - M), (0, Kp - K)))

    grid = (Mp // tm, Np // tn, Kp // tk)
    out = pl.pallas_call(
        functools.partial(_matmul_bias_act_kernel, relu=relu),
        out_shape=jax.ShapeDtypeStruct((Mp, Np), jnp.float32),
        grid_spec=pltpu.PrefetchScalarGridSpec(
            num_scalar_prefetch=0,
            grid=grid,
            in_specs=[
                pl.BlockSpec((tm, tk), lambda i, j, k: (i, k)),
                pl.BlockSpec((tk, tn), lambda i, j, k: (k, j)),
                pl.BlockSpec((1, tn), lambda i, j, k: (0, j)),
            ],
            out_specs=pl.BlockSpec((tm, tn), lambda i, j, k: (i, j)),
        ),
        compiler_params=pltpu.CompilerParams(
            dimension_semantics=("parallel", "parallel", "arbitrary")),
    )(a_p, w_pad, bias_pad)
    return out[:M, :n_true]


def _maxpool3x3s2_kernel(ee_ref, eo_ref, oe_ref, oo_ref, o_ref):
    """3x3 / stride-2 max pool from even/odd row x col phase arrays.

    The window at output (i, j) covers input rows {2i, 2i+1, 2i+2} and cols
    {2j, 2j+1, 2j+2}; in phase space those are offsets {0, +1}, so every one
    of the 9 taps is a contiguous static slice (no strided loads needed).
    """
    _, OH, OW, _ = o_ref.shape
    m = jnp.maximum(ee_ref[0, :OH, :OW, :], ee_ref[0, :OH, 1:OW + 1, :])
    m = jnp.maximum(m, eo_ref[0, :OH, :OW, :])
    m = jnp.maximum(m, oe_ref[0, :OH, :OW, :])
    m = jnp.maximum(m, oe_ref[0, :OH, 1:OW + 1, :])
    m = jnp.maximum(m, oo_ref[0, :OH, :OW, :])
    m = jnp.maximum(m, ee_ref[0, 1:OH + 1, :OW, :])
    m = jnp.maximum(m, ee_ref[0, 1:OH + 1, 1:OW + 1, :])
    m = jnp.maximum(m, eo_ref[0, 1:OH + 1, :OW, :])
    o_ref[0] = m


def max_pool2d_3x3_s2(x):
    """MaxPool2d(kernel_size=3, stride=2, padding=0) on NHWC input."""
    N, H, W, C = x.shape
    OH = (H - 3) // 2 + 1
    OW = (W - 3) // 2 + 1
    # Phase decomposition (glue): 4 strided slices totalling ~1x the data,
    # instead of materializing 9 shifted window copies in HBM.
    ee = jax.lax.slice(x, (0, 0, 0, 0), (N, 2 * OH + 1, 2 * OW + 1, C),
                       (1, 2, 2, 1))                    # (N, OH+1, OW+1, C)
    eo = jax.lax.slice(x, (0, 0, 1, 0), (N, 2 * OH + 1, 2 * OW, C),
                       (1, 2, 2, 1))                    # (N, OH+1, OW,   C)
    oe = jax.lax.slice(x, (0, 1, 0, 0), (N, 2 * OH, 2 * OW + 1, C),
                       (1, 2, 2, 1))                    # (N, OH,   OW+1, C)
    oo = jax.lax.slice(x, (0, 1, 1, 0), (N, 2 * OH, 2 * OW, C),
                       (1, 2, 2, 1))                    # (N, OH,   OW,   C)

    return pl.pallas_call(
        _maxpool3x3s2_kernel,
        out_shape=jax.ShapeDtypeStruct((N, OH, OW, C), x.dtype),
        grid=(N,),
        in_specs=[
            pl.BlockSpec((1, OH + 1, OW + 1, C), lambda n: (n, 0, 0, 0)),
            pl.BlockSpec((1, OH + 1, OW, C), lambda n: (n, 0, 0, 0)),
            pl.BlockSpec((1, OH, OW + 1, C), lambda n: (n, 0, 0, 0)),
            pl.BlockSpec((1, OH, OW, C), lambda n: (n, 0, 0, 0)),
        ],
        out_specs=pl.BlockSpec((1, OH, OW, C), lambda n: (n, 0, 0, 0)),
        compiler_params=pltpu.CompilerParams(
            dimension_semantics=("parallel",)),
    )(ee, eo, oe, oo)


# --------------------------------------------------------------------------
# Conv layer glue (im2col) feeding the GEMM kernel
# --------------------------------------------------------------------------
def conv2d_relu(x, w_pad, bias_pad, *, khw, cout, stride, pad, relu=True):
    """x: (N,H,W,C) NHWC; w_pad: pre-padded bf16 (Kp, Np); cross-correlation
    semantics identical to torch.nn.Conv2d.  The GEMM (hot path) runs in the
    Pallas matmul kernel with fused bias + ReLU."""
    N, H, W, C = x.shape
    KH, KW = khw
    # Cast to bf16 before im2col so the materialized patch matrix is half-size.
    xp = jnp.pad(x.astype(jnp.bfloat16),
                 ((0, 0), (pad, pad), (pad, pad), (0, 0)))
    Hp, Wp = H + 2 * pad, W + 2 * pad
    OH = (Hp - KH) // stride + 1
    OW = (Wp - KW) // stride + 1
    cols = []
    for i in range(KH):
        for j in range(KW):
            cols.append(jax.lax.slice(
                xp, (0, i, j, 0),
                (N, i + stride * (OH - 1) + 1, j + stride * (OW - 1) + 1, C),
                (1, stride, stride, 1)))
    # (N, OH, OW, KH*KW, C) -> (N*OH*OW, KH*KW*C); matches the weight layout.
    patches = jnp.stack(cols, axis=3).reshape(N * OH * OW, KH * KW * C)
    out = matmul_bias_act(patches, w_pad, bias_pad, n_true=cout, relu=relu)
    return out.reshape(N, OH, OW, cout)


# --------------------------------------------------------------------------
# DemoFCN: parameters + forward (features only, matching the nn.Module)
# --------------------------------------------------------------------------
# (KH, KW, Cin, Cout, stride, pad) — the five nn.Conv2d layers of DemoFCN
_CONV_CFG = [
    (11, 11, 3, 64, 4, 2),
    (5, 5, 64, 192, 1, 2),
    (3, 3, 192, 384, 1, 1),
    (3, 3, 384, 256, 1, 1),
    (3, 3, 256, 256, 1, 1),
]


def _prep_conv_params(w, b):
    """One-time weight prep: reshape to GEMM layout, pad to tile multiples,
    cast to bf16 (removes all per-forward weight pads/reshapes)."""
    KH, KW, CI, CO = w.shape
    K = KH * KW * CI
    _, Kp = _pick_tk(K)
    Np = _round_up(CO, _TN)
    w2 = jnp.pad(w.reshape(K, CO).astype(jnp.bfloat16),
                 ((0, Kp - K), (0, Np - CO)))
    b2 = jnp.pad(b.astype(jnp.float32), (0, Np - CO)).reshape(1, Np)
    return {"w": w2, "b": b2}


def init_params(key, in_channels=3):
    assert in_channels == _CONV_CFG[0][2]
    keys = jax.random.split(key, len(_CONV_CFG))
    params = []
    for idx, (kh, kw, ci, co, _, _) in enumerate(_CONV_CFG):
        fan_in = kh * kw * ci
        w = jax.random.normal(keys[idx], (kh, kw, ci, co),
                              jnp.float32) * (2.0 / fan_in) ** 0.5
        b = jnp.zeros((co,), jnp.float32)
        params.append(_prep_conv_params(w, b))
    return params


def demo_fcn_forward(params, x_nchw):
    # NCHW (PyTorch) -> NHWC (TPU kernels)
    x = jnp.transpose(x_nchw, (0, 2, 3, 1)).astype(jnp.float32)
    for idx, layer in enumerate(params):
        kh, kw, _, co, stride, pad = _CONV_CFG[idx]
        x = conv2d_relu(x, layer["w"], layer["b"], khw=(kh, kw), cout=co,
                        stride=stride, pad=pad, relu=True)
        if idx in (0, 1):          # MaxPool2d(3, 2) after the first two convs
            x = max_pool2d_3x3_s2(x)
    # NHWC -> NCHW to match the PyTorch module's output layout
    return jnp.transpose(x, (0, 3, 1, 2))


if __name__ == "__main__":
    key = jax.random.PRNGKey(0)
    pkey, xkey = jax.random.split(key)
    params = init_params(pkey, in_channels=3)

    # NCHW input; 128x128 keeps every layer valid and yields a 7x7 map
    # (31 -> 15 -> 15 -> 7 -> 7 -> 7 spatially), output (2, 256, 7, 7).
    x = jax.random.normal(xkey, (2, 3, 128, 128), jnp.float32)

    fwd = jax.jit(demo_fcn_forward)
    out = jax.block_until_ready(fwd(params, x))

    assert out.shape == (2, 256, 7, 7), out.shape
    assert bool(jnp.all(jnp.isfinite(out)))
    print("KERNEL_OK")
</pallas_src>

<mosaic_0001>
module attributes {stable_mosaic.version = 11 : i64} {
  func.func @_matmul_bias_act_kernel(%arg0: i32, %arg1: i32, %arg2: i32, %arg3: memref<256x384xbf16, #tpu.memory_space<vmem>>, %arg4: memref<384x128xbf16, #tpu.memory_space<vmem>>, %arg5: memref<1x128xf32, #tpu.memory_space<vmem>>, %arg6: memref<256x128xf32, #tpu.memory_space<vmem>>) attributes {dimension_semantics = [#tpu.dimension_semantics<parallel>, #tpu.dimension_semantics<parallel>, #tpu.dimension_semantics<arbitrary>], iteration_bounds = array<i64: 8, 1, 1>, scalar_prefetch = 0 : i64, scratch_operands = 0 : i64, tpu.core_type = #tpu.core_type<tc>, window_params = [{transform_indices = @transform_0, window_bounds = array<i64: 256, 384>}, {transform_indices = @transform_1, window_bounds = array<i64: 384, 128>}, {transform_indices = @transform_2, window_bounds = array<i64: 1, 128>}, {transform_indices = @transform_3, window_bounds = array<i64: 256, 128>}]} {
    %c0_i32 = arith.constant 0 : i32
    %0 = arith.cmpi eq, %arg2, %c0_i32 : i32
    %1 = arith.extui %0 : i1 to i32
    %c0_i32_0 = arith.constant 0 : i32
    %2 = arith.cmpi ne, %1, %c0_i32_0 : i32
    scf.if %2 {
      %cst_10 = arith.constant 0.000000e+00 : f32
      %12 = vector.broadcast %cst_10 : f32 to vector<256x128xf32>
      %c0_11 = arith.constant 0 : index
      %c0_12 = arith.constant 0 : index
      %13 = vector.load %arg6[%c0_11, %c0_12] : memref<256x128xf32, #tpu.memory_space<vmem>>, vector<256x128xf32>
      tpu.vector_store %arg6[%c0_11, %c0_12], %12 {strides = array<i32>} : memref<256x128xf32, #tpu.memory_space<vmem>>, vector<256x128xf32>,
    } else {
    }
    %c0 = arith.constant 0 : index
    %c0_1 = arith.constant 0 : index
    %3 = vector.load %arg6[%c0, %c0_1] : memref<256x128xf32, #tpu.memory_space<vmem>>, vector<256x128xf32>
    %c0_2 = arith.constant 0 : index
    %c0_3 = arith.constant 0 : index
    %4 = vector.load %arg3[%c0_2, %c0_3] : memref<256x384xbf16, #tpu.memory_space<vmem>>, vector<256x384xbf16>
    %c0_4 = arith.constant 0 : index
    %c0_5 = arith.constant 0 : index
    %5 = vector.load %arg4[%c0_4, %c0_5] : memref<384x128xbf16, #tpu.memory_space<vmem>>, vector<384x128xbf16>
    %cst = arith.constant dense<0.000000e+00> : vector<256x128xf32>
    %6 = tpu.matmul %4, %5, %cst {dimension_numbers = #tpu.dot_dimension_numbers<[1], [0], [0], [1], [0, 0, 1, 1], [], []>} : vector<256x384xbf16>, vector<384x128xbf16>, vector<256x128xf32> -> vector<256x128xf32>
    %7 = arith.addf %3, %6 : vector<256x128xf32>
    %c0_6 = arith.constant 0 : index
    %c0_7 = arith.constant 0 : index
    %8 = vector.load %arg6[%c0_6, %c0_7] : memref<256x128xf32, #tpu.memory_space<vmem>>, vector<256x128xf32>
    tpu.vector_store %arg6[%c0_6, %c0_7], %7 {strides = array<i32>} : memref<256x128xf32, #tpu.memory_space<vmem>>, vector<256x128xf32>,
    %c0_i32_8 = arith.constant 0 : i32
    %9 = arith.cmpi eq, %arg2, %c0_i32_8 : i32
    %10 = arith.extui %9 : i1 to i32
    %c0_i32_9 = arith.constant 0 : i32
    %11 = arith.cmpi ne, %10, %c0_i32_9 : i32
    scf.if %11 {
      %c0_10 = arith.constant 0 : index
      %c0_11 = arith.constant 0 : index
      %12 = vector.load %arg6[%c0_10, %c0_11] : memref<256x128xf32, #tpu.memory_space<vmem>>, vector<256x128xf32>
      %c0_12 = arith.constant 0 : index
      %c0_13 = arith.constant 0 : index
      %13 = vector.load %arg5[%c0_12, %c0_13] : memref<1x128xf32, #tpu.memory_space<vmem>>, vector<1x128xf32>
      %14 = vector.broadcast %13 : vector<1x128xf32> to vector<256x128xf32>
      %15 = arith.addf %12, %14 : vector<256x128xf32>
      %cst_14 = arith.constant 0.000000e+00 : f32
      %16 = vector.broadcast %cst_14 : f32 to vector<256x128xf32>
      %17 = arith.maximumf %15, %16 : vector<256x128xf32>
      %c0_15 = arith.constant 0 : index
      %c0_16 = arith.constant 0 : index
      %18 = vector.load %arg6[%c0_15, %c0_16] : memref<256x128xf32, #tpu.memory_space<vmem>>, vector<256x128xf32>
      tpu.vector_store %arg6[%c0_15, %c0_16], %17 {strides = array<i32>} : memref<256x128xf32, #tpu.memory_space<vmem>>, vector<256x128xf32>,
    } else {
    }
    return
  }
  func.func @transform_0(%arg0: i32, %arg1: i32, %arg2: i32) -> (i32, i32) {
    %c0_i32 = arith.constant 0 : i32
    return %arg0, %arg2 : i32, i32
  }
  func.func @transform_1(%arg0: i32, %arg1: i32, %arg2: i32) -> (i32, i32) {
    %c0_i32 = arith.constant 0 : i32
    return %arg2, %arg1 : i32, i32
  }
  func.func @transform_2(%arg0: i32, %arg1: i32, %arg2: i32) -> (i32, i32) {
    %c0_i32 = arith.constant 0 : i32
    %c0_i32_0 = arith.constant 0 : i32
    return %c0_i32, %arg1 : i32, i32
  }
  func.func @transform_3(%arg0: i32, %arg1: i32, %arg2: i32) -> (i32, i32) {
    %c0_i32 = arith.constant 0 : i32
    return %arg0, %arg1 : i32, i32
  }
}

module attributes {stable_mosaic.version = 11 : i64} {
  func.func @_maxpool3x3s2_kernel(%arg0: i32, %arg1: memref<1x16x16x64xf32, #tpu.memory_space<vmem>>, %arg2: memref<1x16x15x64xf32, #tpu.memory_space<vmem>>, %arg3: memref<1x15x16x64xf32, #tpu.memory_space<vmem>>, %arg4: memref<1x15x15x64xf32, #tpu.memory_space<vmem>>, %arg5: memref<1x15x15x64xf32, #tpu.memory_space<vmem>>) attributes {dimension_semantics = [#tpu.dimension_semantics<parallel>], iteration_bounds = array<i64: 2>, scalar_prefetch = 0 : i64, scratch_operands = 0 : i64, tpu.core_type = #tpu.core_type<tc>, window_params = [{transform_indices = @transform_0, window_bounds = array<i64: 1, 16, 16, 64>}, {transform_indices = @transform_1, window_bounds = array<i64: 1, 16, 15, 64>}, {transform_indices = @transform_2, window_bounds = array<i64: 1, 15, 16, 64>}, {transform_indices = @transform_3, window_bounds = array<i64: 1, 15, 15, 64>}, {transform_indices = @transform_4, window_bounds = array<i64: 1, 15, 15, 64>}]} {
    %c0 = arith.constant 0 : index
    %c0_0 = arith.constant 0 : index
    %c0_1 = arith.constant 0 : index
    %c0_2 = arith.constant 0 : index
    %0 = vector.load %arg1[%c0, %c0_0, %c0_1, %c0_2] : memref<1x16x16x64xf32, #tpu.memory_space<vmem>>, vector<1x15x15x64xf32>
    %1 = vector.shape_cast %0 : vector<1x15x15x64xf32> to vector<15x15x64xf32>
    %c0_3 = arith.constant 0 : index
    %c0_4 = arith.constant 0 : index
    %c1 = arith.constant 1 : index
    %c0_5 = arith.constant 0 : index
    %2 = vector.load %arg1[%c0_3, %c0_4, %c1, %c0_5] : memref<1x16x16x64xf32, #tpu.memory_space<vmem>>, vector<1x15x15x64xf32>
    %3 = vector.shape_cast %2 : vector<1x15x15x64xf32> to vector<15x15x64xf32>
    %4 = arith.maximumf %1, %3 : vector<15x15x64xf32>
    %c0_6 = arith.constant 0 : index
    %c0_7 = arith.constant 0 : index
    %c0_8 = arith.constant 0 : index
    %c0_9 = arith.constant 0 : index
    %5 = vector.load %arg2[%c0_6, %c0_7, %c0_8, %c0_9] : memref<1x16x15x64xf32, #tpu.memory_space<vmem>>, vector<1x15x15x64xf32>
    %6 = vector.shape_cast %5 : vector<1x15x15x64xf32> to vector<15x15x64xf32>
    %7 = arith.maximumf %4, %6 : vector<15x15x64xf32>
    %c0_10 = arith.constant 0 : index
    %c0_11 = arith.constant 0 : index
    %c0_12 = arith.constant 0 : index
    %c0_13 = arith.constant 0 : index
    %8 = vector.load %arg3[%c0_10, %c0_11, %c0_12, %c0_13] : memref<1x15x16x64xf32, #tpu.memory_space<vmem>>, vector<1x15x15x64xf32>
    %9 = vector.shape_cast %8 : vector<1x15x15x64xf32> to vector<15x15x64xf32>
    %10 = arith.maximumf %7, %9 : vector<15x15x64xf32>
    %c0_14 = arith.constant 0 : index
    %c0_15 = arith.constant 0 : index
    %c1_16 = arith.constant 1 : index
    %c0_17 = arith.constant 0 : index
    %11 = vector.load %arg3[%c0_14, %c0_15, %c1_16, %c0_17] : memref<1x15x16x64xf32, #tpu.memory_space<vmem>>, vector<1x15x15x64xf32>
    %12 = vector.shape_cast %11 : vector<1x15x15x64xf32> to vector<15x15x64xf32>
    %13 = arith.maximumf %10, %12 : vector<15x15x64xf32>
    %c0_18 = arith.constant 0 : index
    %c0_19 = arith.constant 0 : index
    %c0_20 = arith.constant 0 : index
    %c0_21 = arith.constant 0 : index
    %14 = vector.load %arg4[%c0_18, %c0_19, %c0_20, %c0_21] : memref<1x15x15x64xf32, #tpu.memory_space<vmem>>, vector<1x15x15x64xf32>
    %15 = vector.shape_cast %14 : vector<1x15x15x64xf32> to vector<15x15x64xf32>
    %16 = arith.maximumf %13, %15 : vector<15x15x64xf32>
    %c0_22 = arith.constant 0 : index
    %c1_23 = arith.constant 1 : index
    %c0_24 = arith.constant 0 : index
    %c0_25 = arith.constant 0 : index
    %17 = vector.load %arg1[%c0_22, %c1_23, %c0_24, %c0_25] : memref<1x16x16x64xf32, #tpu.memory_space<vmem>>, vector<1x15x15x64xf32>
    %18 = vector.shape_cast %17 : vector<1x15x15x64xf32> to vector<15x15x64xf32>
    %19 = arith.maximumf %16, %18 : vector<15x15x64xf32>
    %c0_26 = arith.constant 0 : index
    %c1_27 = arith.constant 1 : index
    %c1_28 = arith.constant 1 : index
    %c0_29 = arith.constant 0 : index
    %20 = vector.load %arg1[%c0_26, %c1_27, %c1_28, %c0_29] : memref<1x16x16x64xf32, #tpu.memory_space<vmem>>, vector<1x15x15x64xf32>
    %21 = vector.shape_cast %20 : vector<1x15x15x64xf32> to vector<15x15x64xf32>
    %22 = arith.maximumf %19, %21 : vector<15x15x64xf32>
    %c0_30 = arith.constant 0 : index
    %c1_31 = arith.constant 1 : index
    %c0_32 = arith.constant 0 : index
    %c0_33 = arith.constant 0 : index
    %23 = vector.load %arg2[%c0_30, %c1_31, %c0_32, %c0_33] : memref<1x16x15x64xf32, #tpu.memory_space<vmem>>, vector<1x15x15x64xf32>
    %24 = vector.shape_cast %23 : vector<1x15x15x64xf32> to vector<15x15x64xf32>
    %25 = arith.maximumf %22, %24 : vector<15x15x64xf32>
    %c0_34 = arith.constant 0 : index
    %c0_35 = arith.constant 0 : index
    %c0_36 = arith.constant 0 : index
    %c0_37 = arith.constant 0 : index
    %26 = vector.load %arg5[%c0_34, %c0_35, %c0_36, %c0_37] : memref<1x15x15x64xf32, #tpu.memory_space<vmem>>, vector<1x15x15x64xf32>
    %27 = vector.shape_cast %26 : vector<1x15x15x64xf32> to vector<15x15x64xf32>
    %28 = vector.shape_cast %25 : vector<15x15x64xf32> to vector<1x15x15x64xf32>
    tpu.vector_store %arg5[%c0_34, %c0_35, %c0_36, %c0_37], %28 {strides = array<i32>} : memref<1x15x15x64xf32, #tpu.memory_space<vmem>>, vector<1x15x15x64xf32>,
    return
  }
  func.func @transform_0(%arg0: i32) -> (i32, i32, i32, i32) {
    %c0_i32 = arith.constant 0 : i32
    %c0_i32_0 = arith.constant 0 : i32
    %c0_i32_1 = arith.constant 0 : i32
    %c0_i32_2 = arith.constant 0 : i32
    return %arg0, %c0_i32, %c0_i32_0, %c0_i32_1 : i32, i32, i32, i32
  }
  func.func @transform_1(%arg0: i32) -> (i32, i32, i32, i32) {
    %c0_i32 = arith.constant 0 : i32
    %c0_i32_0 = arith.constant 0 : i32
    %c0_i32_1 = arith.constant 0 : i32
    %c0_i32_2 = arith.constant 0 : i32
    return %arg0, %c0_i32, %c0_i32_0, %c0_i32_1 : i32, i32, i32, i32
  }
  func.func @transform_2(%arg0: i32) -> (i32, i32, i32, i32) {
    %c0_i32 = arith.constant 0 : i32
    %c0_i32_0 = arith.constant 0 : i32
    %c0_i32_1 = arith.constant 0 : i32
    %c0_i32_2 = arith.constant 0 : i32
    return %arg0, %c0_i32, %c0_i32_0, %c0_i32_1 : i32, i32, i32, i32
  }
  func.func @transform_3(%arg0: i32) -> (i32, i32, i32, i32) {
    %c0_i32 = arith.constant 0 : i32
    %c0_i32_0 = arith.constant 0 : i32
    %c0_i32_1 = arith.constant 0 : i32
    %c0_i32_2 = arith.constant 0 : i32
    return %arg0, %c0_i32, %c0_i32_0, %c0_i32_1 : i32, i32, i32, i32
  }
  func.func @transform_4(%arg0: i32) -> (i32, i32, i32, i32) {
    %c0_i32 = arith.constant 0 : i32
    %c0_i32_0 = arith.constant 0 : i32
    %c0_i32_1 = arith.constant 0 : i32
    %c0_i32_2 = arith.constant 0 : i32
    return %arg0, %c0_i32, %c0_i32_0, %c0_i32_1 : i32, i32, i32, i32
  }
}

module attributes {stable_mosaic.version = 11 : i64} {
  func.func @_matmul_bias_act_kernel(%arg0: i32, %arg1: i32, %arg2: i32, %arg3: memref<128x128xbf16, #tpu.memory_space<vmem>>, %arg4: memref<128x128xbf16, #tpu.memory_space<vmem>>, %arg5: memref<1x128xf32, #tpu.memory_space<vmem>>, %arg6: memref<128x128xf32, #tpu.memory_space<vmem>>) attributes {dimension_semantics = [#tpu.dimension_semantics<parallel>, #tpu.dimension_semantics<parallel>, #tpu.dimension_semantics<arbitrary>], iteration_bounds = array<i64: 4, 2, 13>, scalar_prefetch = 0 : i64, scratch_operands = 0 : i64, tpu.core_type = #tpu.core_type<tc>, window_params = [{transform_indices = @transform_0, window_bounds = array<i64: 128, 128>}, {transform_indices = @transform_1, window_bounds = array<i64: 128, 128>}, {transform_indices = @transform_2, window_bounds = array<i64: 1, 128>}, {transform_indices = @transform_3, window_bounds = array<i64: 128, 128>}]} {
    %c0_i32 = arith.constant 0 : i32
    %0 = arith.cmpi eq, %arg2, %c0_i32 : i32
    %1 = arith.extui %0 : i1 to i32
    %c0_i32_0 = arith.constant 0 : i32
    %2 = arith.cmpi ne, %1, %c0_i32_0 : i32
    scf.if %2 {
      %cst_9 = arith.constant 0.000000e+00 : f32
      %12 = vector.broadcast %cst_9 : f32 to vector<128x128xf32>
      %c0_10 = arith.constant 0 : index
      %c0_11 = arith.constant 0 : index
      %13 = vector.load %arg6[%c0_10, %c0_11] : memref<128x128xf32, #tpu.memory_space<vmem>>, vector<128x128xf32>
      tpu.vector_store %arg6[%c0_10, %c0_11], %12 {strides = array<i32>} : memref<128x128xf32, #tpu.memory_space<vmem>>, vector<128x128xf32>,
    } else {
    }
    %c0 = arith.constant 0 : index
    %c0_1 = arith.constant 0 : index
    %3 = vector.load %arg6[%c0, %c0_1] : memref<128x128xf32, #tpu.memory_space<vmem>>, vector<128x128xf32>
    %c0_2 = arith.constant 0 : index
    %c0_3 = arith.constant 0 : index
    %4 = vector.load %arg3[%c0_2, %c0_3] : memref<128x128xbf16, #tpu.memory_space<vmem>>, vector<128x128xbf16>
    %c0_4 = arith.constant 0 : index
    %c0_5 = arith.constant 0 : index
    %5 = vector.load %arg4[%c0_4, %c0_5] : memref<128x128xbf16, #tpu.memory_space<vmem>>, vector<128x128xbf16>
    %cst = arith.constant dense<0.000000e+00> : vector<128x128xf32>
    %6 = tpu.matmul %4, %5, %cst {dimension_numbers = #tpu.dot_dimension_numbers<[1], [0], [0], [1], [0, 0, 1, 1], [], []>} : vector<128x128xbf16>, vector<128x128xbf16>, vector<128x128xf32> -> vector<128x128xf32>
    %7 = arith.addf %3, %6 : vector<128x128xf32>
    %c0_6 = arith.constant 0 : index
    %c0_7 = arith.constant 0 : index
    %8 = vector.load %arg6[%c0_6, %c0_7] : memref<128x128xf32, #tpu.memory_space<vmem>>, vector<128x128xf32>
    tpu.vector_store %arg6[%c0_6, %c0_7], %7 {strides = array<i32>} : memref<128x128xf32, #tpu.memory_space<vmem>>, vector<128x128xf32>,
    %c12_i32 = arith.constant 12 : i32
    %9 = arith.cmpi eq, %arg2, %c12_i32 : i32
    %10 = arith.extui %9 : i1 to i32
    %c0_i32_8 = arith.constant 0 : i32
    %11 = arith.cmpi ne, %10, %c0_i32_8 : i32
    scf.if %11 {
      %c0_9 = arith.constant 0 : index
      %c0_10 = arith.constant 0 : index
      %12 = vector.load %arg6[%c0_9, %c0_10] : memref<128x128xf32, #tpu.memory_space<vmem>>, vector<128x128xf32>
      %c0_11 = arith.constant 0 : index
      %c0_12 = arith.constant 0 : index
      %13 = vector.load %arg5[%c0_11, %c0_12] : memref<1x128xf32, #tpu.memory_space<vmem>>, vector<1x128xf32>
      %14 = vector.broadcast %13 : vector<1x128xf32> to vector<128x128xf32>
      %15 = arith.addf %12, %14 : vector<128x128xf32>
      %cst_13 = arith.constant 0.000000e+00 : f32
      %16 = vector.broadcast %cst_13 : f32 to vector<128x128xf32>
      %17 = arith.maximumf %15, %16 : vector<128x128xf32>
      %c0_14 = arith.constant 0 : index
      %c0_15 = arith.constant 0 : index
      %18 = vector.load %arg6[%c0_14, %c0_15] : memref<128x128xf32, #tpu.memory_space<vmem>>, vector<128x128xf32>
      tpu.vector_store %arg6[%c0_14, %c0_15], %17 {strides = array<i32>} : memref<128x128xf32, #tpu.memory_space<vmem>>, vector<128x128xf32>,
    } else {
    }
    return
  }
  func.func @transform_0(%arg0: i32, %arg1: i32, %arg2: i32) -> (i32, i32) {
    %c0_i32 = arith.constant 0 : i32
    return %arg0, %arg2 : i32, i32
  }
  func.func @transform_1(%arg0: i32, %arg1: i32, %arg2: i32) -> (i32, i32) {
    %c0_i32 = arith.constant 0 : i32
    return %arg2, %arg1 : i32, i32
  }
  func.func @transform_2(%arg0: i32, %arg1: i32, %arg2: i32) -> (i32, i32) {
    %c0_i32 = arith.constant 0 : i32
    %c0_i32_0 = arith.constant 0 : i32
    return %c0_i32, %arg1 : i32, i32
  }
  func.func @transform_3(%arg0: i32, %arg1: i32, %arg2: i32) -> (i32, i32) {
    %c0_i32 = arith.constant 0 : i32
    return %arg0, %arg1 : i32, i32
  }
}

module attributes {stable_mosaic.version = 11 : i64} {
  func.func @_maxpool3x3s2_kernel(%arg0: i32, %arg1: memref<1x8x8x192xf32, #tpu.memory_space<vmem>>, %arg2: memref<1x8x7x192xf32, #tpu.memory_space<vmem>>, %arg3: memref<1x7x8x192xf32, #tpu.memory_space<vmem>>, %arg4: memref<1x7x7x192xf32, #tpu.memory_space<vmem>>, %arg5: memref<1x7x7x192xf32, #tpu.memory_space<vmem>>) attributes {dimension_semantics = [#tpu.dimension_semantics<parallel>], iteration_bounds = array<i64: 2>, scalar_prefetch = 0 : i64, scratch_operands = 0 : i64, tpu.core_type = #tpu.core_type<tc>, window_params = [{transform_indices = @transform_0, window_bounds = array<i64: 1, 8, 8, 192>}, {transform_indices = @transform_1, window_bounds = array<i64: 1, 8, 7, 192>}, {transform_indices = @transform_2, window_bounds = array<i64: 1, 7, 8, 192>}, {transform_indices = @transform_3, window_bounds = array<i64: 1, 7, 7, 192>}, {transform_indices = @transform_4, window_bounds = array<i64: 1, 7, 7, 192>}]} {
    %c0 = arith.constant 0 : index
    %c0_0 = arith.constant 0 : index
    %c0_1 = arith.constant 0 : index
    %c0_2 = arith.constant 0 : index
    %0 = vector.load %arg1[%c0, %c0_0, %c0_1, %c0_2] : memref<1x8x8x192xf32, #tpu.memory_space<vmem>>, vector<1x7x7x192xf32>
    %1 = vector.shape_cast %0 : vector<1x7x7x192xf32> to vector<7x7x192xf32>
    %c0_3 = arith.constant 0 : index
    %c0_4 = arith.constant 0 : index
    %c1 = arith.constant 1 : index
    %c0_5 = arith.constant 0 : index
    %2 = vector.load %arg1[%c0_3, %c0_4, %c1, %c0_5] : memref<1x8x8x192xf32, #tpu.memory_space<vmem>>, vector<1x7x7x192xf32>
    %3 = vector.shape_cast %2 : vector<1x7x7x192xf32> to vector<7x7x192xf32>
    %4 = arith.maximumf %1, %3 : vector<7x7x192xf32>
    %c0_6 = arith.constant 0 : index
    %c0_7 = arith.constant 0 : index
    %c0_8 = arith.constant 0 : index
    %c0_9 = arith.constant 0 : index
    %5 = vector.load %arg2[%c0_6, %c0_7, %c0_8, %c0_9] : memref<1x8x7x192xf32, #tpu.memory_space<vmem>>, vector<1x7x7x192xf32>
    %6 = vector.shape_cast %5 : vector<1x7x7x192xf32> to vector<7x7x192xf32>
    %7 = arith.maximumf %4, %6 : vector<7x7x192xf32>
    %c0_10 = arith.constant 0 : index
    %c0_11 = arith.constant 0 : index
    %c0_12 = arith.constant 0 : index
    %c0_13 = arith.constant 0 : index
    %8 = vector.load %arg3[%c0_10, %c0_11, %c0_12, %c0_13] : memref<1x7x8x192xf32, #tpu.memory_space<vmem>>, vector<1x7x7x192xf32>
    %9 = vector.shape_cast %8 : vector<1x7x7x192xf32> to vector<7x7x192xf32>
    %10 = arith.maximumf %7, %9 : vector<7x7x192xf32>
    %c0_14 = arith.constant 0 : index
    %c0_15 = arith.constant 0 : index
    %c1_16 = arith.constant 1 : index
    %c0_17 = arith.constant 0 : index
    %11 = vector.load %arg3[%c0_14, %c0_15, %c1_16, %c0_17] : memref<1x7x8x192xf32, #tpu.memory_space<vmem>>, vector<1x7x7x192xf32>
    %12 = vector.shape_cast %11 : vector<1x7x7x192xf32> to vector<7x7x192xf32>
    %13 = arith.maximumf %10, %12 : vector<7x7x192xf32>
    %c0_18 = arith.constant 0 : index
    %c0_19 = arith.constant 0 : index
    %c0_20 = arith.constant 0 : index
    %c0_21 = arith.constant 0 : index
    %14 = vector.load %arg4[%c0_18, %c0_19, %c0_20, %c0_21] : memref<1x7x7x192xf32, #tpu.memory_space<vmem>>, vector<1x7x7x192xf32>
    %15 = vector.shape_cast %14 : vector<1x7x7x192xf32> to vector<7x7x192xf32>
    %16 = arith.maximumf %13, %15 : vector<7x7x192xf32>
    %c0_22 = arith.constant 0 : index
    %c1_23 = arith.constant 1 : index
    %c0_24 = arith.constant 0 : index
    %c0_25 = arith.constant 0 : index
    %17 = vector.load %arg1[%c0_22, %c1_23, %c0_24, %c0_25] : memref<1x8x8x192xf32, #tpu.memory_space<vmem>>, vector<1x7x7x192xf32>
    %18 = vector.shape_cast %17 : vector<1x7x7x192xf32> to vector<7x7x192xf32>
    %19 = arith.maximumf %16, %18 : vector<7x7x192xf32>
    %c0_26 = arith.constant 0 : index
    %c1_27 = arith.constant 1 : index
    %c1_28 = arith.constant 1 : index
    %c0_29 = arith.constant 0 : index
    %20 = vector.load %arg1[%c0_26, %c1_27, %c1_28, %c0_29] : memref<1x8x8x192xf32, #tpu.memory_space<vmem>>, vector<1x7x7x192xf32>
    %21 = vector.shape_cast %20 : vector<1x7x7x192xf32> to vector<7x7x192xf32>
    %22 = arith.maximumf %19, %21 : vector<7x7x192xf32>
    %c0_30 = arith.constant 0 : index
    %c1_31 = arith.constant 1 : index
    %c0_32 = arith.constant 0 : index
    %c0_33 = arith.constant 0 : index
    %23 = vector.load %arg2[%c0_30, %c1_31, %c0_32, %c0_33] : memref<1x8x7x192xf32, #tpu.memory_space<vmem>>, vector<1x7x7x192xf32>
    %24 = vector.shape_cast %23 : vector<1x7x7x192xf32> to vector<7x7x192xf32>
    %25 = arith.maximumf %22, %24 : vector<7x7x192xf32>
    %c0_34 = arith.constant 0 : index
    %c0_35 = arith.constant 0 : index
    %c0_36 = arith.constant 0 : index
    %c0_37 = arith.constant 0 : index
    %26 = vector.load %arg5[%c0_34, %c0_35, %c0_36, %c0_37] : memref<1x7x7x192xf32, #tpu.memory_space<vmem>>, vector<1x7x7x192xf32>
    %27 = vector.shape_cast %26 : vector<1x7x7x192xf32> to vector<7x7x192xf32>
    %28 = vector.shape_cast %25 : vector<7x7x192xf32> to vector<1x7x7x192xf32>
    tpu.vector_store %arg5[%c0_34, %c0_35, %c0_36, %c0_37], %28 {strides = array<i32>} : memref<1x7x7x192xf32, #tpu.memory_space<vmem>>, vector<1x7x7x192xf32>,
    return
  }
  func.func @transform_0(%arg0: i32) -> (i32, i32, i32, i32) {
    %c0_i32 = arith.constant 0 : i32
    %c0_i32_0 = arith.constant 0 : i32
    %c0_i32_1 = arith.constant 0 : i32
    %c0_i32_2 = arith.constant 0 : i32
    return %arg0, %c0_i32, %c0_i32_0, %c0_i32_1 : i32, i32, i32, i32
  }
  func.func @transform_1(%arg0: i32) -> (i32, i32, i32, i32) {
    %c0_i32 = arith.constant 0 : i32
    %c0_i32_0 = arith.constant 0 : i32
    %c0_i32_1 = arith.constant 0 : i32
    %c0_i32_2 = arith.constant 0 : i32
    return %arg0, %c0_i32, %c0_i32_0, %c0_i32_1 : i32, i32, i32, i32
  }
  func.func @transform_2(%arg0: i32) -> (i32, i32, i32, i32) {
    %c0_i32 = arith.constant 0 : i32
    %c0_i32_0 = arith.constant 0 : i32
    %c0_i32_1 = arith.constant 0 : i32
    %c0_i32_2 = arith.constant 0 : i32
    return %arg0, %c0_i32, %c0_i32_0, %c0_i32_1 : i32, i32, i32, i32
  }
  func.func @transform_3(%arg0: i32) -> (i32, i32, i32, i32) {
    %c0_i32 = arith.constant 0 : i32
    %c0_i32_0 = arith.constant 0 : i32
    %c0_i32_1 = arith.constant 0 : i32
    %c0_i32_2 = arith.constant 0 : i32
    return %arg0, %c0_i32, %c0_i32_0, %c0_i32_1 : i32, i32, i32, i32
  }
  func.func @transform_4(%arg0: i32) -> (i32, i32, i32, i32) {
    %c0_i32 = arith.constant 0 : i32
    %c0_i32_0 = arith.constant 0 : i32
    %c0_i32_1 = arith.constant 0 : i32
    %c0_i32_2 = arith.constant 0 : i32
    return %arg0, %c0_i32, %c0_i32_0, %c0_i32_1 : i32, i32, i32, i32
  }
}

module attributes {stable_mosaic.version = 11 : i64} {
  func.func @_matmul_bias_act_kernel(%arg0: i32, %arg1: i32, %arg2: i32, %arg3: memref<128x256xbf16, #tpu.memory_space<vmem>>, %arg4: memref<256x128xbf16, #tpu.memory_space<vmem>>, %arg5: memref<1x128xf32, #tpu.memory_space<vmem>>, %arg6: memref<128x128xf32, #tpu.memory_space<vmem>>) attributes {dimension_semantics = [#tpu.dimension_semantics<parallel>, #tpu.dimension_semantics<parallel>, #tpu.dimension_semantics<arbitrary>], iteration_bounds = array<i64: 1, 3, 7>, scalar_prefetch = 0 : i64, scratch_operands = 0 : i64, tpu.core_type = #tpu.core_type<tc>, window_params = [{transform_indices = @transform_0, window_bounds = array<i64: 128, 256>}, {transform_indices = @transform_1, window_bounds = array<i64: 256, 128>}, {transform_indices = @transform_2, window_bounds = array<i64: 1, 128>}, {transform_indices = @transform_3, window_bounds = array<i64: 128, 128>}]} {
    %c0_i32 = arith.constant 0 : i32
    %0 = arith.cmpi eq, %arg2, %c0_i32 : i32
    %1 = arith.extui %0 : i1 to i32
    %c0_i32_0 = arith.constant 0 : i32
    %2 = arith.cmpi ne, %1, %c0_i32_0 : i32
    scf.if %2 {
      %cst_9 = arith.constant 0.000000e+00 : f32
      %12 = vector.broadcast %cst_9 : f32 to vector<128x128xf32>
      %c0_10 = arith.constant 0 : index
      %c0_11 = arith.constant 0 : index
      %13 = vector.load %arg6[%c0_10, %c0_11] : memref<128x128xf32, #tpu.memory_space<vmem>>, vector<128x128xf32>
      tpu.vector_store %arg6[%c0_10, %c0_11], %12 {strides = array<i32>} : memref<128x128xf32, #tpu.memory_space<vmem>>, vector<128x128xf32>,
    } else {
    }
    %c0 = arith.constant 0 : index
    %c0_1 = arith.constant 0 : index
    %3 = vector.load %arg6[%c0, %c0_1] : memref<128x128xf32, #tpu.memory_space<vmem>>, vector<128x128xf32>
    %c0_2 = arith.constant 0 : index
    %c0_3 = arith.constant 0 : index
    %4 = vector.load %arg3[%c0_2, %c0_3] : memref<128x256xbf16, #tpu.memory_space<vmem>>, vector<128x256xbf16>
    %c0_4 = arith.constant 0 : index
    %c0_5 = arith.constant 0 : index
    %5 = vector.load %arg4[%c0_4, %c0_5] : memref<256x128xbf16, #tpu.memory_space<vmem>>, vector<256x128xbf16>
    %cst = arith.constant dense<0.000000e+00> : vector<128x128xf32>
    %6 = tpu.matmul %4, %5, %cst {dimension_numbers = #tpu.dot_dimension_numbers<[1], [0], [0], [1], [0, 0, 1, 1], [], []>} : vector<128x256xbf16>, vector<256x128xbf16>, vector<128x128xf32> -> vector<128x128xf32>
    %7 = arith.addf %3, %6 : vector<128x128xf32>
    %c0_6 = arith.constant 0 : index
    %c0_7 = arith.constant 0 : index
    %8 = vector.load %arg6[%c0_6, %c0_7] : memref<128x128xf32, #tpu.memory_space<vmem>>, vector<128x128xf32>
    tpu.vector_store %arg6[%c0_6, %c0_7], %7 {strides = array<i32>} : memref<128x128xf32, #tpu.memory_space<vmem>>, vector<128x128xf32>,
    %c6_i32 = arith.constant 6 : i32
    %9 = arith.cmpi eq, %arg2, %c6_i32 : i32
    %10 = arith.extui %9 : i1 to i32
    %c0_i32_8 = arith.constant 0 : i32
    %11 = arith.cmpi ne, %10, %c0_i32_8 : i32
    scf.if %11 {
      %c0_9 = arith.constant 0 : index
      %c0_10 = arith.constant 0 : index
      %12 = vector.load %arg6[%c0_9, %c0_10] : memref<128x128xf32, #tpu.memory_space<vmem>>, vector<128x128xf32>
      %c0_11 = arith.constant 0 : index
      %c0_12 = arith.constant 0 : index
      %13 = vector.load %arg5[%c0_11, %c0_12] : memref<1x128xf32, #tpu.memory_space<vmem>>, vector<1x128xf32>
      %14 = vector.broadcast %13 : vector<1x128xf32> to vector<128x128xf32>
      %15 = arith.addf %12, %14 : vector<128x128xf32>
      %cst_13 = arith.constant 0.000000e+00 : f32
      %16 = vector.broadcast %cst_13 : f32 to vector<128x128xf32>
      %17 = arith.maximumf %15, %16 : vector<128x128xf32>
      %c0_14 = arith.constant 0 : index
      %c0_15 = arith.constant 0 : index
      %18 = vector.load %arg6[%c0_14, %c0_15] : memref<128x128xf32, #tpu.memory_space<vmem>>, vector<128x128xf32>
      tpu.vector_store %arg6[%c0_14, %c0_15], %17 {strides = array<i32>} : memref<128x128xf32, #tpu.memory_space<vmem>>, vector<128x128xf32>,
    } else {
    }
    return
  }
  func.func @transform_0(%arg0: i32, %arg1: i32, %arg2: i32) -> (i32, i32) {
    %c0_i32 = arith.constant 0 : i32
    return %arg0, %arg2 : i32, i32
  }
  func.func @transform_1(%arg0: i32, %arg1: i32, %arg2: i32) -> (i32, i32) {
    %c0_i32 = arith.constant 0 : i32
    return %arg2, %arg1 : i32, i32
  }
  func.func @transform_2(%arg0: i32, %arg1: i32, %arg2: i32) -> (i32, i32) {
    %c0_i32 = arith.constant 0 : i32
    %c0_i32_0 = arith.constant 0 : i32
    return %c0_i32, %arg1 : i32, i32
  }
  func.func @transform_3(%arg0: i32, %arg1: i32, %arg2: i32) -> (i32, i32) {
    %c0_i32 = arith.constant 0 : i32
    return %arg0, %arg1 : i32, i32
  }
}

module attributes {stable_mosaic.version = 11 : i64} {
  func.func @_matmul_bias_act_kernel(%arg0: i32, %arg1: i32, %arg2: i32, %arg3: memref<128x384xbf16, #tpu.memory_space<vmem>>, %arg4: memref<384x128xbf16, #tpu.memory_space<vmem>>, %arg5: memref<1x128xf32, #tpu.memory_space<vmem>>, %arg6: memref<128x128xf32, #tpu.memory_space<vmem>>) attributes {dimension_semantics = [#tpu.dimension_semantics<parallel>, #tpu.dimension_semantics<parallel>, #tpu.dimension_semantics<arbitrary>], iteration_bounds = array<i64: 1, 2, 9>, scalar_prefetch = 0 : i64, scratch_operands = 0 : i64, tpu.core_type = #tpu.core_type<tc>, window_params = [{transform_indices = @transform_0, window_bounds = array<i64: 128, 384>}, {transform_indices = @transform_1, window_bounds = array<i64: 384, 128>}, {transform_indices = @transform_2, window_bounds = array<i64: 1, 128>}, {transform_indices = @transform_3, window_bounds = array<i64: 128, 128>}]} {
    %c0_i32 = arith.constant 0 : i32
    %0 = arith.cmpi eq, %arg2, %c0_i32 : i32
    %1 = arith.extui %0 : i1 to i32
    %c0_i32_0 = arith.constant 0 : i32
    %2 = arith.cmpi ne, %1, %c0_i32_0 : i32
    scf.if %2 {
      %cst_9 = arith.constant 0.000000e+00 : f32
      %12 = vector.broadcast %cst_9 : f32 to vector<128x128xf32>
      %c0_10 = arith.constant 0 : index
      %c0_11 = arith.constant 0 : index
      %13 = vector.load %arg6[%c0_10, %c0_11] : memref<128x128xf32, #tpu.memory_space<vmem>>, vector<128x128xf32>
      tpu.vector_store %arg6[%c0_10, %c0_11], %12 {strides = array<i32>} : memref<128x128xf32, #tpu.memory_space<vmem>>, vector<128x128xf32>,
    } else {
    }
    %c0 = arith.constant 0 : index
    %c0_1 = arith.constant 0 : index
    %3 = vector.load %arg6[%c0, %c0_1] : memref<128x128xf32, #tpu.memory_space<vmem>>, vector<128x128xf32>
    %c0_2 = arith.constant 0 : index
    %c0_3 = arith.constant 0 : index
    %4 = vector.load %arg3[%c0_2, %c0_3] : memref<128x384xbf16, #tpu.memory_space<vmem>>, vector<128x384xbf16>
    %c0_4 = arith.constant 0 : index
    %c0_5 = arith.constant 0 : index
    %5 = vector.load %arg4[%c0_4, %c0_5] : memref<384x128xbf16, #tpu.memory_space<vmem>>, vector<384x128xbf16>
    %cst = arith.constant dense<0.000000e+00> : vector<128x128xf32>
    %6 = tpu.matmul %4, %5, %cst {dimension_numbers = #tpu.dot_dimension_numbers<[1], [0], [0], [1], [0, 0, 1, 1], [], []>} : vector<128x384xbf16>, vector<384x128xbf16>, vector<128x128xf32> -> vector<128x128xf32>
    %7 = arith.addf %3, %6 : vector<128x128xf32>
    %c0_6 = arith.constant 0 : index
    %c0_7 = arith.constant 0 : index
    %8 = vector.load %arg6[%c0_6, %c0_7] : memref<128x128xf32, #tpu.memory_space<vmem>>, vector<128x128xf32>
    tpu.vector_store %arg6[%c0_6, %c0_7], %7 {strides = array<i32>} : memref<128x128xf32, #tpu.memory_space<vmem>>, vector<128x128xf32>,
    %c8_i32 = arith.constant 8 : i32
    %9 = arith.cmpi eq, %arg2, %c8_i32 : i32
    %10 = arith.extui %9 : i1 to i32
    %c0_i32_8 = arith.constant 0 : i32
    %11 = arith.cmpi ne, %10, %c0_i32_8 : i32
    scf.if %11 {
      %c0_9 = arith.constant 0 : index
      %c0_10 = arith.constant 0 : index
      %12 = vector.load %arg6[%c0_9, %c0_10] : memref<128x128xf32, #tpu.memory_space<vmem>>, vector<128x128xf32>
      %c0_11 = arith.constant 0 : index
      %c0_12 = arith.constant 0 : index
      %13 = vector.load %arg5[%c0_11, %c0_12] : memref<1x128xf32, #tpu.memory_space<vmem>>, vector<1x128xf32>
      %14 = vector.broadcast %13 : vector<1x128xf32> to vector<128x128xf32>
      %15 = arith.addf %12, %14 : vector<128x128xf32>
      %cst_13 = arith.constant 0.000000e+00 : f32
      %16 = vector.broadcast %cst_13 : f32 to vector<128x128xf32>
      %17 = arith.maximumf %15, %16 : vector<128x128xf32>
      %c0_14 = arith.constant 0 : index
      %c0_15 = arith.constant 0 : index
      %18 = vector.load %arg6[%c0_14, %c0_15] : memref<128x128xf32, #tpu.memory_space<vmem>>, vector<128x128xf32>
      tpu.vector_store %arg6[%c0_14, %c0_15], %17 {strides = array<i32>} : memref<128x128xf32, #tpu.memory_space<vmem>>, vector<128x128xf32>,
    } else {
    }
    return
  }
  func.func @transform_0(%arg0: i32, %arg1: i32, %arg2: i32) -> (i32, i32) {
    %c0_i32 = arith.constant 0 : i32
    return %arg0, %arg2 : i32, i32
  }
  func.func @transform_1(%arg0: i32, %arg1: i32, %arg2: i32) -> (i32, i32) {
    %c0_i32 = arith.constant 0 : i32
    return %arg2, %arg1 : i32, i32
  }
  func.func @transform_2(%arg0: i32, %arg1: i32, %arg2: i32) -> (i32, i32) {
    %c0_i32 = arith.constant 0 : i32
    %c0_i32_0 = arith.constant 0 : i32
    return %c0_i32, %arg1 : i32, i32
  }
  func.func @transform_3(%arg0: i32, %arg1: i32, %arg2: i32) -> (i32, i32) {
    %c0_i32 = arith.constant 0 : i32
    return %arg0, %arg1 : i32, i32
  }
}

module attributes {stable_mosaic.version = 11 : i64} {
  func.func @_matmul_bias_act_kernel(%arg0: i32, %arg1: i32, %arg2: i32, %arg3: memref<128x384xbf16, #tpu.memory_space<vmem>>, %arg4: memref<384x128xbf16, #tpu.memory_space<vmem>>, %arg5: memref<1x128xf32, #tpu.memory_space<vmem>>, %arg6: memref<128x128xf32, #tpu.memory_space<vmem>>) attributes {dimension_semantics = [#tpu.dimension_semantics<parallel>, #tpu.dimension_semantics<parallel>, #tpu.dimension_semantics<arbitrary>], iteration_bounds = array<i64: 1, 2, 6>, scalar_prefetch = 0 : i64, scratch_operands = 0 : i64, tpu.core_type = #tpu.core_type<tc>, window_params = [{transform_indices = @transform_0, window_bounds = array<i64: 128, 384>}, {transform_indices = @transform_1, window_bounds = array<i64: 384, 128>}, {transform_indices = @transform_2, window_bounds = array<i64: 1, 128>}, {transform_indices = @transform_3, window_bounds = array<i64: 128, 128>}]} {
    %c0_i32 = arith.constant 0 : i32
    %0 = arith.cmpi eq, %arg2, %c0_i32 : i32
    %1 = arith.extui %0 : i1 to i32
    %c0_i32_0 = arith.constant 0 : i32
    %2 = arith.cmpi ne, %1, %c0_i32_0 : i32
    scf.if %2 {
      %cst_9 = arith.constant 0.000000e+00 : f32
      %12 = vector.broadcast %cst_9 : f32 to vector<128x128xf32>
      %c0_10 = arith.constant 0 : index
      %c0_11 = arith.constant 0 : index
      %13 = vector.load %arg6[%c0_10, %c0_11] : memref<128x128xf32, #tpu.memory_space<vmem>>, vector<128x128xf32>
      tpu.vector_store %arg6[%c0_10, %c0_11], %12 {strides = array<i32>} : memref<128x128xf32, #tpu.memory_space<vmem>>, vector<128x128xf32>,
    } else {
    }
    %c0 = arith.constant 0 : index
    %c0_1 = arith.constant 0 : index
    %3 = vector.load %arg6[%c0, %c0_1] : memref<128x128xf32, #tpu.memory_space<vmem>>, vector<128x128xf32>
    %c0_2 = arith.constant 0 : index
    %c0_3 = arith.constant 0 : index
    %4 = vector.load %arg3[%c0_2, %c0_3] : memref<128x384xbf16, #tpu.memory_space<vmem>>, vector<128x384xbf16>
    %c0_4 = arith.constant 0 : index
    %c0_5 = arith.constant 0 : index
    %5 = vector.load %arg4[%c0_4, %c0_5] : memref<384x128xbf16, #tpu.memory_space<vmem>>, vector<384x128xbf16>
    %cst = arith.constant dense<0.000000e+00> : vector<128x128xf32>
    %6 = tpu.matmul %4, %5, %cst {dimension_numbers = #tpu.dot_dimension_numbers<[1], [0], [0], [1], [0, 0, 1, 1], [], []>} : vector<128x384xbf16>, vector<384x128xbf16>, vector<128x128xf32> -> vector<128x128xf32>
    %7 = arith.addf %3, %6 : vector<128x128xf32>
    %c0_6 = arith.constant 0 : index
    %c0_7 = arith.constant 0 : index
    %8 = vector.load %arg6[%c0_6, %c0_7] : memref<128x128xf32, #tpu.memory_space<vmem>>, vector<128x128xf32>
    tpu.vector_store %arg6[%c0_6, %c0_7], %7 {strides = array<i32>} : memref<128x128xf32, #tpu.memory_space<vmem>>, vector<128x128xf32>,
    %c5_i32 = arith.constant 5 : i32
    %9 = arith.cmpi eq, %arg2, %c5_i32 : i32
    %10 = arith.extui %9 : i1 to i32
    %c0_i32_8 = arith.constant 0 : i32
    %11 = arith.cmpi ne, %10, %c0_i32_8 : i32
    scf.if %11 {
      %c0_9 = arith.constant 0 : index
      %c0_10 = arith.constant 0 : index
      %12 = vector.load %arg6[%c0_9, %c0_10] : memref<128x128xf32, #tpu.memory_space<vmem>>, vector<128x128xf32>
      %c0_11 = arith.constant 0 : index
      %c0_12 = arith.constant 0 : index
      %13 = vector.load %arg5[%c0_11, %c0_12] : memref<1x128xf32, #tpu.memory_space<vmem>>, vector<1x128xf32>
      %14 = vector.broadcast %13 : vector<1x128xf32> to vector<128x128xf32>
      %15 = arith.addf %12, %14 : vector<128x128xf32>
      %cst_13 = arith.constant 0.000000e+00 : f32
      %16 = vector.broadcast %cst_13 : f32 to vector<128x128xf32>
      %17 = arith.maximumf %15, %16 : vector<128x128xf32>
      %c0_14 = arith.constant 0 : index
      %c0_15 = arith.constant 0 : index
      %18 = vector.load %arg6[%c0_14, %c0_15] : memref<128x128xf32, #tpu.memory_space<vmem>>, vector<128x128xf32>
      tpu.vector_store %arg6[%c0_14, %c0_15], %17 {strides = array<i32>} : memref<128x128xf32, #tpu.memory_space<vmem>>, vector<128x128xf32>,
    } else {
    }
    return
  }
  func.func @transform_0(%arg0: i32, %arg1: i32, %arg2: i32) -> (i32, i32) {
    %c0_i32 = arith.constant 0 : i32
    return %arg0, %arg2 : i32, i32
  }
  func.func @transform_1(%arg0: i32, %arg1: i32, %arg2: i32) -> (i32, i32) {
    %c0_i32 = arith.constant 0 : i32
    return %arg2, %arg1 : i32, i32
  }
  func.func @transform_2(%arg0: i32, %arg1: i32, %arg2: i32) -> (i32, i32) {
    %c0_i32 = arith.constant 0 : i32
    %c0_i32_0 = arith.constant 0 : i32
    return %c0_i32, %arg1 : i32, i32
  }
  func.func @transform_3(%arg0: i32, %arg1: i32, %arg2: i32) -> (i32, i32) {
    %c0_i32 = arith.constant 0 : i32
    return %arg0, %arg1 : i32, i32
  }
}

</mosaic_0001>

<bundles_post_ra>
// kernel: demo_fcn_forward.7
= control target key start
LH: loop header
LB: loop body
LE: loop exit
PB: predicated region body
PF: predicated region fallthrough
CT: control target
= control target key end

     0   :  { %s1930_s12 = smov 0   ;;  %s1932_s13 = smov 0   ;;  %s2190_s0 = inlined_call_operand.vmem [shape: bf16[2048,384], index: 0, kind: input, shape index: {}]   ;;  %s2191_s1 = inlined_call_operand.vmem [shape: bf16[384,128], index: 1, kind: input, shape index: {}]   ;;  %s2192_s2 = inlined_call_operand.vmem [shape: f32[1,128], index: 2, kind: input, shape index: {}]   ;;  %s2193_s3 = inlined_call_operand.vmem [shape: f32[2048,128], index: 3, kind: output, shape index: {}]  }
   0x1   :  { %s1934_s14 = smov 0  }
   0x2 LB: > { %s32_s15 = sadd.s32 1, %s1904_s13  ;;  %p1492_p0 = scmp.ge.s32.totalorder %s1908_s14, 1  ;;  %s1908_s14 = sphi %s1934_s14, %s13_s14   ;;  %s1904_s13 = sphi %s1932_s13, %s2195_s13   ;;  %s1900_s12 = sphi %s1930_s12, %s2194_s12  }
   0x3   : > { %p34_p1 = scmp.ge.s32.totalorder %s32_s15, 8  ;;  %p191_p2 = scmp.lt.s32.totalorder %s1908_s14, 9 }
   0x5   : > { %s2197_s15 = smov (%p34_p1, %s32_s15), 0  ;;  %p192_p3 = pnand %p1492_p0, %p191_p2 }
   0x6   : > { %v1798_v0 = vld [vmem:[%s2191_s1 + $0x40] sm:$0xff] (!%p192_p3)   ;;  %s1493_s18 = sshll.u32 (!%p192_p3), %s1900_s12, 5  ;;  %v1800_v2 = vld [vmem:[%s2191_s1 + $0x48] sm:$0xff] (!%p192_p3)   ;;  %v1802_v4 = vld [vmem:[%s2191_s1 + $0x50] sm:$0xff] (!%p192_p3)  }
   0x7   : > { %195 = sbr.rel (%p192_p3) target bundleno = 351 (0x15f), region = 32  ;;  %v1799_v1 = vld [vmem:[%s2191_s1] sm:$0xff] (!%p192_p3)   ;;  %1572 = vmatprep.subr.bf16.mxu0 (!%p192_p3), %v1798_v0  ;;  %1756 = vmatprep.subr.bf16.mxu1 (!%p192_p3), %v1798_v0  ;;  %p236_p4 = scmp.lt.s32.totalorder (!%p192_p3), %s1493_s18, 255  ;;  %v1801_v3 = vld [vmem:[%s2191_s1 + $0x8] sm:$0xff] (!%p192_p3)   ;;  %v1803_v5 = vld [vmem:[%s2191_s1 + $0x10] sm:$0xff] (!%p192_p3)  }
   0x8   : > { %1573 = vmatpush3.bf16.msra.mxu0 (!%p192_p3), %v1799_v1  ;;  %1764 = vmatpush3.bf16.msra.mxu1 (!%p192_p3), %v1799_v1  ;;  %v1804_v6 = vld [vmem:[%s2191_s1 + $0x58] sm:$0xff] (!%p192_p3)   ;;  %v1806_v8 = vld [vmem:[%s2191_s1 + $0x60] sm:$0xff] (!%p192_p3)   ;;  %v1808_v10 = vld [vmem:[%s2191_s1 + $0x68] sm:$0xff] (!%p192_p3)  }
   0x9   : > { %1574 = vmatprep.subr.bf16.mxu0 (!%p192_p3), %v1800_v2  ;;  %1757 = vmatprep.subr.bf16.mxu1 (!%p192_p3), %v1800_v2  ;;  %v1805_v7 = vld [vmem:[%s2191_s1 + $0x18] sm:$0xff] (!%p192_p3)   ;;  %v1807_v9 = vld [vmem:[%s2191_s1 + $0x20] sm:$0xff] (!%p192_p3)   ;;  %v1809_v13 = vld [vmem:[%s2191_s1 + $0x28] sm:$0xff] (!%p192_p3)  }
   0xa   : > { %v1810_v14 = vld [vmem:[%s2191_s1 + $0x70] sm:$0xff] (!%p192_p3)   ;;  %v1812_v16 = vld [vmem:[%s2191_s1 + $0x78] sm:$0xff] (!%p192_p3)   ;;  %v1820_v18 = vld [vmem:[%s2191_s1 + $0x80] sm:$0xff] (!%p192_p3)  }
   0xb   : > { %v1811_v15 = vld [vmem:[%s2191_s1 + $0x30] sm:$0xff] (!%p192_p3)   ;;  %v1813_v17 = vld [vmem:[%s2191_s1 + $0x38] sm:$0xff] (!%p192_p3)   ;;  %v1821_v22 = vld [vmem:[%s2191_s1 + $0x88] sm:$0xff] (!%p192_p3)  }
   0xc   : > { %1575 = vmatpush3.bf16.msra.mxu0 (!%p192_p3), %v1801_v3  ;;  %1765 = vmatpush3.bf16.msra.mxu1 (!%p192_p3), %v1801_v3  ;;  %v1828_v25 = vld [vmem:[%s2191_s1 + $0x90] sm:$0xff] (!%p192_p3)   ;;  %v1829_v27 = vld [vmem:[%s2191_s1 + $0x98] sm:$0xff] (!%p192_p3)   ;;  %v1836_v30 = vld [vmem:[%s2191_s1 + $0xa0] sm:$0xff] (!%p192_p3)  }
   0xd   : > { %1576 = vmatprep.subr.bf16.mxu0 (!%p192_p3), %v1802_v4  ;;  %1758 = vmatprep.subr.bf16.mxu1 (!%p192_p3), %v1802_v4  ;;  %v1837_v33 = vld [vmem:[%s2191_s1 + $0xa8] sm:$0xff] (!%p192_p3)   ;;  %v1844_v36 = vld [vmem:[%s2191_s1 + $0xb0] sm:$0xff] (!%p192_p3)   ;;  %v1845_v40 = vld [vmem:[%s2191_s1 + $0xb8] sm:$0xff] (!%p192_p3)  }
   0xe   : > { %s2199_s18 = smov (!%p236_p4, %s1493_s18), 255 }
   0xf   : > { %s1772_s4 = smul.u32 12, %s2199_s18  ;;  %s1496_s25 = sshll.u32 %s2199_s18, 3 }
  0x10   : > { %1577 = vmatpush3.bf16.msra.mxu0 %v1803_v5  ;;  %1766 = vmatpush3.bf16.msra.mxu1 %v1803_v5  ;;  %s2102_s28 = scalar_lea.vmem %s2193_s3, %s1496_s25 }
  0x11   : > { %1578 = vmatprep.subr.bf16.mxu0 %v1804_v6  ;;  %1759 = vmatprep.subr.bf16.mxu1 %v1804_v6  ;;  %s1981_s11 = scalar_lea.vmem %s2190_s0, %s1772_s4 }
  0x12   : > { %v1816_v11 = vld [vmem:[%s1981_s11 + $0x4] ss:$12 sps:$4 sm:$0xff]   ;;  %v1814_v19 = vld [vmem:[%s1981_s11] ss:$12 sps:$4 sm:$0xff]   ;;  %v1822_v21 = vld [vmem:[%s1981_s11 + $0x1c] ss:$12 sps:$4 sm:$0xff]  }
  0x13   : > { %v1819_v12 = vld [vmem:[%s1981_s11 + $0x124] ss:$12 sps:$4 sm:$0xff]   ;;  %880 = vmatprep.mubr.bf16.mxu0 %v1816_v11  ;;  %v1817_v20 = vld [vmem:[%s1981_s11 + $0x120] ss:$12 sps:$4 sm:$0xff]   ;;  %v1824_v23 = vld [vmem:[%s1981_s11 + $0x13c] ss:$12 sps:$4 sm:$0xff]  }
  0x14   : > { %1579 = vmatpush3.bf16.msra.mxu0 %v1805_v7  ;;  %1767 = vmatpush3.bf16.msra.mxu1 %v1805_v7  ;;  %v1826_v24 = vld [vmem:[%s1981_s11 + $0x18] ss:$12 sps:$4 sm:$0xff]   ;;  %v1830_v28 = vld [vmem:[%s1981_s11 + $0x34] ss:$12 sps:$4 sm:$0xff]   ;;  %v1834_v31 = vld [vmem:[%s1981_s11 + $0x30] ss:$12 sps:$4 sm:$0xff]  }
  0x15   : > { %1580 = vmatprep.subr.bf16.mxu0 %v1806_v8  ;;  %1760 = vmatprep.subr.bf16.mxu1 %v1806_v8  ;;  %v1827_v26 = vld [vmem:[%s1981_s11 + $0x138] ss:$12 sps:$4 sm:$0xff]   ;;  %v1832_v29 = vld [vmem:[%s1981_s11 + $0x154] ss:$12 sps:$4 sm:$0xff]   ;;  %v1835_v32 = vld [vmem:[%s1981_s11 + $0x150] ss:$12 sps:$4 sm:$0xff]  }
  0x16   : > { %976 = vmatprep.mubr.bf16.mxu1 %v1819_v12  ;;  %v1838_v34 = vld [vmem:[%s1981_s11 + $0x4c] ss:$12 sps:$4 sm:$0xff]   ;;  %v1842_v37 = vld [vmem:[%s1981_s11 + $0x48] ss:$12 sps:$4 sm:$0xff]   ;;  %v1846_v39 = vld [vmem:[%s1981_s11 + $0x64] ss:$12 sps:$4 sm:$0xff]  }
  0x17   : > { %v1840_v35 = vld [vmem:[%s1981_s11 + $0x16c] ss:$12 sps:$4 sm:$0xff]   ;;  %v1843_v38 = vld [vmem:[%s1981_s11 + $0x168] ss:$12 sps:$4 sm:$0xff]   ;;  %v1855_v47 = vld [vmem:[%s1981_s11 + $0x50] ss:$12 sps:$4 sm:$0xff]  }
  0x18   : > { %1581 = vmatpush3.bf16.msra.mxu0 %v1807_v9  ;;  %1768 = vmatpush3.bf16.msra.mxu1 %v1807_v9  ;;  %v1848_v41 = vld [vmem:[%s1981_s11 + $0x8] ss:$12 sps:$4 sm:$0xff]   ;;  %v1849_v42 = vld [vmem:[%s1981_s11 + $0x60] ss:$12 sps:$4 sm:$0xff]   ;;  %v1853_v45 = vld [vmem:[%s1981_s11 + $0x38] ss:$12 sps:$4 sm:$0xff]  }
  0x19   : > { %1582 = vmatprep.subr.bf16.mxu0 %v1808_v10  ;;  %1761 = vmatprep.subr.bf16.mxu1 %v1808_v10  ;;  %v1850_v43 = vld [vmem:[%s1981_s11 + $0x20] ss:$12 sps:$4 sm:$0xff]   ;;  %v1851_v44 = vld [vmem:[%s1981_s11 + $0x7c] ss:$12 sps:$4 sm:$0xff]   ;;  %v1854_v46 = vld [vmem:[%s1981_s11 + $0x78] ss:$12 sps:$4 sm:$0xff]  }
  0x1a   : > { %v1856_v48 = vld [vmem:[%s1981_s11 + $0x94] ss:$12 sps:$4 sm:$0xff]   ;;  %v1859_v50 = vld [vmem:[%s1981_s11 + $0x90] ss:$12 sps:$4 sm:$0xff]   ;;  %v1861_v52 = vld [vmem:[%s1981_s11 + $0xac] ss:$12 sps:$4 sm:$0xff]  }
  0x1b   : > { %v1858_v49 = vld [vmem:[%s1981_s11 + $0x68] ss:$12 sps:$4 sm:$0xff]   ;;  %v1860_v51 = vld [vmem:[%s1981_s11 + $0x80] ss:$12 sps:$4 sm:$0xff]   ;;  %v1863_v53 = vld [vmem:[%s1981_s11 + $0x98] ss:$12 sps:$4 sm:$0xff]  }
  0x1c   : > { %1583 = vmatpush3.bf16.msra.mxu0 %v1809_v13  ;;  %1769 = vmatpush3.bf16.msra.mxu1 %v1809_v13  ;;  %v1864_v54 = vld [vmem:[%s1981_s11 + $0xa8] ss:$12 sps:$4 sm:$0xff]   ;;  %v1865_v55 = vld [vmem:[%s1981_s11 + $0xb0] ss:$12 sps:$4 sm:$0xff]   ;;  %v1869_v58 = vld [vmem:[%s1981_s11 + $0xc0] ss:$12 sps:$4 sm:$0xff]  }
  0x1d   : > { %1584 = vmatprep.subr.bf16.mxu0 %v1810_v14  ;;  %1762 = vmatprep.subr.bf16.mxu1 %v1810_v14  ;;  %v1866_v56 = vld [vmem:[%s1981_s11 + $0xc4] ss:$12 sps:$4 sm:$0xff]   ;;  %v1868_v57 = vld [vmem:[%s1981_s11 + $0xc8] ss:$12 sps:$4 sm:$0xff]   ;;  %v1870_v59 = vld [vmem:[%s1981_s11 + $0xe0] ss:$12 sps:$4 sm:$0xff]  }
  0x1e   : > { %v1871_v60 = vld [vmem:[%s1981_s11 + $0xdc] ss:$12 sps:$4 sm:$0xff]   ;;  %v1873_v61 = vld [vmem:[%s1981_s11 + $0xf8] ss:$12 sps:$4 sm:$0xff]   ;;  %v1876_v0 = vld [vmem:[%s1981_s11 + $0xf4] ss:$12 sps:$4 sm:$0xff]  }
  0x1f   : > { %v1874_v62 = vld [vmem:[%s1981_s11 + $0xd8] ss:$12 sps:$4 sm:$0xff]   ;;  %v1875_v63 = vld [vmem:[%s1981_s11 + $0x110] ss:$12 sps:$4 sm:$0xff]   ;;  %v1878_v1 = vld [vmem:[%s1981_s11 + $0x128] ss:$12 sps:$4 sm:$0xff]  }
  0x20   : > { %1585 = vmatpush3.bf16.msra.mxu0 %v1811_v15  ;;  %1770 = vmatpush3.bf16.msra.mxu1 %v1811_v15  ;;  %v1879_v2 = vld [vmem:[%s1981_s11 + $0xf0] ss:$12 sps:$4 sm:$0xff]   ;;  %v1880_v3 = vld [vmem:[%s1981_s11 + $0x140] ss:$12 sps:$4 sm:$0xff]   ;;  %v1883_v5 = vld [vmem:[%s1981_s11 + $0x158] ss:$12 sps:$4 sm:$0xff]  }
  0x21   : > { %1586 = vmatprep.subr.bf16.mxu0 %v1812_v16  ;;  %1763 = vmatprep.subr.bf16.mxu1 %v1812_v16  ;;  %v1881_v4 = vld [vmem:[%s1981_s11 + $0x10c] ss:$12 sps:$4 sm:$0xff]   ;;  %v1884_v6 = vld [vmem:[%s1981_s11 + $0x108] ss:$12 sps:$4 sm:$0xff]   ;;  %v1885_v7 = vld [vmem:[%s1981_s11 + $0x170] ss:$12 sps:$4 sm:$0xff]  }
  0x24   : > { %1587 = vmatpush3.bf16.msra.mxu0 %v1813_v17  ;;  %1771 = vmatpush3.bf16.msra.mxu1 %v1813_v17 }
  0x25   : > { %1708 = vmatprep.subr.bf16.mxu1 %v1820_v18 }
  0x27   : > { %881 = vmatmul.mubr.bf16.vlgmr.msra.gmra.mrb[0].mxu0 %v1814_v19  ;;  %977 = vmatmul.mubr.bf16.vlgmr.msra.gmra.mrb[0].mxu1 %v1817_v20 }
  0x28   : > { %1709 = vmatpush3.bf16.msra.mxu1 %v1820_v18  ;;  %888 = vmatprep.mubr.bf16.mxu0 %v1822_v21 }
  0x29   : > { %1710 = vmatprep.subr.bf16.mxu1 %v1821_v22  ;;  %984 = vmatprep.mubr.bf16.mxu1 %v1824_v23 }
  0x2c   : > { %1711 = vmatpush3.bf16.msra.mxu1 %v1821_v22 }
  0x2d   : > { %1712 = vmatprep.subr.bf16.mxu1 %v1828_v25 }
  0x2f   : > { %889 = vmatmul.mubr.bf16.gmra.mrb[4].mxu0 %v1826_v24  ;;  %985 = vmatmul.mubr.bf16.gmra.mrb[4].mxu1 %v1827_v26 }
  0x30   : > { %1713 = vmatpush3.bf16.msra.mxu1 %v1828_v25  ;;  %896 = vmatprep.mubr.bf16.mxu0 %v1830_v28 }
  0x31   : > { %1714 = vmatprep.subr.bf16.mxu1 %v1829_v27  ;;  %992 = vmatprep.mubr.bf16.mxu1 %v1832_v29 }
  0x34   : > { %1715 = vmatpush3.bf16.msra.mxu1 %v1829_v27 }
  0x35   : > { %1716 = vmatprep.subr.bf16.mxu1 %v1836_v30 }
  0x37   : > { %897 = vmatmul.mubr.bf16.gmra.mrb[8].mxu0 %v1834_v31  ;;  %993 = vmatmul.mubr.bf16.gmra.mrb[8].mxu1 %v1835_v32 }
  0x38   : > { %1717 = vmatpush3.bf16.msra.mxu1 %v1836_v30  ;;  %904 = vmatprep.mubr.bf16.mxu0 %v1838_v34 }
  0x39   : > { %1718 = vmatprep.subr.bf16.mxu1 %v1837_v33  ;;  %1000 = vmatprep.mubr.bf16.mxu1 %v1840_v35 }
  0x3c   : > { %1719 = vmatpush3.bf16.msra.mxu1 %v1837_v33 }
  0x3d   : > { %1720 = vmatprep.subr.bf16.mxu1 %v1844_v36 }
  0x3f   : > { %905 = vmatmul.mubr.bf16.gmra.mrb[12].mxu0 %v1842_v37  ;;  %1001 = vmatmul.mubr.bf16.gmra.mrb[12].mxu1 %v1843_v38 }
  0x40   : > { %1721 = vmatpush3.bf16.msra.mxu1 %v1844_v36  ;;  %912 = vmatprep.mubr.bf16.mxu0 %v1846_v39 }
  0x41   : > { %1722 = vmatprep.subr.bf16.mxu1 %v1845_v40  ;;  %1724 = vmatprep.mubr.bf16.mxu1 %v1848_v41 }
  0x44   : > { %1723 = vmatpush3.bf16.msra.mxu1 %v1845_v40 }
  0x47   : > { %913 = vmatmul.mubr.bf16.gmra.mrb[16].mxu0 %v1849_v42  ;;  %1725 = vmatmul.mubr.bf16.vlgmr.msra.gmra.mrb[16].mxu1 %v1850_v43 }
  0x48   : > { %920 = vmatprep.mubr.bf16.mxu0 %v1851_v44  ;;  %1728 = vmatprep.mubr.bf16.mxu1 %v1853_v45 }
  0x4f   : > { %921 = vmatmul.mubr.bf16.gmra.mrb[20].mxu0 %v1854_v46  ;;  %1729 = vmatmul.mubr.bf16.gmra.mrb[20].mxu1 %v1855_v47 }
  0x50   : > { %928 = vmatprep.mubr.bf16.mxu0 %v1856_v48  ;;  %1732 = vmatprep.mubr.bf16.mxu1 %v1858_v49 }
  0x57   : > { %929 = vmatmul.mubr.bf16.gmra.mrb[24].mxu0 %v1859_v50  ;;  %1733 = vmatmul.mubr.bf16.gmra.mrb[24].mxu1 %v1860_v51 }
  0x58   : > { %936 = vmatprep.mubr.bf16.mxu0 %v1861_v52  ;;  %1736 = vmatprep.mubr.bf16.mxu1 %v1863_v53 }
  0x5f   : > { %937 = vmatmul.mubr.bf16.gmra.mrb[28].mxu0 %v1864_v54  ;;  %1737 = vmatmul.mubr.bf16.gmra.mrb[28].mxu1 %v1865_v55 }
  0x60   : > { %944 = vmatprep.mubr.bf16.mxu0 %v1866_v56  ;;  %1740 = vmatprep.mubr.bf16.mxu1 %v1868_v57 }
  0x67   : > { %945 = vmatmul.mubr.bf16.gmra.mrb[32].mxu0 %v1869_v58  ;;  %1741 = vmatmul.mubr.bf16.gmra.mrb[32].mxu1 %v1870_v59 }
  0x68   : > { %952 = vmatprep.mubr.bf16.mxu0 %v1871_v60  ;;  %1744 = vmatprep.mubr.bf16.mxu1 %v1873_v61  ;;  %v2095_v61 = vld [vmem:[%s2192_s2] ss:$0 sm:$0xff] }
  0x6f   : > { %953 = vmatmul.mubr.bf16.gmra.mrb[36].mxu0 %v1874_v62  ;;  %1745 = vmatmul.mubr.bf16.gmra.mrb[36].mxu1 %v1875_v63 }
  0x70   : > { %960 = vmatprep.mubr.bf16.mxu0 %v1876_v0  ;;  %1748 = vmatprep.mubr.bf16.mxu1 %v1878_v1 }
  0x77   : > { %961 = vmatmul.mubr.bf16.gmra.mrb[40].mxu0 %v1879_v2  ;;  %1749 = vmatmul.mubr.bf16.gmra.mrb[40].mxu1 %v1880_v3 }
  0x78   : > { %968 = vmatprep.mubr.bf16.mxu0 %v1881_v4  ;;  %1752 = vmatprep.mubr.bf16.mxu1 %v1883_v5 }
  0x7f   : > { %969 = vmatmul.mubr.bf16.gmra.mrb[44].mxu0 %v1884_v6  ;;  %1753 = vmatmul.mubr.bf16.gmra.mrb[44].mxu1 %v1885_v7 }
  0xfa   : > { %v1588_v8 = vpop.f32.mrb[0].mxu0  ;;  %v1660_v9 = vpop.f32.mrb[0].mxu1 }
  0xfb   : > { %v1589_v10 = vpop.f32.mrb[1].mxu0  ;;  %v1661_v11 = vpop.f32.mrb[1].mxu1 }
  0xfc   : > { %v1590_v12 = vadd.f32 %v1589_v10, %v1588_v8  ;;  %v2076_v13 = vadd.f32 %v1661_v11, %v1660_v9  ;;  %v1591_v14 = vpop.f32.mrb[2].mxu0  ;;  %v1663_v15 = vpop.f32.mrb[2].mxu1 }
  0xfd   : > { %v1592_v16 = vpop.f32.mrb[3].mxu0  ;;  %v1664_v17 = vpop.f32.mrb[3].mxu1 }
  0xfe   : > { %v1593_v18 = vadd.f32 %v1592_v16, %v1591_v14  ;;  %v2078_v19 = vadd.f32 %v1664_v17, %v1663_v15 }
 0x102   : > { %v1594_v20 = vpop.f32.mrb[4].mxu0  ;;  %v1666_v21 = vpop.f32.mrb[4].mxu1 }
 0x103   : > { %v1595_v22 = vpop.f32.mrb[5].mxu0  ;;  %v1667_v23 = vpop.f32.mrb[5].mxu1 }
 0x104   : > { %v1596_v24 = vadd.f32 %v1595_v22, %v1594_v20  ;;  %v2080_v25 = vadd.f32 %v1667_v23, %v1666_v21  ;;  %v1597_v26 = vpop.f32.mrb[6].mxu0  ;;  %v1669_v27 = vpop.f32.mrb[6].mxu1 }
 0x105   : > { %v1598_v28 = vpop.f32.mrb[7].mxu0  ;;  %v1670_v29 = vpop.f32.mrb[7].mxu1 }
 0x106   : > { %v1599_v30 = vadd.f32 %v1598_v28, %v1597_v26  ;;  %v2082_v31 = vadd.f32 %v1670_v29, %v1669_v27 }
 0x10a   : > { %v1600_v32 = vpop.f32.mrb[8].mxu0  ;;  %v1672_v33 = vpop.f32.mrb[8].mxu1 }
 0x10b   : > { %v1601_v34 = vpop.f32.mrb[9].mxu0  ;;  %v1673_v35 = vpop.f32.mrb[9].mxu1 }
 0x10c   : > { %v1602_v36 = vadd.f32 %v1601_v34, %v1600_v32  ;;  %v2084_v37 = vadd.f32 %v1673_v35, %v1672_v33  ;;  %v1603_v38 = vpop.f32.mrb[10].mxu0  ;;  %v1675_v39 = vpop.f32.mrb[10].mxu1 }
 0x10d   : > { %v1604_v40 = vpop.f32.mrb[11].mxu0  ;;  %v1676_v41 = vpop.f32.mrb[11].mxu1 }
 0x10e   : > { %v1605_v42 = vadd.f32 %v1604_v40, %v1603_v38  ;;  %v2086_v43 = vadd.f32 %v1676_v41, %v1675_v39 }
 0x112   : > { %v1606_v44 = vpop.f32.mrb[12].mxu0  ;;  %v1678_v45 = vpop.f32.mrb[12].mxu1 }
 0x113   : > { %v1607_v46 = vpop.f32.mrb[13].mxu0  ;;  %v1679_v47 = vpop.f32.mrb[13].mxu1 }
 0x114   : > { %v1608_v48 = vadd.f32 %v1607_v46, %v1606_v44  ;;  %v2088_v49 = vadd.f32 %v1679_v47, %v1678_v45  ;;  %v1609_v50 = vpop.f32.mrb[14].mxu0  ;;  %v1681_v51 = vpop.f32.mrb[14].mxu1 }
 0x115   : > { %v1610_v52 = vpop.f32.mrb[15].mxu0  ;;  %v1682_v53 = vpop.f32.mrb[15].mxu1 }
 0x116   : > { %v1611_v54 = vadd.f32 %v1610_v52, %v1609_v50  ;;  %v2090_v55 = vadd.f32 %v1682_v53, %v1681_v51 }
 0x11a   : > { %v1612_v56 = vpop.f32.mrb[16].mxu0  ;;  %v1726_v57 = vpop.f32.mrb[16].mxu1 }
 0x11b   : > { %v1052_v58 = vadd.f32 %v1726_v57, %v1596_v24  ;;  %v1613_v59 = vpop.f32.mrb[17].mxu0  ;;  %v1043_v60 = vpop.f32.mrb[17].mxu1 }
 0x11c   : > { %v1614_v62 = vadd.f32 %v1613_v59, %v1612_v56  ;;  %v1044_v63 = vadd.f32 %v1590_v12, %v1043_v60  ;;  %v1615_v0 = vpop.f32.mrb[18].mxu0  ;;  %v1727_v1 = vpop.f32.mrb[18].mxu1 }
 0x11d   : > { %v1055_v2 = vadd.f32 %v1727_v1, %v1599_v30  ;;  %v1616_v3 = vpop.f32.mrb[19].mxu0  ;;  %v1046_v4 = vpop.f32.mrb[19].mxu1  ;;  %v1278_v7 = vadd.f32 %v2095_v61, %v1052_v58 }
 0x11e   : > { %v1617_v5 = vadd.f32 %v1616_v3, %v1615_v0  ;;  %v1047_v6 = vadd.f32 %v1593_v18, %v1046_v4  ;;  %v1276_v8 = vadd.f32 %v2095_v61, %v1044_v63 }
 0x11f   : > { %v1310_v9 = vmax.f32 %v1278_v7, 0.0  ;;  %v1279_v10 = vadd.f32 %v2095_v61, %v1055_v2 }
 0x120   : > { %v1308_v11 = vmax.f32 %v1276_v8, 0.0  ;;  %v1277_v12 = vadd.f32 %v2095_v61, %v1047_v6 }
 0x121   : > { %1342 = vst [vmem:[%s2102_s28 + $0x10] sm:$0xff] %v1310_v9  ;;  %v1311_v16 = vmax.f32 %v1279_v10, 0.0 }
 0x122   : > { %v1618_v14 = vpop.f32.mrb[20].mxu0  ;;  %v1730_v15 = vpop.f32.mrb[20].mxu1  ;;  %1340 = vst [vmem:[%s2102_s28] sm:$0xff] %v1308_v11  ;;  %v1309_v21 = vmax.f32 %v1277_v12, 0.0 }
 0x123   : > { %v1068_v17 = vadd.f32 %v1730_v15, %v1608_v48  ;;  %v1619_v18 = vpop.f32.mrb[21].mxu0  ;;  %v1059_v20 = vpop.f32.mrb[21].mxu1  ;;  %1343 = vst [vmem:[%s2102_s28 + $0x18] sm:$0xff] %v1311_v16 }
 0x124   : > { %v1620_v22 = vadd.f32 %v1619_v18, %v1618_v14  ;;  %v1060_v23 = vadd.f32 %v1602_v36, %v1059_v20  ;;  %v1621_v24 = vpop.f32.mrb[22].mxu0  ;;  %v1731_v26 = vpop.f32.mrb[22].mxu1  ;;  %1341 = vst [vmem:[%s2102_s28 + $0x8] sm:$0xff] %v1309_v21 }
 0x125   : > { %v1071_v27 = vadd.f32 %v1731_v26, %v1611_v54  ;;  %v1622_v28 = vpop.f32.mrb[23].mxu0  ;;  %v1062_v29 = vpop.f32.mrb[23].mxu1  ;;  %v1282_v33 = vadd.f32 %v2095_v61, %v1068_v17 }
 0x126   : > { %v1623_v30 = vadd.f32 %v1622_v28, %v1621_v24  ;;  %v1063_v32 = vadd.f32 %v1605_v42, %v1062_v29  ;;  %v1280_v34 = vadd.f32 %v2095_v61, %v1060_v23 }
 0x127   : > { %v1314_v35 = vmax.f32 %v1282_v33, 0.0  ;;  %v1283_v38 = vadd.f32 %v2095_v61, %v1071_v27 }
 0x128   : > { %v1312_v36 = vmax.f32 %v1280_v34, 0.0  ;;  %v1281_v39 = vadd.f32 %v2095_v61, %v1063_v32 }
 0x129   : > { %1346 = vst [vmem:[%s2102_s28 + $0x30] sm:$0xff] %v1314_v35  ;;  %v1315_v44 = vmax.f32 %v1283_v38, 0.0 }
 0x12a   : > { %v1624_v40 = vpop.f32.mrb[24].mxu0  ;;  %v1734_v41 = vpop.f32.mrb[24].mxu1  ;;  %1344 = vst [vmem:[%s2102_s28 + $0x20] sm:$0xff] %v1312_v36  ;;  %v1313_v42 = vmax.f32 %v1281_v39, 0.0 }
 0x12b   : > { %v1084_v45 = vadd.f32 %v1734_v41, %v1620_v22  ;;  %v1625_v46 = vpop.f32.mrb[25].mxu0  ;;  %v1075_v47 = vpop.f32.mrb[25].mxu1  ;;  %1347 = vst [vmem:[%s2102_s28 + $0x38] sm:$0xff] %v1315_v44 }
 0x12c   : > { %v1626_v48 = vadd.f32 %v1625_v46, %v1624_v40  ;;  %v1076_v50 = vadd.f32 %v1614_v62, %v1075_v47  ;;  %v1627_v51 = vpop.f32.mrb[26].mxu0  ;;  %v1735_v52 = vpop.f32.mrb[26].mxu1  ;;  %1345 = vst [vmem:[%s2102_s28 + $0x28] sm:$0xff] %v1313_v42 }
 0x12d   : > { %v1087_v53 = vadd.f32 %v1735_v52, %v1623_v30  ;;  %v1628_v54 = vpop.f32.mrb[27].mxu0  ;;  %v1078_v56 = vpop.f32.mrb[27].mxu1  ;;  %v1286_v59 = vadd.f32 %v2095_v61, %v1084_v45 }
 0x12e   : > { %v1629_v57 = vadd.f32 %v1628_v54, %v1627_v51  ;;  %v1079_v58 = vadd.f32 %v1617_v5, %v1078_v56  ;;  %v1284_v60 = vadd.f32 %v2095_v61, %v1076_v50 }
 0x12f   : > { %v1318_v63 = vmax.f32 %v1286_v59, 0.0  ;;  %v1287_v0 = vadd.f32 %v2095_v61, %v1087_v53 }
 0x130   : > { %v1316_v62 = vmax.f32 %v1284_v60, 0.0  ;;  %v1285_v1 = vadd.f32 %v2095_v61, %v1079_v58 }
 0x131   : > { %1350 = vst [vmem:[%s2102_s28 + $0x50] sm:$0xff] %v1318_v63  ;;  %v1319_v4 = vmax.f32 %v1287_v0, 0.0 }
 0x132   : > { %v1630_v2 = vpop.f32.mrb[28].mxu0  ;;  %v1738_v3 = vpop.f32.mrb[28].mxu1  ;;  %1348 = vst [vmem:[%s2102_s28 + $0x40] sm:$0xff] %v1316_v62  ;;  %v1317_v5 = vmax.f32 %v1285_v1, 0.0 }
 0x133   : > { %v1631_v6 = vpop.f32.mrb[29].mxu0  ;;  %v1091_v7 = vpop.f32.mrb[29].mxu1  ;;  %1351 = vst [vmem:[%s2102_s28 + $0x58] sm:$0xff] %v1319_v4 }
 0x134   : > { %v1632_v8 = vadd.f32 %v1631_v6, %v1630_v2  ;;  %v1092_v9 = vadd.f32 %v1626_v48, %v1091_v7  ;;  %v1633_v10 = vpop.f32.mrb[30].mxu0  ;;  %v1739_v11 = vpop.f32.mrb[30].mxu1  ;;  %1349 = vst [vmem:[%s2102_s28 + $0x48] sm:$0xff] %v1317_v5 }
 0x135   : > { %v1634_v12 = vpop.f32.mrb[31].mxu0  ;;  %v1094_v14 = vpop.f32.mrb[31].mxu1 }
 0x136   : > { %v1100_v15 = vadd.f32 %v1738_v3, %v1632_v8  ;;  %v1635_v16 = vadd.f32 %v1634_v12, %v1633_v10  ;;  %v1095_v17 = vadd.f32 %v1629_v57, %v1094_v14  ;;  %v1288_v18 = vadd.f32 %v2095_v61, %v1092_v9 }
 0x138   : > { %v1103_v20 = vadd.f32 %v1739_v11, %v1635_v16  ;;  %v1290_v21 = vadd.f32 %v2095_v61, %v1100_v15  ;;  %v1320_v22 = vmax.f32 %v1288_v18, 0.0  ;;  %v1289_v23 = vadd.f32 %v2095_v61, %v1095_v17 }
 0x13a   : > { %v1636_v24 = vpop.f32.mrb[32].mxu0  ;;  %v1742_v26 = vpop.f32.mrb[32].mxu1  ;;  %v1322_v29 = vmax.f32 %v1290_v21, 0.0  ;;  %1352 = vst [vmem:[%s2102_s28 + $0x60] sm:$0xff] %v1320_v22  ;;  %v1291_v30 = vadd.f32 %v2095_v61, %v1103_v20  ;;  %v1321_v32 = vmax.f32 %v1289_v23, 0.0 }
 0x13b   : > { %v1637_v27 = vpop.f32.mrb[33].mxu0  ;;  %v1107_v28 = vpop.f32.mrb[33].mxu1 }
 0x13c   : > { %v1638_v33 = vadd.f32 %v1637_v27, %v1636_v24  ;;  %v1639_v34 = vpop.f32.mrb[34].mxu0  ;;  %v1743_v35 = vpop.f32.mrb[34].mxu1  ;;  %1354 = vst [vmem:[%s2102_s28 + $0x70] sm:$0xff] %v1322_v29  ;;  %v1323_v39 = vmax.f32 %v1291_v30, 0.0  ;;  %1353 = vst [vmem:[%s2102_s28 + $0x68] sm:$0xff] %v1321_v32 }
 0x13d   : > { %v1640_v38 = vpop.f32.mrb[35].mxu0  ;;  %v1110_v36 = vpop.f32.mrb[35].mxu1 }
 0x13e   : > { %v1108_v40 = vadd.f32 %v1638_v33, %v1107_v28  ;;  %v1641_v41 = vadd.f32 %v1640_v38, %v1639_v34  ;;  %1355 = vst [vmem:[%s2102_s28 + $0x78] sm:$0xff] %v1323_v39 }
 0x140   : > { %v1111_v44 = vadd.f32 %v1641_v41, %v1110_v36  ;;  %v1292_v45 = vadd.f32 %v2095_v61, %v1108_v40 }
 0x142   : > { %v1642_v46 = vpop.f32.mrb[36].mxu0  ;;  %v2136_v47 = vpop.f32.mrb[36].mxu1  ;;  %v1324_v50 = vmax.f32 %v1292_v45, 0.0  ;;  %v1293_v51 = vadd.f32 %v2095_v61, %v1111_v44 }
 0x143   : > { %v1643_v42 = vpop.f32.mrb[37].mxu0  ;;  %v1123_v48 = vpop.f32.mrb[37].mxu1 }
 0x144   : > { %v1644_v52 = vadd.f32 %v1643_v42, %v1642_v46  ;;  %v1645_v53 = vpop.f32.mrb[38].mxu0  ;;  %v2139_v54 = vpop.f32.mrb[38].mxu1  ;;  %1356 = vst [vmem:[%s2102_s28 + $0x80] sm:$0xff] %v1324_v50  ;;  %v1325_v58 = vmax.f32 %v1293_v51, 0.0 }
 0x145   : > { %v1646_v56 = vpop.f32.mrb[39].mxu0  ;;  %v1126_v57 = vpop.f32.mrb[39].mxu1 }
 0x146   : > { %v1116_v59 = vadd.f32 %v1742_v26, %v1644_v52  ;;  %v1647_v60 = vadd.f32 %v1646_v56, %v1645_v53  ;;  %1357 = vst [vmem:[%s2102_s28 + $0x88] sm:$0xff] %v1325_v58 }
 0x148   : > { %v1119_v63 = vadd.f32 %v1743_v35, %v1647_v60  ;;  %v1294_v0 = vadd.f32 %v2095_v61, %v1116_v59 }
 0x14a   : > { %v1648_v62 = vpop.f32.mrb[40].mxu0  ;;  %v1750_v1 = vpop.f32.mrb[40].mxu1  ;;  %v1326_v6 = vmax.f32 %v1294_v0, 0.0  ;;  %v1295_v7 = vadd.f32 %v2095_v61, %v1119_v63 }
 0x14b   : > { %v1148_v2 = vadd.f32 %v1750_v1, %v2080_v25  ;;  %v1649_v3 = vpop.f32.mrb[41].mxu0  ;;  %v1139_v4 = vpop.f32.mrb[41].mxu1 }
 0x14c   : > { %v1650_v5 = vadd.f32 %v1649_v3, %v1648_v62  ;;  %v1140_v8 = vadd.f32 %v2076_v13, %v1139_v4  ;;  %v1651_v9 = vpop.f32.mrb[42].mxu0  ;;  %v1751_v10 = vpop.f32.mrb[42].mxu1  ;;  %1358 = vst [vmem:[%s2102_s28 + $0x90] sm:$0xff] %v1326_v6  ;;  %v1327_v15 = vmax.f32 %v1295_v7, 0.0 }
 0x14d   : > { %v1151_v11 = vadd.f32 %v1751_v10, %v2082_v31  ;;  %v1652_v12 = vpop.f32.mrb[43].mxu0  ;;  %v1142_v14 = vpop.f32.mrb[43].mxu1  ;;  %v1302_v17 = vadd.f32 %v2095_v61, %v1148_v2 }
 0x14e   : > { %v1124_v16 = vadd.f32 %v1650_v5, %v1123_v48  ;;  %v1653_v25 = vadd.f32 %v1652_v12, %v1651_v9  ;;  %v1143_v18 = vadd.f32 %v2078_v19, %v1142_v14  ;;  %1359 = vst [vmem:[%s2102_s28 + $0x98] sm:$0xff] %v1327_v15  ;;  %v1300_v20 = vadd.f32 %v2095_v61, %v1140_v8 }
 0x14f   : > { %v1334_v21 = vmax.f32 %v1302_v17, 0.0  ;;  %v1303_v22 = vadd.f32 %v2095_v61, %v1151_v11 }
 0x150   : > { %v1127_v13 = vadd.f32 %v1653_v25, %v1126_v57  ;;  %v1296_v31 = vadd.f32 %v2095_v61, %v1124_v16  ;;  %v1332_v23 = vmax.f32 %v1300_v20, 0.0  ;;  %v1301_v28 = vadd.f32 %v2095_v61, %v1143_v18 }
 0x151   : > { %1366 = vst [vmem:[%s2102_s28 + $0xd0] sm:$0xff] %v1334_v21  ;;  %v1335_v27 = vmax.f32 %v1303_v22, 0.0 }
 0x152   : > { %v1654_v24 = vpop.f32.mrb[44].mxu0  ;;  %v1754_v26 = vpop.f32.mrb[44].mxu1  ;;  %v1328_v32 = vmax.f32 %v1296_v31, 0.0  ;;  %1364 = vst [vmem:[%s2102_s28 + $0xc0] sm:$0xff] %v1332_v23  ;;  %v1297_v33 = vadd.f32 %v2095_v61, %v1127_v13  ;;  %v1333_v39 = vmax.f32 %v1301_v28, 0.0 }
 0x153   : > { %v1164_v19 = vadd.f32 %v1754_v26, %v2088_v49  ;;  %v1655_v29 = vpop.f32.mrb[45].mxu0  ;;  %v1155_v30 = vpop.f32.mrb[45].mxu1  ;;  %1367 = vst [vmem:[%s2102_s28 + $0xd8] sm:$0xff] %v1335_v27 }
 0x154   : > { %v1656_v34 = vadd.f32 %v1655_v29, %v1654_v24  ;;  %v1156_v35 = vadd.f32 %v2084_v37, %v1155_v30  ;;  %v1657_v38 = vpop.f32.mrb[46].mxu0  ;;  %v1755_v36 = vpop.f32.mrb[46].mxu1  ;;  %1360 = vst [vmem:[%s2102_s28 + $0xa0] sm:$0xff] %v1328_v32  ;;  %v1329_v44 = vmax.f32 %v1297_v33, 0.0  ;;  %1365 = vst [vmem:[%s2102_s28 + $0xc8] sm:$0xff] %v1333_v39 }
 0x155   : > { %v1167_v40 = vadd.f32 %v1755_v36, %v2090_v55  ;;  %v1658_v41 = vpop.f32.mrb[47].mxu0  ;;  %v1158_v49 = vpop.f32.mrb[47].mxu1  ;;  %v1306_v42 = vadd.f32 %v2095_v61, %v1164_v19 }
 0x156   : > { %v1132_v45 = vadd.f32 %v2136_v47, %v1656_v34  ;;  %v1659_v46 = vadd.f32 %v1658_v41, %v1657_v38  ;;  %v1159_v37 = vadd.f32 %v2086_v43, %v1158_v49  ;;  %1361 = vst [vmem:[%s2102_s28 + $0xa8] sm:$0xff] %v1329_v44  ;;  %v1304_v48 = vadd.f32 %v2095_v61, %v1156_v35 }
 0x157   : > { %v1338_v50 = vmax.f32 %v1306_v42, 0.0  ;;  %v1307_v51 = vadd.f32 %v2095_v61, %v1167_v40 }
 0x158   : > { %v1135_v55 = vadd.f32 %v2139_v54, %v1659_v46  ;;  %v1298_v47 = vadd.f32 %v2095_v61, %v1132_v45  ;;  %v1336_v52 = vmax.f32 %v1304_v48, 0.0  ;;  %v1305_v56 = vadd.f32 %v2095_v61, %v1159_v37 }
 0x159   : > { %1370 = vst [vmem:[%s2102_s28 + $0xf0] sm:$0xff] %v1338_v50  ;;  %v1339_v53 = vmax.f32 %v1307_v51, 0.0 }
 0x15a   : > { %v1330_v57 = vmax.f32 %v1298_v47, 0.0  ;;  %1368 = vst [vmem:[%s2102_s28 + $0xe0] sm:$0xff] %v1336_v52  ;;  %v1299_v43 = vadd.f32 %v2095_v61, %v1135_v55  ;;  %v1337_v58 = vmax.f32 %v1305_v56, 0.0 }
 0x15b   : > { %1371 = vst [vmem:[%s2102_s28 + $0xf8] sm:$0xff] %v1339_v53 }
 0x15c   : > { %1362 = vst [vmem:[%s2102_s28 + $0xb0] sm:$0xff] %v1330_v57  ;;  %v1331_v59 = vmax.f32 %v1299_v43, 0.0  ;;  %1369 = vst [vmem:[%s2102_s28 + $0xe8] sm:$0xff] %v1337_v58 }
 0x15e   : > { %1363 = vst [vmem:[%s2102_s28 + $0xb8] sm:$0xff] %v1331_v59 }
 0x15f PF: > { %s13_s14 = sadd.s32 1, %s1908_s14   ;;  %s2194_s12 = smov %s1904_s13 }
 0x160   : > { %p10_p5 = scmp.ge.s32.totalorder %s13_s14, 10   ;;  %s2195_s13 = smov %s2197_s15 }
 0x162   :  { %12 = sbr.rel (!%p10_p5) target bundleno = 2 (0x2), region = 76 }

// kernel: demo_fcn_forward.8
= control target key start
LH: loop header
LB: loop body
LE: loop exit
PB: predicated region body
PF: predicated region fallthrough
CT: control target
= control target key end

     0   :  { %s1041_s15 = smov 0   ;;  %s1418_s0 = inlined_call_operand.vmem [shape: f32[2,16,16,64], index: 0, kind: input, shape index: {}]   ;;  %s1419_s1 = inlined_call_operand.vmem [shape: f32[2,16,15,64], index: 1, kind: input, shape index: {}]   ;;  %s1420_s2 = inlined_call_operand.vmem [shape: f32[2,15,16,64], index: 2, kind: input, shape index: {}]   ;;  %s1421_s3 = inlined_call_operand.vmem [shape: f32[2,15,15,64], index: 3, kind: input, shape index: {}]   ;;  %s1422_s4 = inlined_call_operand.vmem [shape: f32[2,15,15,64], index: 4, kind: output, shape index: {}]  }
   0x1 LB: > { %s893_s16 = sadd.s32 4294967295, %s1014_s15   ;;  %p897_p0 = scmp.ge.s32.totalorder %s1014_s15, 1  ;;  %s1014_s15 = sphi %s1041_s15, %s14_s15  }
   0x2   : > { %p192_p1 = scmp.lt.s32.totalorder %s1014_s15, 3 }
   0x4   : > { %p193_p2 = pnand %p897_p0, %p192_p1 }
   0x5   : > { %p233_p3 = scmp.lt.s32.totalorder (!%p193_p2), %s893_s16, 1  ;;  %vm770_vm0 = vcmask (!%p193_p2), 523264   ;;  %vm772_vm1 = vcmask (!%p193_p2), 522240  }
   0x6   : > { %196 = sbr.rel (%p193_p2) target bundleno = 107 (0x6b), region = 36 }
   0xd   : > { %s1424_s16 = smov (!%p233_p3, %s893_s16), 1 }
   0xe   : > { %s997_s17 = sshll.u32 %s1424_s16, 8  ;;  %s1049_s18 = smul.u32 240, %s1424_s16 }
   0xf   : > { %s1054_s21 = scalar_lea.vmem %s1418_s0, %s997_s17  ;;  %s1059_s24 = scalar_lea.vmem %s1419_s1, %s997_s17 }
  0x10   : > { %s1065_s27 = scalar_lea.vmem %s1420_s2, %s1049_s18  ;;  %v258_v0 = vld [vmem:[%s1054_s21] sm:$0xff]  ;;  %s1075_s30 = scalar_lea.vmem %s1421_s3, %s1049_s18  ;;  %v905_v5 = vld [vmem:[%s1054_s21 + $0x10] sm:$0xff]  ;;  %v259_v9 = vld [vmem:[%s1054_s21 + $0x8] sm:$0x7f] }
  0x11   : > { %v288_v1 = vld [vmem:[%s1054_s21 + $0x1] sm:$0xff]  ;;  %v1079_v6 = vld [vmem:[%s1054_s21 + $0x11] sm:$0xff]  ;;  %v289_v10 = vld [vmem:[%s1054_s21 + $0x9] sm:$0x7f]  ;;  %s1123_s7 = scalar_lea.vmem %s1422_s4, %s1049_s18 }
  0x12   : > { %v348_v2 = vld [vmem:[%s1059_s24] sm:$0xff]  ;;  %v318_v3 = vmax.f32 %v258_v0, %v288_v1  ;;  %v965_v7 = vld [vmem:[%s1059_s24 + $0x10] sm:$0xff]  ;;  %v349_v11 = vld [vmem:[%s1059_s24 + $0x8] sm:$0x7f]  ;;  %v320_v12 = vmax.f32 %v905_v5, %v1079_v6  ;;  %v319_v14 = vmax.f32 %v259_v9, %v289_v10 }
  0x13   : > { %v408_v4 = vld [vmem:[%s1065_s27] sm:$0xff]  ;;  %v409_v17 = vld [vmem:[%s1065_s27 + $0x8] sm:$0x7f]  ;;  %v410_v21 = vld [vmem:[%s1065_s27 + $0x10] sm:$0xff] }
  0x14   : > { %v378_v8 = vmax.f32 %v318_v3, %v348_v2  ;;  %v468_v13 = vld [vmem:[%s1065_s27 + $0x1] sm:$0xff]  ;;  %v469_v18 = vld [vmem:[%s1065_s27 + $0x9] sm:$0x7f]  ;;  %v380_v19 = vmax.f32 %v320_v12, %v965_v7  ;;  %v379_v20 = vmax.f32 %v319_v14, %v349_v11  ;;  %v470_v22 = vld [vmem:[%s1065_s27 + $0x11] sm:$0xff] }
  0x15   : > { %v528_v16 = vld [vmem:[%s1075_s30] sm:$0xff]  ;;  %v530_v23 = vld [vmem:[%s1075_s30 + $0x10] sm:$0xff]  ;;  %v261_v30 = vld [vmem:[%s1054_s21 + $0x18] sm:$0x7f] }
  0x16   : > { %v438_v15 = vmax.f32 %v378_v8, %v408_v4  ;;  %v440_v25 = vmax.f32 %v380_v19, %v410_v21  ;;  %v907_v26 = vld [vmem:[%s1054_s21 + $0x20] sm:$0xff]  ;;  %v439_v29 = vmax.f32 %v379_v20, %v409_v17  ;;  %v291_v31 = vld [vmem:[%s1054_s21 + $0x19] sm:$0x7f]  ;;  %v529_v35 = vld [vmem:[%s1075_s30 + $0x8] sm:$0x7f] }
  0x17   : > { %v937_v27 = vld [vmem:[%s1054_s21 + $0x21] sm:$0xff]  ;;  %v351_v32 = vld [vmem:[%s1059_s24 + $0x18] sm:$0x7f]  ;;  %v321_v37 = vmax.f32 %v261_v30, %v291_v31  ;;  %v909_v52 = vld [vmem:[%s1054_s21 + $0x30] sm:$0xff] }
  0x18   : > { %v498_v24 = vmax.f32 %v438_v15, %v468_v13  ;;  %v967_v28 = vld [vmem:[%s1059_s24 + $0x20] sm:$0xff]  ;;  %v322_v33 = vmax.f32 %v907_v26, %v937_v27  ;;  %v500_v36 = vmax.f32 %v440_v25, %v470_v22  ;;  %v499_v38 = vmax.f32 %v439_v29, %v469_v18  ;;  %v906_v39 = vld [vmem:[%s1054_s21 + $0x18] sm:$0x7f]  ;;  %v1112_v54 = vld [vmem:[%s1059_s24 + $0x30] sm:$0xff] }
  0x19   : > { %v411_v40 = vld [vmem:[%s1065_s27 + $0x18] sm:$0x7f]  ;;  %v381_v46 = vmax.f32 %v321_v37, %v351_v32  ;;  %v412_v47 = vld [vmem:[%s1065_s27 + $0x20] sm:$0xff]  ;;  %v263_v58 = vld [vmem:[%s1054_s21 + $0x28] sm:$0x7f] }
  0x1a   : > { %v558_v34 = vmax.f32 %v498_v24, %v528_v16  ;;  %v471_v41 = vld [vmem:[%s1065_s27 + $0x19] sm:$0x7f]  ;;  %v382_v42 = vmax.f32 %v322_v33, %v967_v28  ;;  %v560_v45 = vmax.f32 %v500_v36, %v530_v23  ;;  %v472_v48 = vld [vmem:[%s1065_s27 + $0x21] sm:$0xff]  ;;  %v559_v50 = vmax.f32 %v499_v38, %v529_v35  ;;  %v1109_v53 = vld [vmem:[%s1054_s21 + $0x31] sm:$0xff] }
  0x1b   : > { %v936_v44 = vld [vmem:[%s1054_s21 + $0x19] sm:$0x7f]  ;;  %v532_v49 = vld [vmem:[%s1075_s30 + $0x20] sm:$0xff]  ;;  %v441_v57 = vmax.f32 %v381_v46, %v411_v40  ;;  %v293_v59 = vld [vmem:[%s1054_s21 + $0x29] sm:$0x7f]  ;;  %v324_v61 = vmax.f32 %v909_v52, %v1109_v53 }
  0x1c   : > { %v619_v43 = vmax.f32 %v558_v34, %v905_v5  ;;  %v442_v51 = vmax.f32 %v382_v42, %v412_v47  ;;  %v621_v56 = vmax.f32 %v560_v45, %v907_v26  ;;  %v353_v60 = vld [vmem:[%s1059_s24 + $0x28] sm:$0x7f]  ;;  %v620_v62 = vmax.f32 %v559_v50, %v906_v39  ;;  %v966_v63 = vld [vmem:[%s1059_s24 + $0x18] sm:$0x7f]  ;;  %v414_v15 = vld [vmem:[%s1065_s27 + $0x30] sm:$0xff] }
  0x1d   : > { %v531_v0 = vld [vmem:[%s1075_s30 + $0x18] sm:$0x7f]  ;;  %v323_v2 = vmax.f32 %v263_v58, %v293_v59  ;;  %v501_v5 = vmax.f32 %v441_v57, %v471_v41  ;;  %v413_v8 = vld [vmem:[%s1065_s27 + $0x28] sm:$0x7f]  ;;  %v384_v10 = vmax.f32 %v324_v61, %v1112_v54  ;;  %v911_v20 = vld [vmem:[%s1054_s21 + $0x40] sm:$0xff] }
  0x1e   : > { %v679_v55 = vmax.f32 %v619_v43, %v1079_v6  ;;  %v502_v1 = vmax.f32 %v442_v51, %v472_v48  ;;  %v681_v4 = vmax.f32 %v621_v56, %v937_v27  ;;  %v908_v6 = vld [vmem:[%s1054_s21 + $0x28] sm:$0x7f]  ;;  %v680_v11 = vmax.f32 %v620_v62, %v936_v44  ;;  %v474_v16 = vld [vmem:[%s1065_s27 + $0x31] sm:$0xff]  ;;  %v971_v22 = vld [vmem:[%s1059_s24 + $0x40] sm:$0xff] }
  0x1f   : > { %v473_v9 = vld [vmem:[%s1065_s27 + $0x29] sm:$0x7f]  ;;  %v383_v14 = vmax.f32 %v323_v2, %v353_v60  ;;  %v561_v18 = vmax.f32 %v501_v5, %v531_v0  ;;  %v444_v19 = vmax.f32 %v384_v10, %v414_v15  ;;  %v1139_v21 = vld [vmem:[%s1054_s21 + $0x41] sm:$0xff]  ;;  %v265_v26 = vld [vmem:[%s1054_s21 + $0x38] sm:$0x7f] }
  0x20   : > { %v740_v3 = vmax.f32 %v679_v55, %v965_v7  ;;  %v938_v12 = vld [vmem:[%s1054_s21 + $0x29] sm:$0x7f]  ;;  %v562_v13 = vmax.f32 %v502_v1, %v532_v49  ;;  %v534_v7 = vld [vmem:[%s1075_s30 + $0x30] sm:$0xff]  ;;  %v742_v17 = vmax.f32 %v681_v4, %v967_v28  ;;  %v741_v23 = vmax.f32 %v680_v11, %v966_v63  ;;  %v295_v27 = vld [vmem:[%s1054_s21 + $0x39] sm:$0x7f] }
  0x21   : > { %v443_v25 = vmax.f32 %v383_v14, %v413_v8  ;;  %v355_v29 = vld [vmem:[%s1059_s24 + $0x38] sm:$0x7f]  ;;  %v326_v28 = vmax.f32 %v911_v20, %v1139_v21  ;;  %v622_v30 = vmax.f32 %v561_v18, %v908_v6  ;;  %v968_v31 = vld [vmem:[%s1059_s24 + $0x28] sm:$0x7f]  ;;  %v504_v33 = vmax.f32 %v444_v19, %v474_v16  ;;  %v416_v45 = vld [vmem:[%s1065_s27 + $0x40] sm:$0xff] }
  0x22   : > { %771 = vst.msk [vmem:[%s1123_s7] sm:$0xff] %vm770_vm0, %v740_v3  ;;  %v623_v24 = vmax.f32 %v562_v13, %v909_v52  ;;  %774 = vst.msk [vmem:[%s1123_s7 + $0x10] sm:$0xff] %vm770_vm0, %v742_v17  ;;  %v533_v32 = vld [vmem:[%s1075_s30 + $0x28] sm:$0x7f]  ;;  %v325_v34 = vmax.f32 %v265_v26, %v295_v27  ;;  %v910_v37 = vld [vmem:[%s1054_s21 + $0x38] sm:$0x7f] }
  0x23   : > { %773 = vst.msk [vmem:[%s1123_s7 + $0x8] sm:$0x7f] %vm772_vm1, %v741_v23  ;;  %v503_v36 = vmax.f32 %v443_v25, %v473_v9  ;;  %v415_v38 = vld [vmem:[%s1065_s27 + $0x38] sm:$0x7f]  ;;  %v386_v40 = vmax.f32 %v326_v28, %v971_v22  ;;  %v682_v41 = vmax.f32 %v622_v30, %v938_v12  ;;  %v564_v43 = vmax.f32 %v504_v33, %v534_v7  ;;  %v476_v46 = vld [vmem:[%s1065_s27 + $0x41] sm:$0xff]  ;;  %v913_v51 = vld [vmem:[%s1054_s21 + $0x50] sm:$0xff] }
  0x24   : > { %v683_v35 = vmax.f32 %v623_v24, %v1109_v53  ;;  %v475_v39 = vld [vmem:[%s1065_s27 + $0x39] sm:$0x7f]  ;;  %v385_v44 = vmax.f32 %v325_v34, %v355_v29  ;;  %v536_v47 = vld [vmem:[%s1075_s30 + $0x40] sm:$0xff]  ;;  %v1163_v52 = vld [vmem:[%s1054_s21 + $0x51] sm:$0xff] }
  0x25   : > { %v940_v42 = vld [vmem:[%s1054_s21 + $0x39] sm:$0x7f]  ;;  %v563_v49 = vmax.f32 %v503_v36, %v533_v32  ;;  %v446_v50 = vmax.f32 %v386_v40, %v416_v45  ;;  %v973_v53 = vld [vmem:[%s1059_s24 + $0x50] sm:$0xff]  ;;  %v743_v55 = vmax.f32 %v682_v41, %v968_v31  ;;  %v625_v56 = vmax.f32 %v564_v43, %v911_v20  ;;  %v267_v58 = vld [vmem:[%s1054_s21 + $0x48] sm:$0x7f] }
  0x26   : > { %v744_v48 = vmax.f32 %v683_v35, %v1112_v54  ;;  %v445_v57 = vmax.f32 %v385_v44, %v415_v38  ;;  %v297_v59 = vld [vmem:[%s1054_s21 + $0x49] sm:$0x7f]  ;;  %v328_v54 = vmax.f32 %v913_v51, %v1163_v52  ;;  %v970_v62 = vld [vmem:[%s1059_s24 + $0x38] sm:$0x7f]  ;;  %v418_v13 = vld [vmem:[%s1065_s27 + $0x50] sm:$0xff] }
  0x27   : > { %v357_v60 = vld [vmem:[%s1059_s24 + $0x48] sm:$0x7f]  ;;  %v624_v61 = vmax.f32 %v563_v49, %v910_v37  ;;  %v535_v63 = vld [vmem:[%s1075_s30 + $0x38] sm:$0x7f]  ;;  %v506_v0 = vmax.f32 %v446_v50, %v476_v46  ;;  %v327_v1 = vmax.f32 %v267_v58, %v297_v59  ;;  %775 = vst.msk [vmem:[%s1123_s7 + $0x18] sm:$0x7f] %vm772_vm1, %v743_v55  ;;  %v685_v2 = vmax.f32 %v625_v56, %v1139_v21 }
  0x28   : > { %776 = vst.msk [vmem:[%s1123_s7 + $0x20] sm:$0xff] %vm770_vm0, %v744_v48  ;;  %v505_v3 = vmax.f32 %v445_v57, %v475_v39  ;;  %v912_v4 = vld [vmem:[%s1054_s21 + $0x48] sm:$0x7f]  ;;  %v388_v8 = vmax.f32 %v328_v54, %v973_v53  ;;  %v478_v14 = vld [vmem:[%s1065_s27 + $0x51] sm:$0xff]  ;;  %v915_v18 = vld [vmem:[%s1054_s21 + $0x60] sm:$0xff] }
  0x29   : > { %v417_v5 = vld [vmem:[%s1065_s27 + $0x48] sm:$0x7f]  ;;  %v684_v9 = vmax.f32 %v624_v61, %v940_v42  ;;  %v566_v11 = vmax.f32 %v506_v0, %v536_v47  ;;  %v387_v12 = vmax.f32 %v327_v1, %v357_v60  ;;  %v538_v15 = vld [vmem:[%s1075_s30 + $0x50] sm:$0xff]  ;;  %v746_v16 = vmax.f32 %v685_v2, %v971_v22  ;;  %v975_v20 = vld [vmem:[%s1059_s24 + $0x60] sm:$0xff] }
  0x2a   : > { %v477_v6 = vld [vmem:[%s1065_s27 + $0x49] sm:$0x7f]  ;;  %v565_v7 = vmax.f32 %v505_v3, %v535_v63  ;;  %v448_v17 = vmax.f32 %v388_v8, %v418_v13  ;;  %v1186_v19 = vld [vmem:[%s1054_s21 + $0x61] sm:$0xff]  ;;  %v269_v25 = vld [vmem:[%s1054_s21 + $0x58] sm:$0x7f] }
  0x2b   : > { %v942_v10 = vld [vmem:[%s1054_s21 + $0x49] sm:$0x7f]  ;;  %v745_v21 = vmax.f32 %v684_v9, %v970_v62  ;;  %v627_v23 = vmax.f32 %v566_v11, %v913_v51  ;;  %v447_v24 = vmax.f32 %v387_v12, %v417_v5  ;;  %v299_v26 = vld [vmem:[%s1054_s21 + $0x59] sm:$0x7f]  ;;  %v330_v22 = vmax.f32 %v915_v18, %v1186_v19  ;;  %778 = vst.msk [vmem:[%s1123_s7 + $0x30] sm:$0xff] %vm770_vm0, %v746_v16  ;;  %v420_v43 = vld [vmem:[%s1065_s27 + $0x60] sm:$0xff] }
  0x2c   : > { %v359_v27 = vld [vmem:[%s1059_s24 + $0x58] sm:$0x7f]  ;;  %v626_v29 = vmax.f32 %v565_v7, %v912_v4  ;;  %v972_v28 = vld [vmem:[%s1059_s24 + $0x48] sm:$0x7f]  ;;  %v508_v31 = vmax.f32 %v448_v17, %v478_v14  ;;  %v329_v32 = vmax.f32 %v269_v25, %v299_v26  ;;  %v540_v45 = vld [vmem:[%s1075_s30 + $0x60] sm:$0xff] }
  0x2d   : > { %v537_v30 = vld [vmem:[%s1075_s30 + $0x48] sm:$0x7f]  ;;  %777 = vst.msk [vmem:[%s1123_s7 + $0x28] sm:$0x7f] %vm772_vm1, %v745_v21  ;;  %v687_v33 = vmax.f32 %v627_v23, %v1163_v52  ;;  %v507_v34 = vmax.f32 %v447_v24, %v477_v6  ;;  %v914_v35 = vld [vmem:[%s1054_s21 + $0x58] sm:$0x7f]  ;;  %v390_v38 = vmax.f32 %v330_v22, %v975_v20 }
  0x2e   : > { %v419_v36 = vld [vmem:[%s1065_s27 + $0x58] sm:$0x7f]  ;;  %v686_v39 = vmax.f32 %v626_v29, %v942_v10  ;;  %v568_v41 = vmax.f32 %v508_v31, %v538_v15  ;;  %v389_v42 = vmax.f32 %v329_v32, %v359_v27  ;;  %v480_v44 = vld [vmem:[%s1065_s27 + $0x61] sm:$0xff]  ;;  %v917_v49 = vld [vmem:[%s1054_s21 + $0x70] sm:$0xff] }
  0x2f   : > { %v479_v37 = vld [vmem:[%s1065_s27 + $0x59] sm:$0x7f]  ;;  %v748_v46 = vmax.f32 %v687_v33, %v973_v53  ;;  %v567_v47 = vmax.f32 %v507_v34, %v537_v30  ;;  %v450_v48 = vmax.f32 %v390_v38, %v420_v43  ;;  %v1209_v50 = vld [vmem:[%s1054_s21 + $0x71] sm:$0xff]  ;;  %v271_v57 = vld [vmem:[%s1054_s21 + $0x68] sm:$0x7f] }
  0x30   : > { %v944_v40 = vld [vmem:[%s1054_s21 + $0x59] sm:$0x7f]  ;;  %v977_v51 = vld [vmem:[%s1059_s24 + $0x70] sm:$0xff]  ;;  %v747_v52 = vmax.f32 %v686_v39, %v972_v28  ;;  %v629_v55 = vmax.f32 %v568_v41, %v915_v18  ;;  %v449_v56 = vmax.f32 %v389_v42, %v419_v36  ;;  %v301_v58 = vld [vmem:[%s1054_s21 + $0x69] sm:$0x7f]  ;;  %v332_v53 = vmax.f32 %v917_v49, %v1209_v50 }
  0x31   : > { %v361_v59 = vld [vmem:[%s1059_s24 + $0x68] sm:$0x7f]  ;;  %780 = vst.msk [vmem:[%s1123_s7 + $0x40] sm:$0xff] %vm770_vm0, %v748_v46  ;;  %v628_v60 = vmax.f32 %v567_v47, %v914_v35  ;;  %v974_v54 = vld [vmem:[%s1059_s24 + $0x58] sm:$0x7f]  ;;  %v510_v62 = vmax.f32 %v450_v48, %v480_v44  ;;  %v331_v63 = vmax.f32 %v271_v57, %v301_v58  ;;  %v422_v11 = vld [vmem:[%s1065_s27 + $0x70] sm:$0xff] }
  0x32   : > { %v539_v61 = vld [vmem:[%s1075_s30 + $0x58] sm:$0x7f]  ;;  %779 = vst.msk [vmem:[%s1123_s7 + $0x38] sm:$0x7f] %vm772_vm1, %v747_v52  ;;  %v689_v0 = vmax.f32 %v629_v55, %v1186_v19  ;;  %v509_v1 = vmax.f32 %v449_v56, %v479_v37  ;;  %v916_v2 = vld [vmem:[%s1054_s21 + $0x68] sm:$0x7f]  ;;  %v392_v5 = vmax.f32 %v332_v53, %v977_v51 }
  0x33   : > { %v421_v3 = vld [vmem:[%s1065_s27 + $0x68] sm:$0x7f]  ;;  %v688_v6 = vmax.f32 %v628_v60, %v944_v40  ;;  %v570_v9 = vmax.f32 %v510_v62, %v540_v45  ;;  %v391_v10 = vmax.f32 %v331_v63, %v361_v59  ;;  %v482_v12 = vld [vmem:[%s1065_s27 + $0x71] sm:$0xff]  ;;  %v919_v7 = vld [vmem:[%s1054_s21 + $0x80] sm:$0xff] }
  0x34   : > { %v481_v4 = vld [vmem:[%s1065_s27 + $0x69] sm:$0x7f]  ;;  %v542_v13 = vld [vmem:[%s1075_s30 + $0x70] sm:$0xff]  ;;  %v750_v14 = vmax.f32 %v689_v0, %v975_v20  ;;  %v569_v15 = vmax.f32 %v509_v1, %v539_v61  ;;  %v452_v16 = vmax.f32 %v392_v5, %v422_v11  ;;  %v1232_v17 = vld [vmem:[%s1054_s21 + $0x81] sm:$0xff] }
  0x35   : > { %v946_v8 = vld [vmem:[%s1054_s21 + $0x69] sm:$0x7f]  ;;  %v979_v18 = vld [vmem:[%s1059_s24 + $0x80] sm:$0xff]  ;;  %v749_v19 = vmax.f32 %v688_v6, %v974_v54  ;;  %v631_v21 = vmax.f32 %v570_v9, %v917_v49  ;;  %v451_v23 = vmax.f32 %v391_v10, %v421_v3  ;;  %v273_v24 = vld [vmem:[%s1054_s21 + $0x78] sm:$0x7f]  ;;  %v334_v20 = vmax.f32 %v919_v7, %v1232_v17 }
  0x36   : > { %v303_v25 = vld [vmem:[%s1054_s21 + $0x79] sm:$0x7f]  ;;  %782 = vst.msk [vmem:[%s1123_s7 + $0x50] sm:$0xff] %vm770_vm0, %v750_v14  ;;  %v630_v27 = vmax.f32 %v569_v15, %v916_v2  ;;  %v976_v22 = vld [vmem:[%s1059_s24 + $0x68] sm:$0x7f]  ;;  %v512_v28 = vmax.f32 %v452_v16, %v482_v12  ;;  %v424_v41 = vld [vmem:[%s1065_s27 + $0x80] sm:$0xff] }
  0x37   : > { %v363_v26 = vld [vmem:[%s1059_s24 + $0x78] sm:$0x7f]  ;;  %v541_v29 = vld [vmem:[%s1075_s30 + $0x68] sm:$0x7f]  ;;  %v333_v30 = vmax.f32 %v273_v24, %v303_v25  ;;  %781 = vst.msk [vmem:[%s1123_s7 + $0x48] sm:$0x7f] %vm772_vm1, %v749_v19  ;;  %v691_v31 = vmax.f32 %v631_v21, %v1209_v50  ;;  %v511_v32 = vmax.f32 %v451_v23, %v481_v4  ;;  %v394_v36 = vmax.f32 %v334_v20, %v979_v18 }
  0x38   : > { %v918_v33 = vld [vmem:[%s1054_s21 + $0x78] sm:$0x7f]  ;;  %v690_v37 = vmax.f32 %v630_v27, %v946_v8  ;;  %v572_v39 = vmax.f32 %v512_v28, %v542_v13  ;;  %v484_v42 = vld [vmem:[%s1065_s27 + $0x81] sm:$0xff]  ;;  %v921_v47 = vld [vmem:[%s1054_s21 + $0x90] sm:$0xff] }
  0x39   : > { %v423_v34 = vld [vmem:[%s1065_s27 + $0x78] sm:$0x7f]  ;;  %v393_v40 = vmax.f32 %v333_v30, %v363_v26  ;;  %v544_v43 = vld [vmem:[%s1075_s30 + $0x80] sm:$0xff]  ;;  %v752_v44 = vmax.f32 %v691_v31, %v977_v51  ;;  %v571_v45 = vmax.f32 %v511_v32, %v541_v29  ;;  %v454_v46 = vmax.f32 %v394_v36, %v424_v41  ;;  %v981_v49 = vld [vmem:[%s1059_s24 + $0x90] sm:$0xff] }
  0x3a   : > { %v483_v35 = vld [vmem:[%s1065_s27 + $0x79] sm:$0x7f]  ;;  %v1255_v48 = vld [vmem:[%s1054_s21 + $0x91] sm:$0xff]  ;;  %v751_v50 = vmax.f32 %v690_v37, %v976_v22  ;;  %v633_v52 = vmax.f32 %v572_v39, %v919_v7  ;;  %v275_v56 = vld [vmem:[%s1054_s21 + $0x88] sm:$0x7f] }
  0x3b   : > { %v948_v38 = vld [vmem:[%s1054_s21 + $0x79] sm:$0x7f]  ;;  %v453_v55 = vmax.f32 %v393_v40, %v423_v34  ;;  %v305_v57 = vld [vmem:[%s1054_s21 + $0x89] sm:$0x7f]  ;;  %v336_v51 = vmax.f32 %v921_v47, %v1255_v48  ;;  %784 = vst.msk [vmem:[%s1123_s7 + $0x60] sm:$0xff] %vm770_vm0, %v752_v44  ;;  %v632_v59 = vmax.f32 %v571_v45, %v918_v33  ;;  %v514_v54 = vmax.f32 %v454_v46, %v484_v42  ;;  %v426_v9 = vld [vmem:[%s1065_s27 + $0x90] sm:$0xff] }
  0x3c   : > { %v365_v58 = vld [vmem:[%s1059_s24 + $0x88] sm:$0x7f]  ;;  %v978_v53 = vld [vmem:[%s1059_s24 + $0x78] sm:$0x7f]  ;;  %v335_v61 = vmax.f32 %v275_v56, %v305_v57  ;;  %783 = vst.msk [vmem:[%s1123_s7 + $0x58] sm:$0x7f] %vm772_vm1, %v751_v50  ;;  %v693_v62 = vmax.f32 %v633_v52, %v1232_v17 }
  0x3d   : > { %v543_v60 = vld [vmem:[%s1075_s30 + $0x78] sm:$0x7f]  ;;  %v513_v63 = vmax.f32 %v453_v55, %v483_v35  ;;  %v920_v0 = vld [vmem:[%s1054_s21 + $0x88] sm:$0x7f]  ;;  %v396_v3 = vmax.f32 %v336_v51, %v981_v49  ;;  %v692_v4 = vmax.f32 %v632_v59, %v948_v38  ;;  %v574_v6 = vmax.f32 %v514_v54, %v544_v43  ;;  %v546_v11 = vld [vmem:[%s1075_s30 + $0x90] sm:$0xff] }
  0x3e   : > { %v425_v1 = vld [vmem:[%s1065_s27 + $0x88] sm:$0x7f]  ;;  %v395_v8 = vmax.f32 %v335_v61, %v365_v58  ;;  %v486_v10 = vld [vmem:[%s1065_s27 + $0x91] sm:$0xff]  ;;  %v754_v12 = vmax.f32 %v693_v62, %v979_v18  ;;  %v923_v15 = vld [vmem:[%s1054_s21 + $0xa0] sm:$0xff] }
  0x3f   : > { %v485_v2 = vld [vmem:[%s1065_s27 + $0x89] sm:$0x7f]  ;;  %v573_v13 = vmax.f32 %v513_v63, %v543_v60  ;;  %v456_v14 = vmax.f32 %v396_v3, %v426_v9  ;;  %v1278_v16 = vld [vmem:[%s1054_s21 + $0xa1] sm:$0xff]  ;;  %v753_v17 = vmax.f32 %v692_v4, %v978_v53  ;;  %v635_v19 = vmax.f32 %v574_v6, %v921_v47  ;;  %v277_v23 = vld [vmem:[%s1054_s21 + $0x98] sm:$0x7f] }
  0x40   : > { %v950_v5 = vld [vmem:[%s1054_s21 + $0x89] sm:$0x7f]  ;;  %v983_v7 = vld [vmem:[%s1059_s24 + $0xa0] sm:$0xff]  ;;  %v455_v21 = vmax.f32 %v395_v8, %v425_v1  ;;  %v307_v24 = vld [vmem:[%s1054_s21 + $0x99] sm:$0x7f]  ;;  %v338_v18 = vmax.f32 %v923_v15, %v1278_v16  ;;  %786 = vst.msk [vmem:[%s1123_s7 + $0x70] sm:$0xff] %vm770_vm0, %v754_v12 }
  0x41   : > { %v367_v25 = vld [vmem:[%s1059_s24 + $0x98] sm:$0x7f]  ;;  %v634_v26 = vmax.f32 %v573_v13, %v920_v0  ;;  %v980_v20 = vld [vmem:[%s1059_s24 + $0x88] sm:$0x7f]  ;;  %v516_v22 = vmax.f32 %v456_v14, %v486_v10  ;;  %v337_v29 = vmax.f32 %v277_v23, %v307_v24  ;;  %785 = vst.msk [vmem:[%s1123_s7 + $0x68] sm:$0x7f] %vm772_vm1, %v753_v17  ;;  %v695_v28 = vmax.f32 %v635_v19, %v1255_v48 }
  0x42   : > { %v545_v27 = vld [vmem:[%s1075_s30 + $0x88] sm:$0x7f]  ;;  %v515_v30 = vmax.f32 %v455_v21, %v485_v2  ;;  %v922_v31 = vld [vmem:[%s1054_s21 + $0x98] sm:$0x7f]  ;;  %v398_v34 = vmax.f32 %v338_v18, %v983_v7  ;;  %v428_v39 = vld [vmem:[%s1065_s27 + $0xa0] sm:$0xff] }
  0x43   : > { %v427_v32 = vld [vmem:[%s1065_s27 + $0x98] sm:$0x7f]  ;;  %v694_v35 = vmax.f32 %v634_v26, %v950_v5  ;;  %v576_v37 = vmax.f32 %v516_v22, %v546_v11  ;;  %v397_v38 = vmax.f32 %v337_v29, %v367_v25  ;;  %v488_v40 = vld [vmem:[%s1065_s27 + $0xa1] sm:$0xff]  ;;  %v756_v42 = vmax.f32 %v695_v28, %v981_v49  ;;  %v925_v45 = vld [vmem:[%s1054_s21 + $0xb0] sm:$0xff] }
  0x44   : > { %v487_v33 = vld [vmem:[%s1065_s27 + $0x99] sm:$0x7f]  ;;  %v548_v41 = vld [vmem:[%s1075_s30 + $0xa0] sm:$0xff]  ;;  %v575_v43 = vmax.f32 %v515_v30, %v545_v27  ;;  %v458_v44 = vmax.f32 %v398_v34, %v428_v39  ;;  %v1301_v46 = vld [vmem:[%s1054_s21 + $0xb1] sm:$0xff] }
  0x45   : > { %v952_v36 = vld [vmem:[%s1054_s21 + $0x99] sm:$0x7f]  ;;  %v985_v47 = vld [vmem:[%s1059_s24 + $0xb0] sm:$0xff]  ;;  %v755_v48 = vmax.f32 %v694_v35, %v980_v20  ;;  %v637_v50 = vmax.f32 %v576_v37, %v923_v15  ;;  %v457_v52 = vmax.f32 %v397_v38, %v427_v32  ;;  %v279_v55 = vld [vmem:[%s1054_s21 + $0xa8] sm:$0x7f]  ;;  %v340_v49 = vmax.f32 %v925_v45, %v1301_v46  ;;  %788 = vst.msk [vmem:[%s1123_s7 + $0x80] sm:$0xff] %vm770_vm0, %v756_v42 }
  0x46   : > { %v309_v56 = vld [vmem:[%s1054_s21 + $0xa9] sm:$0x7f]  ;;  %v636_v58 = vmax.f32 %v575_v43, %v922_v31  ;;  %v982_v51 = vld [vmem:[%s1059_s24 + $0x98] sm:$0x7f]  ;;  %v518_v53 = vmax.f32 %v458_v44, %v488_v40  ;;  %v430_v6 = vld [vmem:[%s1065_s27 + $0xb0] sm:$0xff] }
  0x47   : > { %v369_v57 = vld [vmem:[%s1059_s24 + $0xa8] sm:$0x7f]  ;;  %v547_v59 = vld [vmem:[%s1075_s30 + $0x98] sm:$0x7f]  ;;  %v339_v60 = vmax.f32 %v279_v55, %v309_v56  ;;  %787 = vst.msk [vmem:[%s1123_s7 + $0x78] sm:$0x7f] %vm772_vm1, %v755_v48  ;;  %v697_v54 = vmax.f32 %v637_v50, %v1278_v16  ;;  %v517_v61 = vmax.f32 %v457_v52, %v487_v33  ;;  %v400_v1 = vmax.f32 %v340_v49, %v985_v47 }
  0x48   : > { %v924_v62 = vld [vmem:[%s1054_s21 + $0xa8] sm:$0x7f]  ;;  %v696_v2 = vmax.f32 %v636_v58, %v952_v36  ;;  %v578_v4 = vmax.f32 %v518_v53, %v548_v41  ;;  %v490_v8 = vld [vmem:[%s1065_s27 + $0xb1] sm:$0xff]  ;;  %v927_v13 = vld [vmem:[%s1054_s21 + $0xc0] sm:$0xff] }
  0x49   : > { %v429_v63 = vld [vmem:[%s1065_s27 + $0xa8] sm:$0x7f]  ;;  %v399_v5 = vmax.f32 %v339_v60, %v369_v57  ;;  %v550_v9 = vld [vmem:[%s1075_s30 + $0xb0] sm:$0xff]  ;;  %v758_v10 = vmax.f32 %v697_v54, %v983_v7  ;;  %v577_v11 = vmax.f32 %v517_v61, %v547_v59  ;;  %v460_v12 = vmax.f32 %v400_v1, %v430_v6  ;;  %v987_v15 = vld [vmem:[%s1059_s24 + $0xc0] sm:$0xff] }
  0x4a   : > { %v489_v0 = vld [vmem:[%s1065_s27 + $0xa9] sm:$0x7f]  ;;  %v1324_v14 = vld [vmem:[%s1054_s21 + $0xc1] sm:$0xff]  ;;  %v757_v16 = vmax.f32 %v696_v2, %v982_v51  ;;  %v639_v17 = vmax.f32 %v578_v4, %v925_v45  ;;  %v281_v21 = vld [vmem:[%s1054_s21 + $0xb8] sm:$0x7f] }
  0x4b   : > { %v954_v3 = vld [vmem:[%s1054_s21 + $0xa9] sm:$0x7f]  ;;  %v459_v19 = vmax.f32 %v399_v5, %v429_v63  ;;  %v311_v23 = vld [vmem:[%s1054_s21 + $0xb9] sm:$0x7f]  ;;  %v342_v7 = vmax.f32 %v927_v13, %v1324_v14  ;;  %790 = vst.msk [vmem:[%s1123_s7 + $0x90] sm:$0xff] %vm770_vm0, %v758_v10  ;;  %v638_v25 = vmax.f32 %v577_v11, %v924_v62  ;;  %v520_v20 = vmax.f32 %v460_v12, %v490_v8  ;;  %v432_v37 = vld [vmem:[%s1065_s27 + $0xc0] sm:$0xff] }
  0x4c   : > { %v371_v24 = vld [vmem:[%s1059_s24 + $0xb8] sm:$0x7f]  ;;  %v984_v18 = vld [vmem:[%s1059_s24 + $0xa8] sm:$0x7f]  ;;  %v341_v27 = vmax.f32 %v281_v21, %v311_v23  ;;  %789 = vst.msk [vmem:[%s1123_s7 + $0x88] sm:$0x7f] %vm772_vm1, %v757_v16  ;;  %v699_v22 = vmax.f32 %v639_v17, %v1301_v46 }
  0x4d   : > { %v549_v26 = vld [vmem:[%s1075_s30 + $0xa8] sm:$0x7f]  ;;  %v519_v29 = vmax.f32 %v459_v19, %v489_v0  ;;  %v926_v28 = vld [vmem:[%s1054_s21 + $0xb8] sm:$0x7f]  ;;  %v402_v32 = vmax.f32 %v342_v7, %v987_v15  ;;  %v698_v33 = vmax.f32 %v638_v25, %v954_v3  ;;  %v580_v35 = vmax.f32 %v520_v20, %v550_v9  ;;  %v552_v39 = vld [vmem:[%s1075_s30 + $0xc0] sm:$0xff] }
  0x4e   : > { %v431_v30 = vld [vmem:[%s1065_s27 + $0xb8] sm:$0x7f]  ;;  %v401_v36 = vmax.f32 %v341_v27, %v371_v24  ;;  %v492_v38 = vld [vmem:[%s1065_s27 + $0xc1] sm:$0xff]  ;;  %v760_v40 = vmax.f32 %v699_v22, %v985_v47  ;;  %v929_v43 = vld [vmem:[%s1054_s21 + $0xd0] sm:$0xff] }
  0x4f   : > { %v491_v31 = vld [vmem:[%s1065_s27 + $0xb9] sm:$0x7f]  ;;  %v579_v41 = vmax.f32 %v519_v29, %v549_v26  ;;  %v462_v42 = vmax.f32 %v402_v32, %v432_v37  ;;  %v959_v44 = vld [vmem:[%s1054_s21 + $0xd1] sm:$0xff]  ;;  %v759_v46 = vmax.f32 %v698_v33, %v984_v18  ;;  %v641_v48 = vmax.f32 %v580_v35, %v927_v13  ;;  %v283_v52 = vld [vmem:[%s1054_s21 + $0xc8] sm:$0x7f] }
  0x50   : > { %v956_v34 = vld [vmem:[%s1054_s21 + $0xb9] sm:$0x7f]  ;;  %v989_v45 = vld [vmem:[%s1059_s24 + $0xd0] sm:$0xff]  ;;  %v461_v50 = vmax.f32 %v401_v36, %v431_v30  ;;  %v313_v55 = vld [vmem:[%s1054_s21 + $0xc9] sm:$0x7f]  ;;  %v344_v57 = vmax.f32 %v929_v43, %v959_v44  ;;  %792 = vst.msk [vmem:[%s1123_s7 + $0xa0] sm:$0xff] %vm770_vm0, %v760_v40 }
  0x51   : > { %v373_v56 = vld [vmem:[%s1059_s24 + $0xc8] sm:$0x7f]  ;;  %v640_v47 = vmax.f32 %v579_v41, %v926_v28  ;;  %v986_v49 = vld [vmem:[%s1059_s24 + $0xb8] sm:$0x7f]  ;;  %v522_v51 = vmax.f32 %v462_v42, %v492_v38  ;;  %v343_v59 = vmax.f32 %v283_v52, %v313_v55  ;;  %791 = vst.msk [vmem:[%s1123_s7 + $0x98] sm:$0x7f] %vm772_vm1, %v759_v46  ;;  %v701_v53 = vmax.f32 %v641_v48, %v1324_v14 }
  0x52   : > { %v551_v58 = vld [vmem:[%s1075_s30 + $0xb8] sm:$0x7f]  ;;  %v521_v60 = vmax.f32 %v461_v50, %v491_v31  ;;  %v928_v54 = vld [vmem:[%s1054_s21 + $0xc8] sm:$0x7f]  ;;  %v404_v63 = vmax.f32 %v344_v57, %v989_v45  ;;  %v434_v4 = vld [vmem:[%s1065_s27 + $0xd0] sm:$0xff] }
  0x53   : > { %v433_v61 = vld [vmem:[%s1065_s27 + $0xc8] sm:$0x7f]  ;;  %v700_v0 = vmax.f32 %v640_v47, %v956_v34  ;;  %v582_v2 = vmax.f32 %v522_v51, %v552_v39  ;;  %v403_v3 = vmax.f32 %v343_v59, %v373_v56  ;;  %v494_v5 = vld [vmem:[%s1065_s27 + $0xd1] sm:$0xff]  ;;  %v762_v8 = vmax.f32 %v701_v53, %v987_v15  ;;  %v931_v11 = vld [vmem:[%s1054_s21 + $0xe0] sm:$0xff] }
  0x54   : > { %v493_v62 = vld [vmem:[%s1065_s27 + $0xc9] sm:$0x7f]  ;;  %v554_v6 = vld [vmem:[%s1075_s30 + $0xd0] sm:$0xff]  ;;  %v581_v9 = vmax.f32 %v521_v60, %v551_v58  ;;  %v464_v10 = vmax.f32 %v404_v63, %v434_v4  ;;  %v961_v12 = vld [vmem:[%s1054_s21 + $0xe1] sm:$0xff] }
  0x55   : > { %v958_v1 = vld [vmem:[%s1054_s21 + $0xc9] sm:$0x7f]  ;;  %v991_v13 = vld [vmem:[%s1059_s24 + $0xe0] sm:$0xff]  ;;  %v761_v14 = vmax.f32 %v700_v0, %v986_v49  ;;  %v643_v16 = vmax.f32 %v582_v2, %v929_v43  ;;  %v463_v17 = vmax.f32 %v403_v3, %v433_v61  ;;  %v285_v19 = vld [vmem:[%s1054_s21 + $0xd8] sm:$0x7f]  ;;  %v346_v24 = vmax.f32 %v931_v11, %v961_v12  ;;  %794 = vst.msk [vmem:[%s1123_s7 + $0xb0] sm:$0xff] %vm770_vm0, %v762_v8 }
  0x56   : > { %v315_v21 = vld [vmem:[%s1054_s21 + $0xd9] sm:$0x7f]  ;;  %v642_v15 = vmax.f32 %v581_v9, %v928_v54  ;;  %v553_v7 = vld [vmem:[%s1075_s30 + $0xc8] sm:$0x7f]  ;;  %v524_v25 = vmax.f32 %v464_v10, %v494_v5  ;;  %v436_v33 = vld [vmem:[%s1065_s27 + $0xe0] sm:$0xff] }
  0x57   : > { %v375_v23 = vld [vmem:[%s1059_s24 + $0xd8] sm:$0x7f]  ;;  %v345_v18 = vmax.f32 %v285_v19, %v315_v21  ;;  %793 = vst.msk [vmem:[%s1123_s7 + $0xa8] sm:$0x7f] %vm772_vm1, %v761_v14  ;;  %v988_v26 = vld [vmem:[%s1059_s24 + $0xc8] sm:$0x7f]  ;;  %v703_v20 = vmax.f32 %v643_v16, %v959_v44  ;;  %v523_v27 = vmax.f32 %v463_v17, %v493_v62  ;;  %v406_v29 = vmax.f32 %v346_v24, %v991_v13 }
  0x58   : > { %v435_v22 = vld [vmem:[%s1065_s27 + $0xd8] sm:$0x7f]  ;;  %v702_v28 = vmax.f32 %v642_v15, %v958_v1  ;;  %v584_v31 = vmax.f32 %v524_v25, %v554_v6  ;;  %v496_v34 = vld [vmem:[%s1065_s27 + $0xe1] sm:$0xff]  ;;  %v317_v46 = vld [vmem:[%s1054_s21 + $0xe9] sm:$0x7f] }
  0x59   : > { %v930_v30 = vld [vmem:[%s1054_s21 + $0xd8] sm:$0x7f]  ;;  %v405_v32 = vmax.f32 %v345_v18, %v375_v23  ;;  %v764_v35 = vmax.f32 %v703_v20, %v989_v45  ;;  %v583_v36 = vmax.f32 %v523_v27, %v553_v7  ;;  %v466_v39 = vmax.f32 %v406_v29, %v436_v33  ;;  %v556_v40 = vld [vmem:[%s1075_s30 + $0xe0] sm:$0xff]  ;;  %v287_v44 = vld [vmem:[%s1054_s21 + $0xe8] sm:$0x7f] }
  0x5a   : > { %v960_v37 = vld [vmem:[%s1054_s21 + $0xd9] sm:$0x7f]  ;;  %v763_v41 = vmax.f32 %v702_v28, %v988_v26  ;;  %v645_v42 = vmax.f32 %v584_v31, %v931_v11  ;;  %v377_v48 = vld [vmem:[%s1059_s24 + $0xe8] sm:$0x7f]  ;;  %v347_v55 = vmax.f32 %v287_v44, %v317_v46  ;;  %v933_v49 = vld [vmem:[%s1054_s21 + $0xf0] sm:$0xff] }
  0x5b   : > { %v495_v38 = vld [vmem:[%s1065_s27 + $0xd9] sm:$0x7f]  ;;  %v465_v43 = vmax.f32 %v405_v32, %v435_v22  ;;  %796 = vst.msk [vmem:[%s1123_s7 + $0xc0] sm:$0xff] %vm770_vm0, %v764_v35  ;;  %v644_v50 = vmax.f32 %v583_v36, %v930_v30  ;;  %v526_v52 = vmax.f32 %v466_v39, %v496_v34  ;;  %v437_v58 = vld [vmem:[%s1065_s27 + $0xe8] sm:$0x7f]  ;;  %v963_v62 = vld [vmem:[%s1054_s21 + $0xf1] sm:$0xff] }
  0x5c   : > { %v555_v45 = vld [vmem:[%s1075_s30 + $0xd8] sm:$0x7f]  ;;  %795 = vst.msk [vmem:[%s1123_s7 + $0xb8] sm:$0x7f] %vm772_vm1, %v763_v41  ;;  %v705_v57 = vmax.f32 %v645_v42, %v961_v12  ;;  %v932_v59 = vld [vmem:[%s1054_s21 + $0xe8] sm:$0x7f]  ;;  %v407_v60 = vmax.f32 %v347_v55, %v377_v48 }
  0x5d   : > { %v990_v56 = vld [vmem:[%s1059_s24 + $0xd8] sm:$0x7f]  ;;  %v525_v47 = vmax.f32 %v465_v43, %v495_v38  ;;  %v704_v51 = vmax.f32 %v644_v50, %v960_v37  ;;  %v586_v53 = vmax.f32 %v526_v52, %v556_v40  ;;  %v497_v63 = vld [vmem:[%s1065_s27 + $0xe9] sm:$0x7f]  ;;  %v993_v5 = vld [vmem:[%s1059_s24 + $0xf0] sm:$0xff] }
  0x5e   : > { %v766_v54 = vmax.f32 %v705_v57, %v991_v13  ;;  %v962_v1 = vld [vmem:[%s1054_s21 + $0xe9] sm:$0x7f]  ;;  %v467_v3 = vmax.f32 %v407_v60, %v437_v58  ;;  %v934_v12 = vld [vmem:[%s1054_s21 + $0xf8] sm:$0x7f] }
  0x5f   : > { %v585_v61 = vmax.f32 %v525_v47, %v555_v45  ;;  %v765_v0 = vmax.f32 %v704_v51, %v990_v56  ;;  %v647_v2 = vmax.f32 %v586_v53, %v933_v49  ;;  %v557_v6 = vld [vmem:[%s1075_s30 + $0xe8] sm:$0x7f]  ;;  %v964_v17 = vld [vmem:[%s1054_s21 + $0xf9] sm:$0x7f] }
  0x60   : > { %798 = vst.msk [vmem:[%s1123_s7 + $0xd0] sm:$0xff] %vm770_vm0, %v766_v54  ;;  %v992_v8 = vld [vmem:[%s1059_s24 + $0xe8] sm:$0x7f]  ;;  %v527_v10 = vmax.f32 %v467_v3, %v497_v63  ;;  %v994_v21 = vld [vmem:[%s1059_s24 + $0xf8] sm:$0x7f] }
  0x61   : > { %v646_v4 = vmax.f32 %v585_v61, %v932_v59  ;;  %797 = vst.msk [vmem:[%s1123_s7 + $0xc8] sm:$0x7f] %vm772_vm1, %v765_v0  ;;  %v707_v9 = vmax.f32 %v647_v2, %v963_v62 }
  0x62   : > { %v587_v14 = vmax.f32 %v527_v10, %v557_v6 }
  0x63   : > { %v706_v11 = vmax.f32 %v646_v4, %v962_v1  ;;  %v768_v13 = vmax.f32 %v707_v9, %v993_v5 }
  0x64   : > { %v648_v19 = vmax.f32 %v587_v14, %v934_v12 }
  0x65   : > { %v767_v16 = vmax.f32 %v706_v11, %v992_v8  ;;  %800 = vst.msk [vmem:[%s1123_s7 + $0xe0] sm:$0xff] %vm770_vm0, %v768_v13 }
  0x66   : > { %v708_v23 = vmax.f32 %v648_v19, %v964_v17 }
  0x67   : > { %799 = vst.msk [vmem:[%s1123_s7 + $0xd8] sm:$0x7f] %vm772_vm1, %v767_v16 }
  0x68   : > { %v769_v24 = vmax.f32 %v708_v23, %v994_v21 }
  0x6a   : > { %801 = vst.msk [vmem:[%s1123_s7 + $0xe8] sm:$0x7f] %vm772_vm1, %v769_v24 }
  0x6b PF: > { %s14_s15 = sadd.s32 1, %s1014_s15  }
  0x6c   : > { %p11_p4 = scmp.ge.s32.totalorder %s14_s15, 4  }
  0x6e   :  { %13 = sbr.rel (!%p11_p4) target bundleno = 1 (0x1), region = 77 }

// kernel: demo_fcn_forward.9
= control target key start
LH: loop header
LB: loop body
LE: loop exit
PB: predicated region body
PF: predicated region fallthrough
CT: control target
= control target key end

     0   :  { %s1728_s0 = inlined_call_operand.vmem [shape: bf16[512,1664], index: 0, kind: input, shape index: {}]   ;;  %s1729_s1 = inlined_call_operand.vmem [shape: bf16[1664,256], index: 1, kind: input, shape index: {}]   ;;  %s1730_s2 = inlined_call_operand.vmem [shape: f32[1,256], index: 2, kind: input, shape index: {}]   ;;  %s1731_s3 = inlined_call_operand.vmem [shape: f32[512,256], index: 3, kind: output, shape index: {}]  }
   0x1   :  { %1734 = sst [smem:[#allocation8_spill]] %s1728_s0 }
   0x2   :  { %1735 = sst [smem:[#allocation9_spill]] %s1729_s1 }
   0x3   :  { %1736 = sst [smem:[#allocation10_spill]] %s1731_s3 }
   0x4   :  { %s1369_s12 = smov 0   ;;  %s1371_s13 = smov 0  }
   0x5   :  { %s1373_s14 = smov 0   ;;  %s1375_s15 = smov 0  }
   0x6   :  { %s1377_s16 = smov 0   ;;  %s1379_s17 = smov 0  }
   0x7   :  { %s1381_s18 = smov 0   ;;  %s1383_s19 = smov 0  }
   0x8   :  { %s1385_s20 = smov 0   ;;  %s1387_s21 = smov 0  }
   0x9   :  { %s1389_s22 = smov 0   ;;  %s1391_s23 = smov 0  }
   0xa   :  { %s1393_s24 = smov 0  }
   0xb LB: > { %1737 = sst [smem:[#allocation5_spill]] %s1330_s20  ;;  %s25_s26 = sadd.s32 1, %s1334_s21  ;;  %s1346_s24 = sphi %s1393_s24, %s13_s24   ;;  %s1342_s23 = sphi %s1391_s23, %s1763_s23   ;;  %s1338_s22 = sphi %s1389_s22, %s1762_s22   ;;  %s1334_s21 = sphi %s1387_s21, %s1761_s21   ;;  %s1330_s20 = sphi %s1385_s20, %s1760_s20   ;;  %s1326_s19 = sphi %s1383_s19, %s1759_s19   ;;  %s1322_s18 = sphi %s1381_s18, %s1758_s18   ;;  %s1318_s17 = sphi %s1379_s17, %s1757_s17   ;;  %s1314_s16 = sphi %s1377_s16, %s1756_s16   ;;  %s1310_s15 = sphi %s1375_s15, %s1755_s15   ;;  %s1306_s14 = sphi %s1373_s14, %s1754_s14   ;;  %s1302_s13 = sphi %s1371_s13, %s1753_s13   ;;  %s1298_s12 = sphi %s1369_s12, %s1752_s12  }
   0xc   : > { %p26_p0 = scmp.ge.s32.totalorder %s25_s26, 13  ;;  %s28_s27 = sadd.s32 1, %s1338_s22 }
   0xd   : > { %s32_s28 = sadd.s32 1, %s1342_s23  ;;  %s41_s29 = sadd.s32 1, %s1318_s17 }
   0xe   : > { %s1765_s26 = smov (%p26_p0, %s25_s26), 0  ;;  %s1767_s27 = smov (!%p26_p0, %s28_s27), %s1338_s22 }
   0xf   : > { %1738 = sst [smem:[#allocation6_spill]] %s1765_s26  ;;  %s37_s30 = ssub.s32 %s1334_s21, %s1765_s26 }
  0x10   : > { %p48_p1 = scmp.ne.s32.totalorder %s1318_s17, %s1314_s16  ;;  %p30_p2 = scmp.ge.s32.totalorder %s1767_s27, 2 }
  0x11   : > { %p49_p3 = scmp.eq.s32.totalorder %s1346_s24, 0  ;;  %s69_s4 = sadd.s32 1, %s1310_s15 }
  0x12   : > { %p76_p4 = scmp.ne.s32.totalorder %s1310_s15, %s1306_s14  ;;  %s1769_s27 = smov (%p30_p2, %s1767_s27), 0 }
  0x13   : > { %1739 = sst [smem:[#allocation7_spill]] %s1769_s27  ;;  %s1771_s28 = smov (!%p30_p2, %s32_s28), %s1342_s23 }
  0x14   : > { %p1453_p5 = por %p49_p3, %p48_p1  ;;  %s65_s6 = ssub.s32 %s1338_s22, %s1769_s27 }
  0x15   : > { %p34_p6 = scmp.ge.s32.totalorder %s1771_s28, 4  ;;  %s66_s7 = sor.u32 %s65_s6, %s37_s30 }
  0x16   : > { %p67_p7 = scmp.eq.s32.totalorder %s66_s7, 0  ;;  %p1459_p8 = por %p76_p4, %p49_p3 }
  0x17   : > { %s1773_s28 = smov (%p34_p6, %s1771_s28), 0  ;;  %s123_s11 = sadd.s32 1, %s1302_s13 }
  0x18   : > { %s1466_s9 = scalar_select %p67_p7, %s1310_s15, %s69_s4  }
  0x19   : > { %s36_s10 = ssub.s32 %s1342_s23, %s1773_s28  ;;  %p133_p11 = scmp.ne.s32.totalorder %s1302_s13, %s1298_s12 }
  0x1a   : > { %s38_s25 = sor.u32 %s37_s30, %s36_s10  ;;  %s120_s26 = sor.u32 %s65_s6, %s36_s10 }
  0x1b   : > { %p39_p9 = scmp.eq.s32.totalorder %s38_s25, 0  ;;  %p121_p10 = scmp.eq.s32.totalorder %s120_s26, 0 }
  0x1c   : > { %s1742_s27 = sadd.s32 4294967295, %s1346_s24   ;;  %p1018_p0 = scmp.ge.s32.totalorder %s1346_s24, 104 }
  0x1d   : > { %p134_p12 = scmp.eq.s32.totalorder %s1742_s27, 103 }
  0x1e   : > { %s1476_s3 = scalar_select %p39_p9, %s1318_s17, %s41_s29  }
  0x1f   : > { %s1479_s7 = scalar_select %p121_p10, %s1302_s13, %s123_s11  }
  0x20   : > { %p1481_p13 = por %p134_p12, %p133_p11  ;;  %156 = sbr.rel (%p1018_p0) target bundleno = 79 (0x4f), region = 16 }
  0x27   : > { %159 = sbr.rel (!%p1453_p5) target bundleno = 59 (0x3b), region = 20  ;;  %s161_s25 = sand.u32 (%p1453_p5), 1, %s1318_s17  }
  0x28   : > { %s1122_s26 = smul.u32 (%p1453_p5), 208, %s1342_s23  ;;  %s1019_s27 = sshll.u32 (%p1453_p5), %s161_s25, 6 }
  0x29   : > { %s1744_s0 = sld [smem:[#allocation8_spill]] (%p1453_p5)  ;;  %s163_s5 = scalar_lea.vmem (%p1453_p5), [#allocation2], %s1019_s27 }
  0x2a   : > { %s166_s29 = sadd.s32 (%p1453_p5), %s1334_s21, %s1122_s26 }
  0x2b   : > { %s1022_s30 = sshll.u32 (%p1453_p5), %s166_s29, 2 }
  0x2f   : > { %s1494_s10 = scalar_lea.vmem %s1744_s0, %s1022_s30 }
  0x30   : > { %v184_v0 = vld [vmem:[%s1494_s10] sm:$0xf]  ;;  %v186_v1 = vld [vmem:[%s1494_s10 + $0x34] sm:$0xf]  ;;  %v188_v2 = vld [vmem:[%s1494_s10 + $0x68] sm:$0xf] }
  0x31   : > { %185 = vst [vmem:[%s163_s5] sm:$0xf] %v184_v0  ;;  %187 = vst [vmem:[%s163_s5 + $0x4] sm:$0xf] %v186_v1  ;;  %v190_v3 = vld [vmem:[%s1494_s10 + $0x9c] sm:$0xf] }
  0x32   : > { %189 = vst [vmem:[%s163_s5 + $0x8] sm:$0xf] %v188_v2  ;;  %v192_v4 = vld [vmem:[%s1494_s10 + $0xd0] sm:$0xf]  ;;  %v194_v5 = vld [vmem:[%s1494_s10 + $0x104] sm:$0xf] }
  0x33   : > { %191 = vst [vmem:[%s163_s5 + $0xc] sm:$0xf] %v190_v3  ;;  %193 = vst [vmem:[%s163_s5 + $0x10] sm:$0xf] %v192_v4  ;;  %v196_v6 = vld [vmem:[%s1494_s10 + $0x138] sm:$0xf] }
  0x34   : > { %195 = vst [vmem:[%s163_s5 + $0x14] sm:$0xf] %v194_v5  ;;  %v198_v7 = vld [vmem:[%s1494_s10 + $0x16c] sm:$0xf]  ;;  %v200_v8 = vld [vmem:[%s1494_s10 + $0x1a0] sm:$0xf] }
  0x35   : > { %197 = vst [vmem:[%s163_s5 + $0x18] sm:$0xf] %v196_v6  ;;  %199 = vst [vmem:[%s163_s5 + $0x1c] sm:$0xf] %v198_v7  ;;  %v202_v9 = vld [vmem:[%s1494_s10 + $0x1d4] sm:$0xf] }
  0x36   : > { %201 = vst [vmem:[%s163_s5 + $0x20] sm:$0xf] %v200_v8  ;;  %v204_v10 = vld [vmem:[%s1494_s10 + $0x208] sm:$0xf]  ;;  %v206_v11 = vld [vmem:[%s1494_s10 + $0x23c] sm:$0xf] }
  0x37   : > { %203 = vst [vmem:[%s163_s5 + $0x24] sm:$0xf] %v202_v9  ;;  %205 = vst [vmem:[%s163_s5 + $0x28] sm:$0xf] %v204_v10  ;;  %v208_v12 = vld [vmem:[%s1494_s10 + $0x270] sm:$0xf] }
  0x38   : > { %207 = vst [vmem:[%s163_s5 + $0x2c] sm:$0xf] %v206_v11  ;;  %v210_v13 = vld [vmem:[%s1494_s10 + $0x2a4] sm:$0xf]  ;;  %v212_v14 = vld [vmem:[%s1494_s10 + $0x2d8] sm:$0xf] }
  0x39   : > { %209 = vst [vmem:[%s163_s5 + $0x30] sm:$0xf] %v208_v12  ;;  %211 = vst [vmem:[%s163_s5 + $0x34] sm:$0xf] %v210_v13  ;;  %v214_v15 = vld [vmem:[%s1494_s10 + $0x30c] sm:$0xf] }
  0x3a   : > { %213 = vst [vmem:[%s163_s5 + $0x38] sm:$0xf] %v212_v14  ;;  %215 = vst [vmem:[%s163_s5 + $0x3c] sm:$0xf] %v214_v15 }
  0x3b PF: > { %270 = sbr.rel (!%p1459_p8) target bundleno = 79 (0x4f), region = 61  ;;  %s272_s11 = sand.u32 (%p1459_p8), 1, %s1310_s15  }
  0x3c   : > { %s1056_s25 = sshll.u32 (%p1459_p8), %s1334_s21, 5  ;;  %s1023_s26 = sshll.u32 (%p1459_p8), %s272_s11, 6 }
  0x3d   : > { %s277_s27 = sadd.s32 (%p1459_p8), %s1338_s22, %s1056_s25  ;;  %s1745_s1 = sld [smem:[#allocation9_spill]] (%p1459_p8) }
  0x3e   : > { %s1026_s29 = sshll.u32 (%p1459_p8), %s277_s27, 2  ;;  %s274_s8 = scalar_lea.vmem (%p1459_p8), [#allocation3], %s1023_s26 }
  0x43   : > { %s1520_s6 = scalar_lea.vmem %s1745_s1, %s1026_s29 }
  0x44   : > { %v295_v16 = vld [vmem:[%s1520_s6] sm:$0xf]  ;;  %v297_v17 = vld [vmem:[%s1520_s6 + $0x8] sm:$0xf]  ;;  %v299_v18 = vld [vmem:[%s1520_s6 + $0x10] sm:$0xf] }
  0x45   : > { %296 = vst [vmem:[%s274_s8] sm:$0xf] %v295_v16  ;;  %298 = vst [vmem:[%s274_s8 + $0x4] sm:$0xf] %v297_v17  ;;  %v301_v19 = vld [vmem:[%s1520_s6 + $0x18] sm:$0xf] }
  0x46   : > { %300 = vst [vmem:[%s274_s8 + $0x8] sm:$0xf] %v299_v18  ;;  %v303_v20 = vld [vmem:[%s1520_s6 + $0x20] sm:$0xf]  ;;  %v305_v21 = vld [vmem:[%s1520_s6 + $0x28] sm:$0xf] }
  0x47   : > { %302 = vst [vmem:[%s274_s8 + $0xc] sm:$0xf] %v301_v19  ;;  %304 = vst [vmem:[%s274_s8 + $0x10] sm:$0xf] %v303_v20  ;;  %v307_v22 = vld [vmem:[%s1520_s6 + $0x30] sm:$0xf] }
  0x48   : > { %306 = vst [vmem:[%s274_s8 + $0x14] sm:$0xf] %v305_v21  ;;  %v309_v23 = vld [vmem:[%s1520_s6 + $0x38] sm:$0xf]  ;;  %v311_v24 = vld [vmem:[%s1520_s6 + $0x40] sm:$0xf] }
  0x49   : > { %308 = vst [vmem:[%s274_s8 + $0x18] sm:$0xf] %v307_v22  ;;  %310 = vst [vmem:[%s274_s8 + $0x1c] sm:$0xf] %v309_v23  ;;  %v313_v25 = vld [vmem:[%s1520_s6 + $0x48] sm:$0xf] }
  0x4a   : > { %312 = vst [vmem:[%s274_s8 + $0x20] sm:$0xf] %v311_v24  ;;  %v315_v26 = vld [vmem:[%s1520_s6 + $0x50] sm:$0xf]  ;;  %v317_v27 = vld [vmem:[%s1520_s6 + $0x58] sm:$0xf] }
  0x4b   : > { %314 = vst [vmem:[%s274_s8 + $0x24] sm:$0xf] %v313_v25  ;;  %316 = vst [vmem:[%s274_s8 + $0x28] sm:$0xf] %v315_v26  ;;  %v319_v28 = vld [vmem:[%s1520_s6 + $0x60] sm:$0xf] }
  0x4c   : > { %318 = vst [vmem:[%s274_s8 + $0x2c] sm:$0xf] %v317_v27  ;;  %v321_v29 = vld [vmem:[%s1520_s6 + $0x68] sm:$0xf]  ;;  %v323_v30 = vld [vmem:[%s1520_s6 + $0x70] sm:$0xf] }
  0x4d   : > { %320 = vst [vmem:[%s274_s8 + $0x30] sm:$0xf] %v319_v28  ;;  %322 = vst [vmem:[%s274_s8 + $0x34] sm:$0xf] %v321_v29  ;;  %v325_v31 = vld [vmem:[%s1520_s6 + $0x78] sm:$0xf] }
  0x4e   : > { %324 = vst [vmem:[%s274_s8 + $0x38] sm:$0xf] %v323_v30  ;;  %326 = vst [vmem:[%s274_s8 + $0x3c] sm:$0xf] %v325_v31 }
  0x4f PF: > { %p1027_p1 = scmp.ge.s32.totalorder %s1346_s24, 1  ;;  %p386_p2 = scmp.lt.s32.totalorder %s1346_s24, 105 }
  0x51   : > { %p387_p3 = pnand %p1027_p1, %p386_p2 }
  0x52   : > { %s393_s10 = sand.u32 (!%p387_p3), 1, %s1314_s16   ;;  %s400_s5 = sand.u32 (!%p387_p3), 1, %s1306_s14  }
  0x53   : > { %390 = sbr.rel (%p387_p3) target bundleno = 390 (0x186), region = 106  ;;  %s1028_s11 = sshll.u32 (!%p387_p3), %s393_s10, 6 }
  0x54   : > { %s1029_s25 = sshll.u32 (!%p387_p3), %s400_s5, 6  ;;  %s426_s26 = sand.u32 (!%p387_p3), 1, %s1298_s12  }
  0x55   : > { %p431_p4 = scmp.lt.s32.totalorder (!%p387_p3), %s1326_s19, 1  ;;  %s1030_s27 = sshll.u32 (!%p387_p3), %s426_s26, 7 }
  0x56   : > { %s1551_s8 = scalar_lea.vmem (!%p387_p3), [#allocation2], %s1028_s11  ;;  %s1553_s0 = scalar_lea.vmem (!%p387_p3), [#allocation3], %s1029_s25 }
  0x57   : > { %s1555_s1 = scalar_lea.vmem (!%p387_p3), [#allocation4], %s1030_s27  ;;  %p1031_p5 = scmp.ne.s32.totalorder (!%p387_p3), %s1322_s18, 0 }
  0x5a   : > { %s1545_s29 = scalar_select %p431_p4, %s1326_s19, 1 }
  0x5b   : > { %439 = sbr.rel (%p1031_p5) target bundleno = 100 (0x64), region = 118  ;;  %v1348_v32 = vmov (!%p1031_p5), 0.0  }
  0x5c   : > { %s433_s6 = scalar_lea.vmem %s1730_s2, %s1545_s29  ;;  %440 = vst [vmem:[%s1555_s1] sm:$0xff] (!%p1031_p5), %v1348_v32  ;;  %441 = vst [vmem:[%s1555_s1 + $0x8] sm:$0xff] (!%p1031_p5), %v1348_v32 }
  0x5d   : > { %442 = vst [vmem:[%s1555_s1 + $0x10] sm:$0xff] (!%p1031_p5), %v1348_v32  ;;  %443 = vst [vmem:[%s1555_s1 + $0x18] sm:$0xff] (!%p1031_p5), %v1348_v32 }
  0x5e   : > { %444 = vst [vmem:[%s1555_s1 + $0x20] sm:$0xff] (!%p1031_p5), %v1348_v32  ;;  %445 = vst [vmem:[%s1555_s1 + $0x28] sm:$0xff] (!%p1031_p5), %v1348_v32 }
  0x5f   : > { %446 = vst [vmem:[%s1555_s1 + $0x30] sm:$0xff] (!%p1031_p5), %v1348_v32  ;;  %447 = vst [vmem:[%s1555_s1 + $0x38] sm:$0xff] (!%p1031_p5), %v1348_v32 }
  0x60   : > { %448 = vst [vmem:[%s1555_s1 + $0x40] sm:$0xff] (!%p1031_p5), %v1348_v32  ;;  %449 = vst [vmem:[%s1555_s1 + $0x48] sm:$0xff] (!%p1031_p5), %v1348_v32 }
  0x61   : > { %450 = vst [vmem:[%s1555_s1 + $0x50] sm:$0xff] (!%p1031_p5), %v1348_v32  ;;  %451 = vst [vmem:[%s1555_s1 + $0x58] sm:$0xff] (!%p1031_p5), %v1348_v32 }
  0x62   : > { %452 = vst [vmem:[%s1555_s1 + $0x60] sm:$0xff] %v1348_v32  ;;  %453 = vst [vmem:[%s1555_s1 + $0x68] sm:$0xff] %v1348_v32 }
  0x63   : > { %454 = vst [vmem:[%s1555_s1 + $0x70] sm:$0xff] %v1348_v32  ;;  %455 = vst [vmem:[%s1555_s1 + $0x78] sm:$0xff] %v1348_v32 }
  0x64 PF: > { %v1228_v33 = vld [vmem:[%s1553_s0] sm:$0xff]   ;;  %v1229_v34 = vld [vmem:[%s1553_s0 + $0x8] sm:$0xff]   ;;  %v1230_v35 = vld [vmem:[%s1553_s0 + $0x10] sm:$0xff]   ;;  %p1048_p6 = scmp.ne.s32.totalorder %s1322_s18, 12 }
  0x65   : > { %1074 = vmatprep.subr.bf16.mxu0 %v1228_v33  ;;  %1106 = vmatprep.subr.bf16.mxu1 %v1228_v33  ;;  %v1231_v36 = vld [vmem:[%s1553_s0 + $0x18] sm:$0xff]   ;;  %v1236_v37 = vld [vmem:[%s1551_s8] sm:$0xff]   ;;  %v1233_v40 = vld [vmem:[%s1553_s0 + $0x28] sm:$0xff]  }
  0x66   : > { %1075 = vmatpush3.bf16.msra.mxu0 %v1228_v33  ;;  %1114 = vmatpush3.bf16.msra.mxu1 %v1228_v33  ;;  %v1237_v38 = vld [vmem:[%s1551_s8 + $0x20] sm:$0xff]   ;;  %v1234_v41 = vld [vmem:[%s1553_s0 + $0x30] sm:$0xff]   ;;  %v1235_v42 = vld [vmem:[%s1553_s0 + $0x38] sm:$0xff]  }
  0x67   : > { %1076 = vmatprep.subr.bf16.mxu0 %v1229_v34  ;;  %1107 = vmatprep.subr.bf16.mxu1 %v1229_v34  ;;  %v1232_v39 = vld [vmem:[%s1553_s0 + $0x20] sm:$0xff]   ;;  %v1238_v43 = vld [vmem:[%s1551_s8 + $0x8] sm:$0xff]   ;;  %v1240_v45 = vld [vmem:[%s1551_s8 + $0x10] sm:$0xff]  }
  0x68   : > { %1090 = vmatprep.mubr.bf16.mxu0 %v1236_v37  ;;  %1098 = vmatprep.mubr.bf16.mxu1 %v1237_v38  ;;  %v1239_v44 = vld [vmem:[%s1551_s8 + $0x28] sm:$0xff]   ;;  %v1241_v46 = vld [vmem:[%s1551_s8 + $0x30] sm:$0xff]   ;;  %v1242_v47 = vld [vmem:[%s1551_s8 + $0x18] sm:$0xff]  }
  0x69   : > { %v1243_v48 = vld [vmem:[%s1551_s8 + $0x38] sm:$0xff]   ;;  %v458_v49 = vld [vmem:[%s1555_s1 + $0x10] sm:$0xff]  ;;  %v456_v51 = vld [vmem:[%s1555_s1] sm:$0xff] }
  0x6a   : > { %1077 = vmatpush3.bf16.msra.mxu0 %v1229_v34  ;;  %1115 = vmatpush3.bf16.msra.mxu1 %v1229_v34  ;;  %v466_v50 = vld [vmem:[%s1555_s1 + $0x50] sm:$0xff]  ;;  %v464_v52 = vld [vmem:[%s1555_s1 + $0x40] sm:$0xff]  ;;  %v459_v55 = vld [vmem:[%s1555_s1 + $0x18] sm:$0xff] }
  0x6b   : > { %1078 = vmatprep.subr.bf16.mxu0 %v1230_v35  ;;  %1108 = vmatprep.subr.bf16.mxu1 %v1230_v35  ;;  %v467_v56 = vld [vmem:[%s1555_s1 + $0x58] sm:$0xff]  ;;  %v457_v61 = vld [vmem:[%s1555_s1 + $0x8] sm:$0xff]  ;;  %v462_v9 = vld [vmem:[%s1555_s1 + $0x30] sm:$0xff] }
  0x6c   : > { %v465_v62 = vld [vmem:[%s1555_s1 + $0x48] sm:$0xff]  ;;  %v470_v10 = vld [vmem:[%s1555_s1 + $0x70] sm:$0xff]  ;;  %v460_v11 = vld [vmem:[%s1555_s1 + $0x20] sm:$0xff] }
  0x6d   : > { %v468_v12 = vld [vmem:[%s1555_s1 + $0x60] sm:$0xff]  ;;  %v463_v15 = vld [vmem:[%s1555_s1 + $0x38] sm:$0xff]  ;;  %v461_v21 = vld [vmem:[%s1555_s1 + $0x28] sm:$0xff] }
  0x6e   : > { %1079 = vmatpush3.bf16.msra.mxu0 %v1230_v35  ;;  %1116 = vmatpush3.bf16.msra.mxu1 %v1230_v35  ;;  %v471_v16 = vld [vmem:[%s1555_s1 + $0x78] sm:$0xff]  ;;  %v469_v22 = vld [vmem:[%s1555_s1 + $0x68] sm:$0xff]  ;;  %v1049_v34 = vld [vmem:[%s433_s6] ss:$0 sm:$0xff] (!%p1048_p6) }
  0x6f   : > { %1080 = vmatprep.subr.bf16.mxu0 %v1231_v36  ;;  %1109 = vmatprep.subr.bf16.mxu1 %v1231_v36 }
  0x72   : > { %1081 = vmatpush3.bf16.msra.mxu0 %v1231_v36  ;;  %1117 = vmatpush3.bf16.msra.mxu1 %v1231_v36 }
  0x73   : > { %1082 = vmatprep.subr.bf16.mxu0 %v1232_v39  ;;  %1110 = vmatprep.subr.bf16.mxu1 %v1232_v39 }
  0x76   : > { %1083 = vmatpush3.bf16.msra.mxu0 %v1232_v39  ;;  %1118 = vmatpush3.bf16.msra.mxu1 %v1232_v39 }
  0x77   : > { %1084 = vmatprep.subr.bf16.mxu0 %v1233_v40  ;;  %1111 = vmatprep.subr.bf16.mxu1 %v1233_v40 }
  0x7a   : > { %1085 = vmatpush3.bf16.msra.mxu0 %v1233_v40  ;;  %1119 = vmatpush3.bf16.msra.mxu1 %v1233_v40 }
  0x7b   : > { %1086 = vmatprep.subr.bf16.mxu0 %v1234_v41  ;;  %1112 = vmatprep.subr.bf16.mxu1 %v1234_v41 }
  0x7e   : > { %1087 = vmatpush3.bf16.msra.mxu0 %v1234_v41  ;;  %1120 = vmatpush3.bf16.msra.mxu1 %v1234_v41 }
  0x7f   : > { %1088 = vmatprep.subr.bf16.mxu0 %v1235_v42  ;;  %1113 = vmatprep.subr.bf16.mxu1 %v1235_v42 }
  0x82   : > { %1089 = vmatpush3.bf16.msra.mxu0 %v1235_v42  ;;  %1121 = vmatpush3.bf16.msra.mxu1 %v1235_v42 }
  0x85   : > { %1091 = vmatmul.mubr.bf16.vlgmr.msra.gmra.mrb[0].mxu0 %v1238_v43  ;;  %1099 = vmatmul.mubr.bf16.vlgmr.msra.gmra.mrb[0].mxu1 %v1239_v44 }
  0x86   : > { %1094 = vmatprep.mubr.bf16.mxu0 %v1240_v45  ;;  %1102 = vmatprep.mubr.bf16.mxu1 %v1241_v46 }
  0x8d   : > { %1095 = vmatmul.mubr.bf16.gmra.mrb[4].mxu0 %v1242_v47  ;;  %1103 = vmatmul.mubr.bf16.gmra.mrb[4].mxu1 %v1243_v48 }
 0x158   : > { %v1092_v53 = vpop.f32.mrb[0].mxu0  ;;  %v1100_v54 = vpop.f32.mrb[0].mxu1 }
 0x159   : > { %v699_v57 = vadd.f32 %v1092_v53, %v458_v49  ;;  %v707_v58 = vadd.f32 %v1100_v54, %v466_v50  ;;  %v634_v59 = vpop.f32.mrb[1].mxu0  ;;  %v666_v60 = vpop.f32.mrb[1].mxu1 }
 0x15a   : > { %v697_v63 = vadd.f32 %v634_v59, %v456_v51  ;;  %v705_v0 = vadd.f32 %v666_v60, %v464_v52  ;;  %v1093_v1 = vpop.f32.mrb[2].mxu0  ;;  %v1101_v2 = vpop.f32.mrb[2].mxu1 }
 0x15b   : > { %715 = vst [vmem:[%s1555_s1 + $0x10] sm:$0xff] %v699_v57  ;;  %723 = vst [vmem:[%s1555_s1 + $0x50] sm:$0xff] %v707_v58  ;;  %v700_v3 = vadd.f32 %v1093_v1, %v459_v55  ;;  %v708_v4 = vadd.f32 %v1101_v2, %v467_v56  ;;  %v637_v5 = vpop.f32.mrb[3].mxu0  ;;  %v669_v6 = vpop.f32.mrb[3].mxu1 }
 0x15c   : > { %713 = vst [vmem:[%s1555_s1] sm:$0xff] %v697_v63  ;;  %721 = vst [vmem:[%s1555_s1 + $0x40] sm:$0xff] %v705_v0  ;;  %v698_v7 = vadd.f32 %v637_v5, %v457_v61  ;;  %v706_v8 = vadd.f32 %v669_v6, %v465_v62 }
 0x15d   : > { %716 = vst [vmem:[%s1555_s1 + $0x18] sm:$0xff] %v700_v3  ;;  %724 = vst [vmem:[%s1555_s1 + $0x58] sm:$0xff] %v708_v4 }
 0x15e   : > { %714 = vst [vmem:[%s1555_s1 + $0x8] sm:$0xff] %v698_v7  ;;  %722 = vst [vmem:[%s1555_s1 + $0x48] sm:$0xff] %v706_v8 }
 0x160   : > { %v1096_v13 = vpop.f32.mrb[4].mxu0  ;;  %v1104_v14 = vpop.f32.mrb[4].mxu1  ;;  %732 = sbr.rel (%p1048_p6) target bundleno = 372 (0x174), region = 122 }
 0x161   : > { %v703_v17 = vadd.f32 %v1096_v13, %v462_v9  ;;  %v711_v18 = vadd.f32 %v1104_v14, %v470_v10  ;;  %v650_v19 = vpop.f32.mrb[5].mxu0  ;;  %v682_v20 = vpop.f32.mrb[5].mxu1 }
 0x162   : > { %v701_v23 = vadd.f32 %v650_v19, %v460_v11  ;;  %v709_v24 = vadd.f32 %v682_v20, %v468_v12  ;;  %v1097_v25 = vpop.f32.mrb[6].mxu0  ;;  %v1105_v26 = vpop.f32.mrb[6].mxu1  ;;  %v735_v38 = vld [vmem:[%s1555_s1 + $0x10] sm:$0xff] (!%p1048_p6) }
 0x163   : > { %719 = vst [vmem:[%s1555_s1 + $0x30] sm:$0xff] %v703_v17  ;;  %727 = vst [vmem:[%s1555_s1 + $0x70] sm:$0xff] %v711_v18  ;;  %v704_v27 = vadd.f32 %v1097_v25, %v463_v15  ;;  %v712_v28 = vadd.f32 %v1105_v26, %v471_v16  ;;  %v653_v29 = vpop.f32.mrb[7].mxu0  ;;  %v685_v30 = vpop.f32.mrb[7].mxu1  ;;  %v733_v33 = vld [vmem:[%s1555_s1] sm:$0xff] (!%p1048_p6)  ;;  %v758_v41 = vadd.f32 (!%p1048_p6), %v1049_v34, %v735_v38  ;;  %v743_v53 = vld [vmem:[%s1555_s1 + $0x50] sm:$0xff] (!%p1048_p6) }
 0x164   : > { %717 = vst [vmem:[%s1555_s1 + $0x20] sm:$0xff] %v701_v23  ;;  %725 = vst [vmem:[%s1555_s1 + $0x60] sm:$0xff] %v709_v24  ;;  %v702_v31 = vadd.f32 %v653_v29, %v461_v21  ;;  %v710_v32 = vadd.f32 %v685_v30, %v469_v22  ;;  %v756_v36 = vadd.f32 (!%p1048_p6), %v1049_v34, %v733_v33  ;;  %v736_v39 = vld [vmem:[%s1555_s1 + $0x18] sm:$0xff] (!%p1048_p6)  ;;  %v741_v51 = vld [vmem:[%s1555_s1 + $0x40] sm:$0xff] (!%p1048_p6) }
 0x165   : > { %720 = vst [vmem:[%s1555_s1 + $0x38] sm:$0xff] %v704_v27  ;;  %728 = vst [vmem:[%s1555_s1 + $0x78] sm:$0xff] %v712_v28  ;;  %v734_v35 = vld [vmem:[%s1555_s1 + $0x8] sm:$0xff] (!%p1048_p6)  ;;  %v759_v42 = vadd.f32 (!%p1048_p6), %v1049_v34, %v736_v39  ;;  %v774_v54 = vmax.f32 (!%p1048_p6), %v758_v41, 0.0  ;;  %v744_v58 = vld [vmem:[%s1555_s1 + $0x58] sm:$0xff] (!%p1048_p6)  ;;  %v764_v63 = vadd.f32 (!%p1048_p6), %v1049_v34, %v741_v51  ;;  %v766_v4 = vadd.f32 (!%p1048_p6), %v1049_v34, %v743_v53 }
 0x166   : > { %718 = vst [vmem:[%s1555_s1 + $0x28] sm:$0xff] %v702_v31  ;;  %726 = vst [vmem:[%s1555_s1 + $0x68] sm:$0xff] %v710_v32  ;;  %v757_v37 = vadd.f32 (!%p1048_p6), %v1049_v34, %v734_v35  ;;  %v772_v47 = vmax.f32 (!%p1048_p6), %v756_v36, 0.0  ;;  %v742_v52 = vld [vmem:[%s1555_s1 + $0x48] sm:$0xff] (!%p1048_p6)  ;;  %v767_v5 = vadd.f32 (!%p1048_p6), %v1049_v34, %v744_v58 }
 0x167   : > { %v775_v55 = vmax.f32 %v759_v42, 0.0  ;;  %v765_v0 = vadd.f32 %v1049_v34, %v742_v52  ;;  %790 = vst [vmem:[%s1555_s1 + $0x10] sm:$0xff] %v774_v54  ;;  %v780_v7 = vmax.f32 %v764_v63, 0.0  ;;  %v782_v11 = vmax.f32 %v766_v4, 0.0 }
 0x168   : > { %v773_v48 = vmax.f32 %v757_v37, 0.0  ;;  %788 = vst [vmem:[%s1555_s1] sm:$0xff] %v772_v47  ;;  %v783_v12 = vmax.f32 %v767_v5, 0.0 }
 0x169   : > { %791 = vst [vmem:[%s1555_s1 + $0x18] sm:$0xff] %v775_v55  ;;  %v781_v8 = vmax.f32 %v765_v0, 0.0  ;;  %796 = vst [vmem:[%s1555_s1 + $0x40] sm:$0xff] %v780_v7 }
 0x16a   : > { %v739_v45 = vld [vmem:[%s1555_s1 + $0x30] sm:$0xff]  ;;  %789 = vst [vmem:[%s1555_s1 + $0x8] sm:$0xff] %v773_v48  ;;  %798 = vst [vmem:[%s1555_s1 + $0x50] sm:$0xff] %v782_v11 }
 0x16b   : > { %v737_v40 = vld [vmem:[%s1555_s1 + $0x20] sm:$0xff]  ;;  %v762_v50 = vadd.f32 %v1049_v34, %v739_v45  ;;  %v747_v1 = vld [vmem:[%s1555_s1 + $0x70] sm:$0xff]  ;;  %797 = vst [vmem:[%s1555_s1 + $0x48] sm:$0xff] %v781_v8  ;;  %799 = vst [vmem:[%s1555_s1 + $0x58] sm:$0xff] %v783_v12 }
 0x16c   : > { %v760_v43 = vadd.f32 %v1049_v34, %v737_v40  ;;  %v740_v46 = vld [vmem:[%s1555_s1 + $0x38] sm:$0xff]  ;;  %v745_v59 = vld [vmem:[%s1555_s1 + $0x60] sm:$0xff]  ;;  %v770_v10 = vadd.f32 %v1049_v34, %v747_v1 }
 0x16d   : > { %v738_v44 = vld [vmem:[%s1555_s1 + $0x28] sm:$0xff]  ;;  %v763_v57 = vadd.f32 %v1049_v34, %v740_v46  ;;  %v778_v62 = vmax.f32 %v762_v50, 0.0  ;;  %v748_v2 = vld [vmem:[%s1555_s1 + $0x78] sm:$0xff]  ;;  %v768_v6 = vadd.f32 %v1049_v34, %v745_v59 }
 0x16e   : > { %v761_v49 = vadd.f32 %v1049_v34, %v738_v44  ;;  %v776_v56 = vmax.f32 %v760_v43, 0.0  ;;  %v746_v60 = vld [vmem:[%s1555_s1 + $0x68] sm:$0xff]  ;;  %v771_v14 = vadd.f32 %v1049_v34, %v748_v2  ;;  %v786_v16 = vmax.f32 %v770_v10, 0.0 }
 0x16f   : > { %v779_v3 = vmax.f32 %v763_v57, 0.0  ;;  %794 = vst [vmem:[%s1555_s1 + $0x30] sm:$0xff] %v778_v62  ;;  %v769_v9 = vadd.f32 %v1049_v34, %v746_v60  ;;  %v784_v13 = vmax.f32 %v768_v6, 0.0 }
 0x170   : > { %v777_v61 = vmax.f32 %v761_v49, 0.0  ;;  %792 = vst [vmem:[%s1555_s1 + $0x20] sm:$0xff] %v776_v56  ;;  %v787_v17 = vmax.f32 %v771_v14, 0.0  ;;  %802 = vst [vmem:[%s1555_s1 + $0x70] sm:$0xff] %v786_v16 }
 0x171   : > { %795 = vst [vmem:[%s1555_s1 + $0x38] sm:$0xff] %v779_v3  ;;  %v785_v15 = vmax.f32 %v769_v9, 0.0  ;;  %800 = vst [vmem:[%s1555_s1 + $0x60] sm:$0xff] %v784_v13 }
 0x172   : > { %793 = vst [vmem:[%s1555_s1 + $0x28] sm:$0xff] %v777_v61  ;;  %803 = vst [vmem:[%s1555_s1 + $0x78] sm:$0xff] %v787_v17 }
 0x173   : > { %801 = vst [vmem:[%s1555_s1 + $0x68] sm:$0xff] %v785_v15 }
 0x174 PF: > { %810 = sbr.rel (!%p1481_p13) target bundleno = 390 (0x186), region = 126  ;;  %s1746_s14 = sld [smem:[#allocation5_spill]] (%p1481_p13)  ;;  %v873_v18 = vld [vmem:[%s1555_s1] sm:$0xff] (%p1481_p13)  ;;  %v875_v19 = vld [vmem:[%s1555_s1 + $0x8] sm:$0xff] (%p1481_p13)  ;;  %v879_v21 = vld [vmem:[%s1555_s1 + $0x18] sm:$0xff] (%p1481_p13) }
 0x175   : > { %v889_v26 = vld [vmem:[%s1555_s1 + $0x40] sm:$0xff] (%p1481_p13)  ;;  %s1747_s11 = sld [smem:[#allocation10_spill]] (%p1481_p13)  ;;  %v891_v27 = vld [vmem:[%s1555_s1 + $0x48] sm:$0xff] (%p1481_p13)  ;;  %v893_v28 = vld [vmem:[%s1555_s1 + $0x50] sm:$0xff] (%p1481_p13) }
 0x176   : > { %v895_v29 = vld [vmem:[%s1555_s1 + $0x58] sm:$0xff] (%p1481_p13) }
 0x177   : > { %v885_v24 = vld [vmem:[%s1555_s1 + $0x30] sm:$0xff] (%p1481_p13) }
 0x178   : > { %v881_v22 = vld [vmem:[%s1555_s1 + $0x20] sm:$0xff] (%p1481_p13)  ;;  %v901_v32 = vld [vmem:[%s1555_s1 + $0x70] sm:$0xff] (%p1481_p13) }
 0x179   : > { %v887_v25 = vld [vmem:[%s1555_s1 + $0x38] sm:$0xff] (%p1481_p13)  ;;  %v897_v30 = vld [vmem:[%s1555_s1 + $0x60] sm:$0xff] (%p1481_p13) }
 0x17a   : > { %s1057_s16 = sshll.u32 (%p1481_p13), %s1746_s14, 5  ;;  %v883_v23 = vld [vmem:[%s1555_s1 + $0x28] sm:$0xff] (%p1481_p13)  ;;  %v903_v33 = vld [vmem:[%s1555_s1 + $0x78] sm:$0xff] (%p1481_p13) }
 0x17b   : > { %v877_v20 = vld [vmem:[%s1555_s1 + $0x10] sm:$0xff]  ;;  %s813_s18 = sadd.s32 %s1326_s19, %s1057_s16  ;;  %v899_v31 = vld [vmem:[%s1555_s1 + $0x68] sm:$0xff] }
 0x17c   : > { %s1053_s20 = sshll.u32 %s813_s18, 3 }
 0x17d   : > { %s815_s25 = scalar_lea.vmem %s1747_s11, %s1053_s20 }
 0x17e   : > { %874 = vst [vmem:[%s815_s25] sm:$0xff] %v873_v18  ;;  %876 = vst [vmem:[%s815_s25 + $0x10] sm:$0xff] %v875_v19 }
 0x17f   : > { %878 = vst [vmem:[%s815_s25 + $0x20] sm:$0xff] %v877_v20  ;;  %880 = vst [vmem:[%s815_s25 + $0x30] sm:$0xff] %v879_v21 }
 0x180   : > { %882 = vst [vmem:[%s815_s25 + $0x40] sm:$0xff] %v881_v22  ;;  %884 = vst [vmem:[%s815_s25 + $0x50] sm:$0xff] %v883_v23 }
 0x181   : > { %886 = vst [vmem:[%s815_s25 + $0x60] sm:$0xff] %v885_v24  ;;  %888 = vst [vmem:[%s815_s25 + $0x70] sm:$0xff] %v887_v25 }
 0x182   : > { %890 = vst [vmem:[%s815_s25 + $0x80] sm:$0xff] %v889_v26  ;;  %892 = vst [vmem:[%s815_s25 + $0x90] sm:$0xff] %v891_v27 }
 0x183   : > { %894 = vst [vmem:[%s815_s25 + $0xa0] sm:$0xff] %v893_v28  ;;  %896 = vst [vmem:[%s815_s25 + $0xb0] sm:$0xff] %v895_v29 }
 0x184   : > { %898 = vst [vmem:[%s815_s25 + $0xc0] sm:$0xff] %v897_v30  ;;  %900 = vst [vmem:[%s815_s25 + $0xd0] sm:$0xff] %v899_v31 }
 0x185   : > { %902 = vst [vmem:[%s815_s25 + $0xe0] sm:$0xff] %v901_v32  ;;  %904 = vst [vmem:[%s815_s25 + $0xf0] sm:$0xff] %v903_v33 }
 0x186 PF: > { %s13_s24 = sadd.s32 1, %s1346_s24   ;;  %s1749_s26 = sld [smem:[#allocation6_spill]] }
 0x187   : > { %p1684_p7 = scmp.ge.s32.totalorder %s13_s24, 106   ;;  %s1750_s1 = sld [smem:[#allocation7_spill]] }
 0x188   : > { %s1752_s12 = smov %s1302_s13  ;;  %s1753_s13 = smov %s1479_s7 }
 0x189   : > { %s1754_s14 = smov %s1310_s15  ;;  %s1755_s15 = smov %s1466_s9 }
 0x18a   : > { %s1756_s16 = smov %s1318_s17  ;;  %s1757_s17 = smov %s1476_s3 }
 0x18b   : > { %s1758_s18 = smov %s1334_s21  ;;  %s1759_s19 = smov %s1338_s22 }
 0x18c   : > { %s1760_s20 = smov %s1342_s23  ;;  %s1761_s21 = smov %s1749_s26 }
 0x18d   : > { %s1762_s22 = smov %s1750_s1  ;;  %s1763_s23 = smov %s1773_s28 }
 0x18e   :  { %12 = sbr.rel (!%p1684_p7) target bundleno = 11 (0xb), region = 206 }

// kernel: demo_fcn_forward.10
= control target key start
LH: loop header
LB: loop body
LE: loop exit
PB: predicated region body
PF: predicated region fallthrough
CT: control target
= control target key end

     0   :  { %s830_s15 = smov 0   ;;  %s1018_s0 = inlined_call_operand.vmem [shape: f32[2,8,8,192], index: 0, kind: input, shape index: {}]   ;;  %s1019_s1 = inlined_call_operand.vmem [shape: f32[2,8,7,192], index: 1, kind: input, shape index: {}]   ;;  %s1020_s2 = inlined_call_operand.vmem [shape: f32[2,7,8,192], index: 2, kind: input, shape index: {}]   ;;  %s1021_s3 = inlined_call_operand.vmem [shape: f32[2,7,7,192], index: 3, kind: input, shape index: {}]   ;;  %s1022_s4 = inlined_call_operand.vmem [shape: f32[2,7,7,192], index: 4, kind: output, shape index: {}]  }
   0x1 LB: > { %s730_s16 = sadd.s32 4294967295, %s803_s15   ;;  %p734_p0 = scmp.ge.s32.totalorder %s803_s15, 1  ;;  %s803_s15 = sphi %s830_s15, %s14_s15  }
   0x2   : > { %p192_p1 = scmp.lt.s32.totalorder %s803_s15, 3 }
   0x4   : > { %p193_p2 = pnand %p734_p0, %p192_p1 }
   0x5   : > { %p233_p3 = scmp.lt.s32.totalorder (!%p193_p2), %s730_s16, 1  ;;  %vm625_vm0 = vcmask (!%p193_p2), 522240  }
   0x6   : > { %196 = sbr.rel (%p193_p2) target bundleno = 83 (0x53), region = 36 }
   0xd   : > { %s1024_s16 = smov (!%p233_p3, %s730_s16), 1 }
   0xe   : > { %s786_s17 = sshll.u32 %s1024_s16, 7  ;;  %s838_s18 = smul.u32 112, %s1024_s16 }
   0xf   : > { %s843_s21 = scalar_lea.vmem %s1018_s0, %s786_s17  ;;  %s848_s24 = scalar_lea.vmem %s1019_s1, %s786_s17 }
  0x10   : > { %s854_s27 = scalar_lea.vmem %s1020_s2, %s838_s18  ;;  %v258_v0 = vld [vmem:[%s843_s21] sm:$0x7f]  ;;  %s864_s30 = scalar_lea.vmem %s1021_s3, %s838_s18  ;;  %v259_v7 = vld [vmem:[%s843_s21 + $0x8] sm:$0x7f]  ;;  %v756_v16 = vld [vmem:[%s843_s21 + $0x10] sm:$0xfe] }
  0x11   : > { %v272_v1 = vld [vmem:[%s843_s21] sm:$0xfe]  ;;  %v273_v8 = vld [vmem:[%s843_s21 + $0x8] sm:$0xfe]  ;;  %v260_v19 = vld [vmem:[%s843_s21 + $0x10] sm:$0x7f]  ;;  %s894_s7 = scalar_lea.vmem %s1022_s4, %s838_s18 }
  0x12   : > { %v300_v2 = vrot.slane %v272_v1, 1  ;;  %v342_v3 = vld [vmem:[%s848_s24] sm:$0x7f]  ;;  %v301_v11 = vrot.slane %v273_v8, 1  ;;  %v343_v12 = vld [vmem:[%s848_s24 + $0x8] sm:$0x7f] }
  0x13   : > { %v398_v4 = vld [vmem:[%s854_s27] sm:$0xfe]  ;;  %v399_v13 = vld [vmem:[%s854_s27 + $0x8] sm:$0xfe]  ;;  %v274_v20 = vld [vmem:[%s843_s21 + $0x10] sm:$0xfe] }
  0x14   : > { %v328_v5 = vmax.f32 %v258_v0, %v300_v2  ;;  %v370_v6 = vld [vmem:[%s854_s27] sm:$0x7f]  ;;  %v426_v10 = vrot.slane %v398_v4, 1  ;;  %v329_v17 = vmax.f32 %v259_v7, %v301_v11  ;;  %v371_v18 = vld [vmem:[%s854_s27 + $0x8] sm:$0x7f]  ;;  %v427_v23 = vrot.slane %v399_v13, 1 }
  0x15   : > { %v468_v15 = vld [vmem:[%s864_s30] sm:$0x7f]  ;;  %v302_v24 = vrot.slane %v274_v20, 1  ;;  %v400_v25 = vld [vmem:[%s854_s27 + $0x10] sm:$0xfe]  ;;  %v553_v27 = vrot.slane %v756_v16, 1 }
  0x16   : > { %v356_v9 = vmax.f32 %v328_v5, %v342_v3  ;;  %v357_v22 = vmax.f32 %v329_v17, %v343_v12  ;;  %v742_v26 = vld [vmem:[%s843_s21 + $0x10] sm:$0x7f]  ;;  %v469_v31 = vld [vmem:[%s864_s30 + $0x8] sm:$0x7f]  ;;  %v757_v32 = vld [vmem:[%s843_s21 + $0x18] sm:$0xfe] }
  0x17   : > { %v344_v28 = vld [vmem:[%s848_s24 + $0x10] sm:$0x7f]  ;;  %v330_v33 = vmax.f32 %v260_v19, %v302_v24  ;;  %v428_v35 = vrot.slane %v400_v25, 1  ;;  %v261_v36 = vld [vmem:[%s843_s21 + $0x18] sm:$0x7f]  ;;  %v554_v45 = vrot.slane %v757_v32, 1 }
  0x18   : > { %v384_v14 = vmax.f32 %v356_v9, %v370_v6  ;;  %v385_v30 = vmax.f32 %v357_v22, %v371_v18  ;;  %v372_v34 = vld [vmem:[%s854_s27 + $0x10] sm:$0x7f]  ;;  %v275_v37 = vld [vmem:[%s843_s21 + $0x18] sm:$0xfe]  ;;  %v758_v51 = vld [vmem:[%s843_s21 + $0x20] sm:$0xfe] }
  0x19   : > { %v770_v39 = vld [vmem:[%s848_s24 + $0x10] sm:$0x7f]  ;;  %v358_v41 = vmax.f32 %v330_v33, %v344_v28  ;;  %v303_v42 = vrot.slane %v275_v37, 1  ;;  %v401_v43 = vld [vmem:[%s854_s27 + $0x18] sm:$0xfe]  ;;  %v555_v63 = vrot.slane %v758_v51, 1 }
  0x1a   : > { %v454_v21 = vmax.f32 %v384_v14, %v426_v10  ;;  %v455_v40 = vmax.f32 %v385_v30, %v427_v23  ;;  %v743_v44 = vld [vmem:[%s843_s21 + $0x18] sm:$0x7f]  ;;  %v470_v50 = vld [vmem:[%s864_s30 + $0x10] sm:$0x7f]  ;;  %v429_v54 = vrot.slane %v401_v43, 1 }
  0x1b   : > { %v345_v46 = vld [vmem:[%s848_s24 + $0x18] sm:$0x7f]  ;;  %v386_v49 = vmax.f32 %v358_v41, %v372_v34  ;;  %v331_v52 = vmax.f32 %v261_v36, %v303_v42  ;;  %v276_v55 = vld [vmem:[%s843_s21 + $0x20] sm:$0xfe]  ;;  %v759_v8 = vld [vmem:[%s843_s21 + $0x28] sm:$0xfe] }
  0x1c   : > { %v482_v29 = vmax.f32 %v454_v21, %v468_v15  ;;  %v483_v48 = vmax.f32 %v455_v40, %v469_v31  ;;  %v373_v53 = vld [vmem:[%s854_s27 + $0x18] sm:$0x7f]  ;;  %v262_v60 = vld [vmem:[%s843_s21 + $0x20] sm:$0x7f]  ;;  %v304_v0 = vrot.slane %v276_v55, 1  ;;  %v556_v24 = vrot.slane %v759_v8, 1 }
  0x1d   : > { %v456_v58 = vmax.f32 %v386_v49, %v428_v35  ;;  %v359_v59 = vmax.f32 %v331_v52, %v345_v46  ;;  %v771_v61 = vld [vmem:[%s848_s24 + $0x18] sm:$0x7f]  ;;  %v744_v62 = vld [vmem:[%s843_s21 + $0x20] sm:$0x7f]  ;;  %v263_v10 = vld [vmem:[%s843_s21 + $0x28] sm:$0x7f] }
  0x1e   : > { %v511_v38 = vmax.f32 %v482_v29, %v742_v26  ;;  %v512_v57 = vmax.f32 %v483_v48, %v743_v44  ;;  %v471_v4 = vld [vmem:[%s864_s30 + $0x18] sm:$0x7f]  ;;  %v346_v5 = vld [vmem:[%s848_s24 + $0x20] sm:$0x7f]  ;;  %v332_v9 = vmax.f32 %v262_v60, %v304_v0  ;;  %v277_v11 = vld [vmem:[%s843_s21 + $0x28] sm:$0xfe] }
  0x1f   : > { %v484_v2 = vmax.f32 %v456_v58, %v470_v50  ;;  %v387_v3 = vmax.f32 %v359_v59, %v373_v53  ;;  %v402_v6 = vld [vmem:[%s854_s27 + $0x20] sm:$0xfe]  ;;  %v305_v16 = vrot.slane %v277_v11, 1  ;;  %v403_v17 = vld [vmem:[%s854_s27 + $0x28] sm:$0xfe] }
  0x20   : > { %v581_v47 = vmax.f32 %v511_v38, %v553_v27  ;;  %v582_v1 = vmax.f32 %v512_v57, %v554_v45  ;;  %v772_v7 = vld [vmem:[%s848_s24 + $0x20] sm:$0x7f]  ;;  %v745_v18 = vld [vmem:[%s843_s21 + $0x28] sm:$0x7f]  ;;  %v360_v19 = vmax.f32 %v332_v9, %v346_v5  ;;  %v430_v20 = vrot.slane %v402_v6, 1 }
  0x21   : > { %v513_v13 = vmax.f32 %v484_v2, %v744_v62  ;;  %v457_v14 = vmax.f32 %v387_v3, %v429_v54  ;;  %v374_v15 = vld [vmem:[%s854_s27 + $0x20] sm:$0x7f]  ;;  %v347_v21 = vld [vmem:[%s848_s24 + $0x28] sm:$0x7f]  ;;  %v333_v26 = vmax.f32 %v263_v10, %v305_v16  ;;  %v431_v29 = vrot.slane %v403_v17, 1 }
  0x22   : > { %v610_v56 = vmax.f32 %v581_v47, %v770_v39  ;;  %v611_v12 = vmax.f32 %v582_v1, %v771_v61  ;;  %v472_v25 = vld [vmem:[%s864_s30 + $0x20] sm:$0x7f]  ;;  %v375_v27 = vld [vmem:[%s854_s27 + $0x28] sm:$0x7f]  ;;  %v388_v28 = vmax.f32 %v360_v19, %v374_v15  ;;  %v264_v30 = vld [vmem:[%s843_s21 + $0x30] sm:$0x7f] }
  0x23   : > { %v583_v22 = vmax.f32 %v513_v13, %v555_v63  ;;  %v485_v23 = vmax.f32 %v457_v14, %v471_v4  ;;  %v278_v31 = vld [vmem:[%s843_s21 + $0x30] sm:$0xfe]  ;;  %v361_v35 = vmax.f32 %v333_v26, %v347_v21  ;;  %v773_v38 = vld [vmem:[%s848_s24 + $0x28] sm:$0x7f]  ;;  %v761_v45 = vld [vmem:[%s843_s21 + $0x38] sm:$0xfe] }
  0x24   : > { %624 = vst [vmem:[%s894_s7] sm:$0x7f] %v610_v56  ;;  %626 = vst.msk [vmem:[%s894_s7 + $0x8] sm:$0x7f] %vm625_vm0, %v611_v12  ;;  %v760_v34 = vld [vmem:[%s843_s21 + $0x30] sm:$0xfe]  ;;  %v306_v36 = vrot.slane %v278_v31, 1  ;;  %v458_v39 = vmax.f32 %v388_v28, %v430_v20 }
  0x25   : > { %v612_v32 = vmax.f32 %v583_v22, %v772_v7  ;;  %v514_v33 = vmax.f32 %v485_v23, %v745_v18  ;;  %v404_v37 = vld [vmem:[%s854_s27 + $0x30] sm:$0xfe]  ;;  %v389_v43 = vmax.f32 %v361_v35, %v375_v27  ;;  %v473_v44 = vld [vmem:[%s864_s30 + $0x28] sm:$0x7f]  ;;  %v557_v49 = vrot.slane %v760_v34, 1 }
  0x26   : > { %v746_v40 = vld [vmem:[%s843_s21 + $0x30] sm:$0x7f]  ;;  %v334_v46 = vmax.f32 %v264_v30, %v306_v36  ;;  %v486_v48 = vmax.f32 %v458_v39, %v472_v25  ;;  %v432_v50 = vrot.slane %v404_v37, 1  ;;  %v265_v51 = vld [vmem:[%s843_s21 + $0x38] sm:$0x7f]  ;;  %v558_v61 = vrot.slane %v761_v45, 1 }
  0x27   : > { %v348_v41 = vld [vmem:[%s848_s24 + $0x30] sm:$0x7f]  ;;  %627 = vst [vmem:[%s894_s7 + $0x10] sm:$0x7f] %v612_v32  ;;  %v584_v42 = vmax.f32 %v514_v33, %v556_v24  ;;  %v279_v52 = vld [vmem:[%s843_s21 + $0x38] sm:$0xfe]  ;;  %v459_v55 = vmax.f32 %v389_v43, %v431_v29 }
  0x28   : > { %v376_v47 = vld [vmem:[%s854_s27 + $0x30] sm:$0x7f]  ;;  %v362_v56 = vmax.f32 %v334_v46, %v348_v41  ;;  %v307_v57 = vrot.slane %v279_v52, 1  ;;  %v405_v58 = vld [vmem:[%s854_s27 + $0x38] sm:$0xfe]  ;;  %v515_v59 = vmax.f32 %v486_v48, %v746_v40 }
  0x29   : > { %v613_v53 = vmax.f32 %v584_v42, %v773_v38  ;;  %v774_v54 = vld [vmem:[%s848_s24 + $0x30] sm:$0x7f]  ;;  %v747_v60 = vld [vmem:[%s843_s21 + $0x38] sm:$0x7f]  ;;  %v487_v63 = vmax.f32 %v459_v55, %v473_v44  ;;  %v762_v2 = vld [vmem:[%s843_s21 + $0x40] sm:$0xfe] }
  0x2a   : > { %v349_v62 = vld [vmem:[%s848_s24 + $0x38] sm:$0x7f]  ;;  %v390_v0 = vmax.f32 %v362_v56, %v376_v47  ;;  %v474_v1 = vld [vmem:[%s864_s30 + $0x30] sm:$0x7f]  ;;  %v335_v3 = vmax.f32 %v265_v51, %v307_v57  ;;  %v585_v5 = vmax.f32 %v515_v59, %v557_v49  ;;  %v433_v6 = vrot.slane %v405_v58, 1 }
  0x2b   : > { %628 = vst.msk [vmem:[%s894_s7 + $0x18] sm:$0x7f] %vm625_vm0, %v613_v53  ;;  %v377_v4 = vld [vmem:[%s854_s27 + $0x38] sm:$0x7f]  ;;  %v266_v7 = vld [vmem:[%s843_s21 + $0x40] sm:$0x7f]  ;;  %v516_v9 = vmax.f32 %v487_v63, %v747_v60 }
  0x2c   : > { %v280_v8 = vld [vmem:[%s843_s21 + $0x40] sm:$0xfe]  ;;  %v775_v10 = vld [vmem:[%s848_s24 + $0x38] sm:$0x7f]  ;;  %v460_v11 = vmax.f32 %v390_v0, %v432_v50  ;;  %v363_v12 = vmax.f32 %v335_v3, %v349_v62  ;;  %v614_v15 = vmax.f32 %v585_v5, %v774_v54  ;;  %v559_v17 = vrot.slane %v762_v2, 1 }
  0x2d   : > { %v308_v13 = vrot.slane %v280_v8, 1  ;;  %v406_v14 = vld [vmem:[%s854_s27 + $0x40] sm:$0xfe]  ;;  %v586_v19 = vmax.f32 %v516_v9, %v558_v61  ;;  %v763_v22 = vld [vmem:[%s843_s21 + $0x48] sm:$0xfe] }
  0x2e   : > { %v748_v16 = vld [vmem:[%s843_s21 + $0x40] sm:$0x7f]  ;;  %v488_v20 = vmax.f32 %v460_v11, %v474_v1  ;;  %v391_v21 = vmax.f32 %v363_v12, %v377_v4  ;;  %v267_v24 = vld [vmem:[%s843_s21 + $0x48] sm:$0x7f]  ;;  %629 = vst [vmem:[%s894_s7 + $0x20] sm:$0x7f] %v614_v15 }
  0x2f   : > { %v350_v18 = vld [vmem:[%s848_s24 + $0x40] sm:$0x7f]  ;;  %v336_v23 = vmax.f32 %v266_v7, %v308_v13  ;;  %v281_v25 = vld [vmem:[%s843_s21 + $0x48] sm:$0xfe]  ;;  %v475_v26 = vld [vmem:[%s864_s30 + $0x38] sm:$0x7f]  ;;  %v615_v30 = vmax.f32 %v586_v19, %v775_v10 }
  0x30   : > { %v378_v27 = vld [vmem:[%s854_s27 + $0x40] sm:$0x7f]  ;;  %v434_v28 = vrot.slane %v406_v14, 1  ;;  %v309_v29 = vrot.slane %v281_v25, 1  ;;  %v517_v31 = vmax.f32 %v488_v20, %v748_v16  ;;  %v461_v33 = vmax.f32 %v391_v21, %v433_v6  ;;  %v351_v35 = vld [vmem:[%s848_s24 + $0x48] sm:$0x7f] }
  0x31   : > { %v776_v32 = vld [vmem:[%s848_s24 + $0x40] sm:$0x7f]  ;;  %v364_v34 = vmax.f32 %v336_v23, %v350_v18  ;;  %v407_v36 = vld [vmem:[%s854_s27 + $0x48] sm:$0xfe]  ;;  %v560_v38 = vrot.slane %v763_v22, 1 }
  0x32   : > { %v749_v37 = vld [vmem:[%s843_s21 + $0x48] sm:$0x7f]  ;;  %v764_v39 = vld [vmem:[%s843_s21 + $0x50] sm:$0xfe]  ;;  %v337_v40 = vmax.f32 %v267_v24, %v309_v29  ;;  %630 = vst.msk [vmem:[%s894_s7 + $0x28] sm:$0x7f] %vm625_vm0, %v615_v30  ;;  %v587_v41 = vmax.f32 %v517_v31, %v559_v17  ;;  %v489_v42 = vmax.f32 %v461_v33, %v475_v26 }
  0x33   : > { %v392_v43 = vmax.f32 %v364_v34, %v378_v27  ;;  %v379_v44 = vld [vmem:[%s854_s27 + $0x48] sm:$0x7f]  ;;  %v268_v45 = vld [vmem:[%s843_s21 + $0x50] sm:$0x7f]  ;;  %v476_v48 = vld [vmem:[%s864_s30 + $0x40] sm:$0x7f] }
  0x34   : > { %v282_v46 = vld [vmem:[%s843_s21 + $0x50] sm:$0xfe]  ;;  %v777_v47 = vld [vmem:[%s848_s24 + $0x48] sm:$0x7f]  ;;  %v365_v49 = vmax.f32 %v337_v40, %v351_v35  ;;  %v435_v50 = vrot.slane %v407_v36, 1  ;;  %v616_v52 = vmax.f32 %v587_v41, %v776_v32  ;;  %v518_v53 = vmax.f32 %v489_v42, %v749_v37 }
  0x35   : > { %v310_v51 = vrot.slane %v282_v46, 1  ;;  %v462_v54 = vmax.f32 %v392_v43, %v434_v28  ;;  %v750_v55 = vld [vmem:[%s843_s21 + $0x50] sm:$0x7f]  ;;  %v561_v58 = vrot.slane %v764_v39, 1  ;;  %v477_v60 = vld [vmem:[%s864_s30 + $0x48] sm:$0x7f] }
  0x36   : > { %v352_v56 = vld [vmem:[%s848_s24 + $0x50] sm:$0x7f]  ;;  %v393_v59 = vmax.f32 %v365_v49, %v379_v44  ;;  %v765_v61 = vld [vmem:[%s843_s21 + $0x58] sm:$0xfe]  ;;  %631 = vst [vmem:[%s894_s7 + $0x30] sm:$0x7f] %v616_v52  ;;  %v588_v63 = vmax.f32 %v518_v53, %v560_v38 }
  0x37   : > { %v408_v57 = vld [vmem:[%s854_s27 + $0x50] sm:$0xfe]  ;;  %v338_v62 = vmax.f32 %v268_v45, %v310_v51  ;;  %v490_v0 = vmax.f32 %v462_v54, %v476_v48  ;;  %v269_v2 = vld [vmem:[%s843_s21 + $0x58] sm:$0x7f]  ;;  %v562_v12 = vrot.slane %v765_v61, 1 }
  0x38   : > { %v380_v1 = vld [vmem:[%s854_s27 + $0x50] sm:$0x7f]  ;;  %v283_v3 = vld [vmem:[%s843_s21 + $0x58] sm:$0xfe]  ;;  %v463_v5 = vmax.f32 %v393_v59, %v435_v50  ;;  %v436_v8 = vrot.slane %v408_v57, 1  ;;  %v617_v10 = vmax.f32 %v588_v63, %v777_v47 }
  0x39   : > { %v778_v4 = vld [vmem:[%s848_s24 + $0x50] sm:$0x7f]  ;;  %v751_v6 = vld [vmem:[%s843_s21 + $0x58] sm:$0x7f]  ;;  %v366_v7 = vmax.f32 %v338_v62, %v352_v56  ;;  %v311_v9 = vrot.slane %v283_v3, 1  ;;  %v519_v11 = vmax.f32 %v490_v0, %v750_v55 }
  0x3a   : > { %v353_v13 = vld [vmem:[%s848_s24 + $0x58] sm:$0x7f]  ;;  %v491_v15 = vmax.f32 %v463_v5, %v477_v60  ;;  %v478_v17 = vld [vmem:[%s864_s30 + $0x50] sm:$0x7f]  ;;  %v766_v18 = vld [vmem:[%s843_s21 + $0x60] sm:$0xfe] }
  0x3b   : > { %v409_v14 = vld [vmem:[%s854_s27 + $0x58] sm:$0xfe]  ;;  %v394_v16 = vmax.f32 %v366_v7, %v380_v1  ;;  %v339_v19 = vmax.f32 %v269_v2, %v311_v9  ;;  %632 = vst.msk [vmem:[%s894_s7 + $0x38] sm:$0x7f] %vm625_vm0, %v617_v10  ;;  %v589_v21 = vmax.f32 %v519_v11, %v561_v58  ;;  %v270_v23 = vld [vmem:[%s843_s21 + $0x60] sm:$0x7f] }
  0x3c   : > { %v381_v20 = vld [vmem:[%s854_s27 + $0x58] sm:$0x7f]  ;;  %v437_v22 = vrot.slane %v409_v14, 1  ;;  %v284_v24 = vld [vmem:[%s843_s21 + $0x60] sm:$0xfe]  ;;  %v520_v25 = vmax.f32 %v491_v15, %v751_v6  ;;  %v563_v32 = vrot.slane %v766_v18, 1 }
  0x3d   : > { %v779_v26 = vld [vmem:[%s848_s24 + $0x58] sm:$0x7f]  ;;  %v464_v27 = vmax.f32 %v394_v16, %v436_v8  ;;  %v752_v28 = vld [vmem:[%s843_s21 + $0x60] sm:$0x7f]  ;;  %v367_v29 = vmax.f32 %v339_v19, %v353_v13  ;;  %v312_v30 = vrot.slane %v284_v24, 1  ;;  %v618_v31 = vmax.f32 %v589_v21, %v778_v4 }
  0x3e   : > { %v354_v33 = vld [vmem:[%s848_s24 + $0x60] sm:$0x7f]  ;;  %v590_v35 = vmax.f32 %v520_v25, %v562_v12  ;;  %v479_v38 = vld [vmem:[%s864_s30 + $0x58] sm:$0x7f]  ;;  %v767_v39 = vld [vmem:[%s843_s21 + $0x68] sm:$0xfe] }
  0x3f   : > { %v410_v34 = vld [vmem:[%s854_s27 + $0x60] sm:$0xfe]  ;;  %v492_v36 = vmax.f32 %v464_v27, %v478_v17  ;;  %v395_v37 = vmax.f32 %v367_v29, %v381_v20  ;;  %v340_v40 = vmax.f32 %v270_v23, %v312_v30  ;;  %633 = vst [vmem:[%s894_s7 + $0x40] sm:$0x7f] %v618_v31  ;;  %v285_v43 = vld [vmem:[%s843_s21 + $0x68] sm:$0xfe] }
  0x40   : > { %v382_v41 = vld [vmem:[%s854_s27 + $0x60] sm:$0x7f]  ;;  %v438_v42 = vrot.slane %v410_v34, 1  ;;  %v619_v44 = vmax.f32 %v590_v35, %v779_v26  ;;  %v271_v48 = vld [vmem:[%s843_s21 + $0x68] sm:$0x7f]  ;;  %v313_v51 = vrot.slane %v285_v43, 1 }
  0x41   : > { %v521_v45 = vmax.f32 %v492_v36, %v752_v28  ;;  %v465_v46 = vmax.f32 %v395_v37, %v437_v22  ;;  %v368_v47 = vmax.f32 %v340_v40, %v354_v33  ;;  %v780_v49 = vld [vmem:[%s848_s24 + $0x60] sm:$0x7f]  ;;  %v753_v50 = vld [vmem:[%s843_s21 + $0x68] sm:$0x7f]  ;;  %v564_v54 = vrot.slane %v767_v39, 1 }
  0x42   : > { %634 = vst.msk [vmem:[%s894_s7 + $0x48] sm:$0x7f] %vm625_vm0, %v619_v44  ;;  %v355_v56 = vld [vmem:[%s848_s24 + $0x68] sm:$0x7f]  ;;  %v480_v58 = vld [vmem:[%s864_s30 + $0x60] sm:$0x7f]  ;;  %v341_v60 = vmax.f32 %v271_v48, %v313_v51 }
  0x43   : > { %v591_v52 = vmax.f32 %v521_v45, %v563_v32  ;;  %v493_v53 = vmax.f32 %v465_v46, %v479_v38  ;;  %v396_v55 = vmax.f32 %v368_v47, %v382_v41  ;;  %v411_v57 = vld [vmem:[%s854_s27 + $0x68] sm:$0xfe]  ;;  %v768_v59 = vld [vmem:[%s843_s21 + $0x70] sm:$0xfe]  ;;  %v769_v12 = vld [vmem:[%s843_s21 + $0x78] sm:$0xfe] }
  0x44   : > { %v383_v0 = vld [vmem:[%s854_s27 + $0x68] sm:$0x7f]  ;;  %v754_v2 = vld [vmem:[%s843_s21 + $0x70] sm:$0x7f]  ;;  %v369_v3 = vmax.f32 %v341_v60, %v355_v56  ;;  %v439_v4 = vrot.slane %v411_v57, 1  ;;  %v565_v7 = vrot.slane %v768_v59, 1 }
  0x45   : > { %v620_v61 = vmax.f32 %v591_v52, %v780_v49  ;;  %v522_v62 = vmax.f32 %v493_v53, %v753_v50  ;;  %v466_v63 = vmax.f32 %v396_v55, %v438_v42  ;;  %v781_v1 = vld [vmem:[%s848_s24 + $0x68] sm:$0x7f]  ;;  %v782_v13 = vld [vmem:[%s848_s24 + $0x70] sm:$0x7f]  ;;  %v755_v16 = vld [vmem:[%s843_s21 + $0x78] sm:$0x7f] }
  0x46   : > { %v397_v8 = vmax.f32 %v369_v3, %v383_v0  ;;  %v481_v11 = vld [vmem:[%s864_s30 + $0x68] sm:$0x7f]  ;;  %v566_v18 = vrot.slane %v769_v12, 1  ;;  %v783_v21 = vld [vmem:[%s848_s24 + $0x78] sm:$0x7f] }
  0x47   : > { %635 = vst [vmem:[%s894_s7 + $0x50] sm:$0x7f] %v620_v61  ;;  %v592_v5 = vmax.f32 %v522_v62, %v564_v54  ;;  %v494_v6 = vmax.f32 %v466_v63, %v480_v58 }
  0x48   : > { %v467_v14 = vmax.f32 %v397_v8, %v439_v4 }
  0x49   : > { %v621_v9 = vmax.f32 %v592_v5, %v781_v1  ;;  %v523_v10 = vmax.f32 %v494_v6, %v754_v2 }
  0x4a   : > { %v495_v17 = vmax.f32 %v467_v14, %v481_v11 }
  0x4b   : > { %636 = vst.msk [vmem:[%s894_s7 + $0x58] sm:$0x7f] %vm625_vm0, %v621_v9  ;;  %v593_v15 = vmax.f32 %v523_v10, %v565_v7 }
  0x4c   : > { %v524_v20 = vmax.f32 %v495_v17, %v755_v16 }
  0x4d   : > { %v622_v19 = vmax.f32 %v593_v15, %v782_v13 }
  0x4e   : > { %v594_v22 = vmax.f32 %v524_v20, %v566_v18 }
  0x4f   : > { %637 = vst [vmem:[%s894_s7 + $0x60] sm:$0x7f] %v622_v19 }
  0x50   : > { %v623_v23 = vmax.f32 %v594_v22, %v783_v21 }
  0x52   : > { %638 = vst.msk [vmem:[%s894_s7 + $0x68] sm:$0x7f] %vm625_vm0, %v623_v23 }
  0x53 PF: > { %s14_s15 = sadd.s32 1, %s803_s15  }
  0x54   : > { %p11_p4 = scmp.ge.s32.totalorder %s14_s15, 4  }
  0x56   :  { %13 = sbr.rel (!%p11_p4) target bundleno = 1 (0x1), region = 77 }

// kernel: demo_fcn_forward.11
= control target key start
LH: loop header
LB: loop body
LE: loop exit
PB: predicated region body
PF: predicated region fallthrough
CT: control target
= control target key end

     0   :  { %s1935_s0 = inlined_call_operand.vmem [shape: bf16[128,1792], index: 0, kind: input, shape index: {}]   ;;  %s1936_s1 = inlined_call_operand.vmem [shape: bf16[1792,384], index: 1, kind: input, shape index: {}]   ;;  %s1937_s2 = inlined_call_operand.vmem [shape: f32[1,384], index: 2, kind: input, shape index: {}]   ;;  %s1938_s3 = inlined_call_operand.vmem [shape: f32[128,384], index: 3, kind: output, shape index: {}]  }
   0x1   :  { %1940 = sst [smem:[#allocation6_spill]] %s1935_s0 }
   0x2   :  { %1941 = sst [smem:[#allocation7_spill]] %s1936_s1 }
   0x3   :  { %s1542_s12 = smov 0   ;;  %s1544_s13 = smov 0  }
   0x4   :  { %s1546_s14 = smov 0   ;;  %s1548_s15 = smov 0  }
   0x5   :  { %s1550_s16 = smov 0   ;;  %s1552_s17 = smov 0  }
   0x6   :  { %s1554_s18 = smov 0   ;;  %s1556_s19 = smov 0  }
   0x7   :  { %s1558_s20 = smov 0   ;;  %s1560_s21 = smov 0  }
   0x8   :  { %s1562_s22 = smov 0  }
   0x9 LB: > { %s1168_s23 = sadd.s32 4294967295, %s1519_s22   ;;  %s25_s24 = sadd.s32 1, %s1511_s20  ;;  %s1519_s22 = sphi %s1562_s22, %s13_s22   ;;  %s1515_s21 = sphi %s1560_s21, %s1958_s21   ;;  %s1511_s20 = sphi %s1558_s20, %s1957_s20   ;;  %s1507_s19 = sphi %s1556_s19, %s1956_s19   ;;  %s1503_s18 = sphi %s1554_s18, %s1955_s18   ;;  %s1499_s17 = sphi %s1552_s17, %s1954_s17   ;;  %s1495_s16 = sphi %s1550_s16, %s1953_s16   ;;  %s1491_s15 = sphi %s1548_s15, %s1952_s15   ;;  %s1487_s14 = sphi %s1546_s14, %s1951_s14   ;;  %s1483_s13 = sphi %s1544_s13, %s1950_s13   ;;  %s1479_s12 = sphi %s1542_s12, %s1949_s12  }
   0xa   : > { %p26_p0 = scmp.ge.s32.totalorder %s25_s24, 7  ;;  %s28_s25 = sadd.s32 1, %s1515_s21 }
   0xb   : > { %s41_s26 = sadd.s32 1, %s1499_s17  ;;  %p48_p1 = scmp.ne.s32.totalorder %s1499_s17, %s1495_s16 }
   0xc   : > { %s1960_s24 = smov (%p26_p0, %s25_s24), 0  ;;  %s1962_s25 = smov (!%p26_p0, %s28_s25), %s1515_s21 }
   0xd   : > { %s37_s27 = ssub.s32 %s1511_s20, %s1960_s24  ;;  %p49_p2 = scmp.eq.s32.totalorder %s1519_s22, 0 }
   0xe   : > { %p30_p3 = scmp.ge.s32.totalorder %s1962_s25, 3  ;;  %p39_p4 = scmp.eq.s32.totalorder %s37_s27, 0 }
   0xf   : > { %p1609_p5 = por %p49_p2, %p48_p1  ;;  %s69_s29 = sadd.s32 1, %s1491_s15 }
  0x10   : > { %s1964_s25 = smov (%p30_p3, %s1962_s25), 0  ;;  %p76_p6 = scmp.ne.s32.totalorder %s1491_s15, %s1487_s14 }
  0x11   : > { %1943 = sst [smem:[#allocation5_spill]] %s1964_s25  ;;  %s65_s4 = ssub.s32 %s1515_s21, %s1964_s25 }
  0x12   : > { %s1617_s30 = scalar_select %p39_p4, %s1499_s17, %s41_s26  }
  0x13   : > { %s66_s5 = sor.u32 %s65_s4, %s37_s27  ;;  %p121_p7 = scmp.eq.s32.totalorder %s65_s4, 0 }
  0x14   : > { %p67_p8 = scmp.eq.s32.totalorder %s66_s5, 0  ;;  %p1623_p9 = por %p76_p6, %p49_p2 }
  0x15   : > { %s123_s7 = sadd.s32 1, %s1483_s13  ;;  %p133_p10 = scmp.ne.s32.totalorder %s1483_s13, %s1479_s12 }
  0x16   : > { %s1631_s8 = scalar_select %p67_p8, %s1491_s15, %s69_s29  }
  0x17   : > { %s1634_s9 = scalar_select %p121_p7, %s1483_s13, %s123_s7  }
  0x18   : > { %p134_p11 = scmp.eq.s32.totalorder %s1168_s23, 20  ;;  %p1171_p13 = scmp.ge.s32.totalorder %s1519_s22, 21 }
  0x1a   : > { %p1636_p12 = por %p134_p11, %p133_p10  ;;  %156 = sbr.rel (%p1171_p13) target bundleno = 82 (0x52), region = 16 }
  0x21   : > { %159 = sbr.rel (!%p1609_p5) target bundleno = 51 (0x33), region = 20  ;;  %s161_s11 = sand.u32 (%p1609_p5), 1, %s1499_s17  }
  0x22   : > { %s1222_s26 = sshll.u32 (%p1609_p5), %s1511_s20, 3  ;;  %s1172_s27 = sshll.u32 (%p1609_p5), %s161_s11, 7 }
  0x23   : > { %s1946_s0 = sld [smem:[#allocation6_spill]] (%p1609_p5)  ;;  %s163_s23 = scalar_lea.vmem (%p1609_p5), [#allocation2], %s1172_s27 }
  0x29   : > { %s1648_s5 = scalar_lea.vmem %s1946_s0, %s1222_s26 }
  0x2a   : > { %v227_v0 = vld [vmem:[%s1648_s5] sm:$0xff]  ;;  %v229_v1 = vld [vmem:[%s1648_s5 + $0x38] sm:$0xff]  ;;  %v231_v2 = vld [vmem:[%s1648_s5 + $0x70] sm:$0xff] }
  0x2b   : > { %228 = vst [vmem:[%s163_s23] sm:$0xff] %v227_v0  ;;  %230 = vst [vmem:[%s163_s23 + $0x8] sm:$0xff] %v229_v1  ;;  %v233_v3 = vld [vmem:[%s1648_s5 + $0xa8] sm:$0xff]  ;;  %v235_v4 = vld [vmem:[%s1648_s5 + $0xe0] sm:$0xff] }
  0x2c   : > { %232 = vst [vmem:[%s163_s23 + $0x10] sm:$0xff] %v231_v2  ;;  %v237_v5 = vld [vmem:[%s1648_s5 + $0x118] sm:$0xff]  ;;  %234 = vst [vmem:[%s163_s23 + $0x18] sm:$0xff] %v233_v3  ;;  %v239_v6 = vld [vmem:[%s1648_s5 + $0x150] sm:$0xff] }
  0x2d   : > { %236 = vst [vmem:[%s163_s23 + $0x20] sm:$0xff] %v235_v4  ;;  %238 = vst [vmem:[%s163_s23 + $0x28] sm:$0xff] %v237_v5  ;;  %v241_v7 = vld [vmem:[%s1648_s5 + $0x188] sm:$0xff]  ;;  %v243_v8 = vld [vmem:[%s1648_s5 + $0x1c0] sm:$0xff] }
  0x2e   : > { %240 = vst [vmem:[%s163_s23 + $0x30] sm:$0xff] %v239_v6  ;;  %242 = vst [vmem:[%s163_s23 + $0x38] sm:$0xff] %v241_v7  ;;  %v245_v9 = vld [vmem:[%s1648_s5 + $0x1f8] sm:$0xff]  ;;  %v247_v10 = vld [vmem:[%s1648_s5 + $0x230] sm:$0xff] }
  0x2f   : > { %244 = vst [vmem:[%s163_s23 + $0x40] sm:$0xff] %v243_v8  ;;  %v249_v11 = vld [vmem:[%s1648_s5 + $0x268] sm:$0xff]  ;;  %246 = vst [vmem:[%s163_s23 + $0x48] sm:$0xff] %v245_v9  ;;  %v251_v12 = vld [vmem:[%s1648_s5 + $0x2a0] sm:$0xff] }
  0x30   : > { %248 = vst [vmem:[%s163_s23 + $0x50] sm:$0xff] %v247_v10  ;;  %250 = vst [vmem:[%s163_s23 + $0x58] sm:$0xff] %v249_v11  ;;  %v253_v13 = vld [vmem:[%s1648_s5 + $0x2d8] sm:$0xff]  ;;  %v255_v14 = vld [vmem:[%s1648_s5 + $0x310] sm:$0xff] }
  0x31   : > { %252 = vst [vmem:[%s163_s23 + $0x60] sm:$0xff] %v251_v12  ;;  %254 = vst [vmem:[%s163_s23 + $0x68] sm:$0xff] %v253_v13  ;;  %v257_v15 = vld [vmem:[%s1648_s5 + $0x348] sm:$0xff] }
  0x32   : > { %256 = vst [vmem:[%s163_s23 + $0x70] sm:$0xff] %v255_v14  ;;  %258 = vst [vmem:[%s163_s23 + $0x78] sm:$0xff] %v257_v15 }
  0x33 PF: > { %264 = sbr.rel (!%p1623_p9) target bundleno = 82 (0x52), region = 58  ;;  %s266_s28 = sand.u32 (%p1623_p9), 1, %s1491_s15  }
  0x34   : > { %s1303_s7 = smul.u32 (%p1623_p9), 96, %s1511_s20  ;;  %s1175_s11 = sshll.u32 (%p1623_p9), %s266_s28, 7 }
  0x35   : > { %s1947_s1 = sld [smem:[#allocation7_spill]] (%p1623_p9)  ;;  %s1679_s6 = scalar_lea.vmem (%p1623_p9), [#allocation3], %s1175_s11 }
  0x36   : > { %s271_s26 = sadd.s32 (%p1623_p9), %s1515_s21, %s1303_s7 }
  0x37   : > { %s1178_s27 = sshll.u32 (%p1623_p9), %s271_s26, 2 }
  0x3b   : > { %s1674_s0 = scalar_lea.vmem %s1947_s1, %s1178_s27 }
  0x3c   : > { %v289_v16 = vld [vmem:[%s1674_s0] sm:$0xf]  ;;  %v291_v17 = vld [vmem:[%s1674_s0 + $0xc] sm:$0xf]  ;;  %v293_v18 = vld [vmem:[%s1674_s0 + $0x18] sm:$0xf] }
  0x3d   : > { %290 = vst [vmem:[%s1679_s6] sm:$0xf] %v289_v16  ;;  %292 = vst [vmem:[%s1679_s6 + $0x4] sm:$0xf] %v291_v17  ;;  %v295_v19 = vld [vmem:[%s1674_s0 + $0x24] sm:$0xf] }
  0x3e   : > { %294 = vst [vmem:[%s1679_s6 + $0x8] sm:$0xf] %v293_v18  ;;  %v297_v20 = vld [vmem:[%s1674_s0 + $0x30] sm:$0xf]  ;;  %v299_v21 = vld [vmem:[%s1674_s0 + $0x3c] sm:$0xf] }
  0x3f   : > { %296 = vst [vmem:[%s1679_s6 + $0xc] sm:$0xf] %v295_v19  ;;  %298 = vst [vmem:[%s1679_s6 + $0x10] sm:$0xf] %v297_v20  ;;  %v301_v22 = vld [vmem:[%s1674_s0 + $0x48] sm:$0xf] }
  0x40   : > { %300 = vst [vmem:[%s1679_s6 + $0x14] sm:$0xf] %v299_v21  ;;  %v303_v23 = vld [vmem:[%s1674_s0 + $0x54] sm:$0xf]  ;;  %v305_v24 = vld [vmem:[%s1674_s0 + $0x60] sm:$0xf] }
  0x41   : > { %302 = vst [vmem:[%s1679_s6 + $0x18] sm:$0xf] %v301_v22  ;;  %304 = vst [vmem:[%s1679_s6 + $0x1c] sm:$0xf] %v303_v23  ;;  %v307_v25 = vld [vmem:[%s1674_s0 + $0x6c] sm:$0xf] }
  0x42   : > { %306 = vst [vmem:[%s1679_s6 + $0x20] sm:$0xf] %v305_v24  ;;  %v309_v26 = vld [vmem:[%s1674_s0 + $0x78] sm:$0xf]  ;;  %v311_v27 = vld [vmem:[%s1674_s0 + $0x84] sm:$0xf] }
  0x43   : > { %308 = vst [vmem:[%s1679_s6 + $0x24] sm:$0xf] %v307_v25  ;;  %310 = vst [vmem:[%s1679_s6 + $0x28] sm:$0xf] %v309_v26  ;;  %v313_v28 = vld [vmem:[%s1674_s0 + $0x90] sm:$0xf] }
  0x44   : > { %312 = vst [vmem:[%s1679_s6 + $0x2c] sm:$0xf] %v311_v27  ;;  %v315_v29 = vld [vmem:[%s1674_s0 + $0x9c] sm:$0xf]  ;;  %v317_v30 = vld [vmem:[%s1674_s0 + $0xa8] sm:$0xf] }
  0x45   : > { %314 = vst [vmem:[%s1679_s6 + $0x30] sm:$0xf] %v313_v28  ;;  %316 = vst [vmem:[%s1679_s6 + $0x34] sm:$0xf] %v315_v29  ;;  %v319_v31 = vld [vmem:[%s1674_s0 + $0xb4] sm:$0xf] }
  0x46   : > { %318 = vst [vmem:[%s1679_s6 + $0x38] sm:$0xf] %v317_v30  ;;  %v321_v32 = vld [vmem:[%s1674_s0 + $0xc0] sm:$0xf]  ;;  %v323_v33 = vld [vmem:[%s1674_s0 + $0xcc] sm:$0xf] }
  0x47   : > { %320 = vst [vmem:[%s1679_s6 + $0x3c] sm:$0xf] %v319_v31  ;;  %322 = vst [vmem:[%s1679_s6 + $0x40] sm:$0xf] %v321_v32  ;;  %v325_v34 = vld [vmem:[%s1674_s0 + $0xd8] sm:$0xf] }
  0x48   : > { %324 = vst [vmem:[%s1679_s6 + $0x44] sm:$0xf] %v323_v33  ;;  %v327_v35 = vld [vmem:[%s1674_s0 + $0xe4] sm:$0xf]  ;;  %v329_v36 = vld [vmem:[%s1674_s0 + $0xf0] sm:$0xf] }
  0x49   : > { %326 = vst [vmem:[%s1679_s6 + $0x48] sm:$0xf] %v325_v34  ;;  %328 = vst [vmem:[%s1679_s6 + $0x4c] sm:$0xf] %v327_v35  ;;  %v331_v37 = vld [vmem:[%s1674_s0 + $0xfc] sm:$0xf] }
  0x4a   : > { %330 = vst [vmem:[%s1679_s6 + $0x50] sm:$0xf] %v329_v36  ;;  %v333_v38 = vld [vmem:[%s1674_s0 + $0x108] sm:$0xf]  ;;  %v335_v39 = vld [vmem:[%s1674_s0 + $0x114] sm:$0xf] }
  0x4b   : > { %332 = vst [vmem:[%s1679_s6 + $0x54] sm:$0xf] %v331_v37  ;;  %334 = vst [vmem:[%s1679_s6 + $0x58] sm:$0xf] %v333_v38  ;;  %v337_v40 = vld [vmem:[%s1674_s0 + $0x120] sm:$0xf] }
  0x4c   : > { %336 = vst [vmem:[%s1679_s6 + $0x5c] sm:$0xf] %v335_v39  ;;  %v339_v41 = vld [vmem:[%s1674_s0 + $0x12c] sm:$0xf]  ;;  %v341_v42 = vld [vmem:[%s1674_s0 + $0x138] sm:$0xf] }
  0x4d   : > { %338 = vst [vmem:[%s1679_s6 + $0x60] sm:$0xf] %v337_v40  ;;  %340 = vst [vmem:[%s1679_s6 + $0x64] sm:$0xf] %v339_v41  ;;  %v343_v43 = vld [vmem:[%s1674_s0 + $0x144] sm:$0xf] }
  0x4e   : > { %342 = vst [vmem:[%s1679_s6 + $0x68] sm:$0xf] %v341_v42  ;;  %v345_v44 = vld [vmem:[%s1674_s0 + $0x150] sm:$0xf]  ;;  %v347_v45 = vld [vmem:[%s1674_s0 + $0x15c] sm:$0xf] }
  0x4f   : > { %344 = vst [vmem:[%s1679_s6 + $0x6c] sm:$0xf] %v343_v43  ;;  %346 = vst [vmem:[%s1679_s6 + $0x70] sm:$0xf] %v345_v44  ;;  %v349_v46 = vld [vmem:[%s1674_s0 + $0x168] sm:$0xf] }
  0x50   : > { %348 = vst [vmem:[%s1679_s6 + $0x74] sm:$0xf] %v347_v45  ;;  %v351_v47 = vld [vmem:[%s1674_s0 + $0x174] sm:$0xf]  ;;  %350 = vst [vmem:[%s1679_s6 + $0x78] sm:$0xf] %v349_v46 }
  0x51   : > { %352 = vst [vmem:[%s1679_s6 + $0x7c] sm:$0xf] %v351_v47 }
  0x52 PF: > { %p1179_p0 = scmp.ge.s32.totalorder %s1519_s22, 1  ;;  %p444_p1 = scmp.lt.s32.totalorder %s1519_s22, 22 }
  0x54   : > { %p445_p2 = pnand %p1179_p0, %p444_p1 }
  0x55   : > { %s451_s5 = sand.u32 (!%p445_p2), 1, %s1495_s16   ;;  %s458_s23 = sand.u32 (!%p445_p2), 1, %s1487_s14  }
  0x56   : > { %448 = sbr.rel (%p445_p2) target bundleno = 403 (0x193), region = 103  ;;  %s1180_s28 = sshll.u32 (!%p445_p2), %s451_s5, 7 }
  0x57   : > { %s1181_s7 = sshll.u32 (!%p445_p2), %s458_s23, 7  ;;  %s484_s0 = sand.u32 (!%p445_p2), 1, %s1479_s12  }
  0x58   : > { %p490_p3 = scmp.lt.s32.totalorder (!%p445_p2), %s1507_s19, 2  ;;  %s1182_s11 = sshll.u32 (!%p445_p2), %s484_s0, 7 }
  0x59   : > { %s1755_s6 = scalar_lea.vmem (!%p445_p2), [#allocation2], %s1180_s28  ;;  %s1757_s1 = scalar_lea.vmem (!%p445_p2), [#allocation3], %s1181_s7 }
  0x5a   : > { %s1759_s25 = scalar_lea.vmem (!%p445_p2), [#allocation4], %s1182_s11  ;;  %p1183_p4 = scmp.ne.s32.totalorder (!%p445_p2), %s1503_s18, 0 }
  0x5d   : > { %s1749_s26 = scalar_select %p490_p3, %s1507_s19, 2 }
  0x5e   : > { %498 = sbr.rel (%p1183_p4) target bundleno = 103 (0x67), region = 115  ;;  %v1521_v48 = vmov (!%p1183_p4), 0.0  }
  0x5f   : > { %s492_s4 = scalar_lea.vmem %s1937_s2, %s1749_s26  ;;  %499 = vst [vmem:[%s1759_s25] sm:$0xff] (!%p1183_p4), %v1521_v48  ;;  %500 = vst [vmem:[%s1759_s25 + $0x8] sm:$0xff] (!%p1183_p4), %v1521_v48 }
  0x60   : > { %501 = vst [vmem:[%s1759_s25 + $0x10] sm:$0xff] (!%p1183_p4), %v1521_v48  ;;  %502 = vst [vmem:[%s1759_s25 + $0x18] sm:$0xff] (!%p1183_p4), %v1521_v48 }
  0x61   : > { %503 = vst [vmem:[%s1759_s25 + $0x20] sm:$0xff] (!%p1183_p4), %v1521_v48  ;;  %504 = vst [vmem:[%s1759_s25 + $0x28] sm:$0xff] (!%p1183_p4), %v1521_v48 }
  0x62   : > { %505 = vst [vmem:[%s1759_s25 + $0x30] sm:$0xff] (!%p1183_p4), %v1521_v48  ;;  %506 = vst [vmem:[%s1759_s25 + $0x38] sm:$0xff] (!%p1183_p4), %v1521_v48 }
  0x63   : > { %507 = vst [vmem:[%s1759_s25 + $0x40] sm:$0xff] (!%p1183_p4), %v1521_v48  ;;  %508 = vst [vmem:[%s1759_s25 + $0x48] sm:$0xff] (!%p1183_p4), %v1521_v48 }
  0x64   : > { %509 = vst [vmem:[%s1759_s25 + $0x50] sm:$0xff] (!%p1183_p4), %v1521_v48  ;;  %510 = vst [vmem:[%s1759_s25 + $0x58] sm:$0xff] (!%p1183_p4), %v1521_v48 }
  0x65   : > { %511 = vst [vmem:[%s1759_s25 + $0x60] sm:$0xff] %v1521_v48  ;;  %512 = vst [vmem:[%s1759_s25 + $0x68] sm:$0xff] %v1521_v48 }
  0x66   : > { %513 = vst [vmem:[%s1759_s25 + $0x70] sm:$0xff] %v1521_v48  ;;  %514 = vst [vmem:[%s1759_s25 + $0x78] sm:$0xff] %v1521_v48 }
  0x67 PF: > { %v1393_v49 = vld [vmem:[%s1757_s1 + $0x40] sm:$0xff]   ;;  %v1395_v51 = vld [vmem:[%s1757_s1 + $0x48] sm:$0xff]   ;;  %v1397_v53 = vld [vmem:[%s1757_s1 + $0x50] sm:$0xff]   ;;  %p1216_p5 = scmp.ne.s32.totalorder %s1503_s18, 6 }
  0x68   : > { %v1394_v50 = vld [vmem:[%s1757_s1] sm:$0xff]   ;;  %1223 = vmatprep.subr.bf16.mxu0 %v1393_v49  ;;  %1287 = vmatprep.subr.bf16.mxu1 %v1393_v49  ;;  %v1396_v52 = vld [vmem:[%s1757_s1 + $0x8] sm:$0xff]   ;;  %v1398_v54 = vld [vmem:[%s1757_s1 + $0x10] sm:$0xff]  }
  0x69   : > { %1224 = vmatpush3.bf16.msra.mxu0 %v1394_v50  ;;  %1295 = vmatpush3.bf16.msra.mxu1 %v1394_v50  ;;  %v1399_v55 = vld [vmem:[%s1757_s1 + $0x58] sm:$0xff]   ;;  %v1401_v57 = vld [vmem:[%s1757_s1 + $0x60] sm:$0xff]   ;;  %v1403_v59 = vld [vmem:[%s1757_s1 + $0x68] sm:$0xff]  }
  0x6a   : > { %1225 = vmatprep.subr.bf16.mxu0 %v1395_v51  ;;  %1288 = vmatprep.subr.bf16.mxu1 %v1395_v51  ;;  %v1400_v56 = vld [vmem:[%s1757_s1 + $0x18] sm:$0xff]   ;;  %v1402_v58 = vld [vmem:[%s1757_s1 + $0x20] sm:$0xff]   ;;  %v1404_v62 = vld [vmem:[%s1757_s1 + $0x28] sm:$0xff]  }
  0x6b   : > { %v1411_v60 = vld [vmem:[%s1755_s6 + $0x4] ss:$8 sps:$4 sm:$0xff]   ;;  %v1405_v63 = vld [vmem:[%s1757_s1 + $0x70] sm:$0xff]   ;;  %v1407_v1 = vld [vmem:[%s1757_s1 + $0x78] sm:$0xff]  }
  0x6c   : > { %v1414_v61 = vld [vmem:[%s1755_s6 + $0x44] ss:$8 sps:$4 sm:$0xff]   ;;  %787 = vmatprep.mubr.bf16.mxu0 %v1411_v60  ;;  %v1406_v0 = vld [vmem:[%s1757_s1 + $0x30] sm:$0xff]   ;;  %v1408_v2 = vld [vmem:[%s1757_s1 + $0x38] sm:$0xff]  }
  0x6d   : > { %1226 = vmatpush3.bf16.msra.mxu0 %v1396_v52  ;;  %1296 = vmatpush3.bf16.msra.mxu1 %v1396_v52  ;;  %v1409_v3 = vld [vmem:[%s1755_s6] ss:$8 sps:$4 sm:$0xff]   ;;  %v1415_v5 = vld [vmem:[%s1755_s6 + $0x14] ss:$8 sps:$4 sm:$0xff]   ;;  %v1419_v7 = vld [vmem:[%s1755_s6 + $0x10] ss:$8 sps:$4 sm:$0xff]  }
  0x6e   : > { %1227 = vmatprep.subr.bf16.mxu0 %v1397_v53  ;;  %1289 = vmatprep.subr.bf16.mxu1 %v1397_v53  ;;  %v1412_v4 = vld [vmem:[%s1755_s6 + $0x40] ss:$8 sps:$4 sm:$0xff]   ;;  %v1417_v6 = vld [vmem:[%s1755_s6 + $0x54] ss:$8 sps:$4 sm:$0xff]   ;;  %v1420_v8 = vld [vmem:[%s1755_s6 + $0x50] ss:$8 sps:$4 sm:$0xff]  }
  0x6f   : > { %819 = vmatprep.mubr.bf16.mxu1 %v1414_v61  ;;  %v1421_v9 = vld [vmem:[%s1755_s6 + $0x24] ss:$8 sps:$4 sm:$0xff]   ;;  %v1425_v11 = vld [vmem:[%s1755_s6 + $0x20] ss:$8 sps:$4 sm:$0xff]   ;;  %v1427_v13 = vld [vmem:[%s1755_s6 + $0x34] ss:$8 sps:$4 sm:$0xff]  }
  0x70   : > { %v1423_v10 = vld [vmem:[%s1755_s6 + $0x64] ss:$8 sps:$4 sm:$0xff]   ;;  %v1426_v12 = vld [vmem:[%s1755_s6 + $0x60] ss:$8 sps:$4 sm:$0xff]   ;;  %v1429_v14 = vld [vmem:[%s1755_s6 + $0x74] ss:$8 sps:$4 sm:$0xff]  }
  0x71   : > { %1228 = vmatpush3.bf16.msra.mxu0 %v1398_v54  ;;  %1297 = vmatpush3.bf16.msra.mxu1 %v1398_v54  ;;  %v1431_v15 = vld [vmem:[%s1755_s6 + $0x30] ss:$8 sps:$4 sm:$0xff]   ;;  %v515_v19 = vld [vmem:[%s1759_s25] sm:$0xff]  ;;  %v516_v27 = vld [vmem:[%s1759_s25 + $0x8] sm:$0xff] }
  0x72   : > { %1229 = vmatprep.subr.bf16.mxu0 %v1399_v55  ;;  %1290 = vmatprep.subr.bf16.mxu1 %v1399_v55  ;;  %v1432_v16 = vld [vmem:[%s1755_s6 + $0x70] ss:$8 sps:$4 sm:$0xff]   ;;  %v523_v21 = vld [vmem:[%s1759_s25 + $0x40] sm:$0xff]  ;;  %v524_v29 = vld [vmem:[%s1759_s25 + $0x48] sm:$0xff] }
  0x73   : > { %v517_v39 = vld [vmem:[%s1759_s25 + $0x10] sm:$0xff]  ;;  %v518_v47 = vld [vmem:[%s1759_s25 + $0x18] sm:$0xff]  ;;  %v527_v61 = vld [vmem:[%s1759_s25 + $0x60] sm:$0xff] }
  0x74   : > { %v525_v41 = vld [vmem:[%s1759_s25 + $0x50] sm:$0xff]  ;;  %v526_v49 = vld [vmem:[%s1759_s25 + $0x58] sm:$0xff] }
  0x75   : > { %1230 = vmatpush3.bf16.msra.mxu0 %v1400_v56  ;;  %1298 = vmatpush3.bf16.msra.mxu1 %v1400_v56 }
  0x76   : > { %1231 = vmatprep.subr.bf16.mxu0 %v1401_v57  ;;  %1291 = vmatprep.subr.bf16.mxu1 %v1401_v57 }
  0x79   : > { %1232 = vmatpush3.bf16.msra.mxu0 %v1402_v58  ;;  %1299 = vmatpush3.bf16.msra.mxu1 %v1402_v58 }
  0x7a   : > { %1233 = vmatprep.subr.bf16.mxu0 %v1403_v59  ;;  %1292 = vmatprep.subr.bf16.mxu1 %v1403_v59  ;;  %v519_v59 = vld [vmem:[%s1759_s25 + $0x20] sm:$0xff] }
  0x7d   : > { %1234 = vmatpush3.bf16.msra.mxu0 %v1404_v62  ;;  %1300 = vmatpush3.bf16.msra.mxu1 %v1404_v62 }
  0x7e   : > { %1235 = vmatprep.subr.bf16.mxu0 %v1405_v63  ;;  %1293 = vmatprep.subr.bf16.mxu1 %v1405_v63 }
  0x81   : > { %1236 = vmatpush3.bf16.msra.mxu0 %v1406_v0  ;;  %1301 = vmatpush3.bf16.msra.mxu1 %v1406_v0 }
  0x82   : > { %1237 = vmatprep.subr.bf16.mxu0 %v1407_v1  ;;  %1294 = vmatprep.subr.bf16.mxu1 %v1407_v1 }
  0x85   : > { %1238 = vmatpush3.bf16.msra.mxu0 %v1408_v2  ;;  %1302 = vmatpush3.bf16.msra.mxu1 %v1408_v2 }
  0x88   : > { %788 = vmatmul.mubr.bf16.vlgmr.msra.gmra.mrb[0].mxu0 %v1409_v3  ;;  %820 = vmatmul.mubr.bf16.vlgmr.msra.gmra.mrb[0].mxu1 %v1412_v4  ;;  %v520_v3 = vld [vmem:[%s1759_s25 + $0x28] sm:$0xff] }
  0x89   : > { %795 = vmatprep.mubr.bf16.mxu0 %v1415_v5  ;;  %827 = vmatprep.mubr.bf16.mxu1 %v1417_v6  ;;  %v528_v5 = vld [vmem:[%s1759_s25 + $0x68] sm:$0xff] }
  0x90   : > { %796 = vmatmul.mubr.bf16.gmra.mrb[4].mxu0 %v1419_v7  ;;  %828 = vmatmul.mubr.bf16.gmra.mrb[4].mxu1 %v1420_v8 }
  0x91   : > { %803 = vmatprep.mubr.bf16.mxu0 %v1421_v9  ;;  %835 = vmatprep.mubr.bf16.mxu1 %v1423_v10 }
  0x98   : > { %804 = vmatmul.mubr.bf16.gmra.mrb[8].mxu0 %v1425_v11  ;;  %836 = vmatmul.mubr.bf16.gmra.mrb[8].mxu1 %v1426_v12 }
  0x99   : > { %811 = vmatprep.mubr.bf16.mxu0 %v1427_v13  ;;  %843 = vmatprep.mubr.bf16.mxu1 %v1429_v14 }
  0xa0   : > { %812 = vmatmul.mubr.bf16.gmra.mrb[12].mxu0 %v1431_v15  ;;  %844 = vmatmul.mubr.bf16.gmra.mrb[12].mxu1 %v1432_v16  ;;  %v521_v15 = vld [vmem:[%s1759_s25 + $0x30] sm:$0xff] }
 0x15b   : > { %v1239_v17 = vpop.f32.mrb[0].mxu0  ;;  %v1263_v18 = vpop.f32.mrb[0].mxu1 }
 0x15c   : > { %v1240_v20 = vpop.f32.mrb[1].mxu0  ;;  %v1264_v22 = vpop.f32.mrb[1].mxu1 }
 0x15d   : > { %v1241_v23 = vadd.f32 %v1240_v20, %v1239_v17  ;;  %v1265_v24 = vadd.f32 %v1264_v22, %v1263_v18  ;;  %v1242_v25 = vpop.f32.mrb[2].mxu0  ;;  %v1266_v26 = vpop.f32.mrb[2].mxu1  ;;  %v529_v17 = vld [vmem:[%s1759_s25 + $0x70] sm:$0xff] }
 0x15e   : > { %v1243_v28 = vpop.f32.mrb[3].mxu0  ;;  %v1267_v30 = vpop.f32.mrb[3].mxu1 }
 0x15f   : > { %v852_v31 = vadd.f32 %v1241_v23, %v515_v19  ;;  %v860_v32 = vadd.f32 %v1265_v24, %v523_v21  ;;  %v1244_v33 = vadd.f32 %v1243_v28, %v1242_v25  ;;  %v1268_v34 = vadd.f32 %v1267_v30, %v1266_v26  ;;  %v522_v23 = vld [vmem:[%s1759_s25 + $0x38] sm:$0xff] }
 0x160   : > { %v530_v25 = vld [vmem:[%s1759_s25 + $0x78] sm:$0xff] }
 0x161   : > { %868 = vst [vmem:[%s1759_s25] sm:$0xff] %v852_v31  ;;  %876 = vst [vmem:[%s1759_s25 + $0x40] sm:$0xff] %v860_v32  ;;  %v853_v35 = vadd.f32 %v1244_v33, %v516_v27  ;;  %v861_v36 = vadd.f32 %v1268_v34, %v524_v29  ;;  %v1217_v34 = vld [vmem:[%s492_s4] ss:$0 sm:$0xff] (!%p1216_p5) }
 0x163   : > { %869 = vst [vmem:[%s1759_s25 + $0x8] sm:$0xff] %v853_v35  ;;  %877 = vst [vmem:[%s1759_s25 + $0x48] sm:$0xff] %v861_v36  ;;  %v1245_v37 = vpop.f32.mrb[4].mxu0  ;;  %v1269_v38 = vpop.f32.mrb[4].mxu1 }
 0x164   : > { %v1246_v40 = vpop.f32.mrb[5].mxu0  ;;  %v1270_v42 = vpop.f32.mrb[5].mxu1 }
 0x165   : > { %v1247_v43 = vadd.f32 %v1246_v40, %v1245_v37  ;;  %v1271_v44 = vadd.f32 %v1270_v42, %v1269_v38  ;;  %v1248_v45 = vpop.f32.mrb[6].mxu0  ;;  %v1272_v46 = vpop.f32.mrb[6].mxu1 }
 0x166   : > { %v1249_v48 = vpop.f32.mrb[7].mxu0  ;;  %v1273_v50 = vpop.f32.mrb[7].mxu1 }
 0x167   : > { %v854_v51 = vadd.f32 %v1247_v43, %v517_v39  ;;  %v862_v52 = vadd.f32 %v1271_v44, %v525_v41  ;;  %v1250_v53 = vadd.f32 %v1249_v48, %v1248_v45  ;;  %v1274_v54 = vadd.f32 %v1273_v50, %v1272_v46 }
 0x168   : > { %v888_v33 = vld [vmem:[%s1759_s25] sm:$0xff] (!%p1216_p5) }
 0x169   : > { %870 = vst [vmem:[%s1759_s25 + $0x10] sm:$0xff] %v854_v51  ;;  %878 = vst [vmem:[%s1759_s25 + $0x50] sm:$0xff] %v862_v52  ;;  %v855_v55 = vadd.f32 %v1250_v53, %v518_v47  ;;  %v863_v56 = vadd.f32 %v1274_v54, %v526_v49  ;;  %v911_v36 = vadd.f32 (!%p1216_p5), %v1217_v34, %v888_v33  ;;  %v896_v51 = vld [vmem:[%s1759_s25 + $0x40] sm:$0xff] (!%p1216_p5) }
 0x16a   : > { %v889_v35 = vld [vmem:[%s1759_s25 + $0x8] sm:$0xff] (!%p1216_p5) }
 0x16b   : > { %871 = vst [vmem:[%s1759_s25 + $0x18] sm:$0xff] %v855_v55  ;;  %879 = vst [vmem:[%s1759_s25 + $0x58] sm:$0xff] %v863_v56  ;;  %v1251_v57 = vpop.f32.mrb[8].mxu0  ;;  %v1275_v58 = vpop.f32.mrb[8].mxu1  ;;  %v912_v37 = vadd.f32 (!%p1216_p5), %v1217_v34, %v889_v35  ;;  %v927_v47 = vmax.f32 (!%p1216_p5), %v911_v36, 0.0  ;;  %v897_v52 = vld [vmem:[%s1759_s25 + $0x48] sm:$0xff] (!%p1216_p5) }
 0x16c   : > { %v1252_v60 = vpop.f32.mrb[9].mxu0  ;;  %v1276_v62 = vpop.f32.mrb[9].mxu1 }
 0x16d   : > { %v1253_v63 = vadd.f32 %v1252_v60, %v1251_v57  ;;  %v1277_v0 = vadd.f32 %v1276_v62, %v1275_v58  ;;  %v1254_v1 = vpop.f32.mrb[10].mxu0  ;;  %v1278_v2 = vpop.f32.mrb[10].mxu1  ;;  %v928_v48 = vmax.f32 (!%p1216_p5), %v912_v37, 0.0  ;;  %943 = vst [vmem:[%s1759_s25] sm:$0xff] (!%p1216_p5), %v927_v47 }
 0x16e   : > { %v1255_v4 = vpop.f32.mrb[11].mxu0  ;;  %v1279_v6 = vpop.f32.mrb[11].mxu1 }
 0x16f   : > { %v856_v7 = vadd.f32 %v1253_v63, %v519_v59  ;;  %v864_v8 = vadd.f32 %v1277_v0, %v527_v61  ;;  %v1256_v9 = vadd.f32 %v1255_v4, %v1254_v1  ;;  %v1280_v10 = vadd.f32 %v1279_v6, %v1278_v2  ;;  %944 = vst [vmem:[%s1759_s25 + $0x8] sm:$0xff] (!%p1216_p5), %v928_v48 }
 0x170   : > { %v890_v38 = vld [vmem:[%s1759_s25 + $0x10] sm:$0xff] (!%p1216_p5)  ;;  %v919_v63 = vadd.f32 (!%p1216_p5), %v1217_v34, %v896_v51  ;;  %v920_v0 = vadd.f32 (!%p1216_p5), %v1217_v34, %v897_v52 }
 0x171   : > { %872 = vst [vmem:[%s1759_s25 + $0x20] sm:$0xff] %v856_v7  ;;  %880 = vst [vmem:[%s1759_s25 + $0x60] sm:$0xff] %v864_v8  ;;  %v857_v11 = vadd.f32 %v1256_v9, %v520_v3  ;;  %v865_v12 = vadd.f32 %v1280_v10, %v528_v5  ;;  %v913_v41 = vadd.f32 (!%p1216_p5), %v1217_v34, %v890_v38  ;;  %v898_v53 = vld [vmem:[%s1759_s25 + $0x50] sm:$0xff] (!%p1216_p5) }
 0x172   : > { %v891_v39 = vld [vmem:[%s1759_s25 + $0x18] sm:$0xff] (!%p1216_p5)  ;;  %v921_v4 = vadd.f32 (!%p1216_p5), %v1217_v34, %v898_v53  ;;  %v935_v7 = vmax.f32 (!%p1216_p5), %v919_v63, 0.0  ;;  %v936_v8 = vmax.f32 (!%p1216_p5), %v920_v0, 0.0 }
 0x173   : > { %873 = vst [vmem:[%s1759_s25 + $0x28] sm:$0xff] %v857_v11  ;;  %881 = vst [vmem:[%s1759_s25 + $0x68] sm:$0xff] %v865_v12  ;;  %v1257_v13 = vpop.f32.mrb[12].mxu0  ;;  %v1281_v14 = vpop.f32.mrb[12].mxu1  ;;  %v914_v42 = vadd.f32 (!%p1216_p5), %v1217_v34, %v891_v39  ;;  %v929_v54 = vmax.f32 (!%p1216_p5), %v913_v41, 0.0  ;;  %v899_v58 = vld [vmem:[%s1759_s25 + $0x58] sm:$0xff] (!%p1216_p5) }
 0x174   : > { %v1258_v16 = vpop.f32.mrb[13].mxu0  ;;  %v1282_v18 = vpop.f32.mrb[13].mxu1  ;;  %v922_v5 = vadd.f32 (!%p1216_p5), %v1217_v34, %v899_v58  ;;  %v937_v11 = vmax.f32 (!%p1216_p5), %v921_v4, 0.0  ;;  %951 = vst [vmem:[%s1759_s25 + $0x40] sm:$0xff] (!%p1216_p5), %v935_v7  ;;  %952 = vst [vmem:[%s1759_s25 + $0x48] sm:$0xff] (!%p1216_p5), %v936_v8 }
 0x175   : > { %v1259_v19 = vadd.f32 %v1258_v16, %v1257_v13  ;;  %v1283_v20 = vadd.f32 %v1282_v18, %v1281_v14  ;;  %v1260_v21 = vpop.f32.mrb[14].mxu0  ;;  %v1284_v22 = vpop.f32.mrb[14].mxu1  ;;  %887 = sbr.rel (%p1216_p5) target bundleno = 393 (0x189), region = 119  ;;  %v930_v55 = vmax.f32 (!%p1216_p5), %v914_v42, 0.0  ;;  %945 = vst [vmem:[%s1759_s25 + $0x10] sm:$0xff] (!%p1216_p5), %v929_v54 }
 0x176   : > { %v1261_v24 = vpop.f32.mrb[15].mxu0  ;;  %v1285_v26 = vpop.f32.mrb[15].mxu1  ;;  %v938_v12 = vmax.f32 (!%p1216_p5), %v922_v5, 0.0  ;;  %953 = vst [vmem:[%s1759_s25 + $0x50] sm:$0xff] (!%p1216_p5), %v937_v11 }
 0x177   : > { %v858_v27 = vadd.f32 %v1259_v19, %v521_v15  ;;  %v866_v28 = vadd.f32 %v1283_v20, %v529_v17  ;;  %v1262_v29 = vadd.f32 %v1261_v24, %v1260_v21  ;;  %v1286_v30 = vadd.f32 %v1285_v26, %v1284_v22  ;;  %946 = vst [vmem:[%s1759_s25 + $0x18] sm:$0xff] (!%p1216_p5), %v930_v55 }
 0x178   : > { %v892_v40 = vld [vmem:[%s1759_s25 + $0x20] sm:$0xff] (!%p1216_p5)  ;;  %954 = vst [vmem:[%s1759_s25 + $0x58] sm:$0xff] (!%p1216_p5), %v938_v12 }
 0x179   : > { %874 = vst [vmem:[%s1759_s25 + $0x30] sm:$0xff] %v858_v27  ;;  %882 = vst [vmem:[%s1759_s25 + $0x70] sm:$0xff] %v866_v28  ;;  %v859_v31 = vadd.f32 %v1262_v29, %v522_v23  ;;  %v867_v32 = vadd.f32 %v1286_v30, %v530_v25  ;;  %v915_v43 = vadd.f32 (!%p1216_p5), %v1217_v34, %v892_v40  ;;  %v900_v59 = vld [vmem:[%s1759_s25 + $0x60] sm:$0xff] (!%p1216_p5) }
 0x17a   : > { %v893_v44 = vld [vmem:[%s1759_s25 + $0x28] sm:$0xff] (!%p1216_p5)  ;;  %v923_v6 = vadd.f32 (!%p1216_p5), %v1217_v34, %v900_v59 }
 0x17b   : > { %875 = vst [vmem:[%s1759_s25 + $0x38] sm:$0xff] %v859_v31  ;;  %883 = vst [vmem:[%s1759_s25 + $0x78] sm:$0xff] %v867_v32  ;;  %v916_v49 = vadd.f32 (!%p1216_p5), %v1217_v34, %v893_v44  ;;  %v931_v56 = vmax.f32 (!%p1216_p5), %v915_v43, 0.0  ;;  %v901_v60 = vld [vmem:[%s1759_s25 + $0x68] sm:$0xff] (!%p1216_p5) }
 0x17c   : > { %v924_v9 = vadd.f32 %v1217_v34, %v901_v60  ;;  %v939_v13 = vmax.f32 %v923_v6, 0.0 }
 0x17d   : > { %v932_v61 = vmax.f32 %v916_v49, 0.0  ;;  %947 = vst [vmem:[%s1759_s25 + $0x20] sm:$0xff] %v931_v56 }
 0x17e   : > { %v940_v15 = vmax.f32 %v924_v9, 0.0  ;;  %955 = vst [vmem:[%s1759_s25 + $0x60] sm:$0xff] %v939_v13 }
 0x17f   : > { %948 = vst [vmem:[%s1759_s25 + $0x28] sm:$0xff] %v932_v61 }
 0x180   : > { %v894_v45 = vld [vmem:[%s1759_s25 + $0x30] sm:$0xff]  ;;  %956 = vst [vmem:[%s1759_s25 + $0x68] sm:$0xff] %v940_v15 }
 0x181   : > { %v917_v50 = vadd.f32 %v1217_v34, %v894_v45  ;;  %v902_v1 = vld [vmem:[%s1759_s25 + $0x70] sm:$0xff] }
 0x182   : > { %v895_v46 = vld [vmem:[%s1759_s25 + $0x38] sm:$0xff]  ;;  %v925_v10 = vadd.f32 %v1217_v34, %v902_v1 }
 0x183   : > { %v918_v57 = vadd.f32 %v1217_v34, %v895_v46  ;;  %v933_v62 = vmax.f32 %v917_v50, 0.0  ;;  %v903_v2 = vld [vmem:[%s1759_s25 + $0x78] sm:$0xff] }
 0x184   : > { %v926_v14 = vadd.f32 %v1217_v34, %v903_v2  ;;  %v941_v16 = vmax.f32 %v925_v10, 0.0 }
 0x185   : > { %v934_v3 = vmax.f32 %v918_v57, 0.0  ;;  %949 = vst [vmem:[%s1759_s25 + $0x30] sm:$0xff] %v933_v62 }
 0x186   : > { %v942_v17 = vmax.f32 %v926_v14, 0.0  ;;  %957 = vst [vmem:[%s1759_s25 + $0x70] sm:$0xff] %v941_v16 }
 0x187   : > { %950 = vst [vmem:[%s1759_s25 + $0x38] sm:$0xff] %v934_v3 }
 0x188   : > { %958 = vst [vmem:[%s1759_s25 + $0x78] sm:$0xff] %v942_v17 }
 0x189 PF: > { %965 = sbr.rel (!%p1636_p12) target bundleno = 403 (0x193), region = 123  ;;  %s1219_s14 = sshll.u32 (%p1636_p12), %s1507_s19, 3  ;;  %v1028_v18 = vld [vmem:[%s1759_s25] sm:$0xff] (%p1636_p12)  ;;  %v1030_v19 = vld [vmem:[%s1759_s25 + $0x8] sm:$0xff] (%p1636_p12)  ;;  %v1032_v20 = vld [vmem:[%s1759_s25 + $0x10] sm:$0xff] (%p1636_p12) }
 0x18a   : > { %s970_s5 = scalar_lea.vmem (%p1636_p12), %s1938_s3, %s1219_s14  ;;  %v1036_v22 = vld [vmem:[%s1759_s25 + $0x20] sm:$0xff] (%p1636_p12)  ;;  %v1038_v23 = vld [vmem:[%s1759_s25 + $0x28] sm:$0xff] (%p1636_p12)  ;;  %v1048_v28 = vld [vmem:[%s1759_s25 + $0x50] sm:$0xff] (%p1636_p12) }
 0x18b   : > { %v1034_v21 = vld [vmem:[%s1759_s25 + $0x18] sm:$0xff] (%p1636_p12)  ;;  %1029 = vst [vmem:[%s970_s5] sm:$0xff] (%p1636_p12), %v1028_v18  ;;  %1031 = vst [vmem:[%s970_s5 + $0x18] sm:$0xff] (%p1636_p12), %v1030_v19  ;;  %v1044_v26 = vld [vmem:[%s1759_s25 + $0x40] sm:$0xff] (%p1636_p12) }
 0x18c   : > { %1033 = vst [vmem:[%s970_s5 + $0x30] sm:$0xff] (%p1636_p12), %v1032_v20  ;;  %1035 = vst [vmem:[%s970_s5 + $0x48] sm:$0xff] (%p1636_p12), %v1034_v21  ;;  %v1046_v27 = vld [vmem:[%s1759_s25 + $0x48] sm:$0xff] (%p1636_p12)  ;;  %v1050_v29 = vld [vmem:[%s1759_s25 + $0x58] sm:$0xff] (%p1636_p12) }
 0x18d   : > { %1037 = vst [vmem:[%s970_s5 + $0x60] sm:$0xff] (%p1636_p12), %v1036_v22  ;;  %1039 = vst [vmem:[%s970_s5 + $0x78] sm:$0xff] (%p1636_p12), %v1038_v23  ;;  %v1040_v24 = vld [vmem:[%s1759_s25 + $0x30] sm:$0xff] (%p1636_p12)  ;;  %v1052_v30 = vld [vmem:[%s1759_s25 + $0x60] sm:$0xff] (%p1636_p12) }
 0x18e   : > { %1041 = vst [vmem:[%s970_s5 + $0x90] sm:$0xff] (%p1636_p12), %v1040_v24  ;;  %1045 = vst [vmem:[%s970_s5 + $0xc0] sm:$0xff] (%p1636_p12), %v1044_v26  ;;  %v1054_v31 = vld [vmem:[%s1759_s25 + $0x68] sm:$0xff] (%p1636_p12)  ;;  %v1056_v32 = vld [vmem:[%s1759_s25 + $0x70] sm:$0xff] (%p1636_p12) }
 0x18f   : > { %v1042_v25 = vld [vmem:[%s1759_s25 + $0x38] sm:$0xff] (%p1636_p12)  ;;  %1047 = vst [vmem:[%s970_s5 + $0xd8] sm:$0xff] (%p1636_p12), %v1046_v27  ;;  %1049 = vst [vmem:[%s970_s5 + $0xf0] sm:$0xff] (%p1636_p12), %v1048_v28 }
 0x190   : > { %1043 = vst [vmem:[%s970_s5 + $0xa8] sm:$0xff] %v1042_v25  ;;  %1051 = vst [vmem:[%s970_s5 + $0x108] sm:$0xff] %v1050_v29  ;;  %v1058_v33 = vld [vmem:[%s1759_s25 + $0x78] sm:$0xff] }
 0x191   : > { %1053 = vst [vmem:[%s970_s5 + $0x120] sm:$0xff] %v1052_v30  ;;  %1055 = vst [vmem:[%s970_s5 + $0x138] sm:$0xff] %v1054_v31 }
 0x192   : > { %1057 = vst [vmem:[%s970_s5 + $0x150] sm:$0xff] %v1056_v32  ;;  %1059 = vst [vmem:[%s970_s5 + $0x168] sm:$0xff] %v1058_v33 }
 0x193 PF: > { %s13_s22 = sadd.s32 1, %s1519_s22   ;;  %s1948_s10 = sld [smem:[#allocation5_spill]] }
 0x194   : > { %p10_p6 = scmp.ge.s32.totalorder %s13_s22, 23   ;;  %s1949_s12 = smov %s1483_s13 }
 0x195   : > { %s1950_s13 = smov %s1634_s9  ;;  %s1951_s14 = smov %s1491_s15 }
 0x196   : > { %s1952_s15 = smov %s1631_s8  ;;  %s1953_s16 = smov %s1499_s17 }
 0x197   : > { %s1954_s17 = smov %s1617_s30  ;;  %s1955_s18 = smov %s1511_s20 }
 0x198   : > { %s1956_s19 = smov %s1515_s21  ;;  %s1957_s20 = smov %s1960_s24 }
 0x199   : > { %s1958_s21 = smov %s1948_s10  ;;  %12 = sbr.rel (!%p10_p6) target bundleno = 9 (0x9), region = 203 }

// kernel: demo_fcn_forward.12
= control target key start
LH: loop header
LB: loop body
LE: loop exit
PB: predicated region body
PF: predicated region fallthrough
CT: control target
= control target key end

     0   :  { %s2416_s0 = inlined_call_operand.vmem [shape: bf16[128,3456], index: 0, kind: input, shape index: {}]   ;;  %s2417_s1 = inlined_call_operand.vmem [shape: bf16[3456,256], index: 1, kind: input, shape index: {}]   ;;  %s2418_s2 = inlined_call_operand.vmem [shape: f32[1,256], index: 2, kind: input, shape index: {}]   ;;  %s2419_s3 = inlined_call_operand.vmem [shape: f32[128,256], index: 3, kind: output, shape index: {}]  }
   0x1   :  { %2421 = sst [smem:[#allocation6_spill]] %s2416_s0 }
   0x2   :  { %2422 = sst [smem:[#allocation7_spill]] %s2417_s1 }
   0x3   :  { %s1925_s12 = smov 0   ;;  %s1927_s13 = smov 0  }
   0x4   :  { %s1929_s14 = smov 0   ;;  %s1931_s15 = smov 0  }
   0x5   :  { %s1933_s16 = smov 0   ;;  %s1935_s17 = smov 0  }
   0x6   :  { %s1937_s18 = smov 0   ;;  %s1939_s19 = smov 0  }
   0x7   :  { %s1941_s20 = smov 0   ;;  %s1943_s21 = smov 0  }
   0x8   :  { %s1945_s22 = smov 0  }
   0x9 LB: > { %s1457_s23 = sadd.s32 4294967295, %s1902_s22   ;;  %s25_s24 = sadd.s32 1, %s1894_s20  ;;  %s1902_s22 = sphi %s1945_s22, %s13_s22   ;;  %s1898_s21 = sphi %s1943_s21, %s2439_s21   ;;  %s1894_s20 = sphi %s1941_s20, %s2438_s20   ;;  %s1890_s19 = sphi %s1939_s19, %s2437_s19   ;;  %s1886_s18 = sphi %s1937_s18, %s2436_s18   ;;  %s1882_s17 = sphi %s1935_s17, %s2435_s17   ;;  %s1878_s16 = sphi %s1933_s16, %s2434_s16   ;;  %s1874_s15 = sphi %s1931_s15, %s2433_s15   ;;  %s1870_s14 = sphi %s1929_s14, %s2432_s14   ;;  %s1866_s13 = sphi %s1927_s13, %s2431_s13   ;;  %s1862_s12 = sphi %s1925_s12, %s2430_s12  }
   0xa   : > { %p26_p0 = scmp.ge.s32.totalorder %s25_s24, 9  ;;  %s28_s25 = sadd.s32 1, %s1898_s21 }
   0xb   : > { %s41_s26 = sadd.s32 1, %s1882_s17  ;;  %p48_p1 = scmp.ne.s32.totalorder %s1882_s17, %s1878_s16 }
   0xc   : > { %s2441_s24 = smov (%p26_p0, %s25_s24), 0  ;;  %s2443_s25 = smov (!%p26_p0, %s28_s25), %s1898_s21 }
   0xd   : > { %s37_s27 = ssub.s32 %s1894_s20, %s2441_s24  ;;  %p49_p2 = scmp.eq.s32.totalorder %s1902_s22, 0 }
   0xe   : > { %p30_p3 = scmp.ge.s32.totalorder %s2443_s25, 2  ;;  %p39_p4 = scmp.eq.s32.totalorder %s37_s27, 0 }
   0xf   : > { %p1992_p5 = por %p49_p2, %p48_p1  ;;  %s69_s29 = sadd.s32 1, %s1874_s15 }
  0x10   : > { %s2445_s25 = smov (%p30_p3, %s2443_s25), 0  ;;  %p76_p6 = scmp.ne.s32.totalorder %s1874_s15, %s1870_s14 }
  0x11   : > { %2424 = sst [smem:[#allocation5_spill]] %s2445_s25  ;;  %s65_s4 = ssub.s32 %s1898_s21, %s2445_s25 }
  0x12   : > { %s2000_s30 = scalar_select %p39_p4, %s1882_s17, %s41_s26  }
  0x13   : > { %s66_s5 = sor.u32 %s65_s4, %s37_s27  ;;  %p121_p7 = scmp.eq.s32.totalorder %s65_s4, 0 }
  0x14   : > { %p67_p8 = scmp.eq.s32.totalorder %s66_s5, 0  ;;  %p2006_p9 = por %p76_p6, %p49_p2 }
  0x15   : > { %s123_s7 = sadd.s32 1, %s1866_s13  ;;  %p133_p10 = scmp.ne.s32.totalorder %s1866_s13, %s1862_s12 }
  0x16   : > { %s2014_s8 = scalar_select %p67_p8, %s1874_s15, %s69_s29  }
  0x17   : > { %s2017_s9 = scalar_select %p121_p7, %s1866_s13, %s123_s7  }
  0x18   : > { %p134_p11 = scmp.eq.s32.totalorder %s1457_s23, 17  ;;  %p1460_p13 = scmp.ge.s32.totalorder %s1902_s22, 18 }
  0x1a   : > { %p2019_p12 = por %p134_p11, %p133_p10  ;;  %156 = sbr.rel (%p1460_p13) target bundleno = 101 (0x65), region = 16 }
  0x21   : > { %159 = sbr.rel (!%p1992_p5) target bundleno = 60 (0x3c), region = 20  ;;  %s161_s11 = sand.u32 (%p1992_p5), 1, %s1882_s17  }
  0x22   : > { %s1553_s26 = smul.u32 (%p1992_p5), 12, %s1894_s20  ;;  %s2427_s0 = sld [smem:[#allocation6_spill]] (%p1992_p5) }
  0x23   : > { %s1667_s27 = smul.u32 (%p1992_p5), 192, %s161_s11 }
  0x25   : > { %s2036_s23 = scalar_lea.vmem (%p1992_p5), [#allocation2], %s1667_s27 }
  0x28   : > { %s2031_s5 = scalar_lea.vmem %s2427_s0, %s1553_s26 }
  0x29   : > { %v184_v0 = vld [vmem:[%s2031_s5] sm:$0xff]  ;;  %v186_v1 = vld [vmem:[%s2031_s5 + $0x6c] sm:$0xff]  ;;  %v188_v2 = vld [vmem:[%s2031_s5 + $0xd8] sm:$0xff] }
  0x2a   : > { %185 = vst [vmem:[%s2036_s23] sm:$0xff] %v184_v0  ;;  %187 = vst [vmem:[%s2036_s23 + $0xc] sm:$0xff] %v186_v1  ;;  %v190_v3 = vld [vmem:[%s2031_s5 + $0x144] sm:$0xff]  ;;  %v192_v4 = vld [vmem:[%s2031_s5 + $0x1b0] sm:$0xff] }
  0x2b   : > { %189 = vst [vmem:[%s2036_s23 + $0x18] sm:$0xff] %v188_v2  ;;  %v194_v5 = vld [vmem:[%s2031_s5 + $0x21c] sm:$0xff]  ;;  %191 = vst [vmem:[%s2036_s23 + $0x24] sm:$0xff] %v190_v3  ;;  %v196_v6 = vld [vmem:[%s2031_s5 + $0x288] sm:$0xff] }
  0x2c   : > { %193 = vst [vmem:[%s2036_s23 + $0x30] sm:$0xff] %v192_v4  ;;  %195 = vst [vmem:[%s2036_s23 + $0x3c] sm:$0xff] %v194_v5  ;;  %v198_v7 = vld [vmem:[%s2031_s5 + $0x2f4] sm:$0xff]  ;;  %v200_v8 = vld [vmem:[%s2031_s5 + $0x360] sm:$0xff] }
  0x2d   : > { %197 = vst [vmem:[%s2036_s23 + $0x48] sm:$0xff] %v196_v6  ;;  %199 = vst [vmem:[%s2036_s23 + $0x54] sm:$0xff] %v198_v7  ;;  %v202_v9 = vld [vmem:[%s2031_s5 + $0x3cc] sm:$0xff]  ;;  %v204_v10 = vld [vmem:[%s2031_s5 + $0x438] sm:$0xff] }
  0x2e   : > { %201 = vst [vmem:[%s2036_s23 + $0x60] sm:$0xff] %v200_v8  ;;  %v206_v11 = vld [vmem:[%s2031_s5 + $0x4a4] sm:$0xff]  ;;  %203 = vst [vmem:[%s2036_s23 + $0x6c] sm:$0xff] %v202_v9  ;;  %v208_v12 = vld [vmem:[%s2031_s5 + $0x510] sm:$0xff] }
  0x2f   : > { %205 = vst [vmem:[%s2036_s23 + $0x78] sm:$0xff] %v204_v10  ;;  %207 = vst [vmem:[%s2036_s23 + $0x84] sm:$0xff] %v206_v11  ;;  %v210_v13 = vld [vmem:[%s2031_s5 + $0x57c] sm:$0xff]  ;;  %v212_v14 = vld [vmem:[%s2031_s5 + $0x5e8] sm:$0xff] }
  0x30   : > { %209 = vst [vmem:[%s2036_s23 + $0x90] sm:$0xff] %v208_v12  ;;  %211 = vst [vmem:[%s2036_s23 + $0x9c] sm:$0xff] %v210_v13  ;;  %v214_v15 = vld [vmem:[%s2031_s5 + $0x654] sm:$0xff]  ;;  %v1462_v16 = vld [vmem:[%s2031_s5 + $0x8] sm:$0xf] }
  0x31   : > { %213 = vst [vmem:[%s2036_s23 + $0xa8] sm:$0xff] %v212_v14  ;;  %v1464_v17 = vld [vmem:[%s2031_s5 + $0x74] sm:$0xf]  ;;  %215 = vst [vmem:[%s2036_s23 + $0xb4] sm:$0xff] %v214_v15  ;;  %v1466_v18 = vld [vmem:[%s2031_s5 + $0xe0] sm:$0xf] }
  0x32   : > { %1463 = vst [vmem:[%s2036_s23 + $0x8] sm:$0xf] %v1462_v16  ;;  %1465 = vst [vmem:[%s2036_s23 + $0x14] sm:$0xf] %v1464_v17  ;;  %v1468_v19 = vld [vmem:[%s2031_s5 + $0x14c] sm:$0xf] }
  0x33   : > { %v1470_v20 = vld [vmem:[%s2031_s5 + $0x1b8] sm:$0xf]  ;;  %1467 = vst [vmem:[%s2036_s23 + $0x20] sm:$0xf] %v1466_v18  ;;  %1469 = vst [vmem:[%s2036_s23 + $0x2c] sm:$0xf] %v1468_v19 }
  0x34   : > { %1471 = vst [vmem:[%s2036_s23 + $0x38] sm:$0xf] %v1470_v20  ;;  %v1472_v21 = vld [vmem:[%s2031_s5 + $0x224] sm:$0xf]  ;;  %v1474_v22 = vld [vmem:[%s2031_s5 + $0x290] sm:$0xf] }
  0x35   : > { %v1476_v23 = vld [vmem:[%s2031_s5 + $0x2fc] sm:$0xf]  ;;  %1473 = vst [vmem:[%s2036_s23 + $0x44] sm:$0xf] %v1472_v21  ;;  %1475 = vst [vmem:[%s2036_s23 + $0x50] sm:$0xf] %v1474_v22 }
  0x36   : > { %1477 = vst [vmem:[%s2036_s23 + $0x5c] sm:$0xf] %v1476_v23  ;;  %v1478_v24 = vld [vmem:[%s2031_s5 + $0x368] sm:$0xf]  ;;  %v1480_v25 = vld [vmem:[%s2031_s5 + $0x3d4] sm:$0xf] }
  0x37   : > { %v1482_v26 = vld [vmem:[%s2031_s5 + $0x440] sm:$0xf]  ;;  %1479 = vst [vmem:[%s2036_s23 + $0x68] sm:$0xf] %v1478_v24  ;;  %1481 = vst [vmem:[%s2036_s23 + $0x74] sm:$0xf] %v1480_v25 }
  0x38   : > { %1483 = vst [vmem:[%s2036_s23 + $0x80] sm:$0xf] %v1482_v26  ;;  %v1484_v27 = vld [vmem:[%s2031_s5 + $0x4ac] sm:$0xf]  ;;  %v1486_v28 = vld [vmem:[%s2031_s5 + $0x518] sm:$0xf] }
  0x39   : > { %v1488_v29 = vld [vmem:[%s2031_s5 + $0x584] sm:$0xf]  ;;  %1485 = vst [vmem:[%s2036_s23 + $0x8c] sm:$0xf] %v1484_v27  ;;  %1487 = vst [vmem:[%s2036_s23 + $0x98] sm:$0xf] %v1486_v28 }
  0x3a   : > { %1489 = vst [vmem:[%s2036_s23 + $0xa4] sm:$0xf] %v1488_v29  ;;  %v1490_v30 = vld [vmem:[%s2031_s5 + $0x5f0] sm:$0xf]  ;;  %v1492_v31 = vld [vmem:[%s2031_s5 + $0x65c] sm:$0xf] }
  0x3b   : > { %1491 = vst [vmem:[%s2036_s23 + $0xb0] sm:$0xf] %v1490_v30  ;;  %1493 = vst [vmem:[%s2036_s23 + $0xbc] sm:$0xf] %v1492_v31 }
  0x3c PF: > { %260 = sbr.rel (!%p2006_p9) target bundleno = 101 (0x65), region = 46  ;;  %s262_s28 = sand.u32 (%p2006_p9), 1, %s1874_s15  }
  0x3d   : > { %s1554_s7 = smul.u32 (%p2006_p9), 96, %s1894_s20  ;;  %s2428_s1 = sld [smem:[#allocation7_spill]] (%p2006_p9) }
  0x3e   : > { %s1668_s11 = smul.u32 (%p2006_p9), 192, %s262_s28 }
  0x3f   : > { %s267_s26 = sadd.s32 (%p2006_p9), %s1898_s21, %s1554_s7 }
  0x40   : > { %s1495_s27 = sshll.u32 (%p2006_p9), %s267_s26, 2  ;;  %s2112_s6 = scalar_lea.vmem (%p2006_p9), [#allocation3], %s1668_s11 }
  0x43   : > { %s2107_s0 = scalar_lea.vmem %s2428_s1, %s1495_s27 }
  0x44   : > { %v285_v32 = vld [vmem:[%s2107_s0] sm:$0xf]  ;;  %v287_v33 = vld [vmem:[%s2107_s0 + $0x8] sm:$0xf]  ;;  %v289_v34 = vld [vmem:[%s2107_s0 + $0x10] sm:$0xf] }
  0x45   : > { %286 = vst [vmem:[%s2112_s6] sm:$0xf] %v285_v32  ;;  %288 = vst [vmem:[%s2112_s6 + $0x4] sm:$0xf] %v287_v33  ;;  %v291_v35 = vld [vmem:[%s2107_s0 + $0x18] sm:$0xf] }
  0x46   : > { %290 = vst [vmem:[%s2112_s6 + $0x8] sm:$0xf] %v289_v34  ;;  %v293_v36 = vld [vmem:[%s2107_s0 + $0x20] sm:$0xf]  ;;  %v295_v37 = vld [vmem:[%s2107_s0 + $0x28] sm:$0xf] }
  0x47   : > { %292 = vst [vmem:[%s2112_s6 + $0xc] sm:$0xf] %v291_v35  ;;  %294 = vst [vmem:[%s2112_s6 + $0x10] sm:$0xf] %v293_v36  ;;  %v297_v38 = vld [vmem:[%s2107_s0 + $0x30] sm:$0xf] }
  0x48   : > { %296 = vst [vmem:[%s2112_s6 + $0x14] sm:$0xf] %v295_v37  ;;  %v299_v39 = vld [vmem:[%s2107_s0 + $0x38] sm:$0xf]  ;;  %v301_v40 = vld [vmem:[%s2107_s0 + $0x40] sm:$0xf] }
  0x49   : > { %298 = vst [vmem:[%s2112_s6 + $0x18] sm:$0xf] %v297_v38  ;;  %300 = vst [vmem:[%s2112_s6 + $0x1c] sm:$0xf] %v299_v39  ;;  %v303_v41 = vld [vmem:[%s2107_s0 + $0x48] sm:$0xf] }
  0x4a   : > { %302 = vst [vmem:[%s2112_s6 + $0x20] sm:$0xf] %v301_v40  ;;  %v305_v42 = vld [vmem:[%s2107_s0 + $0x50] sm:$0xf]  ;;  %v307_v43 = vld [vmem:[%s2107_s0 + $0x58] sm:$0xf] }
  0x4b   : > { %304 = vst [vmem:[%s2112_s6 + $0x24] sm:$0xf] %v303_v41  ;;  %306 = vst [vmem:[%s2112_s6 + $0x28] sm:$0xf] %v305_v42  ;;  %v309_v44 = vld [vmem:[%s2107_s0 + $0x60] sm:$0xf] }
  0x4c   : > { %308 = vst [vmem:[%s2112_s6 + $0x2c] sm:$0xf] %v307_v43  ;;  %v311_v45 = vld [vmem:[%s2107_s0 + $0x68] sm:$0xf]  ;;  %v313_v46 = vld [vmem:[%s2107_s0 + $0x70] sm:$0xf] }
  0x4d   : > { %310 = vst [vmem:[%s2112_s6 + $0x30] sm:$0xf] %v309_v44  ;;  %312 = vst [vmem:[%s2112_s6 + $0x34] sm:$0xf] %v311_v45  ;;  %v315_v47 = vld [vmem:[%s2107_s0 + $0x78] sm:$0xf] }
  0x4e   : > { %314 = vst [vmem:[%s2112_s6 + $0x38] sm:$0xf] %v313_v46  ;;  %v317_v48 = vld [vmem:[%s2107_s0 + $0x80] sm:$0xf]  ;;  %v319_v49 = vld [vmem:[%s2107_s0 + $0x88] sm:$0xf] }
  0x4f   : > { %316 = vst [vmem:[%s2112_s6 + $0x3c] sm:$0xf] %v315_v47  ;;  %318 = vst [vmem:[%s2112_s6 + $0x40] sm:$0xf] %v317_v48  ;;  %v321_v50 = vld [vmem:[%s2107_s0 + $0x90] sm:$0xf] }
  0x50   : > { %320 = vst [vmem:[%s2112_s6 + $0x44] sm:$0xf] %v319_v49  ;;  %v323_v51 = vld [vmem:[%s2107_s0 + $0x98] sm:$0xf]  ;;  %v325_v52 = vld [vmem:[%s2107_s0 + $0xa0] sm:$0xf] }
  0x51   : > { %322 = vst [vmem:[%s2112_s6 + $0x48] sm:$0xf] %v321_v50  ;;  %324 = vst [vmem:[%s2112_s6 + $0x4c] sm:$0xf] %v323_v51  ;;  %v327_v53 = vld [vmem:[%s2107_s0 + $0xa8] sm:$0xf] }
  0x52   : > { %326 = vst [vmem:[%s2112_s6 + $0x50] sm:$0xf] %v325_v52  ;;  %v329_v54 = vld [vmem:[%s2107_s0 + $0xb0] sm:$0xf]  ;;  %v331_v55 = vld [vmem:[%s2107_s0 + $0xb8] sm:$0xf] }
  0x53   : > { %328 = vst [vmem:[%s2112_s6 + $0x54] sm:$0xf] %v327_v53  ;;  %330 = vst [vmem:[%s2112_s6 + $0x58] sm:$0xf] %v329_v54  ;;  %v333_v56 = vld [vmem:[%s2107_s0 + $0xc0] sm:$0xf] }
  0x54   : > { %332 = vst [vmem:[%s2112_s6 + $0x5c] sm:$0xf] %v331_v55  ;;  %v335_v57 = vld [vmem:[%s2107_s0 + $0xc8] sm:$0xf]  ;;  %v337_v58 = vld [vmem:[%s2107_s0 + $0xd0] sm:$0xf] }
  0x55   : > { %334 = vst [vmem:[%s2112_s6 + $0x60] sm:$0xf] %v333_v56  ;;  %336 = vst [vmem:[%s2112_s6 + $0x64] sm:$0xf] %v335_v57  ;;  %v339_v59 = vld [vmem:[%s2107_s0 + $0xd8] sm:$0xf] }
  0x56   : > { %338 = vst [vmem:[%s2112_s6 + $0x68] sm:$0xf] %v337_v58  ;;  %v341_v60 = vld [vmem:[%s2107_s0 + $0xe0] sm:$0xf]  ;;  %v343_v61 = vld [vmem:[%s2107_s0 + $0xe8] sm:$0xf] }
  0x57   : > { %340 = vst [vmem:[%s2112_s6 + $0x6c] sm:$0xf] %v339_v59  ;;  %342 = vst [vmem:[%s2112_s6 + $0x70] sm:$0xf] %v341_v60  ;;  %v345_v62 = vld [vmem:[%s2107_s0 + $0xf0] sm:$0xf] }
  0x58   : > { %344 = vst [vmem:[%s2112_s6 + $0x74] sm:$0xf] %v343_v61  ;;  %v347_v63 = vld [vmem:[%s2107_s0 + $0xf8] sm:$0xf]  ;;  %v349_v0 = vld [vmem:[%s2107_s0 + $0x100] sm:$0xf] }
  0x59   : > { %346 = vst [vmem:[%s2112_s6 + $0x78] sm:$0xf] %v345_v62  ;;  %348 = vst [vmem:[%s2112_s6 + $0x7c] sm:$0xf] %v347_v63  ;;  %v351_v1 = vld [vmem:[%s2107_s0 + $0x108] sm:$0xf] }
  0x5a   : > { %350 = vst [vmem:[%s2112_s6 + $0x80] sm:$0xf] %v349_v0  ;;  %v353_v2 = vld [vmem:[%s2107_s0 + $0x110] sm:$0xf]  ;;  %v355_v3 = vld [vmem:[%s2107_s0 + $0x118] sm:$0xf] }
  0x5b   : > { %352 = vst [vmem:[%s2112_s6 + $0x84] sm:$0xf] %v351_v1  ;;  %354 = vst [vmem:[%s2112_s6 + $0x88] sm:$0xf] %v353_v2  ;;  %v357_v4 = vld [vmem:[%s2107_s0 + $0x120] sm:$0xf] }
  0x5c   : > { %356 = vst [vmem:[%s2112_s6 + $0x8c] sm:$0xf] %v355_v3  ;;  %v359_v5 = vld [vmem:[%s2107_s0 + $0x128] sm:$0xf]  ;;  %v361_v6 = vld [vmem:[%s2107_s0 + $0x130] sm:$0xf] }
  0x5d   : > { %358 = vst [vmem:[%s2112_s6 + $0x90] sm:$0xf] %v357_v4  ;;  %360 = vst [vmem:[%s2112_s6 + $0x94] sm:$0xf] %v359_v5  ;;  %v363_v7 = vld [vmem:[%s2107_s0 + $0x138] sm:$0xf] }
  0x5e   : > { %362 = vst [vmem:[%s2112_s6 + $0x98] sm:$0xf] %v361_v6  ;;  %v365_v8 = vld [vmem:[%s2107_s0 + $0x140] sm:$0xf]  ;;  %v367_v9 = vld [vmem:[%s2107_s0 + $0x148] sm:$0xf] }
  0x5f   : > { %364 = vst [vmem:[%s2112_s6 + $0x9c] sm:$0xf] %v363_v7  ;;  %366 = vst [vmem:[%s2112_s6 + $0xa0] sm:$0xf] %v365_v8  ;;  %v369_v10 = vld [vmem:[%s2107_s0 + $0x150] sm:$0xf] }
  0x60   : > { %368 = vst [vmem:[%s2112_s6 + $0xa4] sm:$0xf] %v367_v9  ;;  %v371_v11 = vld [vmem:[%s2107_s0 + $0x158] sm:$0xf]  ;;  %v373_v12 = vld [vmem:[%s2107_s0 + $0x160] sm:$0xf] }
  0x61   : > { %370 = vst [vmem:[%s2112_s6 + $0xa8] sm:$0xf] %v369_v10  ;;  %372 = vst [vmem:[%s2112_s6 + $0xac] sm:$0xf] %v371_v11  ;;  %v375_v13 = vld [vmem:[%s2107_s0 + $0x168] sm:$0xf] }
  0x62   : > { %374 = vst [vmem:[%s2112_s6 + $0xb0] sm:$0xf] %v373_v12  ;;  %v377_v14 = vld [vmem:[%s2107_s0 + $0x170] sm:$0xf]  ;;  %v379_v15 = vld [vmem:[%s2107_s0 + $0x178] sm:$0xf] }
  0x63   : > { %376 = vst [vmem:[%s2112_s6 + $0xb4] sm:$0xf] %v375_v13  ;;  %378 = vst [vmem:[%s2112_s6 + $0xb8] sm:$0xf] %v377_v14 }
  0x64   : > { %380 = vst [vmem:[%s2112_s6 + $0xbc] sm:$0xf] %v379_v15 }
  0x65 PF: > { %p1496_p0 = scmp.ge.s32.totalorder %s1902_s22, 1  ;;  %p504_p1 = scmp.lt.s32.totalorder %s1902_s22, 19 }
  0x67   : > { %p505_p2 = pnand %p1496_p0, %p504_p1 }
  0x68   : > { %s511_s5 = sand.u32 (!%p505_p2), 1, %s1878_s16   ;;  %s518_s23 = sand.u32 (!%p505_p2), 1, %s1870_s14  }
  0x69   : > { %508 = sbr.rel (%p505_p2) target bundleno = 455 (0x1c7), region = 91  ;;  %s544_s0 = sand.u32 (!%p505_p2), 1, %s1862_s12  }
  0x6a   : > { %s1669_s28 = smul.u32 (!%p505_p2), 192, %s511_s5  ;;  %s1497_s11 = sshll.u32 (!%p505_p2), %s544_s0, 7 }
  0x6b   : > { %s1670_s7 = smul.u32 (!%p505_p2), 192, %s518_s23  ;;  %p550_p3 = scmp.lt.s32.totalorder (!%p505_p2), %s1890_s19, 1 }
  0x6c   : > { %s2220_s6 = scalar_lea.vmem (!%p505_p2), [#allocation2], %s1669_s28  ;;  %s2224_s25 = scalar_lea.vmem (!%p505_p2), [#allocation4], %s1497_s11 }
  0x6d   : > { %s2222_s1 = scalar_lea.vmem (!%p505_p2), [#allocation3], %s1670_s7  ;;  %p1498_p4 = scmp.ne.s32.totalorder (!%p505_p2), %s1886_s18, 0 }
  0x70   : > { %s2214_s26 = scalar_select %p550_p3, %s1890_s19, 1 }
  0x71   : > { %558 = sbr.rel (%p1498_p4) target bundleno = 122 (0x7a), region = 103  ;;  %v1904_v16 = vmov (!%p1498_p4), 0.0  }
  0x72   : > { %s552_s4 = scalar_lea.vmem %s2418_s2, %s2214_s26  ;;  %559 = vst [vmem:[%s2224_s25] sm:$0xff] (!%p1498_p4), %v1904_v16  ;;  %560 = vst [vmem:[%s2224_s25 + $0x8] sm:$0xff] (!%p1498_p4), %v1904_v16 }
  0x73   : > { %561 = vst [vmem:[%s2224_s25 + $0x10] sm:$0xff] (!%p1498_p4), %v1904_v16  ;;  %562 = vst [vmem:[%s2224_s25 + $0x18] sm:$0xff] (!%p1498_p4), %v1904_v16 }
  0x74   : > { %563 = vst [vmem:[%s2224_s25 + $0x20] sm:$0xff] (!%p1498_p4), %v1904_v16  ;;  %564 = vst [vmem:[%s2224_s25 + $0x28] sm:$0xff] (!%p1498_p4), %v1904_v16 }
  0x75   : > { %565 = vst [vmem:[%s2224_s25 + $0x30] sm:$0xff] (!%p1498_p4), %v1904_v16  ;;  %566 = vst [vmem:[%s2224_s25 + $0x38] sm:$0xff] (!%p1498_p4), %v1904_v16 }
  0x76   : > { %567 = vst [vmem:[%s2224_s25 + $0x40] sm:$0xff] (!%p1498_p4), %v1904_v16  ;;  %568 = vst [vmem:[%s2224_s25 + $0x48] sm:$0xff] (!%p1498_p4), %v1904_v16 }
  0x77   : > { %569 = vst [vmem:[%s2224_s25 + $0x50] sm:$0xff] (!%p1498_p4), %v1904_v16  ;;  %570 = vst [vmem:[%s2224_s25 + $0x58] sm:$0xff] (!%p1498_p4), %v1904_v16 }
  0x78   : > { %571 = vst [vmem:[%s2224_s25 + $0x60] sm:$0xff] %v1904_v16  ;;  %572 = vst [vmem:[%s2224_s25 + $0x68] sm:$0xff] %v1904_v16 }
  0x79   : > { %573 = vst [vmem:[%s2224_s25 + $0x70] sm:$0xff] %v1904_v16  ;;  %574 = vst [vmem:[%s2224_s25 + $0x78] sm:$0xff] %v1904_v16 }
  0x7a PF: > { %v1760_v17 = vld [vmem:[%s2222_s1 + $0x40] sm:$0xff]   ;;  %v1763_v20 = vld [vmem:[%s2222_s1 + $0x48] sm:$0xff]   ;;  %v1766_v23 = vld [vmem:[%s2222_s1 + $0x50] sm:$0xff]   ;;  %p1547_p5 = scmp.ne.s32.totalorder %s1886_s18, 8 }
  0x7b   : > { %v1761_v18 = vld [vmem:[%s2222_s1] sm:$0xff]   ;;  %1555 = vmatprep.subr.bf16.mxu0 %v1760_v17  ;;  %v1764_v21 = vld [vmem:[%s2222_s1 + $0x8] sm:$0xff]   ;;  %v1767_v24 = vld [vmem:[%s2222_s1 + $0x10] sm:$0xff]  }
  0x7c   : > { %v1762_v19 = vld [vmem:[%s2222_s1 + $0x80] sm:$0xff]   ;;  %1556 = vmatpush3.bf16.msra.mxu0 %v1761_v18  ;;  %v1765_v22 = vld [vmem:[%s2222_s1 + $0x88] sm:$0xff]   ;;  %v1768_v25 = vld [vmem:[%s2222_s1 + $0x90] sm:$0xff]  }
  0x7d   : > { %1635 = vmatprep.subr.bf16.mxu1 %v1762_v19  ;;  %1557 = vmatprep.subr.bf16.mxu0 %v1763_v20  ;;  %v1769_v26 = vld [vmem:[%s2222_s1 + $0x58] sm:$0xff]   ;;  %v1772_v29 = vld [vmem:[%s2222_s1 + $0x60] sm:$0xff]   ;;  %v1775_v32 = vld [vmem:[%s2222_s1 + $0x68] sm:$0xff]  }
  0x7e   : > { %1636 = vmatpush3.bf16.msra.mxu1 %v1762_v19  ;;  %v1770_v27 = vld [vmem:[%s2222_s1 + $0x18] sm:$0xff]   ;;  %v1774_v30 = vld [vmem:[%s2222_s1 + $0xa0] sm:$0xff]   ;;  %v1777_v33 = vld [vmem:[%s2222_s1 + $0xa8] sm:$0xff]  }
  0x7f   : > { %1637 = vmatprep.subr.bf16.mxu1 %v1765_v22  ;;  %v1771_v28 = vld [vmem:[%s2222_s1 + $0x98] sm:$0xff]   ;;  %v1773_v31 = vld [vmem:[%s2222_s1 + $0x20] sm:$0xff]   ;;  %v1776_v34 = vld [vmem:[%s2222_s1 + $0x28] sm:$0xff]  }
  0x80   : > { %1558 = vmatpush3.bf16.msra.mxu0 %v1764_v21  ;;  %v1778_v35 = vld [vmem:[%s2222_s1 + $0x70] sm:$0xff]   ;;  %v1781_v38 = vld [vmem:[%s2222_s1 + $0x78] sm:$0xff]   ;;  %v1784_v43 = vld [vmem:[%s2220_s6] ss:$12 sps:$4 sm:$0xff]  }
  0x81   : > { %1559 = vmatprep.subr.bf16.mxu0 %v1766_v23  ;;  %v1779_v36 = vld [vmem:[%s2222_s1 + $0x30] sm:$0xff]   ;;  %v1783_v39 = vld [vmem:[%s2222_s1 + $0xb8] sm:$0xff]   ;;  %v1788_v45 = vld [vmem:[%s2220_s6 + $0x20] ss:$12 sps:$4 sm:$0xff]  }
  0x82   : > { %1638 = vmatpush3.bf16.msra.mxu1 %v1765_v22  ;;  %v1780_v37 = vld [vmem:[%s2222_s1 + $0xb0] sm:$0xff]   ;;  %v1782_v42 = vld [vmem:[%s2222_s1 + $0x38] sm:$0xff]   ;;  %v1804_v53 = vld [vmem:[%s2220_s6 + $0x80] ss:$12 sps:$4 sm:$0xff]  }
  0x83   : > { %1639 = vmatprep.subr.bf16.mxu1 %v1768_v25  ;;  %v1786_v40 = vld [vmem:[%s2220_s6 + $0x4] ss:$12 sps:$4 sm:$0xff]   ;;  %v1787_v41 = vld [vmem:[%s2220_s6 + $0x8] ss:$12 sps:$4 sm:$0xff]   ;;  %v1797_v52 = vld [vmem:[%s2220_s6 + $0x4c] ss:$12 sps:$4 sm:$0xff]  }
  0x84   : > { %1560 = vmatpush3.bf16.msra.mxu0 %v1767_v24  ;;  %975 = vmatprep.mubr.bf16.mxu0 %v1786_v40  ;;  %v1789_v44 = vld [vmem:[%s2220_s6 + $0x1c] ss:$12 sps:$4 sm:$0xff]   ;;  %v1795_v46 = vld [vmem:[%s2220_s6 + $0x38] ss:$12 sps:$4 sm:$0xff]   ;;  %v1792_v48 = vld [vmem:[%s2220_s6 + $0x34] ss:$12 sps:$4 sm:$0xff]  }
  0x85   : > { %1561 = vmatprep.subr.bf16.mxu0 %v1769_v26  ;;  %1651 = vmatprep.mubr.bf16.mxu1 %v1787_v41  ;;  %v1791_v47 = vld [vmem:[%s2220_s6 + $0x18] ss:$12 sps:$4 sm:$0xff]   ;;  %v1796_v49 = vld [vmem:[%s2220_s6 + $0x50] ss:$12 sps:$4 sm:$0xff]   ;;  %v1803_v50 = vld [vmem:[%s2220_s6 + $0x68] ss:$12 sps:$4 sm:$0xff]  }
  0x86   : > { %1640 = vmatpush3.bf16.msra.mxu1 %v1768_v25  ;;  %v1794_v51 = vld [vmem:[%s2220_s6 + $0x30] ss:$12 sps:$4 sm:$0xff]   ;;  %v1811_v54 = vld [vmem:[%s2220_s6 + $0x98] ss:$12 sps:$4 sm:$0xff]   ;;  %v1799_v55 = vld [vmem:[%s2220_s6 + $0x48] ss:$12 sps:$4 sm:$0xff]  }
  0x87   : > { %1641 = vmatprep.subr.bf16.mxu1 %v1771_v28  ;;  %v1800_v56 = vld [vmem:[%s2220_s6 + $0x64] ss:$12 sps:$4 sm:$0xff]   ;;  %v1802_v58 = vld [vmem:[%s2220_s6 + $0x60] ss:$12 sps:$4 sm:$0xff]   ;;  %v1805_v59 = vld [vmem:[%s2220_s6 + $0x7c] ss:$12 sps:$4 sm:$0xff]  }
  0x88   : > { %1562 = vmatpush3.bf16.msra.mxu0 %v1770_v27  ;;  %v1812_v57 = vld [vmem:[%s2220_s6 + $0xb0] ss:$12 sps:$4 sm:$0xff]   ;;  %v1807_v60 = vld [vmem:[%s2220_s6 + $0x78] ss:$12 sps:$4 sm:$0xff]   ;;  %v1808_v61 = vld [vmem:[%s2220_s6 + $0x94] ss:$12 sps:$4 sm:$0xff]  }
  0x89   : > { %1563 = vmatprep.subr.bf16.mxu0 %v1772_v29  ;;  %v1810_v62 = vld [vmem:[%s2220_s6 + $0x90] ss:$12 sps:$4 sm:$0xff]   ;;  %v1813_v63 = vld [vmem:[%s2220_s6 + $0xac] ss:$12 sps:$4 sm:$0xff]   ;;  %v1815_v0 = vld [vmem:[%s2220_s6 + $0xa8] ss:$12 sps:$4 sm:$0xff]  }
  0x8a   : > { %1642 = vmatpush3.bf16.msra.mxu1 %v1771_v28  ;;  %v575_v7 = vld [vmem:[%s2224_s25] sm:$0xff]  ;;  %v576_v12 = vld [vmem:[%s2224_s25 + $0x8] sm:$0xff]  ;;  %v577_v22 = vld [vmem:[%s2224_s25 + $0x10] sm:$0xff] }
  0x8b   : > { %1643 = vmatprep.subr.bf16.mxu1 %v1774_v30  ;;  %v578_v28 = vld [vmem:[%s2224_s25 + $0x18] sm:$0xff] }
  0x8c   : > { %1564 = vmatpush3.bf16.msra.mxu0 %v1773_v31 }
  0x8d   : > { %1565 = vmatprep.subr.bf16.mxu0 %v1775_v32 }
  0x8e   : > { %1644 = vmatpush3.bf16.msra.mxu1 %v1774_v30 }
  0x8f   : > { %1645 = vmatprep.subr.bf16.mxu1 %v1777_v33 }
  0x90   : > { %1566 = vmatpush3.bf16.msra.mxu0 %v1776_v34 }
  0x91   : > { %1567 = vmatprep.subr.bf16.mxu0 %v1778_v35 }
  0x92   : > { %1646 = vmatpush3.bf16.msra.mxu1 %v1777_v33 }
  0x93   : > { %1647 = vmatprep.subr.bf16.mxu1 %v1780_v37 }
  0x94   : > { %1568 = vmatpush3.bf16.msra.mxu0 %v1779_v36 }
  0x95   : > { %1569 = vmatprep.subr.bf16.mxu0 %v1781_v38 }
  0x96   : > { %1648 = vmatpush3.bf16.msra.mxu1 %v1780_v37 }
  0x97   : > { %1649 = vmatprep.subr.bf16.mxu1 %v1783_v39 }
  0x98   : > { %1570 = vmatpush3.bf16.msra.mxu0 %v1782_v42 }
  0x9a   : > { %1650 = vmatpush3.bf16.msra.mxu1 %v1783_v39  ;;  %v579_v39 = vld [vmem:[%s2224_s25 + $0x20] sm:$0xff] }
  0x9b   : > { %976 = vmatmul.mubr.bf16.vlgmr.msra.gmra.mrb[0].mxu0 %v1784_v43 }
  0x9c   : > { %983 = vmatprep.mubr.bf16.mxu0 %v1789_v44  ;;  %v580_v44 = vld [vmem:[%s2224_s25 + $0x28] sm:$0xff] }
  0x9d   : > { %1652 = vmatmul.mubr.bf16.vlgmr.msra.gmra.mrb[0].mxu1 %v1788_v45 }
  0x9e   : > { %1655 = vmatprep.mubr.bf16.mxu1 %v1795_v46 }
  0xa3   : > { %984 = vmatmul.mubr.bf16.gmra.mrb[4].mxu0 %v1791_v47 }
  0xa4   : > { %991 = vmatprep.mubr.bf16.mxu0 %v1792_v48 }
  0xa5   : > { %1656 = vmatmul.mubr.bf16.gmra.mrb[4].mxu1 %v1796_v49 }
  0xa6   : > { %1659 = vmatprep.mubr.bf16.mxu1 %v1803_v50 }
  0xab   : > { %992 = vmatmul.mubr.bf16.gmra.mrb[8].mxu0 %v1794_v51 }
  0xac   : > { %999 = vmatprep.mubr.bf16.mxu0 %v1797_v52 }
  0xad   : > { %1660 = vmatmul.mubr.bf16.gmra.mrb[8].mxu1 %v1804_v53 }
  0xae   : > { %1663 = vmatprep.mubr.bf16.mxu1 %v1811_v54  ;;  %v581_v54 = vld [vmem:[%s2224_s25 + $0x30] sm:$0xff] }
  0xb3   : > { %1000 = vmatmul.mubr.bf16.gmra.mrb[12].mxu0 %v1799_v55 }
  0xb4   : > { %1007 = vmatprep.mubr.bf16.mxu0 %v1800_v56 }
  0xb5   : > { %1664 = vmatmul.mubr.bf16.gmra.mrb[12].mxu1 %v1812_v57 }
  0xbb   : > { %1008 = vmatmul.mubr.bf16.gmra.mrb[16].mxu0 %v1802_v58 }
  0xbc   : > { %1015 = vmatprep.mubr.bf16.mxu0 %v1805_v59 }
  0xc3   : > { %1016 = vmatmul.mubr.bf16.gmra.mrb[20].mxu0 %v1807_v60  ;;  %v582_v60 = vld [vmem:[%s2224_s25 + $0x38] sm:$0xff] }
  0xc4   : > { %1023 = vmatprep.mubr.bf16.mxu0 %v1808_v61 }
  0xcb   : > { %1024 = vmatmul.mubr.bf16.gmra.mrb[24].mxu0 %v1810_v62 }
  0xcc   : > { %1031 = vmatprep.mubr.bf16.mxu0 %v1813_v63 }
  0xd3   : > { %1032 = vmatmul.mubr.bf16.gmra.mrb[28].mxu0 %v1815_v0 }
 0x16e   : > { %v1571_v1 = vpop.f32.mrb[0].mxu0 }
 0x16f   : > { %v1572_v2 = vpop.f32.mrb[1].mxu0 }
 0x170   : > { %v1573_v3 = vadd.f32 %v1572_v2, %v1571_v1  ;;  %v1574_v4 = vpop.f32.mrb[2].mxu0  ;;  %v1653_v5 = vpop.f32.mrb[0].mxu1 }
 0x171   : > { %v1575_v6 = vpop.f32.mrb[3].mxu0  ;;  %v1074_v8 = vpop.f32.mrb[1].mxu1 }
 0x172   : > { %v1576_v9 = vadd.f32 %v1575_v6, %v1574_v4  ;;  %v1075_v10 = vadd.f32 %v1573_v3, %v1074_v8  ;;  %v1654_v11 = vpop.f32.mrb[2].mxu1  ;;  %v583_v6 = vld [vmem:[%s2224_s25 + $0x40] sm:$0xff] }
 0x173   : > { %v1077_v13 = vpop.f32.mrb[3].mxu1 }
 0x174   : > { %v1137_v14 = vadd.f32 %v1075_v10, %v575_v7  ;;  %v1078_v15 = vadd.f32 %v1576_v9, %v1077_v13  ;;  %v584_v9 = vld [vmem:[%s2224_s25 + $0x48] sm:$0xff] }
 0x176   : > { %1153 = vst [vmem:[%s2224_s25] sm:$0xff] %v1137_v14  ;;  %v1138_v16 = vadd.f32 %v1078_v15, %v576_v12  ;;  %v1577_v17 = vpop.f32.mrb[4].mxu0 }
 0x177   : > { %v1578_v18 = vpop.f32.mrb[5].mxu0 }
 0x178   : > { %1154 = vst [vmem:[%s2224_s25 + $0x8] sm:$0xff] %v1138_v16  ;;  %v1579_v19 = vadd.f32 %v1578_v18, %v1577_v17  ;;  %v1580_v20 = vpop.f32.mrb[6].mxu0  ;;  %v1657_v21 = vpop.f32.mrb[4].mxu1  ;;  %v585_v17 = vld [vmem:[%s2224_s25 + $0x50] sm:$0xff] }
 0x179   : > { %v1581_v23 = vpop.f32.mrb[7].mxu0  ;;  %v1090_v24 = vpop.f32.mrb[5].mxu1 }
 0x17a   : > { %v1083_v25 = vadd.f32 %v1653_v5, %v1579_v19  ;;  %v1582_v26 = vadd.f32 %v1581_v23, %v1580_v20  ;;  %v1658_v27 = vpop.f32.mrb[6].mxu1 }
 0x17b   : > { %v1093_v29 = vpop.f32.mrb[7].mxu1 }
 0x17c   : > { %v1139_v30 = vadd.f32 %v1083_v25, %v577_v22  ;;  %v1086_v31 = vadd.f32 %v1654_v11, %v1582_v26 }
 0x17e   : > { %1155 = vst [vmem:[%s2224_s25 + $0x10] sm:$0xff] %v1139_v30  ;;  %v1140_v32 = vadd.f32 %v1086_v31, %v578_v28  ;;  %v1583_v33 = vpop.f32.mrb[8].mxu0  ;;  %v587_v30 = vld [vmem:[%s2224_s25 + $0x60] sm:$0xff] }
 0x17f   : > { %v1584_v34 = vpop.f32.mrb[9].mxu0 }
 0x180   : > { %1156 = vst [vmem:[%s2224_s25 + $0x18] sm:$0xff] %v1140_v32  ;;  %v1585_v35 = vadd.f32 %v1584_v34, %v1583_v33  ;;  %v1586_v36 = vpop.f32.mrb[10].mxu0  ;;  %v1661_v37 = vpop.f32.mrb[8].mxu1  ;;  %v588_v33 = vld [vmem:[%s2224_s25 + $0x68] sm:$0xff] }
 0x181   : > { %v1587_v38 = vpop.f32.mrb[11].mxu0  ;;  %v1106_v40 = vpop.f32.mrb[9].mxu1 }
 0x182   : > { %v1588_v41 = vadd.f32 %v1587_v38, %v1586_v36  ;;  %v1091_v42 = vadd.f32 %v1585_v35, %v1090_v24  ;;  %v1662_v43 = vpop.f32.mrb[10].mxu1 }
 0x183   : > { %v1109_v45 = vpop.f32.mrb[11].mxu1 }
 0x184   : > { %v1141_v46 = vadd.f32 %v1091_v42, %v579_v39  ;;  %v1094_v47 = vadd.f32 %v1588_v41, %v1093_v29  ;;  %v589_v41 = vld [vmem:[%s2224_s25 + $0x70] sm:$0xff] }
 0x186   : > { %1157 = vst [vmem:[%s2224_s25 + $0x20] sm:$0xff] %v1141_v46  ;;  %v1142_v48 = vadd.f32 %v1094_v47, %v580_v44  ;;  %v1589_v49 = vpop.f32.mrb[12].mxu0 }
 0x187   : > { %v1590_v50 = vpop.f32.mrb[13].mxu0 }
 0x188   : > { %1158 = vst [vmem:[%s2224_s25 + $0x28] sm:$0xff] %v1142_v48  ;;  %v1591_v51 = vadd.f32 %v1590_v50, %v1589_v49  ;;  %v1592_v52 = vpop.f32.mrb[14].mxu0  ;;  %v1665_v53 = vpop.f32.mrb[12].mxu1  ;;  %v1173_v49 = vld [vmem:[%s2224_s25] sm:$0xff] (!%p1547_p5) }
 0x189   : > { %v1593_v55 = vpop.f32.mrb[15].mxu0  ;;  %v1122_v56 = vpop.f32.mrb[13].mxu1  ;;  %v1548_v50 = vld [vmem:[%s552_s4] ss:$0 sm:$0xff] (!%p1547_p5) }
 0x18a   : > { %v1099_v57 = vadd.f32 %v1657_v21, %v1591_v51  ;;  %v1594_v58 = vadd.f32 %v1593_v55, %v1592_v52  ;;  %v1666_v59 = vpop.f32.mrb[14].mxu1  ;;  %v586_v21 = vld [vmem:[%s2224_s25 + $0x58] sm:$0xff]  ;;  %v1174_v51 = vld [vmem:[%s2224_s25 + $0x8] sm:$0xff] (!%p1547_p5)  ;;  %v1196_v52 = vadd.f32 (!%p1547_p5), %v1548_v50, %v1173_v49 }
 0x18b   : > { %v1125_v61 = vpop.f32.mrb[15].mxu1  ;;  %v1176_v55 = vld [vmem:[%s2224_s25 + $0x18] sm:$0xff] (!%p1547_p5) }
 0x18c   : > { %v1143_v62 = vadd.f32 %v1099_v57, %v581_v54  ;;  %v1102_v63 = vadd.f32 %v1658_v27, %v1594_v58  ;;  %v1175_v54 = vld [vmem:[%s2224_s25 + $0x10] sm:$0xff] (!%p1547_p5)  ;;  %v1199_v58 = vadd.f32 (!%p1547_p5), %v1548_v50, %v1176_v55 }
 0x18d   : > { %v1198_v57 = vadd.f32 (!%p1547_p5), %v1548_v50, %v1175_v54 }
 0x18e   : > { %1159 = vst [vmem:[%s2224_s25 + $0x30] sm:$0xff] %v1143_v62  ;;  %v1144_v0 = vadd.f32 %v1102_v63, %v582_v60  ;;  %v1595_v1 = vpop.f32.mrb[16].mxu0  ;;  %v1212_v63 = vmax.f32 (!%p1547_p5), %v1196_v52, 0.0 }
 0x18f   : > { %v1596_v2 = vpop.f32.mrb[17].mxu0  ;;  %v1178_v60 = vld [vmem:[%s2224_s25 + $0x28] sm:$0xff] (!%p1547_p5) }
 0x190   : > { %1160 = vst [vmem:[%s2224_s25 + $0x38] sm:$0xff] %v1144_v0  ;;  %v1597_v3 = vadd.f32 %v1596_v2, %v1595_v1  ;;  %v1598_v4 = vpop.f32.mrb[18].mxu0  ;;  %v1201_v1 = vadd.f32 (!%p1547_p5), %v1548_v50, %v1178_v60  ;;  %1228 = vst [vmem:[%s2224_s25] sm:$0xff] (!%p1547_p5), %v1212_v63 }
 0x191   : > { %v1599_v5 = vpop.f32.mrb[19].mxu0 }
 0x192   : > { %v1600_v7 = vadd.f32 %v1599_v5, %v1598_v4  ;;  %v1107_v8 = vadd.f32 %v1597_v3, %v1106_v40 }
 0x194   : > { %v1145_v10 = vadd.f32 %v1107_v8, %v583_v6  ;;  %v1110_v11 = vadd.f32 %v1600_v7, %v1109_v45  ;;  %v590_v45 = vld [vmem:[%s2224_s25 + $0x78] sm:$0xff]  ;;  %v1214_v6 = vmax.f32 (!%p1547_p5), %v1198_v57, 0.0  ;;  %v1215_v7 = vmax.f32 (!%p1547_p5), %v1199_v58, 0.0 }
 0x196   : > { %1161 = vst [vmem:[%s2224_s25 + $0x40] sm:$0xff] %v1145_v10  ;;  %v1146_v12 = vadd.f32 %v1110_v11, %v584_v9  ;;  %v1601_v13 = vpop.f32.mrb[20].mxu0  ;;  %1230 = vst [vmem:[%s2224_s25 + $0x10] sm:$0xff] (!%p1547_p5), %v1214_v6 }
 0x197   : > { %v1602_v14 = vpop.f32.mrb[21].mxu0  ;;  %v1180_v62 = vld [vmem:[%s2224_s25 + $0x38] sm:$0xff] (!%p1547_p5)  ;;  %1231 = vst [vmem:[%s2224_s25 + $0x18] sm:$0xff] (!%p1547_p5), %v1215_v7 }
 0x198   : > { %1162 = vst [vmem:[%s2224_s25 + $0x48] sm:$0xff] %v1146_v12  ;;  %v1603_v15 = vadd.f32 %v1602_v14, %v1601_v13  ;;  %v1604_v16 = vpop.f32.mrb[22].mxu0  ;;  %v1203_v9 = vadd.f32 (!%p1547_p5), %v1548_v50, %v1180_v62  ;;  %v1217_v13 = vmax.f32 (!%p1547_p5), %v1201_v1, 0.0 }
 0x199   : > { %v1605_v18 = vpop.f32.mrb[23].mxu0 }
 0x19a   : > { %v1115_v19 = vadd.f32 %v1661_v37, %v1603_v15  ;;  %v1606_v20 = vadd.f32 %v1605_v18, %v1604_v16  ;;  %1233 = vst [vmem:[%s2224_s25 + $0x28] sm:$0xff] (!%p1547_p5), %v1217_v13 }
 0x19c   : > { %v1147_v22 = vadd.f32 %v1115_v19, %v585_v17  ;;  %v1118_v23 = vadd.f32 %v1662_v43, %v1606_v20  ;;  %v1219_v19 = vmax.f32 (!%p1547_p5), %v1203_v9, 0.0 }
 0x19d   : > { %v1181_v3 = vld [vmem:[%s2224_s25 + $0x40] sm:$0xff] (!%p1547_p5) }
 0x19e   : > { %1163 = vst [vmem:[%s2224_s25 + $0x50] sm:$0xff] %v1147_v22  ;;  %v1148_v24 = vadd.f32 %v1118_v23, %v586_v21  ;;  %v1607_v25 = vpop.f32.mrb[24].mxu0  ;;  %v1204_v15 = vadd.f32 (!%p1547_p5), %v1548_v50, %v1181_v3  ;;  %1235 = vst [vmem:[%s2224_s25 + $0x38] sm:$0xff] (!%p1547_p5), %v1219_v19 }
 0x19f   : > { %v1608_v26 = vpop.f32.mrb[25].mxu0  ;;  %v1182_v4 = vld [vmem:[%s2224_s25 + $0x48] sm:$0xff] (!%p1547_p5) }
 0x1a0   : > { %1164 = vst [vmem:[%s2224_s25 + $0x58] sm:$0xff] %v1148_v24  ;;  %v1609_v27 = vadd.f32 %v1608_v26, %v1607_v25  ;;  %v1610_v28 = vpop.f32.mrb[26].mxu0  ;;  %v1205_v16 = vadd.f32 (!%p1547_p5), %v1548_v50, %v1182_v4  ;;  %v1220_v23 = vmax.f32 (!%p1547_p5), %v1204_v15, 0.0 }
 0x1a1   : > { %v1611_v29 = vpop.f32.mrb[27].mxu0 }
 0x1a2   : > { %v1612_v31 = vadd.f32 %v1611_v29, %v1610_v28  ;;  %v1123_v32 = vadd.f32 %v1609_v27, %v1122_v56  ;;  %v1177_v56 = vld [vmem:[%s2224_s25 + $0x20] sm:$0xff] (!%p1547_p5)  ;;  %v1221_v24 = vmax.f32 (!%p1547_p5), %v1205_v16, 0.0  ;;  %1236 = vst [vmem:[%s2224_s25 + $0x40] sm:$0xff] (!%p1547_p5), %v1220_v23 }
 0x1a4   : > { %v1149_v34 = vadd.f32 %v1123_v32, %v587_v30  ;;  %v1126_v35 = vadd.f32 %v1612_v31, %v1125_v61  ;;  %v1179_v61 = vld [vmem:[%s2224_s25 + $0x30] sm:$0xff] (!%p1547_p5)  ;;  %1237 = vst [vmem:[%s2224_s25 + $0x48] sm:$0xff] (!%p1547_p5), %v1221_v24 }
 0x1a5   : > { %v1202_v2 = vadd.f32 (!%p1547_p5), %v1548_v50, %v1179_v61  ;;  %v1183_v5 = vld [vmem:[%s2224_s25 + $0x50] sm:$0xff] (!%p1547_p5) }
 0x1a6   : > { %1165 = vst [vmem:[%s2224_s25 + $0x60] sm:$0xff] %v1149_v34  ;;  %v1150_v36 = vadd.f32 %v1126_v35, %v588_v33  ;;  %v1613_v37 = vpop.f32.mrb[28].mxu0  ;;  %v1206_v20 = vadd.f32 (!%p1547_p5), %v1548_v50, %v1183_v5 }
 0x1a7   : > { %v1614_v38 = vpop.f32.mrb[29].mxu0  ;;  %v1184_v10 = vld [vmem:[%s2224_s25 + $0x58] sm:$0xff] (!%p1547_p5)  ;;  %v1218_v14 = vmax.f32 (!%p1547_p5), %v1202_v2, 0.0 }
 0x1a8   : > { %1166 = vst [vmem:[%s2224_s25 + $0x68] sm:$0xff] %v1150_v36  ;;  %v1615_v39 = vadd.f32 %v1614_v38, %v1613_v37  ;;  %v1616_v40 = vpop.f32.mrb[30].mxu0  ;;  %v1207_v21 = vadd.f32 (!%p1547_p5), %v1548_v50, %v1184_v10  ;;  %v1222_v27 = vmax.f32 (!%p1547_p5), %v1206_v20, 0.0 }
 0x1a9   : > { %v1617_v42 = vpop.f32.mrb[31].mxu0  ;;  %1234 = vst [vmem:[%s2224_s25 + $0x30] sm:$0xff] (!%p1547_p5), %v1218_v14 }
 0x1aa   : > { %v1131_v43 = vadd.f32 %v1665_v53, %v1615_v39  ;;  %v1618_v44 = vadd.f32 %v1617_v42, %v1616_v40  ;;  %1172 = sbr.rel (%p1547_p5) target bundleno = 445 (0x1bd), region = 107  ;;  %v1197_v53 = vadd.f32 (!%p1547_p5), %v1548_v50, %v1174_v51  ;;  %v1223_v28 = vmax.f32 (!%p1547_p5), %v1207_v21, 0.0  ;;  %1238 = vst [vmem:[%s2224_s25 + $0x50] sm:$0xff] (!%p1547_p5), %v1222_v27 }
 0x1ac   : > { %v1151_v46 = vadd.f32 %v1131_v43, %v589_v41  ;;  %v1134_v47 = vadd.f32 %v1666_v59, %v1618_v44  ;;  %v1200_v59 = vadd.f32 (!%p1547_p5), %v1548_v50, %v1177_v56  ;;  %v1213_v0 = vmax.f32 (!%p1547_p5), %v1197_v53, 0.0  ;;  %1239 = vst [vmem:[%s2224_s25 + $0x58] sm:$0xff] (!%p1547_p5), %v1223_v28 }
 0x1ad   : > { %v1185_v11 = vld [vmem:[%s2224_s25 + $0x60] sm:$0xff] (!%p1547_p5) }
 0x1ae   : > { %1167 = vst [vmem:[%s2224_s25 + $0x70] sm:$0xff] %v1151_v46  ;;  %v1152_v48 = vadd.f32 %v1134_v47, %v590_v45  ;;  %v1216_v8 = vmax.f32 (!%p1547_p5), %v1200_v59, 0.0  ;;  %1229 = vst [vmem:[%s2224_s25 + $0x8] sm:$0xff] (!%p1547_p5), %v1213_v0  ;;  %v1208_v22 = vadd.f32 (!%p1547_p5), %v1548_v50, %v1185_v11 }
 0x1af   : > { %v1186_v12 = vld [vmem:[%s2224_s25 + $0x68] sm:$0xff] (!%p1547_p5) }
 0x1b0   : > { %1168 = vst [vmem:[%s2224_s25 + $0x78] sm:$0xff] %v1152_v48  ;;  %1232 = vst [vmem:[%s2224_s25 + $0x20] sm:$0xff] (!%p1547_p5), %v1216_v8  ;;  %v1209_v25 = vadd.f32 (!%p1547_p5), %v1548_v50, %v1186_v12  ;;  %v1224_v29 = vmax.f32 (!%p1547_p5), %v1208_v22, 0.0 }
 0x1b2   : > { %v1225_v31 = vmax.f32 %v1209_v25, 0.0  ;;  %1240 = vst [vmem:[%s2224_s25 + $0x60] sm:$0xff] %v1224_v29 }
 0x1b4   : > { %1241 = vst [vmem:[%s2224_s25 + $0x68] sm:$0xff] %v1225_v31 }
 0x1b5   : > { %v1187_v17 = vld [vmem:[%s2224_s25 + $0x70] sm:$0xff] }
 0x1b6   : > { %v1210_v26 = vadd.f32 %v1548_v50, %v1187_v17 }
 0x1b7   : > { %v1188_v18 = vld [vmem:[%s2224_s25 + $0x78] sm:$0xff] }
 0x1b8   : > { %v1211_v30 = vadd.f32 %v1548_v50, %v1188_v18  ;;  %v1226_v32 = vmax.f32 %v1210_v26, 0.0 }
 0x1ba   : > { %v1227_v33 = vmax.f32 %v1211_v30, 0.0  ;;  %1242 = vst [vmem:[%s2224_s25 + $0x70] sm:$0xff] %v1226_v32 }
 0x1bc   : > { %1243 = vst [vmem:[%s2224_s25 + $0x78] sm:$0xff] %v1227_v33 }
 0x1bd PF: > { %1250 = sbr.rel (!%p2019_p12) target bundleno = 455 (0x1c7), region = 111  ;;  %s1550_s14 = sshll.u32 (%p2019_p12), %s1890_s19, 3  ;;  %v1313_v34 = vld [vmem:[%s2224_s25] sm:$0xff] (%p2019_p12)  ;;  %v1317_v36 = vld [vmem:[%s2224_s25 + $0x10] sm:$0xff] (%p2019_p12)  ;;  %v1319_v37 = vld [vmem:[%s2224_s25 + $0x18] sm:$0xff] (%p2019_p12) }
 0x1be   : > { %s1255_s5 = scalar_lea.vmem (%p2019_p12), %s2419_s3, %s1550_s14  ;;  %v1323_v39 = vld [vmem:[%s2224_s25 + $0x28] sm:$0xff] (%p2019_p12)  ;;  %v1325_v40 = vld [vmem:[%s2224_s25 + $0x30] sm:$0xff] (%p2019_p12)  ;;  %v1327_v41 = vld [vmem:[%s2224_s25 + $0x38] sm:$0xff] (%p2019_p12) }
 0x1bf   : > { %1314 = vst [vmem:[%s1255_s5] sm:$0xff] (%p2019_p12), %v1313_v34  ;;  %1318 = vst [vmem:[%s1255_s5 + $0x20] sm:$0xff] (%p2019_p12), %v1317_v36  ;;  %v1329_v42 = vld [vmem:[%s2224_s25 + $0x40] sm:$0xff] (%p2019_p12)  ;;  %v1331_v43 = vld [vmem:[%s2224_s25 + $0x48] sm:$0xff] (%p2019_p12) }
 0x1c0   : > { %1320 = vst [vmem:[%s1255_s5 + $0x30] sm:$0xff] (%p2019_p12), %v1319_v37  ;;  %1324 = vst [vmem:[%s1255_s5 + $0x50] sm:$0xff] (%p2019_p12), %v1323_v39  ;;  %v1333_v44 = vld [vmem:[%s2224_s25 + $0x50] sm:$0xff] (%p2019_p12)  ;;  %v1335_v45 = vld [vmem:[%s2224_s25 + $0x58] sm:$0xff] (%p2019_p12) }
 0x1c1   : > { %v1315_v35 = vld [vmem:[%s2224_s25 + $0x8] sm:$0xff] (%p2019_p12)  ;;  %1326 = vst [vmem:[%s1255_s5 + $0x60] sm:$0xff] (%p2019_p12), %v1325_v40  ;;  %1328 = vst [vmem:[%s1255_s5 + $0x70] sm:$0xff] (%p2019_p12), %v1327_v41  ;;  %v1337_v46 = vld [vmem:[%s2224_s25 + $0x60] sm:$0xff] (%p2019_p12) }
 0x1c2   : > { %1316 = vst [vmem:[%s1255_s5 + $0x10] sm:$0xff] (%p2019_p12), %v1315_v35  ;;  %1330 = vst [vmem:[%s1255_s5 + $0x80] sm:$0xff] (%p2019_p12), %v1329_v42  ;;  %v1339_v47 = vld [vmem:[%s2224_s25 + $0x68] sm:$0xff] (%p2019_p12)  ;;  %v1341_v48 = vld [vmem:[%s2224_s25 + $0x70] sm:$0xff] (%p2019_p12) }
 0x1c3   : > { %v1321_v38 = vld [vmem:[%s2224_s25 + $0x20] sm:$0xff] (%p2019_p12)  ;;  %1332 = vst [vmem:[%s1255_s5 + $0x90] sm:$0xff] (%p2019_p12), %v1331_v43  ;;  %1334 = vst [vmem:[%s1255_s5 + $0xa0] sm:$0xff] (%p2019_p12), %v1333_v44  ;;  %v1343_v49 = vld [vmem:[%s2224_s25 + $0x78] sm:$0xff] (%p2019_p12) }
 0x1c4   : > { %1322 = vst [vmem:[%s1255_s5 + $0x40] sm:$0xff] %v1321_v38  ;;  %1336 = vst [vmem:[%s1255_s5 + $0xb0] sm:$0xff] %v1335_v45 }
 0x1c5   : > { %1338 = vst [vmem:[%s1255_s5 + $0xc0] sm:$0xff] %v1337_v46  ;;  %1340 = vst [vmem:[%s1255_s5 + $0xd0] sm:$0xff] %v1339_v47 }
 0x1c6   : > { %1342 = vst [vmem:[%s1255_s5 + $0xe0] sm:$0xff] %v1341_v48  ;;  %1344 = vst [vmem:[%s1255_s5 + $0xf0] sm:$0xff] %v1343_v49 }
 0x1c7 PF: > { %s13_s22 = sadd.s32 1, %s1902_s22   ;;  %s2429_s10 = sld [smem:[#allocation5_spill]] }
 0x1c8   : > { %p10_p6 = scmp.ge.s32.totalorder %s13_s22, 20   ;;  %s2430_s12 = smov %s1866_s13 }
 0x1c9   : > { %s2431_s13 = smov %s2017_s9  ;;  %s2432_s14 = smov %s1874_s15 }
 0x1ca   : > { %s2433_s15 = smov %s2014_s8  ;;  %s2434_s16 = smov %s1882_s17 }
 0x1cb   : > { %s2435_s17 = smov %s2000_s30  ;;  %s2436_s18 = smov %s1894_s20 }
 0x1cc   : > { %s2437_s19 = smov %s1898_s21  ;;  %s2438_s20 = smov %s2441_s24 }
 0x1cd   : > { %s2439_s21 = smov %s2429_s10  ;;  %12 = sbr.rel (!%p10_p6) target bundleno = 9 (0x9), region = 197 }

// kernel: demo_fcn_forward.13
= control target key start
LH: loop header
LB: loop body
LE: loop exit
PB: predicated region body
PF: predicated region fallthrough
CT: control target
= control target key end

     0   :  { %s2416_s0 = inlined_call_operand.vmem [shape: bf16[128,2304], index: 0, kind: input, shape index: {}]   ;;  %s2417_s1 = inlined_call_operand.vmem [shape: bf16[2304,256], index: 1, kind: input, shape index: {}]   ;;  %s2418_s2 = inlined_call_operand.vmem [shape: f32[1,256], index: 2, kind: input, shape index: {}]   ;;  %s2419_s3 = inlined_call_operand.vmem [shape: f32[128,256], index: 3, kind: output, shape index: {}]  }
   0x1   :  { %2421 = sst [smem:[#allocation6_spill]] %s2416_s0 }
   0x2   :  { %2422 = sst [smem:[#allocation7_spill]] %s2417_s1 }
   0x3   :  { %s1925_s12 = smov 0   ;;  %s1927_s13 = smov 0  }
   0x4   :  { %s1929_s14 = smov 0   ;;  %s1931_s15 = smov 0  }
   0x5   :  { %s1933_s16 = smov 0   ;;  %s1935_s17 = smov 0  }
   0x6   :  { %s1937_s18 = smov 0   ;;  %s1939_s19 = smov 0  }
   0x7   :  { %s1941_s20 = smov 0   ;;  %s1943_s21 = smov 0  }
   0x8   :  { %s1945_s22 = smov 0  }
   0x9 LB: > { %s1457_s23 = sadd.s32 4294967295, %s1902_s22   ;;  %s25_s24 = sadd.s32 1, %s1894_s20  ;;  %s1902_s22 = sphi %s1945_s22, %s13_s22   ;;  %s1898_s21 = sphi %s1943_s21, %s2439_s21   ;;  %s1894_s20 = sphi %s1941_s20, %s2438_s20   ;;  %s1890_s19 = sphi %s1939_s19, %s2437_s19   ;;  %s1886_s18 = sphi %s1937_s18, %s2436_s18   ;;  %s1882_s17 = sphi %s1935_s17, %s2435_s17   ;;  %s1878_s16 = sphi %s1933_s16, %s2434_s16   ;;  %s1874_s15 = sphi %s1931_s15, %s2433_s15   ;;  %s1870_s14 = sphi %s1929_s14, %s2432_s14   ;;  %s1866_s13 = sphi %s1927_s13, %s2431_s13   ;;  %s1862_s12 = sphi %s1925_s12, %s2430_s12  }
   0xa   : > { %p26_p0 = scmp.ge.s32.totalorder %s25_s24, 6  ;;  %s28_s25 = sadd.s32 1, %s1898_s21 }
   0xb   : > { %s41_s26 = sadd.s32 1, %s1882_s17  ;;  %p48_p1 = scmp.ne.s32.totalorder %s1882_s17, %s1878_s16 }
   0xc   : > { %s2441_s24 = smov (%p26_p0, %s25_s24), 0  ;;  %s2443_s25 = smov (!%p26_p0, %s28_s25), %s1898_s21 }
   0xd   : > { %s37_s27 = ssub.s32 %s1894_s20, %s2441_s24  ;;  %p49_p2 = scmp.eq.s32.totalorder %s1902_s22, 0 }
   0xe   : > { %p30_p3 = scmp.ge.s32.totalorder %s2443_s25, 2  ;;  %p39_p4 = scmp.eq.s32.totalorder %s37_s27, 0 }
   0xf   : > { %p1992_p5 = por %p49_p2, %p48_p1  ;;  %s69_s29 = sadd.s32 1, %s1874_s15 }
  0x10   : > { %s2445_s25 = smov (%p30_p3, %s2443_s25), 0  ;;  %p76_p6 = scmp.ne.s32.totalorder %s1874_s15, %s1870_s14 }
  0x11   : > { %2424 = sst [smem:[#allocation5_spill]] %s2445_s25  ;;  %s65_s4 = ssub.s32 %s1898_s21, %s2445_s25 }
  0x12   : > { %s2000_s30 = scalar_select %p39_p4, %s1882_s17, %s41_s26  }
  0x13   : > { %s66_s5 = sor.u32 %s65_s4, %s37_s27  ;;  %p121_p7 = scmp.eq.s32.totalorder %s65_s4, 0 }
  0x14   : > { %p67_p8 = scmp.eq.s32.totalorder %s66_s5, 0  ;;  %p2006_p9 = por %p76_p6, %p49_p2 }
  0x15   : > { %s123_s7 = sadd.s32 1, %s1866_s13  ;;  %p133_p10 = scmp.ne.s32.totalorder %s1866_s13, %s1862_s12 }
  0x16   : > { %s2014_s8 = scalar_select %p67_p8, %s1874_s15, %s69_s29  }
  0x17   : > { %s2017_s9 = scalar_select %p121_p7, %s1866_s13, %s123_s7  }
  0x18   : > { %p134_p11 = scmp.eq.s32.totalorder %s1457_s23, 11  ;;  %p1460_p13 = scmp.ge.s32.totalorder %s1902_s22, 12 }
  0x1a   : > { %p2019_p12 = por %p134_p11, %p133_p10  ;;  %156 = sbr.rel (%p1460_p13) target bundleno = 101 (0x65), region = 16 }
  0x21   : > { %159 = sbr.rel (!%p1992_p5) target bundleno = 60 (0x3c), region = 20  ;;  %s161_s11 = sand.u32 (%p1992_p5), 1, %s1882_s17  }
  0x22   : > { %s1553_s26 = smul.u32 (%p1992_p5), 12, %s1894_s20  ;;  %s2427_s0 = sld [smem:[#allocation6_spill]] (%p1992_p5) }
  0x23   : > { %s1667_s27 = smul.u32 (%p1992_p5), 192, %s161_s11 }
  0x25   : > { %s2036_s23 = scalar_lea.vmem (%p1992_p5), [#allocation2], %s1667_s27 }
  0x28   : > { %s2031_s5 = scalar_lea.vmem %s2427_s0, %s1553_s26 }
  0x29   : > { %v184_v0 = vld [vmem:[%s2031_s5] sm:$0xff]  ;;  %v186_v1 = vld [vmem:[%s2031_s5 + $0x48] sm:$0xff]  ;;  %v188_v2 = vld [vmem:[%s2031_s5 + $0x90] sm:$0xff] }
  0x2a   : > { %185 = vst [vmem:[%s2036_s23] sm:$0xff] %v184_v0  ;;  %187 = vst [vmem:[%s2036_s23 + $0xc] sm:$0xff] %v186_v1  ;;  %v190_v3 = vld [vmem:[%s2031_s5 + $0xd8] sm:$0xff]  ;;  %v192_v4 = vld [vmem:[%s2031_s5 + $0x120] sm:$0xff] }
  0x2b   : > { %189 = vst [vmem:[%s2036_s23 + $0x18] sm:$0xff] %v188_v2  ;;  %v194_v5 = vld [vmem:[%s2031_s5 + $0x168] sm:$0xff]  ;;  %191 = vst [vmem:[%s2036_s23 + $0x24] sm:$0xff] %v190_v3  ;;  %v196_v6 = vld [vmem:[%s2031_s5 + $0x1b0] sm:$0xff] }
  0x2c   : > { %193 = vst [vmem:[%s2036_s23 + $0x30] sm:$0xff] %v192_v4  ;;  %195 = vst [vmem:[%s2036_s23 + $0x3c] sm:$0xff] %v194_v5  ;;  %v198_v7 = vld [vmem:[%s2031_s5 + $0x1f8] sm:$0xff]  ;;  %v200_v8 = vld [vmem:[%s2031_s5 + $0x240] sm:$0xff] }
  0x2d   : > { %197 = vst [vmem:[%s2036_s23 + $0x48] sm:$0xff] %v196_v6  ;;  %199 = vst [vmem:[%s2036_s23 + $0x54] sm:$0xff] %v198_v7  ;;  %v202_v9 = vld [vmem:[%s2031_s5 + $0x288] sm:$0xff]  ;;  %v204_v10 = vld [vmem:[%s2031_s5 + $0x2d0] sm:$0xff] }
  0x2e   : > { %201 = vst [vmem:[%s2036_s23 + $0x60] sm:$0xff] %v200_v8  ;;  %v206_v11 = vld [vmem:[%s2031_s5 + $0x318] sm:$0xff]  ;;  %203 = vst [vmem:[%s2036_s23 + $0x6c] sm:$0xff] %v202_v9  ;;  %v208_v12 = vld [vmem:[%s2031_s5 + $0x360] sm:$0xff] }
  0x2f   : > { %205 = vst [vmem:[%s2036_s23 + $0x78] sm:$0xff] %v204_v10  ;;  %207 = vst [vmem:[%s2036_s23 + $0x84] sm:$0xff] %v206_v11  ;;  %v210_v13 = vld [vmem:[%s2031_s5 + $0x3a8] sm:$0xff]  ;;  %v212_v14 = vld [vmem:[%s2031_s5 + $0x3f0] sm:$0xff] }
  0x30   : > { %209 = vst [vmem:[%s2036_s23 + $0x90] sm:$0xff] %v208_v12  ;;  %211 = vst [vmem:[%s2036_s23 + $0x9c] sm:$0xff] %v210_v13  ;;  %v214_v15 = vld [vmem:[%s2031_s5 + $0x438] sm:$0xff]  ;;  %v1462_v16 = vld [vmem:[%s2031_s5 + $0x8] sm:$0xf] }
  0x31   : > { %213 = vst [vmem:[%s2036_s23 + $0xa8] sm:$0xff] %v212_v14  ;;  %v1464_v17 = vld [vmem:[%s2031_s5 + $0x50] sm:$0xf]  ;;  %215 = vst [vmem:[%s2036_s23 + $0xb4] sm:$0xff] %v214_v15  ;;  %v1466_v18 = vld [vmem:[%s2031_s5 + $0x98] sm:$0xf] }
  0x32   : > { %1463 = vst [vmem:[%s2036_s23 + $0x8] sm:$0xf] %v1462_v16  ;;  %1465 = vst [vmem:[%s2036_s23 + $0x14] sm:$0xf] %v1464_v17  ;;  %v1468_v19 = vld [vmem:[%s2031_s5 + $0xe0] sm:$0xf] }
  0x33   : > { %v1470_v20 = vld [vmem:[%s2031_s5 + $0x128] sm:$0xf]  ;;  %1467 = vst [vmem:[%s2036_s23 + $0x20] sm:$0xf] %v1466_v18  ;;  %1469 = vst [vmem:[%s2036_s23 + $0x2c] sm:$0xf] %v1468_v19 }
  0x34   : > { %1471 = vst [vmem:[%s2036_s23 + $0x38] sm:$0xf] %v1470_v20  ;;  %v1472_v21 = vld [vmem:[%s2031_s5 + $0x170] sm:$0xf]  ;;  %v1474_v22 = vld [vmem:[%s2031_s5 + $0x1b8] sm:$0xf] }
  0x35   : > { %v1476_v23 = vld [vmem:[%s2031_s5 + $0x200] sm:$0xf]  ;;  %1473 = vst [vmem:[%s2036_s23 + $0x44] sm:$0xf] %v1472_v21  ;;  %1475 = vst [vmem:[%s2036_s23 + $0x50] sm:$0xf] %v1474_v22 }
  0x36   : > { %1477 = vst [vmem:[%s2036_s23 + $0x5c] sm:$0xf] %v1476_v23  ;;  %v1478_v24 = vld [vmem:[%s2031_s5 + $0x248] sm:$0xf]  ;;  %v1480_v25 = vld [vmem:[%s2031_s5 + $0x290] sm:$0xf] }
  0x37   : > { %v1482_v26 = vld [vmem:[%s2031_s5 + $0x2d8] sm:$0xf]  ;;  %1479 = vst [vmem:[%s2036_s23 + $0x68] sm:$0xf] %v1478_v24  ;;  %1481 = vst [vmem:[%s2036_s23 + $0x74] sm:$0xf] %v1480_v25 }
  0x38   : > { %1483 = vst [vmem:[%s2036_s23 + $0x80] sm:$0xf] %v1482_v26  ;;  %v1484_v27 = vld [vmem:[%s2031_s5 + $0x320] sm:$0xf]  ;;  %v1486_v28 = vld [vmem:[%s2031_s5 + $0x368] sm:$0xf] }
  0x39   : > { %v1488_v29 = vld [vmem:[%s2031_s5 + $0x3b0] sm:$0xf]  ;;  %1485 = vst [vmem:[%s2036_s23 + $0x8c] sm:$0xf] %v1484_v27  ;;  %1487 = vst [vmem:[%s2036_s23 + $0x98] sm:$0xf] %v1486_v28 }
  0x3a   : > { %1489 = vst [vmem:[%s2036_s23 + $0xa4] sm:$0xf] %v1488_v29  ;;  %v1490_v30 = vld [vmem:[%s2031_s5 + $0x3f8] sm:$0xf]  ;;  %v1492_v31 = vld [vmem:[%s2031_s5 + $0x440] sm:$0xf] }
  0x3b   : > { %1491 = vst [vmem:[%s2036_s23 + $0xb0] sm:$0xf] %v1490_v30  ;;  %1493 = vst [vmem:[%s2036_s23 + $0xbc] sm:$0xf] %v1492_v31 }
  0x3c PF: > { %260 = sbr.rel (!%p2006_p9) target bundleno = 101 (0x65), region = 46  ;;  %s262_s28 = sand.u32 (%p2006_p9), 1, %s1874_s15  }
  0x3d   : > { %s1554_s7 = smul.u32 (%p2006_p9), 96, %s1894_s20  ;;  %s2428_s1 = sld [smem:[#allocation7_spill]] (%p2006_p9) }
  0x3e   : > { %s1668_s11 = smul.u32 (%p2006_p9), 192, %s262_s28 }
  0x3f   : > { %s267_s26 = sadd.s32 (%p2006_p9), %s1898_s21, %s1554_s7 }
  0x40   : > { %s1495_s27 = sshll.u32 (%p2006_p9), %s267_s26, 2  ;;  %s2112_s6 = scalar_lea.vmem (%p2006_p9), [#allocation3], %s1668_s11 }
  0x43   : > { %s2107_s0 = scalar_lea.vmem %s2428_s1, %s1495_s27 }
  0x44   : > { %v285_v32 = vld [vmem:[%s2107_s0] sm:$0xf]  ;;  %v287_v33 = vld [vmem:[%s2107_s0 + $0x8] sm:$0xf]  ;;  %v289_v34 = vld [vmem:[%s2107_s0 + $0x10] sm:$0xf] }
  0x45   : > { %286 = vst [vmem:[%s2112_s6] sm:$0xf] %v285_v32  ;;  %288 = vst [vmem:[%s2112_s6 + $0x4] sm:$0xf] %v287_v33  ;;  %v291_v35 = vld [vmem:[%s2107_s0 + $0x18] sm:$0xf] }
  0x46   : > { %290 = vst [vmem:[%s2112_s6 + $0x8] sm:$0xf] %v289_v34  ;;  %v293_v36 = vld [vmem:[%s2107_s0 + $0x20] sm:$0xf]  ;;  %v295_v37 = vld [vmem:[%s2107_s0 + $0x28] sm:$0xf] }
  0x47   : > { %292 = vst [vmem:[%s2112_s6 + $0xc] sm:$0xf] %v291_v35  ;;  %294 = vst [vmem:[%s2112_s6 + $0x10] sm:$0xf] %v293_v36  ;;  %v297_v38 = vld [vmem:[%s2107_s0 + $0x30] sm:$0xf] }
  0x48   : > { %296 = vst [vmem:[%s2112_s6 + $0x14] sm:$0xf] %v295_v37  ;;  %v299_v39 = vld [vmem:[%s2107_s0 + $0x38] sm:$0xf]  ;;  %v301_v40 = vld [vmem:[%s2107_s0 + $0x40] sm:$0xf] }
  0x49   : > { %298 = vst [vmem:[%s2112_s6 + $0x18] sm:$0xf] %v297_v38  ;;  %300 = vst [vmem:[%s2112_s6 + $0x1c] sm:$0xf] %v299_v39  ;;  %v303_v41 = vld [vmem:[%s2107_s0 + $0x48] sm:$0xf] }
  0x4a   : > { %302 = vst [vmem:[%s2112_s6 + $0x20] sm:$0xf] %v301_v40  ;;  %v305_v42 = vld [vmem:[%s2107_s0 + $0x50] sm:$0xf]  ;;  %v307_v43 = vld [vmem:[%s2107_s0 + $0x58] sm:$0xf] }
  0x4b   : > { %304 = vst [vmem:[%s2112_s6 + $0x24] sm:$0xf] %v303_v41  ;;  %306 = vst [vmem:[%s2112_s6 + $0x28] sm:$0xf] %v305_v42  ;;  %v309_v44 = vld [vmem:[%s2107_s0 + $0x60] sm:$0xf] }
  0x4c   : > { %308 = vst [vmem:[%s2112_s6 + $0x2c] sm:$0xf] %v307_v43  ;;  %v311_v45 = vld [vmem:[%s2107_s0 + $0x68] sm:$0xf]  ;;  %v313_v46 = vld [vmem:[%s2107_s0 + $0x70] sm:$0xf] }
  0x4d   : > { %310 = vst [vmem:[%s2112_s6 + $0x30] sm:$0xf] %v309_v44  ;;  %312 = vst [vmem:[%s2112_s6 + $0x34] sm:$0xf] %v311_v45  ;;  %v315_v47 = vld [vmem:[%s2107_s0 + $0x78] sm:$0xf] }
  0x4e   : > { %314 = vst [vmem:[%s2112_s6 + $0x38] sm:$0xf] %v313_v46  ;;  %v317_v48 = vld [vmem:[%s2107_s0 + $0x80] sm:$0xf]  ;;  %v319_v49 = vld [vmem:[%s2107_s0 + $0x88] sm:$0xf] }
  0x4f   : > { %316 = vst [vmem:[%s2112_s6 + $0x3c] sm:$0xf] %v315_v47  ;;  %318 = vst [vmem:[%s2112_s6 + $0x40] sm:$0xf] %v317_v48  ;;  %v321_v50 = vld [vmem:[%s2107_s0 + $0x90] sm:$0xf] }
  0x50   : > { %320 = vst [vmem:[%s2112_s6 + $0x44] sm:$0xf] %v319_v49  ;;  %v323_v51 = vld [vmem:[%s2107_s0 + $0x98] sm:$0xf]  ;;  %v325_v52 = vld [vmem:[%s2107_s0 + $0xa0] sm:$0xf] }
  0x51   : > { %322 = vst [vmem:[%s2112_s6 + $0x48] sm:$0xf] %v321_v50  ;;  %324 = vst [vmem:[%s2112_s6 + $0x4c] sm:$0xf] %v323_v51  ;;  %v327_v53 = vld [vmem:[%s2107_s0 + $0xa8] sm:$0xf] }
  0x52   : > { %326 = vst [vmem:[%s2112_s6 + $0x50] sm:$0xf] %v325_v52  ;;  %v329_v54 = vld [vmem:[%s2107_s0 + $0xb0] sm:$0xf]  ;;  %v331_v55 = vld [vmem:[%s2107_s0 + $0xb8] sm:$0xf] }
  0x53   : > { %328 = vst [vmem:[%s2112_s6 + $0x54] sm:$0xf] %v327_v53  ;;  %330 = vst [vmem:[%s2112_s6 + $0x58] sm:$0xf] %v329_v54  ;;  %v333_v56 = vld [vmem:[%s2107_s0 + $0xc0] sm:$0xf] }
  0x54   : > { %332 = vst [vmem:[%s2112_s6 + $0x5c] sm:$0xf] %v331_v55  ;;  %v335_v57 = vld [vmem:[%s2107_s0 + $0xc8] sm:$0xf]  ;;  %v337_v58 = vld [vmem:[%s2107_s0 + $0xd0] sm:$0xf] }
  0x55   : > { %334 = vst [vmem:[%s2112_s6 + $0x60] sm:$0xf] %v333_v56  ;;  %336 = vst [vmem:[%s2112_s6 + $0x64] sm:$0xf] %v335_v57  ;;  %v339_v59 = vld [vmem:[%s2107_s0 + $0xd8] sm:$0xf] }
  0x56   : > { %338 = vst [vmem:[%s2112_s6 + $0x68] sm:$0xf] %v337_v58  ;;  %v341_v60 = vld [vmem:[%s2107_s0 + $0xe0] sm:$0xf]  ;;  %v343_v61 = vld [vmem:[%s2107_s0 + $0xe8] sm:$0xf] }
  0x57   : > { %340 = vst [vmem:[%s2112_s6 + $0x6c] sm:$0xf] %v339_v59  ;;  %342 = vst [vmem:[%s2112_s6 + $0x70] sm:$0xf] %v341_v60  ;;  %v345_v62 = vld [vmem:[%s2107_s0 + $0xf0] sm:$0xf] }
  0x58   : > { %344 = vst [vmem:[%s2112_s6 + $0x74] sm:$0xf] %v343_v61  ;;  %v347_v63 = vld [vmem:[%s2107_s0 + $0xf8] sm:$0xf]  ;;  %v349_v0 = vld [vmem:[%s2107_s0 + $0x100] sm:$0xf] }
  0x59   : > { %346 = vst [vmem:[%s2112_s6 + $0x78] sm:$0xf] %v345_v62  ;;  %348 = vst [vmem:[%s2112_s6 + $0x7c] sm:$0xf] %v347_v63  ;;  %v351_v1 = vld [vmem:[%s2107_s0 + $0x108] sm:$0xf] }
  0x5a   : > { %350 = vst [vmem:[%s2112_s6 + $0x80] sm:$0xf] %v349_v0  ;;  %v353_v2 = vld [vmem:[%s2107_s0 + $0x110] sm:$0xf]  ;;  %v355_v3 = vld [vmem:[%s2107_s0 + $0x118] sm:$0xf] }
  0x5b   : > { %352 = vst [vmem:[%s2112_s6 + $0x84] sm:$0xf] %v351_v1  ;;  %354 = vst [vmem:[%s2112_s6 + $0x88] sm:$0xf] %v353_v2  ;;  %v357_v4 = vld [vmem:[%s2107_s0 + $0x120] sm:$0xf] }
  0x5c   : > { %356 = vst [vmem:[%s2112_s6 + $0x8c] sm:$0xf] %v355_v3  ;;  %v359_v5 = vld [vmem:[%s2107_s0 + $0x128] sm:$0xf]  ;;  %v361_v6 = vld [vmem:[%s2107_s0 + $0x130] sm:$0xf] }
  0x5d   : > { %358 = vst [vmem:[%s2112_s6 + $0x90] sm:$0xf] %v357_v4  ;;  %360 = vst [vmem:[%s2112_s6 + $0x94] sm:$0xf] %v359_v5  ;;  %v363_v7 = vld [vmem:[%s2107_s0 + $0x138] sm:$0xf] }
  0x5e   : > { %362 = vst [vmem:[%s2112_s6 + $0x98] sm:$0xf] %v361_v6  ;;  %v365_v8 = vld [vmem:[%s2107_s0 + $0x140] sm:$0xf]  ;;  %v367_v9 = vld [vmem:[%s2107_s0 + $0x148] sm:$0xf] }
  0x5f   : > { %364 = vst [vmem:[%s2112_s6 + $0x9c] sm:$0xf] %v363_v7  ;;  %366 = vst [vmem:[%s2112_s6 + $0xa0] sm:$0xf] %v365_v8  ;;  %v369_v10 = vld [vmem:[%s2107_s0 + $0x150] sm:$0xf] }
  0x60   : > { %368 = vst [vmem:[%s2112_s6 + $0xa4] sm:$0xf] %v367_v9  ;;  %v371_v11 = vld [vmem:[%s2107_s0 + $0x158] sm:$0xf]  ;;  %v373_v12 = vld [vmem:[%s2107_s0 + $0x160] sm:$0xf] }
  0x61   : > { %370 = vst [vmem:[%s2112_s6 + $0xa8] sm:$0xf] %v369_v10  ;;  %372 = vst [vmem:[%s2112_s6 + $0xac] sm:$0xf] %v371_v11  ;;  %v375_v13 = vld [vmem:[%s2107_s0 + $0x168] sm:$0xf] }
  0x62   : > { %374 = vst [vmem:[%s2112_s6 + $0xb0] sm:$0xf] %v373_v12  ;;  %v377_v14 = vld [vmem:[%s2107_s0 + $0x170] sm:$0xf]  ;;  %v379_v15 = vld [vmem:[%s2107_s0 + $0x178] sm:$0xf] }
  0x63   : > { %376 = vst [vmem:[%s2112_s6 + $0xb4] sm:$0xf] %v375_v13  ;;  %378 = vst [vmem:[%s2112_s6 + $0xb8] sm:$0xf] %v377_v14 }
  0x64   : > { %380 = vst [vmem:[%s2112_s6 + $0xbc] sm:$0xf] %v379_v15 }
  0x65 PF: > { %p1496_p0 = scmp.ge.s32.totalorder %s1902_s22, 1  ;;  %p504_p1 = scmp.lt.s32.totalorder %s1902_s22, 13 }
  0x67   : > { %p505_p2 = pnand %p1496_p0, %p504_p1 }
  0x68   : > { %s511_s5 = sand.u32 (!%p505_p2), 1, %s1878_s16   ;;  %s518_s23 = sand.u32 (!%p505_p2), 1, %s1870_s14  }
  0x69   : > { %508 = sbr.rel (%p505_p2) target bundleno = 455 (0x1c7), region = 91  ;;  %s544_s0 = sand.u32 (!%p505_p2), 1, %s1862_s12  }
  0x6a   : > { %s1669_s28 = smul.u32 (!%p505_p2), 192, %s511_s5  ;;  %s1497_s11 = sshll.u32 (!%p505_p2), %s544_s0, 7 }
  0x6b   : > { %s1670_s7 = smul.u32 (!%p505_p2), 192, %s518_s23  ;;  %p550_p3 = scmp.lt.s32.totalorder (!%p505_p2), %s1890_s19, 1 }
  0x6c   : > { %s2220_s6 = scalar_lea.vmem (!%p505_p2), [#allocation2], %s1669_s28  ;;  %s2224_s25 = scalar_lea.vmem (!%p505_p2), [#allocation4], %s1497_s11 }
  0x6d   : > { %s2222_s1 = scalar_lea.vmem (!%p505_p2), [#allocation3], %s1670_s7  ;;  %p1498_p4 = scmp.ne.s32.totalorder (!%p505_p2), %s1886_s18, 0 }
  0x70   : > { %s2214_s26 = scalar_select %p550_p3, %s1890_s19, 1 }
  0x71   : > { %558 = sbr.rel (%p1498_p4) target bundleno = 122 (0x7a), region = 103  ;;  %v1904_v16 = vmov (!%p1498_p4), 0.0  }
  0x72   : > { %s552_s4 = scalar_lea.vmem %s2418_s2, %s2214_s26  ;;  %559 = vst [vmem:[%s2224_s25] sm:$0xff] (!%p1498_p4), %v1904_v16  ;;  %560 = vst [vmem:[%s2224_s25 + $0x8] sm:$0xff] (!%p1498_p4), %v1904_v16 }
  0x73   : > { %561 = vst [vmem:[%s2224_s25 + $0x10] sm:$0xff] (!%p1498_p4), %v1904_v16  ;;  %562 = vst [vmem:[%s2224_s25 + $0x18] sm:$0xff] (!%p1498_p4), %v1904_v16 }
  0x74   : > { %563 = vst [vmem:[%s2224_s25 + $0x20] sm:$0xff] (!%p1498_p4), %v1904_v16  ;;  %564 = vst [vmem:[%s2224_s25 + $0x28] sm:$0xff] (!%p1498_p4), %v1904_v16 }
  0x75   : > { %565 = vst [vmem:[%s2224_s25 + $0x30] sm:$0xff] (!%p1498_p4), %v1904_v16  ;;  %566 = vst [vmem:[%s2224_s25 + $0x38] sm:$0xff] (!%p1498_p4), %v1904_v16 }
  0x76   : > { %567 = vst [vmem:[%s2224_s25 + $0x40] sm:$0xff] (!%p1498_p4), %v1904_v16  ;;  %568 = vst [vmem:[%s2224_s25 + $0x48] sm:$0xff] (!%p1498_p4), %v1904_v16 }
  0x77   : > { %569 = vst [vmem:[%s2224_s25 + $0x50] sm:$0xff] (!%p1498_p4), %v1904_v16  ;;  %570 = vst [vmem:[%s2224_s25 + $0x58] sm:$0xff] (!%p1498_p4), %v1904_v16 }
  0x78   : > { %571 = vst [vmem:[%s2224_s25 + $0x60] sm:$0xff] %v1904_v16  ;;  %572 = vst [vmem:[%s2224_s25 + $0x68] sm:$0xff] %v1904_v16 }
  0x79   : > { %573 = vst [vmem:[%s2224_s25 + $0x70] sm:$0xff] %v1904_v16  ;;  %574 = vst [vmem:[%s2224_s25 + $0x78] sm:$0xff] %v1904_v16 }
  0x7a PF: > { %v1760_v17 = vld [vmem:[%s2222_s1 + $0x40] sm:$0xff]   ;;  %v1763_v20 = vld [vmem:[%s2222_s1 + $0x48] sm:$0xff]   ;;  %v1766_v23 = vld [vmem:[%s2222_s1 + $0x50] sm:$0xff]   ;;  %p1547_p5 = scmp.ne.s32.totalorder %s1886_s18, 5 }
  0x7b   : > { %v1761_v18 = vld [vmem:[%s2222_s1] sm:$0xff]   ;;  %1555 = vmatprep.subr.bf16.mxu0 %v1760_v17  ;;  %v1764_v21 = vld [vmem:[%s2222_s1 + $0x8] sm:$0xff]   ;;  %v1767_v24 = vld [vmem:[%s2222_s1 + $0x10] sm:$0xff]  }
  0x7c   : > { %v1762_v19 = vld [vmem:[%s2222_s1 + $0x80] sm:$0xff]   ;;  %1556 = vmatpush3.bf16.msra.mxu0 %v1761_v18  ;;  %v1765_v22 = vld [vmem:[%s2222_s1 + $0x88] sm:$0xff]   ;;  %v1768_v25 = vld [vmem:[%s2222_s1 + $0x90] sm:$0xff]  }
  0x7d   : > { %1635 = vmatprep.subr.bf16.mxu1 %v1762_v19  ;;  %1557 = vmatprep.subr.bf16.mxu0 %v1763_v20  ;;  %v1769_v26 = vld [vmem:[%s2222_s1 + $0x58] sm:$0xff]   ;;  %v1772_v29 = vld [vmem:[%s2222_s1 + $0x60] sm:$0xff]   ;;  %v1775_v32 = vld [vmem:[%s2222_s1 + $0x68] sm:$0xff]  }
  0x7e   : > { %1636 = vmatpush3.bf16.msra.mxu1 %v1762_v19  ;;  %v1770_v27 = vld [vmem:[%s2222_s1 + $0x18] sm:$0xff]   ;;  %v1774_v30 = vld [vmem:[%s2222_s1 + $0xa0] sm:$0xff]   ;;  %v1777_v33 = vld [vmem:[%s2222_s1 + $0xa8] sm:$0xff]  }
  0x7f   : > { %1637 = vmatprep.subr.bf16.mxu1 %v1765_v22  ;;  %v1771_v28 = vld [vmem:[%s2222_s1 + $0x98] sm:$0xff]   ;;  %v1773_v31 = vld [vmem:[%s2222_s1 + $0x20] sm:$0xff]   ;;  %v1776_v34 = vld [vmem:[%s2222_s1 + $0x28] sm:$0xff]  }
  0x80   : > { %1558 = vmatpush3.bf16.msra.mxu0 %v1764_v21  ;;  %v1778_v35 = vld [vmem:[%s2222_s1 + $0x70] sm:$0xff]   ;;  %v1781_v38 = vld [vmem:[%s2222_s1 + $0x78] sm:$0xff]   ;;  %v1784_v43 = vld [vmem:[%s2220_s6] ss:$12 sps:$4 sm:$0xff]  }
  0x81   : > { %1559 = vmatprep.subr.bf16.mxu0 %v1766_v23  ;;  %v1779_v36 = vld [vmem:[%s2222_s1 + $0x30] sm:$0xff]   ;;  %v1783_v39 = vld [vmem:[%s2222_s1 + $0xb8] sm:$0xff]   ;;  %v1788_v45 = vld [vmem:[%s2220_s6 + $0x20] ss:$12 sps:$4 sm:$0xff]  }
  0x82   : > { %1638 = vmatpush3.bf16.msra.mxu1 %v1765_v22  ;;  %v1780_v37 = vld [vmem:[%s2222_s1 + $0xb0] sm:$0xff]   ;;  %v1782_v42 = vld [vmem:[%s2222_s1 + $0x38] sm:$0xff]   ;;  %v1804_v53 = vld [vmem:[%s2220_s6 + $0x80] ss:$12 sps:$4 sm:$0xff]  }
  0x83   : > { %1639 = vmatprep.subr.bf16.mxu1 %v1768_v25  ;;  %v1786_v40 = vld [vmem:[%s2220_s6 + $0x4] ss:$12 sps:$4 sm:$0xff]   ;;  %v1787_v41 = vld [vmem:[%s2220_s6 + $0x8] ss:$12 sps:$4 sm:$0xff]   ;;  %v1797_v52 = vld [vmem:[%s2220_s6 + $0x4c] ss:$12 sps:$4 sm:$0xff]  }
  0x84   : > { %1560 = vmatpush3.bf16.msra.mxu0 %v1767_v24  ;;  %975 = vmatprep.mubr.bf16.mxu0 %v1786_v40  ;;  %v1789_v44 = vld [vmem:[%s2220_s6 + $0x1c] ss:$12 sps:$4 sm:$0xff]   ;;  %v1795_v46 = vld [vmem:[%s2220_s6 + $0x38] ss:$12 sps:$4 sm:$0xff]   ;;  %v1792_v48 = vld [vmem:[%s2220_s6 + $0x34] ss:$12 sps:$4 sm:$0xff]  }
  0x85   : > { %1561 = vmatprep.subr.bf16.mxu0 %v1769_v26  ;;  %1651 = vmatprep.mubr.bf16.mxu1 %v1787_v41  ;;  %v1791_v47 = vld [vmem:[%s2220_s6 + $0x18] ss:$12 sps:$4 sm:$0xff]   ;;  %v1796_v49 = vld [vmem:[%s2220_s6 + $0x50] ss:$12 sps:$4 sm:$0xff]   ;;  %v1803_v50 = vld [vmem:[%s2220_s6 + $0x68] ss:$12 sps:$4 sm:$0xff]  }
  0x86   : > { %1640 = vmatpush3.bf16.msra.mxu1 %v1768_v25  ;;  %v1794_v51 = vld [vmem:[%s2220_s6 + $0x30] ss:$12 sps:$4 sm:$0xff]   ;;  %v1811_v54 = vld [vmem:[%s2220_s6 + $0x98] ss:$12 sps:$4 sm:$0xff]   ;;  %v1799_v55 = vld [vmem:[%s2220_s6 + $0x48] ss:$12 sps:$4 sm:$0xff]  }
  0x87   : > { %1641 = vmatprep.subr.bf16.mxu1 %v1771_v28  ;;  %v1800_v56 = vld [vmem:[%s2220_s6 + $0x64] ss:$12 sps:$4 sm:$0xff]   ;;  %v1802_v58 = vld [vmem:[%s2220_s6 + $0x60] ss:$12 sps:$4 sm:$0xff]   ;;  %v1805_v59 = vld [vmem:[%s2220_s6 + $0x7c] ss:$12 sps:$4 sm:$0xff]  }
  0x88   : > { %1562 = vmatpush3.bf16.msra.mxu0 %v1770_v27  ;;  %v1812_v57 = vld [vmem:[%s2220_s6 + $0xb0] ss:$12 sps:$4 sm:$0xff]   ;;  %v1807_v60 = vld [vmem:[%s2220_s6 + $0x78] ss:$12 sps:$4 sm:$0xff]   ;;  %v1808_v61 = vld [vmem:[%s2220_s6 + $0x94] ss:$12 sps:$4 sm:$0xff]  }
  0x89   : > { %1563 = vmatprep.subr.bf16.mxu0 %v1772_v29  ;;  %v1810_v62 = vld [vmem:[%s2220_s6 + $0x90] ss:$12 sps:$4 sm:$0xff]   ;;  %v1813_v63 = vld [vmem:[%s2220_s6 + $0xac] ss:$12 sps:$4 sm:$0xff]   ;;  %v1815_v0 = vld [vmem:[%s2220_s6 + $0xa8] ss:$12 sps:$4 sm:$0xff]  }
  0x8a   : > { %1642 = vmatpush3.bf16.msra.mxu1 %v1771_v28  ;;  %v575_v7 = vld [vmem:[%s2224_s25] sm:$0xff]  ;;  %v576_v12 = vld [vmem:[%s2224_s25 + $0x8] sm:$0xff]  ;;  %v577_v22 = vld [vmem:[%s2224_s25 + $0x10] sm:$0xff] }
  0x8b   : > { %1643 = vmatprep.subr.bf16.mxu1 %v1774_v30  ;;  %v578_v28 = vld [vmem:[%s2224_s25 + $0x18] sm:$0xff] }
  0x8c   : > { %1564 = vmatpush3.bf16.msra.mxu0 %v1773_v31 }
  0x8d   : > { %1565 = vmatprep.subr.bf16.mxu0 %v1775_v32 }
  0x8e   : > { %1644 = vmatpush3.bf16.msra.mxu1 %v1774_v30 }
  0x8f   : > { %1645 = vmatprep.subr.bf16.mxu1 %v1777_v33 }
  0x90   : > { %1566 = vmatpush3.bf16.msra.mxu0 %v1776_v34 }
  0x91   : > { %1567 = vmatprep.subr.bf16.mxu0 %v1778_v35 }
  0x92   : > { %1646 = vmatpush3.bf16.msra.mxu1 %v1777_v33 }
  0x93   : > { %1647 = vmatprep.subr.bf16.mxu1 %v1780_v37 }
  0x94   : > { %1568 = vmatpush3.bf16.msra.mxu0 %v1779_v36 }
  0x95   : > { %1569 = vmatprep.subr.bf16.mxu0 %v1781_v38 }
  0x96   : > { %1648 = vmatpush3.bf16.msra.mxu1 %v1780_v37 }
  0x97   : > { %1649 = vmatprep.subr.bf16.mxu1 %v1783_v39 }
  0x98   : > { %1570 = vmatpush3.bf16.msra.mxu0 %v1782_v42 }
  0x9a   : > { %1650 = vmatpush3.bf16.msra.mxu1 %v1783_v39  ;;  %v579_v39 = vld [vmem:[%s2224_s25 + $0x20] sm:$0xff] }
  0x9b   : > { %976 = vmatmul.mubr.bf16.vlgmr.msra.gmra.mrb[0].mxu0 %v1784_v43 }
  0x9c   : > { %983 = vmatprep.mubr.bf16.mxu0 %v1789_v44  ;;  %v580_v44 = vld [vmem:[%s2224_s25 + $0x28] sm:$0xff] }
  0x9d   : > { %1652 = vmatmul.mubr.bf16.vlgmr.msra.gmra.mrb[0].mxu1 %v1788_v45 }
  0x9e   : > { %1655 = vmatprep.mubr.bf16.mxu1 %v1795_v46 }
  0xa3   : > { %984 = vmatmul.mubr.bf16.gmra.mrb[4].mxu0 %v1791_v47 }
  0xa4   : > { %991 = vmatprep.mubr.bf16.mxu0 %v1792_v48 }
  0xa5   : > { %1656 = vmatmul.mubr.bf16.gmra.mrb[4].mxu1 %v1796_v49 }
  0xa6   : > { %1659 = vmatprep.mubr.bf16.mxu1 %v1803_v50 }
  0xab   : > { %992 = vmatmul.mubr.bf16.gmra.mrb[8].mxu0 %v1794_v51 }
  0xac   : > { %999 = vmatprep.mubr.bf16.mxu0 %v1797_v52 }
  0xad   : > { %1660 = vmatmul.mubr.bf16.gmra.mrb[8].mxu1 %v1804_v53 }
  0xae   : > { %1663 = vmatprep.mubr.bf16.mxu1 %v1811_v54  ;;  %v581_v54 = vld [vmem:[%s2224_s25 + $0x30] sm:$0xff] }
  0xb3   : > { %1000 = vmatmul.mubr.bf16.gmra.mrb[12].mxu0 %v1799_v55 }
  0xb4   : > { %1007 = vmatprep.mubr.bf16.mxu0 %v1800_v56 }
  0xb5   : > { %1664 = vmatmul.mubr.bf16.gmra.mrb[12].mxu1 %v1812_v57 }
  0xbb   : > { %1008 = vmatmul.mubr.bf16.gmra.mrb[16].mxu0 %v1802_v58 }
  0xbc   : > { %1015 = vmatprep.mubr.bf16.mxu0 %v1805_v59 }
  0xc3   : > { %1016 = vmatmul.mubr.bf16.gmra.mrb[20].mxu0 %v1807_v60  ;;  %v582_v60 = vld [vmem:[%s2224_s25 + $0x38] sm:$0xff] }
  0xc4   : > { %1023 = vmatprep.mubr.bf16.mxu0 %v1808_v61 }
  0xcb   : > { %1024 = vmatmul.mubr.bf16.gmra.mrb[24].mxu0 %v1810_v62 }
  0xcc   : > { %1031 = vmatprep.mubr.bf16.mxu0 %v1813_v63 }
  0xd3   : > { %1032 = vmatmul.mubr.bf16.gmra.mrb[28].mxu0 %v1815_v0 }
 0x16e   : > { %v1571_v1 = vpop.f32.mrb[0].mxu0 }
 0x16f   : > { %v1572_v2 = vpop.f32.mrb[1].mxu0 }
 0x170   : > { %v1573_v3 = vadd.f32 %v1572_v2, %v1571_v1  ;;  %v1574_v4 = vpop.f32.mrb[2].mxu0  ;;  %v1653_v5 = vpop.f32.mrb[0].mxu1 }
 0x171   : > { %v1575_v6 = vpop.f32.mrb[3].mxu0  ;;  %v1074_v8 = vpop.f32.mrb[1].mxu1 }
 0x172   : > { %v1576_v9 = vadd.f32 %v1575_v6, %v1574_v4  ;;  %v1075_v10 = vadd.f32 %v1573_v3, %v1074_v8  ;;  %v1654_v11 = vpop.f32.mrb[2].mxu1  ;;  %v583_v6 = vld [vmem:[%s2224_s25 + $0x40] sm:$0xff] }
 0x173   : > { %v1077_v13 = vpop.f32.mrb[3].mxu1 }
 0x174   : > { %v1137_v14 = vadd.f32 %v1075_v10, %v575_v7  ;;  %v1078_v15 = vadd.f32 %v1576_v9, %v1077_v13  ;;  %v584_v9 = vld [vmem:[%s2224_s25 + $0x48] sm:$0xff] }
 0x176   : > { %1153 = vst [vmem:[%s2224_s25] sm:$0xff] %v1137_v14  ;;  %v1138_v16 = vadd.f32 %v1078_v15, %v576_v12  ;;  %v1577_v17 = vpop.f32.mrb[4].mxu0 }
 0x177   : > { %v1578_v18 = vpop.f32.mrb[5].mxu0 }
 0x178   : > { %1154 = vst [vmem:[%s2224_s25 + $0x8] sm:$0xff] %v1138_v16  ;;  %v1579_v19 = vadd.f32 %v1578_v18, %v1577_v17  ;;  %v1580_v20 = vpop.f32.mrb[6].mxu0  ;;  %v1657_v21 = vpop.f32.mrb[4].mxu1  ;;  %v585_v17 = vld [vmem:[%s2224_s25 + $0x50] sm:$0xff] }
 0x179   : > { %v1581_v23 = vpop.f32.mrb[7].mxu0  ;;  %v1090_v24 = vpop.f32.mrb[5].mxu1 }
 0x17a   : > { %v1083_v25 = vadd.f32 %v1653_v5, %v1579_v19  ;;  %v1582_v26 = vadd.f32 %v1581_v23, %v1580_v20  ;;  %v1658_v27 = vpop.f32.mrb[6].mxu1 }
 0x17b   : > { %v1093_v29 = vpop.f32.mrb[7].mxu1 }
 0x17c   : > { %v1139_v30 = vadd.f32 %v1083_v25, %v577_v22  ;;  %v1086_v31 = vadd.f32 %v1654_v11, %v1582_v26 }
 0x17e   : > { %1155 = vst [vmem:[%s2224_s25 + $0x10] sm:$0xff] %v1139_v30  ;;  %v1140_v32 = vadd.f32 %v1086_v31, %v578_v28  ;;  %v1583_v33 = vpop.f32.mrb[8].mxu0  ;;  %v587_v30 = vld [vmem:[%s2224_s25 + $0x60] sm:$0xff] }
 0x17f   : > { %v1584_v34 = vpop.f32.mrb[9].mxu0 }
 0x180   : > { %1156 = vst [vmem:[%s2224_s25 + $0x18] sm:$0xff] %v1140_v32  ;;  %v1585_v35 = vadd.f32 %v1584_v34, %v1583_v33  ;;  %v1586_v36 = vpop.f32.mrb[10].mxu0  ;;  %v1661_v37 = vpop.f32.mrb[8].mxu1  ;;  %v588_v33 = vld [vmem:[%s2224_s25 + $0x68] sm:$0xff] }
 0x181   : > { %v1587_v38 = vpop.f32.mrb[11].mxu0  ;;  %v1106_v40 = vpop.f32.mrb[9].mxu1 }
 0x182   : > { %v1588_v41 = vadd.f32 %v1587_v38, %v1586_v36  ;;  %v1091_v42 = vadd.f32 %v1585_v35, %v1090_v24  ;;  %v1662_v43 = vpop.f32.mrb[10].mxu1 }
 0x183   : > { %v1109_v45 = vpop.f32.mrb[11].mxu1 }
 0x184   : > { %v1141_v46 = vadd.f32 %v1091_v42, %v579_v39  ;;  %v1094_v47 = vadd.f32 %v1588_v41, %v1093_v29  ;;  %v589_v41 = vld [vmem:[%s2224_s25 + $0x70] sm:$0xff] }
 0x186   : > { %1157 = vst [vmem:[%s2224_s25 + $0x20] sm:$0xff] %v1141_v46  ;;  %v1142_v48 = vadd.f32 %v1094_v47, %v580_v44  ;;  %v1589_v49 = vpop.f32.mrb[12].mxu0 }
 0x187   : > { %v1590_v50 = vpop.f32.mrb[13].mxu0 }
 0x188   : > { %1158 = vst [vmem:[%s2224_s25 + $0x28] sm:$0xff] %v1142_v48  ;;  %v1591_v51 = vadd.f32 %v1590_v50, %v1589_v49  ;;  %v1592_v52 = vpop.f32.mrb[14].mxu0  ;;  %v1665_v53 = vpop.f32.mrb[12].mxu1  ;;  %v1173_v49 = vld [vmem:[%s2224_s25] sm:$0xff] (!%p1547_p5) }
 0x189   : > { %v1593_v55 = vpop.f32.mrb[15].mxu0  ;;  %v1122_v56 = vpop.f32.mrb[13].mxu1  ;;  %v1548_v50 = vld [vmem:[%s552_s4] ss:$0 sm:$0xff] (!%p1547_p5) }
 0x18a   : > { %v1099_v57 = vadd.f32 %v1657_v21, %v1591_v51  ;;  %v1594_v58 = vadd.f32 %v1593_v55, %v1592_v52  ;;  %v1666_v59 = vpop.f32.mrb[14].mxu1  ;;  %v586_v21 = vld [vmem:[%s2224_s25 + $0x58] sm:$0xff]  ;;  %v1174_v51 = vld [vmem:[%s2224_s25 + $0x8] sm:$0xff] (!%p1547_p5)  ;;  %v1196_v52 = vadd.f32 (!%p1547_p5), %v1548_v50, %v1173_v49 }
 0x18b   : > { %v1125_v61 = vpop.f32.mrb[15].mxu1  ;;  %v1176_v55 = vld [vmem:[%s2224_s25 + $0x18] sm:$0xff] (!%p1547_p5) }
 0x18c   : > { %v1143_v62 = vadd.f32 %v1099_v57, %v581_v54  ;;  %v1102_v63 = vadd.f32 %v1658_v27, %v1594_v58  ;;  %v1175_v54 = vld [vmem:[%s2224_s25 + $0x10] sm:$0xff] (!%p1547_p5)  ;;  %v1199_v58 = vadd.f32 (!%p1547_p5), %v1548_v50, %v1176_v55 }
 0x18d   : > { %v1198_v57 = vadd.f32 (!%p1547_p5), %v1548_v50, %v1175_v54 }
 0x18e   : > { %1159 = vst [vmem:[%s2224_s25 + $0x30] sm:$0xff] %v1143_v62  ;;  %v1144_v0 = vadd.f32 %v1102_v63, %v582_v60  ;;  %v1595_v1 = vpop.f32.mrb[16].mxu0  ;;  %v1212_v63 = vmax.f32 (!%p1547_p5), %v1196_v52, 0.0 }
 0x18f   : > { %v1596_v2 = vpop.f32.mrb[17].mxu0  ;;  %v1178_v60 = vld [vmem:[%s2224_s25 + $0x28] sm:$0xff] (!%p1547_p5) }
 0x190   : > { %1160 = vst [vmem:[%s2224_s25 + $0x38] sm:$0xff] %v1144_v0  ;;  %v1597_v3 = vadd.f32 %v1596_v2, %v1595_v1  ;;  %v1598_v4 = vpop.f32.mrb[18].mxu0  ;;  %v1201_v1 = vadd.f32 (!%p1547_p5), %v1548_v50, %v1178_v60  ;;  %1228 = vst [vmem:[%s2224_s25] sm:$0xff] (!%p1547_p5), %v1212_v63 }
 0x191   : > { %v1599_v5 = vpop.f32.mrb[19].mxu0 }
 0x192   : > { %v1600_v7 = vadd.f32 %v1599_v5, %v1598_v4  ;;  %v1107_v8 = vadd.f32 %v1597_v3, %v1106_v40 }
 0x194   : > { %v1145_v10 = vadd.f32 %v1107_v8, %v583_v6  ;;  %v1110_v11 = vadd.f32 %v1600_v7, %v1109_v45  ;;  %v590_v45 = vld [vmem:[%s2224_s25 + $0x78] sm:$0xff]  ;;  %v1214_v6 = vmax.f32 (!%p1547_p5), %v1198_v57, 0.0  ;;  %v1215_v7 = vmax.f32 (!%p1547_p5), %v1199_v58, 0.0 }
 0x196   : > { %1161 = vst [vmem:[%s2224_s25 + $0x40] sm:$0xff] %v1145_v10  ;;  %v1146_v12 = vadd.f32 %v1110_v11, %v584_v9  ;;  %v1601_v13 = vpop.f32.mrb[20].mxu0  ;;  %1230 = vst [vmem:[%s2224_s25 + $0x10] sm:$0xff] (!%p1547_p5), %v1214_v6 }
 0x197   : > { %v1602_v14 = vpop.f32.mrb[21].mxu0  ;;  %v1180_v62 = vld [vmem:[%s2224_s25 + $0x38] sm:$0xff] (!%p1547_p5)  ;;  %1231 = vst [vmem:[%s2224_s25 + $0x18] sm:$0xff] (!%p1547_p5), %v1215_v7 }
 0x198   : > { %1162 = vst [vmem:[%s2224_s25 + $0x48] sm:$0xff] %v1146_v12  ;;  %v1603_v15 = vadd.f32 %v1602_v14, %v1601_v13  ;;  %v1604_v16 = vpop.f32.mrb[22].mxu0  ;;  %v1203_v9 = vadd.f32 (!%p1547_p5), %v1548_v50, %v1180_v62  ;;  %v1217_v13 = vmax.f32 (!%p1547_p5), %v1201_v1, 0.0 }
 0x199   : > { %v1605_v18 = vpop.f32.mrb[23].mxu0 }
 0x19a   : > { %v1115_v19 = vadd.f32 %v1661_v37, %v1603_v15  ;;  %v1606_v20 = vadd.f32 %v1605_v18, %v1604_v16  ;;  %1233 = vst [vmem:[%s2224_s25 + $0x28] sm:$0xff] (!%p1547_p5), %v1217_v13 }
 0x19c   : > { %v1147_v22 = vadd.f32 %v1115_v19, %v585_v17  ;;  %v1118_v23 = vadd.f32 %v1662_v43, %v1606_v20  ;;  %v1219_v19 = vmax.f32 (!%p1547_p5), %v1203_v9, 0.0 }
 0x19d   : > { %v1181_v3 = vld [vmem:[%s2224_s25 + $0x40] sm:$0xff] (!%p1547_p5) }
 0x19e   : > { %1163 = vst [vmem:[%s2224_s25 + $0x50] sm:$0xff] %v1147_v22  ;;  %v1148_v24 = vadd.f32 %v1118_v23, %v586_v21  ;;  %v1607_v25 = vpop.f32.mrb[24].mxu0  ;;  %v1204_v15 = vadd.f32 (!%p1547_p5), %v1548_v50, %v1181_v3  ;;  %1235 = vst [vmem:[%s2224_s25 + $0x38] sm:$0xff] (!%p1547_p5), %v1219_v19 }
 0x19f   : > { %v1608_v26 = vpop.f32.mrb[25].mxu0  ;;  %v1182_v4 = vld [vmem:[%s2224_s25 + $0x48] sm:$0xff] (!%p1547_p5) }
 0x1a0   : > { %1164 = vst [vmem:[%s2224_s25 + $0x58] sm:$0xff] %v1148_v24  ;;  %v1609_v27 = vadd.f32 %v1608_v26, %v1607_v25  ;;  %v1610_v28 = vpop.f32.mrb[26].mxu0  ;;  %v1205_v16 = vadd.f32 (!%p1547_p5), %v1548_v50, %v1182_v4  ;;  %v1220_v23 = vmax.f32 (!%p1547_p5), %v1204_v15, 0.0 }
 0x1a1   : > { %v1611_v29 = vpop.f32.mrb[27].mxu0 }
 0x1a2   : > { %v1612_v31 = vadd.f32 %v1611_v29, %v1610_v28  ;;  %v1123_v32 = vadd.f32 %v1609_v27, %v1122_v56  ;;  %v1177_v56 = vld [vmem:[%s2224_s25 + $0x20] sm:$0xff] (!%p1547_p5)  ;;  %v1221_v24 = vmax.f32 (!%p1547_p5), %v1205_v16, 0.0  ;;  %1236 = vst [vmem:[%s2224_s25 + $0x40] sm:$0xff] (!%p1547_p5), %v1220_v23 }
 0x1a4   : > { %v1149_v34 = vadd.f32 %v1123_v32, %v587_v30  ;;  %v1126_v35 = vadd.f32 %v1612_v31, %v1125_v61  ;;  %v1179_v61 = vld [vmem:[%s2224_s25 + $0x30] sm:$0xff] (!%p1547_p5)  ;;  %1237 = vst [vmem:[%s2224_s25 + $0x48] sm:$0xff] (!%p1547_p5), %v1221_v24 }
 0x1a5   : > { %v1202_v2 = vadd.f32 (!%p1547_p5), %v1548_v50, %v1179_v61  ;;  %v1183_v5 = vld [vmem:[%s2224_s25 + $0x50] sm:$0xff] (!%p1547_p5) }
 0x1a6   : > { %1165 = vst [vmem:[%s2224_s25 + $0x60] sm:$0xff] %v1149_v34  ;;  %v1150_v36 = vadd.f32 %v1126_v35, %v588_v33  ;;  %v1613_v37 = vpop.f32.mrb[28].mxu0  ;;  %v1206_v20 = vadd.f32 (!%p1547_p5), %v1548_v50, %v1183_v5 }
 0x1a7   : > { %v1614_v38 = vpop.f32.mrb[29].mxu0  ;;  %v1184_v10 = vld [vmem:[%s2224_s25 + $0x58] sm:$0xff] (!%p1547_p5)  ;;  %v1218_v14 = vmax.f32 (!%p1547_p5), %v1202_v2, 0.0 }
 0x1a8   : > { %1166 = vst [vmem:[%s2224_s25 + $0x68] sm:$0xff] %v1150_v36  ;;  %v1615_v39 = vadd.f32 %v1614_v38, %v1613_v37  ;;  %v1616_v40 = vpop.f32.mrb[30].mxu0  ;;  %v1207_v21 = vadd.f32 (!%p1547_p5), %v1548_v50, %v1184_v10  ;;  %v1222_v27 = vmax.f32 (!%p1547_p5), %v1206_v20, 0.0 }
 0x1a9   : > { %v1617_v42 = vpop.f32.mrb[31].mxu0  ;;  %1234 = vst [vmem:[%s2224_s25 + $0x30] sm:$0xff] (!%p1547_p5), %v1218_v14 }
 0x1aa   : > { %v1131_v43 = vadd.f32 %v1665_v53, %v1615_v39  ;;  %v1618_v44 = vadd.f32 %v1617_v42, %v1616_v40  ;;  %1172 = sbr.rel (%p1547_p5) target bundleno = 445 (0x1bd), region = 107  ;;  %v1197_v53 = vadd.f32 (!%p1547_p5), %v1548_v50, %v1174_v51  ;;  %v1223_v28 = vmax.f32 (!%p1547_p5), %v1207_v21, 0.0  ;;  %1238 = vst [vmem:[%s2224_s25 + $0x50] sm:$0xff] (!%p1547_p5), %v1222_v27 }
 0x1ac   : > { %v1151_v46 = vadd.f32 %v1131_v43, %v589_v41  ;;  %v1134_v47 = vadd.f32 %v1666_v59, %v1618_v44  ;;  %v1200_v59 = vadd.f32 (!%p1547_p5), %v1548_v50, %v1177_v56  ;;  %v1213_v0 = vmax.f32 (!%p1547_p5), %v1197_v53, 0.0  ;;  %1239 = vst [vmem:[%s2224_s25 + $0x58] sm:$0xff] (!%p1547_p5), %v1223_v28 }
 0x1ad   : > { %v1185_v11 = vld [vmem:[%s2224_s25 + $0x60] sm:$0xff] (!%p1547_p5) }
 0x1ae   : > { %1167 = vst [vmem:[%s2224_s25 + $0x70] sm:$0xff] %v1151_v46  ;;  %v1152_v48 = vadd.f32 %v1134_v47, %v590_v45  ;;  %v1216_v8 = vmax.f32 (!%p1547_p5), %v1200_v59, 0.0  ;;  %1229 = vst [vmem:[%s2224_s25 + $0x8] sm:$0xff] (!%p1547_p5), %v1213_v0  ;;  %v1208_v22 = vadd.f32 (!%p1547_p5), %v1548_v50, %v1185_v11 }
 0x1af   : > { %v1186_v12 = vld [vmem:[%s2224_s25 + $0x68] sm:$0xff] (!%p1547_p5) }
 0x1b0   : > { %1168 = vst [vmem:[%s2224_s25 + $0x78] sm:$0xff] %v1152_v48  ;;  %1232 = vst [vmem:[%s2224_s25 + $0x20] sm:$0xff] (!%p1547_p5), %v1216_v8  ;;  %v1209_v25 = vadd.f32 (!%p1547_p5), %v1548_v50, %v1186_v12  ;;  %v1224_v29 = vmax.f32 (!%p1547_p5), %v1208_v22, 0.0 }
 0x1b2   : > { %v1225_v31 = vmax.f32 %v1209_v25, 0.0  ;;  %1240 = vst [vmem:[%s2224_s25 + $0x60] sm:$0xff] %v1224_v29 }
 0x1b4   : > { %1241 = vst [vmem:[%s2224_s25 + $0x68] sm:$0xff] %v1225_v31 }
 0x1b5   : > { %v1187_v17 = vld [vmem:[%s2224_s25 + $0x70] sm:$0xff] }
 0x1b6   : > { %v1210_v26 = vadd.f32 %v1548_v50, %v1187_v17 }
 0x1b7   : > { %v1188_v18 = vld [vmem:[%s2224_s25 + $0x78] sm:$0xff] }
 0x1b8   : > { %v1211_v30 = vadd.f32 %v1548_v50, %v1188_v18  ;;  %v1226_v32 = vmax.f32 %v1210_v26, 0.0 }
 0x1ba   : > { %v1227_v33 = vmax.f32 %v1211_v30, 0.0  ;;  %1242 = vst [vmem:[%s2224_s25 + $0x70] sm:$0xff] %v1226_v32 }
 0x1bc   : > { %1243 = vst [vmem:[%s2224_s25 + $0x78] sm:$0xff] %v1227_v33 }
 0x1bd PF: > { %1250 = sbr.rel (!%p2019_p12) target bundleno = 455 (0x1c7), region = 111  ;;  %s1550_s14 = sshll.u32 (%p2019_p12), %s1890_s19, 3  ;;  %v1313_v34 = vld [vmem:[%s2224_s25] sm:$0xff] (%p2019_p12)  ;;  %v1317_v36 = vld [vmem:[%s2224_s25 + $0x10] sm:$0xff] (%p2019_p12)  ;;  %v1319_v37 = vld [vmem:[%s2224_s25 + $0x18] sm:$0xff] (%p2019_p12) }
 0x1be   : > { %s1255_s5 = scalar_lea.vmem (%p2019_p12), %s2419_s3, %s1550_s14  ;;  %v1323_v39 = vld [vmem:[%s2224_s25 + $0x28] sm:$0xff] (%p2019_p12)  ;;  %v1325_v40 = vld [vmem:[%s2224_s25 + $0x30] sm:$0xff] (%p2019_p12)  ;;  %v1327_v41 = vld [vmem:[%s2224_s25 + $0x38] sm:$0xff] (%p2019_p12) }
 0x1bf   : > { %1314 = vst [vmem:[%s1255_s5] sm:$0xff] (%p2019_p12), %v1313_v34  ;;  %1318 = vst [vmem:[%s1255_s5 + $0x20] sm:$0xff] (%p2019_p12), %v1317_v36  ;;  %v1329_v42 = vld [vmem:[%s2224_s25 + $0x40] sm:$0xff] (%p2019_p12)  ;;  %v1331_v43 = vld [vmem:[%s2224_s25 + $0x48] sm:$0xff] (%p2019_p12) }
 0x1c0   : > { %1320 = vst [vmem:[%s1255_s5 + $0x30] sm:$0xff] (%p2019_p12), %v1319_v37  ;;  %1324 = vst [vmem:[%s1255_s5 + $0x50] sm:$0xff] (%p2019_p12), %v1323_v39  ;;  %v1333_v44 = vld [vmem:[%s2224_s25 + $0x50] sm:$0xff] (%p2019_p12)  ;;  %v1335_v45 = vld [vmem:[%s2224_s25 + $0x58] sm:$0xff] (%p2019_p12) }
 0x1c1   : > { %v1315_v35 = vld [vmem:[%s2224_s25 + $0x8] sm:$0xff] (%p2019_p12)  ;;  %1326 = vst [vmem:[%s1255_s5 + $0x60] sm:$0xff] (%p2019_p12), %v1325_v40  ;;  %1328 = vst [vmem:[%s1255_s5 + $0x70] sm:$0xff] (%p2019_p12), %v1327_v41  ;;  %v1337_v46 = vld [vmem:[%s2224_s25 + $0x60] sm:$0xff] (%p2019_p12) }
 0x1c2   : > { %1316 = vst [vmem:[%s1255_s5 + $0x10] sm:$0xff] (%p2019_p12), %v1315_v35  ;;  %1330 = vst [vmem:[%s1255_s5 + $0x80] sm:$0xff] (%p2019_p12), %v1329_v42  ;;  %v1339_v47 = vld [vmem:[%s2224_s25 + $0x68] sm:$0xff] (%p2019_p12)  ;;  %v1341_v48 = vld [vmem:[%s2224_s25 + $0x70] sm:$0xff] (%p2019_p12) }
 0x1c3   : > { %v1321_v38 = vld [vmem:[%s2224_s25 + $0x20] sm:$0xff] (%p2019_p12)  ;;  %1332 = vst [vmem:[%s1255_s5 + $0x90] sm:$0xff] (%p2019_p12), %v1331_v43  ;;  %1334 = vst [vmem:[%s1255_s5 + $0xa0] sm:$0xff] (%p2019_p12), %v1333_v44  ;;  %v1343_v49 = vld [vmem:[%s2224_s25 + $0x78] sm:$0xff] (%p2019_p12) }
 0x1c4   : > { %1322 = vst [vmem:[%s1255_s5 + $0x40] sm:$0xff] %v1321_v38  ;;  %1336 = vst [vmem:[%s1255_s5 + $0xb0] sm:$0xff] %v1335_v45 }
 0x1c5   : > { %1338 = vst [vmem:[%s1255_s5 + $0xc0] sm:$0xff] %v1337_v46  ;;  %1340 = vst [vmem:[%s1255_s5 + $0xd0] sm:$0xff] %v1339_v47 }
 0x1c6   : > { %1342 = vst [vmem:[%s1255_s5 + $0xe0] sm:$0xff] %v1341_v48  ;;  %1344 = vst [vmem:[%s1255_s5 + $0xf0] sm:$0xff] %v1343_v49 }
 0x1c7 PF: > { %s13_s22 = sadd.s32 1, %s1902_s22   ;;  %s2429_s10 = sld [smem:[#allocation5_spill]] }
 0x1c8   : > { %p10_p6 = scmp.ge.s32.totalorder %s13_s22, 14   ;;  %s2430_s12 = smov %s1866_s13 }
 0x1c9   : > { %s2431_s13 = smov %s2017_s9  ;;  %s2432_s14 = smov %s1874_s15 }
 0x1ca   : > { %s2433_s15 = smov %s2014_s8  ;;  %s2434_s16 = smov %s1882_s17 }
 0x1cb   : > { %s2435_s17 = smov %s2000_s30  ;;  %s2436_s18 = smov %s1894_s20 }
 0x1cc   : > { %s2437_s19 = smov %s1898_s21  ;;  %s2438_s20 = smov %s2441_s24 }
 0x1cd   : > { %s2439_s21 = smov %s2429_s10  ;;  %12 = sbr.rel (!%p10_p6) target bundleno = 9 (0x9), region = 197 }

</bundles_post_ra>
